<compile_context>
chip_gen: v5e
topology: v5e:2x2
jax: 0.10.0
libtpu: 0.0.40
codegen_flags: <defaults>
</compile_context>

<pallas_src>
import math
import functools

import jax
import jax.numpy as jnp
from jax import lax
from jax.experimental import pallas as pl
from jax.experimental.pallas import tpu as pltpu


# ----------------------------------------------------------------------------
# Math helpers (f32 elementwise; bf16 only as MXU operands)
# ----------------------------------------------------------------------------
def _layer_norm(x, g, b, eps=1e-5):
    mu = jnp.mean(x, axis=-1, keepdims=True)
    var = jnp.mean((x - mu) ** 2, axis=-1, keepdims=True)
    return (x - mu) * lax.rsqrt(var + eps) * g + b


def _mha(q, k, v, wo, bo, nhead, bt, tq, tk):
    """Multi-head attention for one batch tile.

    q: (bt*tq, D) f32, k/v: (bt*tk, D) f32 (already projected; softmax scale
    is pre-folded into the Q projection). wo: (D, D) bf16 input-major, bo f32.
    Attention is head-batched per batch element; the output projection is a
    single fused (bt*tq, D) @ (D, D) matmul.
    """
    D = q.shape[-1]
    hd = D // nhead
    per_b = []
    for i in range(bt):                                   # small static unroll
        qh = q[i * tq:(i + 1) * tq].reshape(tq, nhead, hd).astype(jnp.bfloat16)
        kh = k[i * tk:(i + 1) * tk].reshape(tk, nhead, hd).astype(jnp.bfloat16)
        vh = v[i * tk:(i + 1) * tk].reshape(tk, nhead, hd).astype(jnp.bfloat16)

        s = jnp.einsum("qhd,khd->hqk", qh, kh,
                       preferred_element_type=jnp.float32)        # (H, tq, tk)
        s = s - jnp.max(s, axis=-1, keepdims=True)
        p = jnp.exp(s)
        denom = jnp.sum(p, axis=-1, keepdims=True)
        inv = pl.reciprocal(denom, approx=True)                   # EUP slot
        inv = inv * (2.0 - denom * inv)                           # 1 NR step
        p = (p * inv).astype(jnp.bfloat16)

        # Output emitted in (q, h, hd) order -> merged heads need no transpose.
        o = jnp.einsum("hqk,khd->qhd", p, vh,
                       preferred_element_type=jnp.float32)        # (tq, H, hd)
        per_b.append(o.reshape(tq, D))

    o_all = per_b[0] if bt == 1 else jnp.concatenate(per_b, axis=0)
    return jnp.dot(o_all.astype(jnp.bfloat16), wo,
                   preferred_element_type=jnp.float32) + bo


# ----------------------------------------------------------------------------
# Fused decoder kernel: one grid step = one (batch tile, decoder layer)
# ----------------------------------------------------------------------------
def _fused_decoder_kernel(tgt_ref, memv_ref, memk_ref, qpos_ref,
                          sa_wqk_ref, sa_bqk_ref, sa_wv_ref, sa_bv_ref,
                          sa_wo_ref, sa_bo_ref,
                          ca_wq_ref, ca_bq_ref, ca_wk_ref, ca_bk_ref,
                          ca_wv_ref, ca_bv_ref, ca_wo_ref, ca_bo_ref,
                          w1_ref, b1_ref, w2_ref, b2_ref,
                          n1g_ref, n1b_ref, n2g_ref, n2b_ref, n3g_ref, n3b_ref,
                          fng_ref, fnb_ref,
                          out_ref, *, nhead, num_layers):
    l = pl.program_id(1)

    # Initialize the resident activation from tgt at the first layer.
    @pl.when(l == 0)
    def _():
        out_ref[...] = tgt_ref[...]

    Bt, T, D = out_ref.shape
    S = memv_ref.shape[1]
    bf16 = jnp.bfloat16

    x = out_ref[...].astype(jnp.float32).reshape(Bt * T, D)     # residual (f32)
    qpos = qpos_ref[...].astype(jnp.float32).reshape(Bt * T, D)
    memv = memv_ref[...].reshape(Bt * S, D)                     # bf16 operand
    memk = memk_ref[...].reshape(Bt * S, D)                     # bf16 (mem+pos)

    # --- self attention: q = k = x + query_pos, v = x  (post-norm DETR layer)
    q_src = (x + qpos).astype(bf16)
    qk = jnp.dot(q_src, sa_wqk_ref[...],
                 preferred_element_type=jnp.float32) + sa_bqk_ref[...]  # (BtT,2D)
    v = jnp.dot(x.astype(bf16), sa_wv_ref[...],
                preferred_element_type=jnp.float32) + sa_bv_ref[...]
    sa = _mha(qk[:, :D], qk[:, D:], v, sa_wo_ref[...], sa_bo_ref[...],
              nhead, Bt, T, T)
    x = _layer_norm(x + sa, n1g_ref[...], n1b_ref[...])

    # --- cross attention: q = x + query_pos, k = memory + pos, v = memory
    qc = jnp.dot((x + qpos).astype(bf16), ca_wq_ref[...],
                 preferred_element_type=jnp.float32) + ca_bq_ref[...]
    kc = jnp.dot(memk, ca_wk_ref[...],
                 preferred_element_type=jnp.float32) + ca_bk_ref[...]
    vc = jnp.dot(memv, ca_wv_ref[...],
                 preferred_element_type=jnp.float32) + ca_bv_ref[...]
    ca = _mha(qc, kc, vc, ca_wo_ref[...], ca_bo_ref[...], nhead, Bt, T, S)
    x = _layer_norm(x + ca, n2g_ref[...], n2b_ref[...])

    # --- FFN (ReLU), f32 accumulation / elementwise
    h = jnp.maximum(
        jnp.dot(x.astype(bf16), w1_ref[...],
                preferred_element_type=jnp.float32) + b1_ref[...], 0.0)
    ff = jnp.dot(h.astype(bf16), w2_ref[...],
                 preferred_element_type=jnp.float32) + b2_ref[...]
    x = _layer_norm(x + ff, n3g_ref[...], n3b_ref[...])

    # --- write back: final decoder norm fused into the last layer step
    @pl.when(l == num_layers - 1)
    def _():
        y = _layer_norm(x, fng_ref[...], fnb_ref[...])
        out_ref[...] = y.reshape(Bt, T, D).astype(out_ref.dtype)

    @pl.when(l < num_layers - 1)
    def _():
        out_ref[...] = x.reshape(Bt, T, D).astype(out_ref.dtype)


# ----------------------------------------------------------------------------
# Host-side parameter packing
# ----------------------------------------------------------------------------
def pack_params(params, nhead):
    """Stack per-layer PyTorch-layout params along a leading L axis,
    pre-transpose to input-major, fold the softmax scale into the Q
    projections, and store MXU weight matrices in bf16 (biases/norms f32)."""
    layers = params["layers"]
    D = layers[0][2].shape[0]                # out_proj.weight is (D, D)
    scale = 1.0 / math.sqrt(D // nhead)
    bf16 = jnp.bfloat16

    def stack(fn, dtype=None):
        w = jnp.stack([fn(lp) for lp in layers])
        return w.astype(dtype) if dtype is not None else w

    return [
        # self-attn: packed [Wq^T*scale | Wk^T], bqk (bq scaled), Wv^T, bv, Wo^T, bo
        stack(lambda lp: jnp.concatenate(
            [lp[0][0:D].T * scale, lp[0][D:2 * D].T], axis=1), bf16),
        stack(lambda lp: jnp.concatenate(
            [lp[1][:, 0:D] * scale, lp[1][:, D:2 * D]], axis=1)),
        stack(lambda lp: lp[0][2 * D:3 * D].T, bf16),
        stack(lambda lp: lp[1][:, 2 * D:3 * D]),
        stack(lambda lp: lp[2].T, bf16),
        stack(lambda lp: lp[3]),
        # cross-attn: Wq^T*scale, bq*scale, Wk^T, bk, Wv^T, bv, Wo^T, bo
        stack(lambda lp: lp[4][0:D].T * scale, bf16),
        stack(lambda lp: lp[5][:, 0:D] * scale),
        stack(lambda lp: lp[4][D:2 * D].T, bf16),
        stack(lambda lp: lp[5][:, D:2 * D]),
        stack(lambda lp: lp[4][2 * D:3 * D].T, bf16),
        stack(lambda lp: lp[5][:, 2 * D:3 * D]),
        stack(lambda lp: lp[6].T, bf16),
        stack(lambda lp: lp[7]),
        # FFN: W1^T (D,FF), b1, W2^T (FF,D), b2
        stack(lambda lp: lp[8].T, bf16),
        stack(lambda lp: lp[9]),
        stack(lambda lp: lp[10].T, bf16),
        stack(lambda lp: lp[11]),
        # norms 1..3 (f32)
        stack(lambda lp: lp[12]), stack(lambda lp: lp[13]),
        stack(lambda lp: lp[14]), stack(lambda lp: lp[15]),
        stack(lambda lp: lp[16]), stack(lambda lp: lp[17]),
    ]


# ----------------------------------------------------------------------------
# Host-side wrapper
# ----------------------------------------------------------------------------
def transformer_decoder(tgt, memory, query_pos, pos, params, nhead,
                        batch_tile=None):
    """Mirrors TransformerDecoder.forward with masks=None, return_intermediate=False.

    tgt: (T, B, D)  memory: (S, B, D)  query_pos: (T, B, D)  pos: (S, B, D)
    returns (1, T, B, D)  (== output.unsqueeze(0))
    """
    tgt_b = jnp.transpose(tgt, (1, 0, 2))
    mem_b = jnp.transpose(memory, (1, 0, 2))
    qpos_b = jnp.transpose(query_pos, (1, 0, 2))
    pos_b = jnp.transpose(pos, (1, 0, 2))

    B, T, D = tgt_b.shape
    S = mem_b.shape[1]
    L = len(params["layers"])
    assert D % nhead == 0

    if batch_tile is None:
        # Largest small divisor of B; sweep (v5e/v6e: up to 8, v7x: 2-4).
        batch_tile = next(bt for bt in (8, 4, 2, 1) if B % bt == 0)
    Bt = batch_tile
    assert B % Bt == 0

    # Hoist the layer-invariant cross-attn K input (memory + pos) out of the
    # layer loop; memory-side activations are only MXU operands -> stream bf16.
    memk_b = (mem_b + pos_b).astype(jnp.bfloat16)
    memv_b = mem_b.astype(jnp.bfloat16)

    stacked = pack_params(params, nhead)
    norm_g, norm_b = params["norm_g"], params["norm_b"]

    def act_spec(n, d):
        # constant in l => DMA'd once per batch tile, resident across layers
        return pl.BlockSpec((Bt, n, d), lambda b, l: (b, 0, 0))

    def layer_spec(w):
        nzeros = w.ndim - 1
        return pl.BlockSpec((None,) + w.shape[1:],
                            lambda b, l, _n=nzeros: (l,) + (0,) * _n)

    def const_spec(w):
        nd = w.ndim
        return pl.BlockSpec(w.shape, lambda b, l, _n=nd: (0,) * _n)

    in_specs = ([act_spec(T, D), act_spec(S, D), act_spec(S, D), act_spec(T, D)]
                + [layer_spec(w) for w in stacked]
                + [const_spec(norm_g), const_spec(norm_b)])

    out = pl.pallas_call(
        functools.partial(_fused_decoder_kernel, nhead=nhead, num_layers=L),
        out_shape=jax.ShapeDtypeStruct((B, T, D), tgt_b.dtype),
        grid=(B // Bt, L),
        in_specs=in_specs,
        # output block constant in l => activation stays resident in VMEM
        # across layers and is written to HBM once per batch tile.
        out_specs=pl.BlockSpec((Bt, T, D), lambda b, l: (b, 0, 0)),
        compiler_params=pltpu.CompilerParams(
            dimension_semantics=("parallel", "arbitrary"),
            # Raise the 32 MiB default scoped limit; 48 MiB leaves headroom on
            # v7x (64 MiB physical). Re-derive / raise on v5e/v6e (128 MiB) if
            # making the weight stack VMEM-resident.
            vmem_limit_bytes=48 * 1024 * 1024),
    )(tgt_b, memv_b, memk_b, qpos_b, *stacked, norm_g, norm_b)

    out = jnp.transpose(out, (1, 0, 2))   # back to (T, B, D)
    return out[None]                      # unsqueeze(0)


# ----------------------------------------------------------------------------
# Deterministic parameter init (PyTorch module layout)
# ----------------------------------------------------------------------------
def init_params(key, num_layers, d_model, dim_ff):
    layers = []
    for l in range(num_layers):
        ks = jax.random.split(jax.random.fold_in(key, l), 6)
        w = lambda k, shape: jax.random.normal(k, shape, jnp.float32) * 0.05
        lp = [
            w(ks[0], (3 * d_model, d_model)),            # self-attn in_proj_weight
            jnp.zeros((1, 3 * d_model), jnp.float32),    # self-attn in_proj_bias
            w(ks[1], (d_model, d_model)),                # self-attn out_proj.weight
            jnp.zeros((1, d_model), jnp.float32),        # self-attn out_proj.bias
            w(ks[2], (3 * d_model, d_model)),            # cross-attn in_proj_weight
            jnp.zeros((1, 3 * d_model), jnp.float32),
            w(ks[3], (d_model, d_model)),
            jnp.zeros((1, d_model), jnp.float32),
            w(ks[4], (dim_ff, d_model)),                 # linear1.weight
            jnp.zeros((1, dim_ff), jnp.float32),         # linear1.bias
            w(ks[5], (d_model, dim_ff)),                 # linear2.weight
            jnp.zeros((1, d_model), jnp.float32),        # linear2.bias
            jnp.ones((1, d_model), jnp.float32), jnp.zeros((1, d_model), jnp.float32),  # norm1
            jnp.ones((1, d_model), jnp.float32), jnp.zeros((1, d_model), jnp.float32),  # norm2
            jnp.ones((1, d_model), jnp.float32), jnp.zeros((1, d_model), jnp.float32),  # norm3
        ]
        layers.append(lp)
    return {"layers": layers,
            "norm_g": jnp.ones((1, d_model), jnp.float32),
            "norm_b": jnp.zeros((1, d_model), jnp.float32)}


# ----------------------------------------------------------------------------
# Pure-JAX reference (PyTorch-layout f32 weights, exact divide) for correctness
# ----------------------------------------------------------------------------
def _mha_ref(q_in, k_in, v_in, w_in, b_in, w_o, b_o, nhead):
    D = q_in.shape[-1]
    hd = D // nhead
    scale = 1.0 / math.sqrt(hd)
    wq, wk, wv = w_in[0:D, :], w_in[D:2 * D, :], w_in[2 * D:3 * D, :]
    bq, bk, bv = b_in[:, 0:D], b_in[:, D:2 * D], b_in[:, 2 * D:3 * D]
    Q = jnp.dot(q_in, wq.T) + bq
    K = jnp.dot(k_in, wk.T) + bk
    V = jnp.dot(v_in, wv.T) + bv
    out = jnp.zeros((q_in.shape[0], D), jnp.float32)
    for h in range(nhead):
        sl = slice(h * hd, (h + 1) * hd)
        s = jnp.dot(Q[:, sl], K[:, sl].T) * scale
        s = s - jnp.max(s, axis=-1, keepdims=True)
        p = jnp.exp(s)
        p = p / jnp.sum(p, axis=-1, keepdims=True)
        oh = jnp.dot(p, V[:, sl])
        out = out + jnp.dot(oh, w_o[:, sl].T)
    return out + b_o


def reference_decoder(tgt, memory, query_pos, pos, params, nhead):
    def one_layer(tgt1, mem1, qp1, p1, lp):
        (sa_win, sa_bin, sa_wo, sa_bo, ca_win, ca_bin, ca_wo, ca_bo,
         w1, b1, w2, b2, n1g, n1b, n2g, n2b, n3g, n3b) = lp
        q = tgt1 + qp1
        sa = _mha_ref(q, q, tgt1, sa_win, sa_bin, sa_wo, sa_bo, nhead)
        x = _layer_norm(tgt1 + sa, n1g, n1b)
        ca = _mha_ref(x + qp1, mem1 + p1, mem1, ca_win, ca_bin, ca_wo, ca_bo, nhead)
        x = _layer_norm(x + ca, n2g, n2b)
        h = jnp.maximum(jnp.dot(x, w1.T) + b1, 0.0)
        ff = jnp.dot(h, w2.T) + b2
        return _layer_norm(x + ff, n3g, n3b)

    tgt_b = jnp.transpose(tgt, (1, 0, 2))
    mem_b = jnp.transpose(memory, (1, 0, 2))
    qpos_b = jnp.transpose(query_pos, (1, 0, 2))
    pos_b = jnp.transpose(pos, (1, 0, 2))
    out = tgt_b
    for lp in params["layers"]:
        out = jax.vmap(lambda t, m, qp, p: one_layer(t, m, qp, p, lp))(
            out, mem_b, qpos_b, pos_b)
    out = jax.vmap(lambda x: _layer_norm(x, params["norm_g"], params["norm_b"]))(out)
    return jnp.transpose(out, (1, 0, 2))[None]


# ----------------------------------------------------------------------------
if __name__ == "__main__":
    key = jax.random.PRNGKey(0)
    B, T, S, D, H, FF, L = 2, 8, 16, 32, 4, 64, 2   # batch, queries, mem len, d_model, heads, ffn, layers

    k1, k2, k3, k4, kp = jax.random.split(key, 5)
    tgt = jax.random.normal(k1, (T, B, D), jnp.float32)        # (seq, batch, d_model)
    memory = jax.random.normal(k2, (S, B, D), jnp.float32)
    query_pos = jax.random.normal(k3, (T, B, D), jnp.float32)
    pos = jax.random.normal(k4, (S, B, D), jnp.float32)
    params = init_params(kp, L, D, FF)

    out = transformer_decoder(tgt, memory, query_pos, pos, params, nhead=H)
    out = jax.block_until_ready(out)
    assert out.shape == (1, T, B, D), out.shape

    ref = reference_decoder(tgt, memory, query_pos, pos, params, H)
    err = float(jnp.max(jnp.abs(out - ref)))
    # Tolerance accounts for bf16 MXU operands (weights/activations) in the
    # kernel vs the f32 reference; the softmax reciprocal is NR-refined.
    assert err < 5e-2, err

    print("KERNEL_OK")
</pallas_src>

<mosaic_0001>
module attributes {stable_mosaic.version = 11 : i64} {
  func.func @_fused_decoder_kernel(%arg0: i32, %arg1: i32, %arg2: memref<2x8x32xf32, #tpu.memory_space<vmem>>, %arg3: memref<2x16x32xbf16, #tpu.memory_space<vmem>>, %arg4: memref<2x16x32xbf16, #tpu.memory_space<vmem>>, %arg5: memref<2x8x32xf32, #tpu.memory_space<vmem>>, %arg6: memref<1x32x64xbf16, #tpu.memory_space<vmem>>, %arg7: memref<1x1x64xf32, #tpu.memory_space<vmem>>, %arg8: memref<1x32x32xbf16, #tpu.memory_space<vmem>>, %arg9: memref<1x1x32xf32, #tpu.memory_space<vmem>>, %arg10: memref<1x32x32xbf16, #tpu.memory_space<vmem>>, %arg11: memref<1x1x32xf32, #tpu.memory_space<vmem>>, %arg12: memref<1x32x32xbf16, #tpu.memory_space<vmem>>, %arg13: memref<1x1x32xf32, #tpu.memory_space<vmem>>, %arg14: memref<1x32x32xbf16, #tpu.memory_space<vmem>>, %arg15: memref<1x1x32xf32, #tpu.memory_space<vmem>>, %arg16: memref<1x32x32xbf16, #tpu.memory_space<vmem>>, %arg17: memref<1x1x32xf32, #tpu.memory_space<vmem>>, %arg18: memref<1x32x32xbf16, #tpu.memory_space<vmem>>, %arg19: memref<1x1x32xf32, #tpu.memory_space<vmem>>, %arg20: memref<1x32x64xbf16, #tpu.memory_space<vmem>>, %arg21: memref<1x1x64xf32, #tpu.memory_space<vmem>>, %arg22: memref<1x64x32xbf16, #tpu.memory_space<vmem>>, %arg23: memref<1x1x32xf32, #tpu.memory_space<vmem>>, %arg24: memref<1x1x32xf32, #tpu.memory_space<vmem>>, %arg25: memref<1x1x32xf32, #tpu.memory_space<vmem>>, %arg26: memref<1x1x32xf32, #tpu.memory_space<vmem>>, %arg27: memref<1x1x32xf32, #tpu.memory_space<vmem>>, %arg28: memref<1x1x32xf32, #tpu.memory_space<vmem>>, %arg29: memref<1x1x32xf32, #tpu.memory_space<vmem>>, %arg30: memref<1x32xf32, #tpu.memory_space<vmem>>, %arg31: memref<1x32xf32, #tpu.memory_space<vmem>>, %arg32: memref<2x8x32xf32, #tpu.memory_space<vmem>>) attributes {dimension_semantics = [#tpu.dimension_semantics<parallel>, #tpu.dimension_semantics<arbitrary>], iteration_bounds = array<i64: 1, 2>, scalar_prefetch = 0 : i64, scratch_operands = 0 : i64, tpu.core_type = #tpu.core_type<tc>, window_params = [{transform_indices = @transform_0, window_bounds = array<i64: 2, 8, 32>}, {transform_indices = @transform_1, window_bounds = array<i64: 2, 16, 32>}, {transform_indices = @transform_2, window_bounds = array<i64: 2, 16, 32>}, {transform_indices = @transform_3, window_bounds = array<i64: 2, 8, 32>}, {transform_indices = @transform_4, window_bounds = array<i64: 1, 32, 64>}, {transform_indices = @transform_5, window_bounds = array<i64: 1, 1, 64>}, {transform_indices = @transform_6, window_bounds = array<i64: 1, 32, 32>}, {transform_indices = @transform_7, window_bounds = array<i64: 1, 1, 32>}, {transform_indices = @transform_8, window_bounds = array<i64: 1, 32, 32>}, {transform_indices = @transform_9, window_bounds = array<i64: 1, 1, 32>}, {transform_indices = @transform_10, window_bounds = array<i64: 1, 32, 32>}, {transform_indices = @transform_11, window_bounds = array<i64: 1, 1, 32>}, {transform_indices = @transform_12, window_bounds = array<i64: 1, 32, 32>}, {transform_indices = @transform_13, window_bounds = array<i64: 1, 1, 32>}, {transform_indices = @transform_14, window_bounds = array<i64: 1, 32, 32>}, {transform_indices = @transform_15, window_bounds = array<i64: 1, 1, 32>}, {transform_indices = @transform_16, window_bounds = array<i64: 1, 32, 32>}, {transform_indices = @transform_17, window_bounds = array<i64: 1, 1, 32>}, {transform_indices = @transform_18, window_bounds = array<i64: 1, 32, 64>}, {transform_indices = @transform_19, window_bounds = array<i64: 1, 1, 64>}, {transform_indices = @transform_20, window_bounds = array<i64: 1, 64, 32>}, {transform_indices = @transform_21, window_bounds = array<i64: 1, 1, 32>}, {transform_indices = @transform_22, window_bounds = array<i64: 1, 1, 32>}, {transform_indices = @transform_23, window_bounds = array<i64: 1, 1, 32>}, {transform_indices = @transform_24, window_bounds = array<i64: 1, 1, 32>}, {transform_indices = @transform_25, window_bounds = array<i64: 1, 1, 32>}, {transform_indices = @transform_26, window_bounds = array<i64: 1, 1, 32>}, {transform_indices = @transform_27, window_bounds = array<i64: 1, 1, 32>}, {pipeline_mode = #tpu.pipeline_mode<synchronous>, transform_indices = @transform_28, window_bounds = array<i64: 1, 32>}, {pipeline_mode = #tpu.pipeline_mode<synchronous>, transform_indices = @transform_29, window_bounds = array<i64: 1, 32>}, {transform_indices = @transform_30, window_bounds = array<i64: 2, 8, 32>}]} {
    %c0_i32 = arith.constant 0 : i32
    %0 = arith.cmpi eq, %arg1, %c0_i32 : i32
    %1 = arith.extui %0 : i1 to i32
    %c0_i32_0 = arith.constant 0 : i32
    %2 = arith.cmpi ne, %1, %c0_i32_0 : i32
    scf.if %2 {
      %c0_131 = arith.constant 0 : index
      %c0_132 = arith.constant 0 : index
      %c0_133 = arith.constant 0 : index
      %288 = vector.load %arg2[%c0_131, %c0_132, %c0_133] : memref<2x8x32xf32, #tpu.memory_space<vmem>>, vector<2x8x32xf32>
      %c0_134 = arith.constant 0 : index
      %c0_135 = arith.constant 0 : index
      %c0_136 = arith.constant 0 : index
      %289 = vector.load %arg32[%c0_134, %c0_135, %c0_136] : memref<2x8x32xf32, #tpu.memory_space<vmem>>, vector<2x8x32xf32>
      tpu.vector_store %arg32[%c0_134, %c0_135, %c0_136], %288 {strides = array<i32>} : memref<2x8x32xf32, #tpu.memory_space<vmem>>, vector<2x8x32xf32>,
    } else {
    }
    %c0 = arith.constant 0 : index
    %c0_1 = arith.constant 0 : index
    %c0_2 = arith.constant 0 : index
    %3 = vector.load %arg32[%c0, %c0_1, %c0_2] : memref<2x8x32xf32, #tpu.memory_space<vmem>>, vector<2x8x32xf32>
    %4 = vector.shape_cast %3 : vector<2x8x32xf32> to vector<16x32xf32>
    %c0_3 = arith.constant 0 : index
    %c0_4 = arith.constant 0 : index
    %c0_5 = arith.constant 0 : index
    %5 = vector.load %arg5[%c0_3, %c0_4, %c0_5] : memref<2x8x32xf32, #tpu.memory_space<vmem>>, vector<2x8x32xf32>
    %6 = vector.shape_cast %5 : vector<2x8x32xf32> to vector<16x32xf32>
    %c0_6 = arith.constant 0 : index
    %c0_7 = arith.constant 0 : index
    %c0_8 = arith.constant 0 : index
    %7 = vector.load %arg3[%c0_6, %c0_7, %c0_8] : memref<2x16x32xbf16, #tpu.memory_space<vmem>>, vector<2x16x32xbf16>
    %8 = vector.shape_cast %7 : vector<2x16x32xbf16> to vector<32x32xbf16>
    %c0_9 = arith.constant 0 : index
    %c0_10 = arith.constant 0 : index
    %c0_11 = arith.constant 0 : index
    %9 = vector.load %arg4[%c0_9, %c0_10, %c0_11] : memref<2x16x32xbf16, #tpu.memory_space<vmem>>, vector<2x16x32xbf16>
    %10 = vector.shape_cast %9 : vector<2x16x32xbf16> to vector<32x32xbf16>
    %11 = arith.addf %4, %6 : vector<16x32xf32>
    %12 = arith.truncf %11 : vector<16x32xf32> to vector<16x32xbf16>
    %c0_12 = arith.constant 0 : index
    %c0_13 = arith.constant 0 : index
    %c0_14 = arith.constant 0 : index
    %13 = vector.load %arg6[%c0_12, %c0_13, %c0_14] : memref<1x32x64xbf16, #tpu.memory_space<vmem>>, vector<1x32x64xbf16>
    %14 = vector.shape_cast %13 : vector<1x32x64xbf16> to vector<32x64xbf16>
    %cst = arith.constant dense<0.000000e+00> : vector<16x64xf32>
    %15 = tpu.matmul %12, %14, %cst {dimension_numbers = #tpu.dot_dimension_numbers<[1], [0], [0], [1], [0, 0, 1, 1], [], []>} : vector<16x32xbf16>, vector<32x64xbf16>, vector<16x64xf32> -> vector<16x64xf32>
    %c0_15 = arith.constant 0 : index
    %c0_16 = arith.constant 0 : index
    %c0_17 = arith.constant 0 : index
    %16 = vector.load %arg7[%c0_15, %c0_16, %c0_17] : memref<1x1x64xf32, #tpu.memory_space<vmem>>, vector<1x1x64xf32>
    %17 = vector.shape_cast %16 : vector<1x1x64xf32> to vector<1x64xf32>
    %18 = vector.broadcast %17 : vector<1x64xf32> to vector<16x64xf32>
    %19 = arith.addf %15, %18 : vector<16x64xf32>
    %20 = arith.truncf %4 : vector<16x32xf32> to vector<16x32xbf16>
    %c0_18 = arith.constant 0 : index
    %c0_19 = arith.constant 0 : index
    %c0_20 = arith.constant 0 : index
    %21 = vector.load %arg8[%c0_18, %c0_19, %c0_20] : memref<1x32x32xbf16, #tpu.memory_space<vmem>>, vector<1x32x32xbf16>
    %22 = vector.shape_cast %21 : vector<1x32x32xbf16> to vector<32x32xbf16>
    %cst_21 = arith.constant dense<0.000000e+00> : vector<16x32xf32>
    %23 = tpu.matmul %20, %22, %cst_21 {dimension_numbers = #tpu.dot_dimension_numbers<[1], [0], [0], [1], [0, 0, 1, 1], [], []>} : vector<16x32xbf16>, vector<32x32xbf16>, vector<16x32xf32> -> vector<16x32xf32>
    %c0_22 = arith.constant 0 : index
    %c0_23 = arith.constant 0 : index
    %c0_24 = arith.constant 0 : index
    %24 = vector.load %arg9[%c0_22, %c0_23, %c0_24] : memref<1x1x32xf32, #tpu.memory_space<vmem>>, vector<1x1x32xf32>
    %25 = vector.shape_cast %24 : vector<1x1x32xf32> to vector<1x32xf32>
    %26 = vector.broadcast %25 : vector<1x32xf32> to vector<16x32xf32>
    %27 = arith.addf %23, %26 : vector<16x32xf32>
    %28 = vector.extract_strided_slice %19 {offsets = [0, 0], sizes = [16, 32], strides = [1, 1]} : vector<16x64xf32> to vector<16x32xf32>
    %29 = vector.extract_strided_slice %19 {offsets = [0, 32], sizes = [16, 32], strides = [1, 1]} : vector<16x64xf32> to vector<16x32xf32>
    %c0_25 = arith.constant 0 : index
    %c0_26 = arith.constant 0 : index
    %c0_27 = arith.constant 0 : index
    %30 = vector.load %arg10[%c0_25, %c0_26, %c0_27] : memref<1x32x32xbf16, #tpu.memory_space<vmem>>, vector<1x32x32xbf16>
    %31 = vector.shape_cast %30 : vector<1x32x32xbf16> to vector<32x32xbf16>
    %c0_28 = arith.constant 0 : index
    %c0_29 = arith.constant 0 : index
    %c0_30 = arith.constant 0 : index
    %32 = vector.load %arg11[%c0_28, %c0_29, %c0_30] : memref<1x1x32xf32, #tpu.memory_space<vmem>>, vector<1x1x32xf32>
    %33 = vector.shape_cast %32 : vector<1x1x32xf32> to vector<1x32xf32>
    %34 = vector.extract_strided_slice %28 {offsets = [0, 0], sizes = [8, 32], strides = [1, 1]} : vector<16x32xf32> to vector<8x32xf32>
    %35 = vector.shape_cast %34 : vector<8x32xf32> to vector<8x4x8xf32>
    %36 = arith.truncf %35 : vector<8x4x8xf32> to vector<8x4x8xbf16>
    %37 = vector.extract_strided_slice %29 {offsets = [0, 0], sizes = [8, 32], strides = [1, 1]} : vector<16x32xf32> to vector<8x32xf32>
    %38 = vector.shape_cast %37 : vector<8x32xf32> to vector<8x4x8xf32>
    %39 = arith.truncf %38 : vector<8x4x8xf32> to vector<8x4x8xbf16>
    %40 = vector.extract_strided_slice %27 {offsets = [0, 0], sizes = [8, 32], strides = [1, 1]} : vector<16x32xf32> to vector<8x32xf32>
    %41 = vector.shape_cast %40 : vector<8x32xf32> to vector<8x4x8xf32>
    %42 = arith.truncf %41 : vector<8x4x8xf32> to vector<8x4x8xbf16>
    "tpu.trace_start"() <{level = 10 : i32, message = "qhd,khd->hqk"}> : () -> ()
    %cst_31 = arith.constant dense<0.000000e+00> : vector<4x8x8xf32>
    %43 = tpu.matmul %36, %39, %cst_31 {dimension_numbers = #tpu.dot_dimension_numbers<[2], [2], [0], [0], [0, 1, 0, 0, 1, 0], [1], [1]>} : vector<8x4x8xbf16>, vector<8x4x8xbf16>, vector<4x8x8xf32> -> vector<4x8x8xf32>
    "tpu.trace_stop"() : () -> ()
    %cst_32 = arith.constant dense<0xFF800000> : vector<4x8xf32>
    %44 = vector.multi_reduction <maximumf>, %43, %cst_32 [2] : vector<4x8x8xf32> to vector<4x8xf32>
    %45 = vector.shape_cast %44 : vector<4x8xf32> to vector<4x8x1xf32>
    %46 = vector.broadcast %45 : vector<4x8x1xf32> to vector<4x8x8xf32>
    %47 = arith.subf %43, %46 : vector<4x8x8xf32>
    %48 = math.exp %47 : vector<4x8x8xf32>
    %cst_33 = arith.constant dense<0.000000e+00> : vector<4x8xf32>
    %49 = vector.multi_reduction <add>, %48, %cst_33 [2] : vector<4x8x8xf32> to vector<4x8xf32>
    %50 = vector.shape_cast %49 : vector<4x8xf32> to vector<4x8x1xf32>
    %51 = tpu.reciprocal %50 {approx = true} : vector<4x8x1xf32> -> vector<4x8x1xf32>
    %52 = arith.mulf %50, %51 : vector<4x8x1xf32>
    %cst_34 = arith.constant 2.000000e+00 : f32
    %53 = vector.broadcast %cst_34 : f32 to vector<4x8x1xf32>
    %54 = arith.subf %53, %52 : vector<4x8x1xf32>
    %55 = arith.mulf %51, %54 : vector<4x8x1xf32>
    %56 = vector.broadcast %55 : vector<4x8x1xf32> to vector<4x8x8xf32>
    %57 = arith.mulf %48, %56 : vector<4x8x8xf32>
    %58 = arith.truncf %57 : vector<4x8x8xf32> to vector<4x8x8xbf16>
    "tpu.trace_start"() <{level = 10 : i32, message = "hqk,khd->qhd"}> : () -> ()
    %cst_35 = arith.constant dense<0.000000e+00> : vector<4x8x8xf32>
    %59 = tpu.matmul %42, %58, %cst_35 {dimension_numbers = #tpu.dot_dimension_numbers<[0], [2], [2], [1], [0, 1, 0, 2, 1, 1], [1], [0]>} : vector<8x4x8xbf16>, vector<4x8x8xbf16>, vector<4x8x8xf32> -> vector<4x8x8xf32>
    %60 = tpu.transpose %59, [2, 0, 1] : vector<4x8x8xf32> -> vector<8x4x8xf32>
    "tpu.trace_stop"() : () -> ()
    %61 = vector.shape_cast %60 : vector<8x4x8xf32> to vector<8x32xf32>
    %62 = vector.extract_strided_slice %28 {offsets = [8, 0], sizes = [8, 32], strides = [1, 1]} : vector<16x32xf32> to vector<8x32xf32>
    %63 = vector.shape_cast %62 : vector<8x32xf32> to vector<8x4x8xf32>
    %64 = arith.truncf %63 : vector<8x4x8xf32> to vector<8x4x8xbf16>
    %65 = vector.extract_strided_slice %29 {offsets = [8, 0], sizes = [8, 32], strides = [1, 1]} : vector<16x32xf32> to vector<8x32xf32>
    %66 = vector.shape_cast %65 : vector<8x32xf32> to vector<8x4x8xf32>
    %67 = arith.truncf %66 : vector<8x4x8xf32> to vector<8x4x8xbf16>
    %68 = vector.extract_strided_slice %27 {offsets = [8, 0], sizes = [8, 32], strides = [1, 1]} : vector<16x32xf32> to vector<8x32xf32>
    %69 = vector.shape_cast %68 : vector<8x32xf32> to vector<8x4x8xf32>
    %70 = arith.truncf %69 : vector<8x4x8xf32> to vector<8x4x8xbf16>
    "tpu.trace_start"() <{level = 10 : i32, message = "qhd,khd->hqk"}> : () -> ()
    %cst_36 = arith.constant dense<0.000000e+00> : vector<4x8x8xf32>
    %71 = tpu.matmul %64, %67, %cst_36 {dimension_numbers = #tpu.dot_dimension_numbers<[2], [2], [0], [0], [0, 1, 0, 0, 1, 0], [1], [1]>} : vector<8x4x8xbf16>, vector<8x4x8xbf16>, vector<4x8x8xf32> -> vector<4x8x8xf32>
    "tpu.trace_stop"() : () -> ()
    %cst_37 = arith.constant dense<0xFF800000> : vector<4x8xf32>
    %72 = vector.multi_reduction <maximumf>, %71, %cst_37 [2] : vector<4x8x8xf32> to vector<4x8xf32>
    %73 = vector.shape_cast %72 : vector<4x8xf32> to vector<4x8x1xf32>
    %74 = vector.broadcast %73 : vector<4x8x1xf32> to vector<4x8x8xf32>
    %75 = arith.subf %71, %74 : vector<4x8x8xf32>
    %76 = math.exp %75 : vector<4x8x8xf32>
    %cst_38 = arith.constant dense<0.000000e+00> : vector<4x8xf32>
    %77 = vector.multi_reduction <add>, %76, %cst_38 [2] : vector<4x8x8xf32> to vector<4x8xf32>
    %78 = vector.shape_cast %77 : vector<4x8xf32> to vector<4x8x1xf32>
    %79 = tpu.reciprocal %78 {approx = true} : vector<4x8x1xf32> -> vector<4x8x1xf32>
    %80 = arith.mulf %78, %79 : vector<4x8x1xf32>
    %cst_39 = arith.constant 2.000000e+00 : f32
    %81 = vector.broadcast %cst_39 : f32 to vector<4x8x1xf32>
    %82 = arith.subf %81, %80 : vector<4x8x1xf32>
    %83 = arith.mulf %79, %82 : vector<4x8x1xf32>
    %84 = vector.broadcast %83 : vector<4x8x1xf32> to vector<4x8x8xf32>
    %85 = arith.mulf %76, %84 : vector<4x8x8xf32>
    %86 = arith.truncf %85 : vector<4x8x8xf32> to vector<4x8x8xbf16>
    "tpu.trace_start"() <{level = 10 : i32, message = "hqk,khd->qhd"}> : () -> ()
    %cst_40 = arith.constant dense<0.000000e+00> : vector<4x8x8xf32>
    %87 = tpu.matmul %70, %86, %cst_40 {dimension_numbers = #tpu.dot_dimension_numbers<[0], [2], [2], [1], [0, 1, 0, 2, 1, 1], [1], [0]>} : vector<8x4x8xbf16>, vector<4x8x8xbf16>, vector<4x8x8xf32> -> vector<4x8x8xf32>
    %88 = tpu.transpose %87, [2, 0, 1] : vector<4x8x8xf32> -> vector<8x4x8xf32>
    "tpu.trace_stop"() : () -> ()
    %89 = vector.shape_cast %88 : vector<8x4x8xf32> to vector<8x32xf32>
    %90 = tpu.concatenate %61, %89 in 0 : vector<8x32xf32>, vector<8x32xf32> -> vector<16x32xf32>
    %91 = arith.truncf %90 : vector<16x32xf32> to vector<16x32xbf16>
    %cst_41 = arith.constant dense<0.000000e+00> : vector<16x32xf32>
    %92 = tpu.matmul %91, %31, %cst_41 {dimension_numbers = #tpu.dot_dimension_numbers<[1], [0], [0], [1], [0, 0, 1, 1], [], []>} : vector<16x32xbf16>, vector<32x32xbf16>, vector<16x32xf32> -> vector<16x32xf32>
    %93 = vector.broadcast %33 : vector<1x32xf32> to vector<16x32xf32>
    %94 = arith.addf %92, %93 : vector<16x32xf32>
    %95 = arith.addf %4, %94 : vector<16x32xf32>
    %c0_42 = arith.constant 0 : index
    %c0_43 = arith.constant 0 : index
    %c0_44 = arith.constant 0 : index
    %96 = vector.load %arg24[%c0_42, %c0_43, %c0_44] : memref<1x1x32xf32, #tpu.memory_space<vmem>>, vector<1x1x32xf32>
    %97 = vector.shape_cast %96 : vector<1x1x32xf32> to vector<1x32xf32>
    %c0_45 = arith.constant 0 : index
    %c0_46 = arith.constant 0 : index
    %c0_47 = arith.constant 0 : index
    %98 = vector.load %arg25[%c0_45, %c0_46, %c0_47] : memref<1x1x32xf32, #tpu.memory_space<vmem>>, vector<1x1x32xf32>
    %99 = vector.shape_cast %98 : vector<1x1x32xf32> to vector<1x32xf32>
    %cst_48 = arith.constant dense<0.000000e+00> : vector<16xf32>
    %100 = vector.multi_reduction <add>, %95, %cst_48 [1] : vector<16x32xf32> to vector<16xf32>
    %101 = vector.shape_cast %100 : vector<16xf32> to vector<16x1xf32>
    %cst_49 = arith.constant 3.200000e+01 : f32
    %102 = vector.broadcast %cst_49 : f32 to vector<16x1xf32>
    %103 = arith.divf %101, %102 : vector<16x1xf32>
    %104 = vector.broadcast %103 : vector<16x1xf32> to vector<16x32xf32>
    %105 = arith.subf %95, %104 : vector<16x32xf32>
    %106 = arith.mulf %105, %105 : vector<16x32xf32>
    %cst_50 = arith.constant dense<0.000000e+00> : vector<16xf32>
    %107 = vector.multi_reduction <add>, %106, %cst_50 [1] : vector<16x32xf32> to vector<16xf32>
    %108 = vector.shape_cast %107 : vector<16xf32> to vector<16x1xf32>
    %cst_51 = arith.constant 3.200000e+01 : f32
    %109 = vector.broadcast %cst_51 : f32 to vector<16x1xf32>
    %110 = arith.divf %108, %109 : vector<16x1xf32>
    %111 = vector.broadcast %103 : vector<16x1xf32> to vector<16x32xf32>
    %112 = arith.subf %95, %111 : vector<16x32xf32>
    %cst_52 = arith.constant 9.99999974E-6 : f32
    %113 = vector.broadcast %cst_52 : f32 to vector<16x1xf32>
    %114 = arith.addf %110, %113 : vector<16x1xf32>
    %115 = math.rsqrt %114 : vector<16x1xf32>
    %116 = vector.broadcast %115 : vector<16x1xf32> to vector<16x32xf32>
    %117 = arith.mulf %112, %116 : vector<16x32xf32>
    %118 = vector.broadcast %97 : vector<1x32xf32> to vector<16x32xf32>
    %119 = arith.mulf %117, %118 : vector<16x32xf32>
    %120 = vector.broadcast %99 : vector<1x32xf32> to vector<16x32xf32>
    %121 = arith.addf %119, %120 : vector<16x32xf32>
    %122 = arith.addf %121, %6 : vector<16x32xf32>
    %123 = arith.truncf %122 : vector<16x32xf32> to vector<16x32xbf16>
    %c0_53 = arith.constant 0 : index
    %c0_54 = arith.constant 0 : index
    %c0_55 = arith.constant 0 : index
    %124 = vector.load %arg12[%c0_53, %c0_54, %c0_55] : memref<1x32x32xbf16, #tpu.memory_space<vmem>>, vector<1x32x32xbf16>
    %125 = vector.shape_cast %124 : vector<1x32x32xbf16> to vector<32x32xbf16>
    %cst_56 = arith.constant dense<0.000000e+00> : vector<16x32xf32>
    %126 = tpu.matmul %123, %125, %cst_56 {dimension_numbers = #tpu.dot_dimension_numbers<[1], [0], [0], [1], [0, 0, 1, 1], [], []>} : vector<16x32xbf16>, vector<32x32xbf16>, vector<16x32xf32> -> vector<16x32xf32>
    %c0_57 = arith.constant 0 : index
    %c0_58 = arith.constant 0 : index
    %c0_59 = arith.constant 0 : index
    %127 = vector.load %arg13[%c0_57, %c0_58, %c0_59] : memref<1x1x32xf32, #tpu.memory_space<vmem>>, vector<1x1x32xf32>
    %128 = vector.shape_cast %127 : vector<1x1x32xf32> to vector<1x32xf32>
    %129 = vector.broadcast %128 : vector<1x32xf32> to vector<16x32xf32>
    %130 = arith.addf %126, %129 : vector<16x32xf32>
    %c0_60 = arith.constant 0 : index
    %c0_61 = arith.constant 0 : index
    %c0_62 = arith.constant 0 : index
    %131 = vector.load %arg14[%c0_60, %c0_61, %c0_62] : memref<1x32x32xbf16, #tpu.memory_space<vmem>>, vector<1x32x32xbf16>
    %132 = vector.shape_cast %131 : vector<1x32x32xbf16> to vector<32x32xbf16>
    %cst_63 = arith.constant dense<0.000000e+00> : vector<32x32xf32>
    %133 = tpu.matmul %10, %132, %cst_63 {dimension_numbers = #tpu.dot_dimension_numbers<[1], [0], [0], [1], [0, 0, 1, 1], [], []>} : vector<32x32xbf16>, vector<32x32xbf16>, vector<32x32xf32> -> vector<32x32xf32>
    %c0_64 = arith.constant 0 : index
    %c0_65 = arith.constant 0 : index
    %c0_66 = arith.constant 0 : index
    %134 = vector.load %arg15[%c0_64, %c0_65, %c0_66] : memref<1x1x32xf32, #tpu.memory_space<vmem>>, vector<1x1x32xf32>
    %135 = vector.shape_cast %134 : vector<1x1x32xf32> to vector<1x32xf32>
    %136 = vector.broadcast %135 : vector<1x32xf32> to vector<32x32xf32>
    %137 = arith.addf %133, %136 : vector<32x32xf32>
    %c0_67 = arith.constant 0 : index
    %c0_68 = arith.constant 0 : index
    %c0_69 = arith.constant 0 : index
    %138 = vector.load %arg16[%c0_67, %c0_68, %c0_69] : memref<1x32x32xbf16, #tpu.memory_space<vmem>>, vector<1x32x32xbf16>
    %139 = vector.shape_cast %138 : vector<1x32x32xbf16> to vector<32x32xbf16>
    %cst_70 = arith.constant dense<0.000000e+00> : vector<32x32xf32>
    %140 = tpu.matmul %8, %139, %cst_70 {dimension_numbers = #tpu.dot_dimension_numbers<[1], [0], [0], [1], [0, 0, 1, 1], [], []>} : vector<32x32xbf16>, vector<32x32xbf16>, vector<32x32xf32> -> vector<32x32xf32>
    %c0_71 = arith.constant 0 : index
    %c0_72 = arith.constant 0 : index
    %c0_73 = arith.constant 0 : index
    %141 = vector.load %arg17[%c0_71, %c0_72, %c0_73] : memref<1x1x32xf32, #tpu.memory_space<vmem>>, vector<1x1x32xf32>
    %142 = vector.shape_cast %141 : vector<1x1x32xf32> to vector<1x32xf32>
    %143 = vector.broadcast %142 : vector<1x32xf32> to vector<32x32xf32>
    %144 = arith.addf %140, %143 : vector<32x32xf32>
    %c0_74 = arith.constant 0 : index
    %c0_75 = arith.constant 0 : index
    %c0_76 = arith.constant 0 : index
    %145 = vector.load %arg18[%c0_74, %c0_75, %c0_76] : memref<1x32x32xbf16, #tpu.memory_space<vmem>>, vector<1x32x32xbf16>
    %146 = vector.shape_cast %145 : vector<1x32x32xbf16> to vector<32x32xbf16>
    %c0_77 = arith.constant 0 : index
    %c0_78 = arith.constant 0 : index
    %c0_79 = arith.constant 0 : index
    %147 = vector.load %arg19[%c0_77, %c0_78, %c0_79] : memref<1x1x32xf32, #tpu.memory_space<vmem>>, vector<1x1x32xf32>
    %148 = vector.shape_cast %147 : vector<1x1x32xf32> to vector<1x32xf32>
    %149 = vector.extract_strided_slice %130 {offsets = [0, 0], sizes = [8, 32], strides = [1, 1]} : vector<16x32xf32> to vector<8x32xf32>
    %150 = vector.shape_cast %149 : vector<8x32xf32> to vector<8x4x8xf32>
    %151 = arith.truncf %150 : vector<8x4x8xf32> to vector<8x4x8xbf16>
    %152 = vector.extract_strided_slice %137 {offsets = [0, 0], sizes = [16, 32], strides = [1, 1]} : vector<32x32xf32> to vector<16x32xf32>
    %153 = vector.shape_cast %152 : vector<16x32xf32> to vector<16x4x8xf32>
    %154 = arith.truncf %153 : vector<16x4x8xf32> to vector<16x4x8xbf16>
    %155 = vector.extract_strided_slice %144 {offsets = [0, 0], sizes = [16, 32], strides = [1, 1]} : vector<32x32xf32> to vector<16x32xf32>
    %156 = vector.shape_cast %155 : vector<16x32xf32> to vector<16x4x8xf32>
    %157 = arith.truncf %156 : vector<16x4x8xf32> to vector<16x4x8xbf16>
    "tpu.trace_start"() <{level = 10 : i32, message = "qhd,khd->hqk"}> : () -> ()
    %cst_80 = arith.constant dense<0.000000e+00> : vector<4x8x16xf32>
    %158 = tpu.matmul %151, %154, %cst_80 {dimension_numbers = #tpu.dot_dimension_numbers<[2], [2], [0], [0], [0, 1, 0, 0, 1, 0], [1], [1]>} : vector<8x4x8xbf16>, vector<16x4x8xbf16>, vector<4x8x16xf32> -> vector<4x8x16xf32>
    "tpu.trace_stop"() : () -> ()
    %cst_81 = arith.constant dense<0xFF800000> : vector<4x8xf32>
    %159 = vector.multi_reduction <maximumf>, %158, %cst_81 [2] : vector<4x8x16xf32> to vector<4x8xf32>
    %160 = vector.shape_cast %159 : vector<4x8xf32> to vector<4x8x1xf32>
    %161 = vector.broadcast %160 : vector<4x8x1xf32> to vector<4x8x16xf32>
    %162 = arith.subf %158, %161 : vector<4x8x16xf32>
    %163 = math.exp %162 : vector<4x8x16xf32>
    %cst_82 = arith.constant dense<0.000000e+00> : vector<4x8xf32>
    %164 = vector.multi_reduction <add>, %163, %cst_82 [2] : vector<4x8x16xf32> to vector<4x8xf32>
    %165 = vector.shape_cast %164 : vector<4x8xf32> to vector<4x8x1xf32>
    %166 = tpu.reciprocal %165 {approx = true} : vector<4x8x1xf32> -> vector<4x8x1xf32>
    %167 = arith.mulf %165, %166 : vector<4x8x1xf32>
    %cst_83 = arith.constant 2.000000e+00 : f32
    %168 = vector.broadcast %cst_83 : f32 to vector<4x8x1xf32>
    %169 = arith.subf %168, %167 : vector<4x8x1xf32>
    %170 = arith.mulf %166, %169 : vector<4x8x1xf32>
    %171 = vector.broadcast %170 : vector<4x8x1xf32> to vector<4x8x16xf32>
    %172 = arith.mulf %163, %171 : vector<4x8x16xf32>
    %173 = arith.truncf %172 : vector<4x8x16xf32> to vector<4x8x16xbf16>
    "tpu.trace_start"() <{level = 10 : i32, message = "hqk,khd->qhd"}> : () -> ()
    %cst_84 = arith.constant dense<0.000000e+00> : vector<4x8x8xf32>
    %174 = tpu.matmul %157, %173, %cst_84 {dimension_numbers = #tpu.dot_dimension_numbers<[0], [2], [2], [1], [0, 1, 0, 2, 1, 1], [1], [0]>} : vector<16x4x8xbf16>, vector<4x8x16xbf16>, vector<4x8x8xf32> -> vector<4x8x8xf32>
    %175 = tpu.transpose %174, [2, 0, 1] : vector<4x8x8xf32> -> vector<8x4x8xf32>
    "tpu.trace_stop"() : () -> ()
    %176 = vector.shape_cast %175 : vector<8x4x8xf32> to vector<8x32xf32>
    %177 = vector.extract_strided_slice %130 {offsets = [8, 0], sizes = [8, 32], strides = [1, 1]} : vector<16x32xf32> to vector<8x32xf32>
    %178 = vector.shape_cast %177 : vector<8x32xf32> to vector<8x4x8xf32>
    %179 = arith.truncf %178 : vector<8x4x8xf32> to vector<8x4x8xbf16>
    %180 = vector.extract_strided_slice %137 {offsets = [16, 0], sizes = [16, 32], strides = [1, 1]} : vector<32x32xf32> to vector<16x32xf32>
    %181 = vector.shape_cast %180 : vector<16x32xf32> to vector<16x4x8xf32>
    %182 = arith.truncf %181 : vector<16x4x8xf32> to vector<16x4x8xbf16>
    %183 = vector.extract_strided_slice %144 {offsets = [16, 0], sizes = [16, 32], strides = [1, 1]} : vector<32x32xf32> to vector<16x32xf32>
    %184 = vector.shape_cast %183 : vector<16x32xf32> to vector<16x4x8xf32>
    %185 = arith.truncf %184 : vector<16x4x8xf32> to vector<16x4x8xbf16>
    "tpu.trace_start"() <{level = 10 : i32, message = "qhd,khd->hqk"}> : () -> ()
    %cst_85 = arith.constant dense<0.000000e+00> : vector<4x8x16xf32>
    %186 = tpu.matmul %179, %182, %cst_85 {dimension_numbers = #tpu.dot_dimension_numbers<[2], [2], [0], [0], [0, 1, 0, 0, 1, 0], [1], [1]>} : vector<8x4x8xbf16>, vector<16x4x8xbf16>, vector<4x8x16xf32> -> vector<4x8x16xf32>
    "tpu.trace_stop"() : () -> ()
    %cst_86 = arith.constant dense<0xFF800000> : vector<4x8xf32>
    %187 = vector.multi_reduction <maximumf>, %186, %cst_86 [2] : vector<4x8x16xf32> to vector<4x8xf32>
    %188 = vector.shape_cast %187 : vector<4x8xf32> to vector<4x8x1xf32>
    %189 = vector.broadcast %188 : vector<4x8x1xf32> to vector<4x8x16xf32>
    %190 = arith.subf %186, %189 : vector<4x8x16xf32>
    %191 = math.exp %190 : vector<4x8x16xf32>
    %cst_87 = arith.constant dense<0.000000e+00> : vector<4x8xf32>
    %192 = vector.multi_reduction <add>, %191, %cst_87 [2] : vector<4x8x16xf32> to vector<4x8xf32>
    %193 = vector.shape_cast %192 : vector<4x8xf32> to vector<4x8x1xf32>
    %194 = tpu.reciprocal %193 {approx = true} : vector<4x8x1xf32> -> vector<4x8x1xf32>
    %195 = arith.mulf %193, %194 : vector<4x8x1xf32>
    %cst_88 = arith.constant 2.000000e+00 : f32
    %196 = vector.broadcast %cst_88 : f32 to vector<4x8x1xf32>
    %197 = arith.subf %196, %195 : vector<4x8x1xf32>
    %198 = arith.mulf %194, %197 : vector<4x8x1xf32>
    %199 = vector.broadcast %198 : vector<4x8x1xf32> to vector<4x8x16xf32>
    %200 = arith.mulf %191, %199 : vector<4x8x16xf32>
    %201 = arith.truncf %200 : vector<4x8x16xf32> to vector<4x8x16xbf16>
    "tpu.trace_start"() <{level = 10 : i32, message = "hqk,khd->qhd"}> : () -> ()
    %cst_89 = arith.constant dense<0.000000e+00> : vector<4x8x8xf32>
    %202 = tpu.matmul %185, %201, %cst_89 {dimension_numbers = #tpu.dot_dimension_numbers<[0], [2], [2], [1], [0, 1, 0, 2, 1, 1], [1], [0]>} : vector<16x4x8xbf16>, vector<4x8x16xbf16>, vector<4x8x8xf32> -> vector<4x8x8xf32>
    %203 = tpu.transpose %202, [2, 0, 1] : vector<4x8x8xf32> -> vector<8x4x8xf32>
    "tpu.trace_stop"() : () -> ()
    %204 = vector.shape_cast %203 : vector<8x4x8xf32> to vector<8x32xf32>
    %205 = tpu.concatenate %176, %204 in 0 : vector<8x32xf32>, vector<8x32xf32> -> vector<16x32xf32>
    %206 = arith.truncf %205 : vector<16x32xf32> to vector<16x32xbf16>
    %cst_90 = arith.constant dense<0.000000e+00> : vector<16x32xf32>
    %207 = tpu.matmul %206, %146, %cst_90 {dimension_numbers = #tpu.dot_dimension_numbers<[1], [0], [0], [1], [0, 0, 1, 1], [], []>} : vector<16x32xbf16>, vector<32x32xbf16>, vector<16x32xf32> -> vector<16x32xf32>
    %208 = vector.broadcast %148 : vector<1x32xf32> to vector<16x32xf32>
    %209 = arith.addf %207, %208 : vector<16x32xf32>
    %210 = arith.addf %121, %209 : vector<16x32xf32>
    %c0_91 = arith.constant 0 : index
    %c0_92 = arith.constant 0 : index
    %c0_93 = arith.constant 0 : index
    %211 = vector.load %arg26[%c0_91, %c0_92, %c0_93] : memref<1x1x32xf32, #tpu.memory_space<vmem>>, vector<1x1x32xf32>
    %212 = vector.shape_cast %211 : vector<1x1x32xf32> to vector<1x32xf32>
    %c0_94 = arith.constant 0 : index
    %c0_95 = arith.constant 0 : index
    %c0_96 = arith.constant 0 : index
    %213 = vector.load %arg27[%c0_94, %c0_95, %c0_96] : memref<1x1x32xf32, #tpu.memory_space<vmem>>, vector<1x1x32xf32>
    %214 = vector.shape_cast %213 : vector<1x1x32xf32> to vector<1x32xf32>
    %cst_97 = arith.constant dense<0.000000e+00> : vector<16xf32>
    %215 = vector.multi_reduction <add>, %210, %cst_97 [1] : vector<16x32xf32> to vector<16xf32>
    %216 = vector.shape_cast %215 : vector<16xf32> to vector<16x1xf32>
    %cst_98 = arith.constant 3.200000e+01 : f32
    %217 = vector.broadcast %cst_98 : f32 to vector<16x1xf32>
    %218 = arith.divf %216, %217 : vector<16x1xf32>
    %219 = vector.broadcast %218 : vector<16x1xf32> to vector<16x32xf32>
    %220 = arith.subf %210, %219 : vector<16x32xf32>
    %221 = arith.mulf %220, %220 : vector<16x32xf32>
    %cst_99 = arith.constant dense<0.000000e+00> : vector<16xf32>
    %222 = vector.multi_reduction <add>, %221, %cst_99 [1] : vector<16x32xf32> to vector<16xf32>
    %223 = vector.shape_cast %222 : vector<16xf32> to vector<16x1xf32>
    %cst_100 = arith.constant 3.200000e+01 : f32
    %224 = vector.broadcast %cst_100 : f32 to vector<16x1xf32>
    %225 = arith.divf %223, %224 : vector<16x1xf32>
    %226 = vector.broadcast %218 : vector<16x1xf32> to vector<16x32xf32>
    %227 = arith.subf %210, %226 : vector<16x32xf32>
    %cst_101 = arith.constant 9.99999974E-6 : f32
    %228 = vector.broadcast %cst_101 : f32 to vector<16x1xf32>
    %229 = arith.addf %225, %228 : vector<16x1xf32>
    %230 = math.rsqrt %229 : vector<16x1xf32>
    %231 = vector.broadcast %230 : vector<16x1xf32> to vector<16x32xf32>
    %232 = arith.mulf %227, %231 : vector<16x32xf32>
    %233 = vector.broadcast %212 : vector<1x32xf32> to vector<16x32xf32>
    %234 = arith.mulf %232, %233 : vector<16x32xf32>
    %235 = vector.broadcast %214 : vector<1x32xf32> to vector<16x32xf32>
    %236 = arith.addf %234, %235 : vector<16x32xf32>
    %237 = arith.truncf %236 : vector<16x32xf32> to vector<16x32xbf16>
    %c0_102 = arith.constant 0 : index
    %c0_103 = arith.constant 0 : index
    %c0_104 = arith.constant 0 : index
    %238 = vector.load %arg20[%c0_102, %c0_103, %c0_104] : memref<1x32x64xbf16, #tpu.memory_space<vmem>>, vector<1x32x64xbf16>
    %239 = vector.shape_cast %238 : vector<1x32x64xbf16> to vector<32x64xbf16>
    %cst_105 = arith.constant dense<0.000000e+00> : vector<16x64xf32>
    %240 = tpu.matmul %237, %239, %cst_105 {dimension_numbers = #tpu.dot_dimension_numbers<[1], [0], [0], [1], [0, 0, 1, 1], [], []>} : vector<16x32xbf16>, vector<32x64xbf16>, vector<16x64xf32> -> vector<16x64xf32>
    %c0_106 = arith.constant 0 : index
    %c0_107 = arith.constant 0 : index
    %c0_108 = arith.constant 0 : index
    %241 = vector.load %arg21[%c0_106, %c0_107, %c0_108] : memref<1x1x64xf32, #tpu.memory_space<vmem>>, vector<1x1x64xf32>
    %242 = vector.shape_cast %241 : vector<1x1x64xf32> to vector<1x64xf32>
    %243 = vector.broadcast %242 : vector<1x64xf32> to vector<16x64xf32>
    %244 = arith.addf %240, %243 : vector<16x64xf32>
    %cst_109 = arith.constant 0.000000e+00 : f32
    %245 = vector.broadcast %cst_109 : f32 to vector<16x64xf32>
    %246 = arith.maximumf %244, %245 : vector<16x64xf32>
    %247 = arith.truncf %246 : vector<16x64xf32> to vector<16x64xbf16>
    %c0_110 = arith.constant 0 : index
    %c0_111 = arith.constant 0 : index
    %c0_112 = arith.constant 0 : index
    %248 = vector.load %arg22[%c0_110, %c0_111, %c0_112] : memref<1x64x32xbf16, #tpu.memory_space<vmem>>, vector<1x64x32xbf16>
    %249 = vector.shape_cast %248 : vector<1x64x32xbf16> to vector<64x32xbf16>
    %cst_113 = arith.constant dense<0.000000e+00> : vector<16x32xf32>
    %250 = tpu.matmul %247, %249, %cst_113 {dimension_numbers = #tpu.dot_dimension_numbers<[1], [0], [0], [1], [0, 0, 1, 1], [], []>} : vector<16x64xbf16>, vector<64x32xbf16>, vector<16x32xf32> -> vector<16x32xf32>
    %c0_114 = arith.constant 0 : index
    %c0_115 = arith.constant 0 : index
    %c0_116 = arith.constant 0 : index
    %251 = vector.load %arg23[%c0_114, %c0_115, %c0_116] : memref<1x1x32xf32, #tpu.memory_space<vmem>>, vector<1x1x32xf32>
    %252 = vector.shape_cast %251 : vector<1x1x32xf32> to vector<1x32xf32>
    %253 = vector.broadcast %252 : vector<1x32xf32> to vector<16x32xf32>
    %254 = arith.addf %250, %253 : vector<16x32xf32>
    %255 = arith.addf %236, %254 : vector<16x32xf32>
    %c0_117 = arith.constant 0 : index
    %c0_118 = arith.constant 0 : index
    %c0_119 = arith.constant 0 : index
    %256 = vector.load %arg28[%c0_117, %c0_118, %c0_119] : memref<1x1x32xf32, #tpu.memory_space<vmem>>, vector<1x1x32xf32>
    %257 = vector.shape_cast %256 : vector<1x1x32xf32> to vector<1x32xf32>
    %c0_120 = arith.constant 0 : index
    %c0_121 = arith.constant 0 : index
    %c0_122 = arith.constant 0 : index
    %258 = vector.load %arg29[%c0_120, %c0_121, %c0_122] : memref<1x1x32xf32, #tpu.memory_space<vmem>>, vector<1x1x32xf32>
    %259 = vector.shape_cast %258 : vector<1x1x32xf32> to vector<1x32xf32>
    %cst_123 = arith.constant dense<0.000000e+00> : vector<16xf32>
    %260 = vector.multi_reduction <add>, %255, %cst_123 [1] : vector<16x32xf32> to vector<16xf32>
    %261 = vector.shape_cast %260 : vector<16xf32> to vector<16x1xf32>
    %cst_124 = arith.constant 3.200000e+01 : f32
    %262 = vector.broadcast %cst_124 : f32 to vector<16x1xf32>
    %263 = arith.divf %261, %262 : vector<16x1xf32>
    %264 = vector.broadcast %263 : vector<16x1xf32> to vector<16x32xf32>
    %265 = arith.subf %255, %264 : vector<16x32xf32>
    %266 = arith.mulf %265, %265 : vector<16x32xf32>
    %cst_125 = arith.constant dense<0.000000e+00> : vector<16xf32>
    %267 = vector.multi_reduction <add>, %266, %cst_125 [1] : vector<16x32xf32> to vector<16xf32>
    %268 = vector.shape_cast %267 : vector<16xf32> to vector<16x1xf32>
    %cst_126 = arith.constant 3.200000e+01 : f32
    %269 = vector.broadcast %cst_126 : f32 to vector<16x1xf32>
    %270 = arith.divf %268, %269 : vector<16x1xf32>
    %271 = vector.broadcast %263 : vector<16x1xf32> to vector<16x32xf32>
    %272 = arith.subf %255, %271 : vector<16x32xf32>
    %cst_127 = arith.constant 9.99999974E-6 : f32
    %273 = vector.broadcast %cst_127 : f32 to vector<16x1xf32>
    %274 = arith.addf %270, %273 : vector<16x1xf32>
    %275 = math.rsqrt %274 : vector<16x1xf32>
    %276 = vector.broadcast %275 : vector<16x1xf32> to vector<16x32xf32>
    %277 = arith.mulf %272, %276 : vector<16x32xf32>
    %278 = vector.broadcast %257 : vector<1x32xf32> to vector<16x32xf32>
    %279 = arith.mulf %277, %278 : vector<16x32xf32>
    %280 = vector.broadcast %259 : vector<1x32xf32> to vector<16x32xf32>
    %281 = arith.addf %279, %280 : vector<16x32xf32>
    %c1_i32 = arith.constant 1 : i32
    %282 = arith.cmpi eq, %arg1, %c1_i32 : i32
    %283 = arith.extui %282 : i1 to i32
    %c0_i32_128 = arith.constant 0 : i32
    %284 = arith.cmpi ne, %283, %c0_i32_128 : i32
    scf.if %284 {
      %c0_131 = arith.constant 0 : index
      %c0_132 = arith.constant 0 : index
      %288 = vector.load %arg30[%c0_131, %c0_132] : memref<1x32xf32, #tpu.memory_space<vmem>>, vector<1x32xf32>
      %c0_133 = arith.constant 0 : index
      %c0_134 = arith.constant 0 : index
      %289 = vector.load %arg31[%c0_133, %c0_134] : memref<1x32xf32, #tpu.memory_space<vmem>>, vector<1x32xf32>
      %cst_135 = arith.constant dense<0.000000e+00> : vector<16xf32>
      %290 = vector.multi_reduction <add>, %281, %cst_135 [1] : vector<16x32xf32> to vector<16xf32>
      %291 = vector.shape_cast %290 : vector<16xf32> to vector<16x1xf32>
      %cst_136 = arith.constant 3.200000e+01 : f32
      %292 = vector.broadcast %cst_136 : f32 to vector<16x1xf32>
      %293 = arith.divf %291, %292 : vector<16x1xf32>
      %294 = vector.broadcast %293 : vector<16x1xf32> to vector<16x32xf32>
      %295 = arith.subf %281, %294 : vector<16x32xf32>
      %296 = arith.mulf %295, %295 : vector<16x32xf32>
      %cst_137 = arith.constant dense<0.000000e+00> : vector<16xf32>
      %297 = vector.multi_reduction <add>, %296, %cst_137 [1] : vector<16x32xf32> to vector<16xf32>
      %298 = vector.shape_cast %297 : vector<16xf32> to vector<16x1xf32>
      %cst_138 = arith.constant 3.200000e+01 : f32
      %299 = vector.broadcast %cst_138 : f32 to vector<16x1xf32>
      %300 = arith.divf %298, %299 : vector<16x1xf32>
      %301 = vector.broadcast %293 : vector<16x1xf32> to vector<16x32xf32>
      %302 = arith.subf %281, %301 : vector<16x32xf32>
      %cst_139 = arith.constant 9.99999974E-6 : f32
      %303 = vector.broadcast %cst_139 : f32 to vector<16x1xf32>
      %304 = arith.addf %300, %303 : vector<16x1xf32>
      %305 = math.rsqrt %304 : vector<16x1xf32>
      %306 = vector.broadcast %305 : vector<16x1xf32> to vector<16x32xf32>
      %307 = arith.mulf %302, %306 : vector<16x32xf32>
      %308 = vector.broadcast %288 : vector<1x32xf32> to vector<16x32xf32>
      %309 = arith.mulf %307, %308 : vector<16x32xf32>
      %310 = vector.broadcast %289 : vector<1x32xf32> to vector<16x32xf32>
      %311 = arith.addf %309, %310 : vector<16x32xf32>
      %312 = vector.shape_cast %311 : vector<16x32xf32> to vector<2x8x32xf32>
      %c0_140 = arith.constant 0 : index
      %c0_141 = arith.constant 0 : index
      %c0_142 = arith.constant 0 : index
      %313 = vector.load %arg32[%c0_140, %c0_141, %c0_142] : memref<2x8x32xf32, #tpu.memory_space<vmem>>, vector<2x8x32xf32>
      tpu.vector_store %arg32[%c0_140, %c0_141, %c0_142], %312 {strides = array<i32>} : memref<2x8x32xf32, #tpu.memory_space<vmem>>, vector<2x8x32xf32>,
    } else {
    }
    %c1_i32_129 = arith.constant 1 : i32
    %285 = arith.cmpi slt, %arg1, %c1_i32_129 : i32
    %286 = arith.extui %285 : i1 to i32
    %c0_i32_130 = arith.constant 0 : i32
    %287 = arith.cmpi ne, %286, %c0_i32_130 : i32
    scf.if %287 {
      %288 = vector.shape_cast %281 : vector<16x32xf32> to vector<2x8x32xf32>
      %c0_131 = arith.constant 0 : index
      %c0_132 = arith.constant 0 : index
      %c0_133 = arith.constant 0 : index
      %289 = vector.load %arg32[%c0_131, %c0_132, %c0_133] : memref<2x8x32xf32, #tpu.memory_space<vmem>>, vector<2x8x32xf32>
      tpu.vector_store %arg32[%c0_131, %c0_132, %c0_133], %288 {strides = array<i32>} : memref<2x8x32xf32, #tpu.memory_space<vmem>>, vector<2x8x32xf32>,
    } else {
    }
    return
  }
  func.func @transform_0(%arg0: i32, %arg1: i32) -> (i32, i32, i32) {
    %c0_i32 = arith.constant 0 : i32
    %c0_i32_0 = arith.constant 0 : i32
    %c0_i32_1 = arith.constant 0 : i32
    return %arg0, %c0_i32, %c0_i32_0 : i32, i32, i32
  }
  func.func @transform_1(%arg0: i32, %arg1: i32) -> (i32, i32, i32) {
    %c0_i32 = arith.constant 0 : i32
    %c0_i32_0 = arith.constant 0 : i32
    %c0_i32_1 = arith.constant 0 : i32
    return %arg0, %c0_i32, %c0_i32_0 : i32, i32, i32
  }
  func.func @transform_2(%arg0: i32, %arg1: i32) -> (i32, i32, i32) {
    %c0_i32 = arith.constant 0 : i32
    %c0_i32_0 = arith.constant 0 : i32
    %c0_i32_1 = arith.constant 0 : i32
    return %arg0, %c0_i32, %c0_i32_0 : i32, i32, i32
  }
  func.func @transform_3(%arg0: i32, %arg1: i32) -> (i32, i32, i32) {
    %c0_i32 = arith.constant 0 : i32
    %c0_i32_0 = arith.constant 0 : i32
    %c0_i32_1 = arith.constant 0 : i32
    return %arg0, %c0_i32, %c0_i32_0 : i32, i32, i32
  }
  func.func @transform_4(%arg0: i32, %arg1: i32) -> (i32, i32, i32) {
    %c0_i32 = arith.constant 0 : i32
    %c0_i32_0 = arith.constant 0 : i32
    %c0_i32_1 = arith.constant 0 : i32
    return %arg1, %c0_i32, %c0_i32_0 : i32, i32, i32
  }
  func.func @transform_5(%arg0: i32, %arg1: i32) -> (i32, i32, i32) {
    %c0_i32 = arith.constant 0 : i32
    %c0_i32_0 = arith.constant 0 : i32
    %c0_i32_1 = arith.constant 0 : i32
    return %arg1, %c0_i32, %c0_i32_0 : i32, i32, i32
  }
  func.func @transform_6(%arg0: i32, %arg1: i32) -> (i32, i32, i32) {
    %c0_i32 = arith.constant 0 : i32
    %c0_i32_0 = arith.constant 0 : i32
    %c0_i32_1 = arith.constant 0 : i32
    return %arg1, %c0_i32, %c0_i32_0 : i32, i32, i32
  }
  func.func @transform_7(%arg0: i32, %arg1: i32) -> (i32, i32, i32) {
    %c0_i32 = arith.constant 0 : i32
    %c0_i32_0 = arith.constant 0 : i32
    %c0_i32_1 = arith.constant 0 : i32
    return %arg1, %c0_i32, %c0_i32_0 : i32, i32, i32
  }
  func.func @transform_8(%arg0: i32, %arg1: i32) -> (i32, i32, i32) {
    %c0_i32 = arith.constant 0 : i32
    %c0_i32_0 = arith.constant 0 : i32
    %c0_i32_1 = arith.constant 0 : i32
    return %arg1, %c0_i32, %c0_i32_0 : i32, i32, i32
  }
  func.func @transform_9(%arg0: i32, %arg1: i32) -> (i32, i32, i32) {
    %c0_i32 = arith.constant 0 : i32
    %c0_i32_0 = arith.constant 0 : i32
    %c0_i32_1 = arith.constant 0 : i32
    return %arg1, %c0_i32, %c0_i32_0 : i32, i32, i32
  }
  func.func @transform_10(%arg0: i32, %arg1: i32) -> (i32, i32, i32) {
    %c0_i32 = arith.constant 0 : i32
    %c0_i32_0 = arith.constant 0 : i32
    %c0_i32_1 = arith.constant 0 : i32
    return %arg1, %c0_i32, %c0_i32_0 : i32, i32, i32
  }
  func.func @transform_11(%arg0: i32, %arg1: i32) -> (i32, i32, i32) {
    %c0_i32 = arith.constant 0 : i32
    %c0_i32_0 = arith.constant 0 : i32
    %c0_i32_1 = arith.constant 0 : i32
    return %arg1, %c0_i32, %c0_i32_0 : i32, i32, i32
  }
  func.func @transform_12(%arg0: i32, %arg1: i32) -> (i32, i32, i32) {
    %c0_i32 = arith.constant 0 : i32
    %c0_i32_0 = arith.constant 0 : i32
    %c0_i32_1 = arith.constant 0 : i32
    return %arg1, %c0_i32, %c0_i32_0 : i32, i32, i32
  }
  func.func @transform_13(%arg0: i32, %arg1: i32) -> (i32, i32, i32) {
    %c0_i32 = arith.constant 0 : i32
    %c0_i32_0 = arith.constant 0 : i32
    %c0_i32_1 = arith.constant 0 : i32
    return %arg1, %c0_i32, %c0_i32_0 : i32, i32, i32
  }
  func.func @transform_14(%arg0: i32, %arg1: i32) -> (i32, i32, i32) {
    %c0_i32 = arith.constant 0 : i32
    %c0_i32_0 = arith.constant 0 : i32
    %c0_i32_1 = arith.constant 0 : i32
    return %arg1, %c0_i32, %c0_i32_0 : i32, i32, i32
  }
  func.func @transform_15(%arg0: i32, %arg1: i32) -> (i32, i32, i32) {
    %c0_i32 = arith.constant 0 : i32
    %c0_i32_0 = arith.constant 0 : i32
    %c0_i32_1 = arith.constant 0 : i32
    return %arg1, %c0_i32, %c0_i32_0 : i32, i32, i32
  }
  func.func @transform_16(%arg0: i32, %arg1: i32) -> (i32, i32, i32) {
    %c0_i32 = arith.constant 0 : i32
    %c0_i32_0 = arith.constant 0 : i32
    %c0_i32_1 = arith.constant 0 : i32
    return %arg1, %c0_i32, %c0_i32_0 : i32, i32, i32
  }
  func.func @transform_17(%arg0: i32, %arg1: i32) -> (i32, i32, i32) {
    %c0_i32 = arith.constant 0 : i32
    %c0_i32_0 = arith.constant 0 : i32
    %c0_i32_1 = arith.constant 0 : i32
    return %arg1, %c0_i32, %c0_i32_0 : i32, i32, i32
  }
  func.func @transform_18(%arg0: i32, %arg1: i32) -> (i32, i32, i32) {
    %c0_i32 = arith.constant 0 : i32
    %c0_i32_0 = arith.constant 0 : i32
    %c0_i32_1 = arith.constant 0 : i32
    return %arg1, %c0_i32, %c0_i32_0 : i32, i32, i32
  }
  func.func @transform_19(%arg0: i32, %arg1: i32) -> (i32, i32, i32) {
    %c0_i32 = arith.constant 0 : i32
    %c0_i32_0 = arith.constant 0 : i32
    %c0_i32_1 = arith.constant 0 : i32
    return %arg1, %c0_i32, %c0_i32_0 : i32, i32, i32
  }
  func.func @transform_20(%arg0: i32, %arg1: i32) -> (i32, i32, i32) {
    %c0_i32 = arith.constant 0 : i32
    %c0_i32_0 = arith.constant 0 : i32
    %c0_i32_1 = arith.constant 0 : i32
    return %arg1, %c0_i32, %c0_i32_0 : i32, i32, i32
  }
  func.func @transform_21(%arg0: i32, %arg1: i32) -> (i32, i32, i32) {
    %c0_i32 = arith.constant 0 : i32
    %c0_i32_0 = arith.constant 0 : i32
    %c0_i32_1 = arith.constant 0 : i32
    return %arg1, %c0_i32, %c0_i32_0 : i32, i32, i32
  }
  func.func @transform_22(%arg0: i32, %arg1: i32) -> (i32, i32, i32) {
    %c0_i32 = arith.constant 0 : i32
    %c0_i32_0 = arith.constant 0 : i32
    %c0_i32_1 = arith.constant 0 : i32
    return %arg1, %c0_i32, %c0_i32_0 : i32, i32, i32
  }
  func.func @transform_23(%arg0: i32, %arg1: i32) -> (i32, i32, i32) {
    %c0_i32 = arith.constant 0 : i32
    %c0_i32_0 = arith.constant 0 : i32
    %c0_i32_1 = arith.constant 0 : i32
    return %arg1, %c0_i32, %c0_i32_0 : i32, i32, i32
  }
  func.func @transform_24(%arg0: i32, %arg1: i32) -> (i32, i32, i32) {
    %c0_i32 = arith.constant 0 : i32
    %c0_i32_0 = arith.constant 0 : i32
    %c0_i32_1 = arith.constant 0 : i32
    return %arg1, %c0_i32, %c0_i32_0 : i32, i32, i32
  }
  func.func @transform_25(%arg0: i32, %arg1: i32) -> (i32, i32, i32) {
    %c0_i32 = arith.constant 0 : i32
    %c0_i32_0 = arith.constant 0 : i32
    %c0_i32_1 = arith.constant 0 : i32
    return %arg1, %c0_i32, %c0_i32_0 : i32, i32, i32
  }
  func.func @transform_26(%arg0: i32, %arg1: i32) -> (i32, i32, i32) {
    %c0_i32 = arith.constant 0 : i32
    %c0_i32_0 = arith.constant 0 : i32
    %c0_i32_1 = arith.constant 0 : i32
    return %arg1, %c0_i32, %c0_i32_0 : i32, i32, i32
  }
  func.func @transform_27(%arg0: i32, %arg1: i32) -> (i32, i32, i32) {
    %c0_i32 = arith.constant 0 : i32
    %c0_i32_0 = arith.constant 0 : i32
    %c0_i32_1 = arith.constant 0 : i32
    return %arg1, %c0_i32, %c0_i32_0 : i32, i32, i32
  }
  func.func @transform_28(%arg0: i32, %arg1: i32) -> (i32, i32) {
    %c0_i32 = arith.constant 0 : i32
    %c0_i32_0 = arith.constant 0 : i32
    %c0_i32_1 = arith.constant 0 : i32
    return %c0_i32, %c0_i32_0 : i32, i32
  }
  func.func @transform_29(%arg0: i32, %arg1: i32) -> (i32, i32) {
    %c0_i32 = arith.constant 0 : i32
    %c0_i32_0 = arith.constant 0 : i32
    %c0_i32_1 = arith.constant 0 : i32
    return %c0_i32, %c0_i32_0 : i32, i32
  }
  func.func @transform_30(%arg0: i32, %arg1: i32) -> (i32, i32, i32) {
    %c0_i32 = arith.constant 0 : i32
    %c0_i32_0 = arith.constant 0 : i32
    %c0_i32_1 = arith.constant 0 : i32
    return %arg0, %c0_i32, %c0_i32_0 : i32, i32, i32
  }
}

</mosaic_0001>

<bundles_post_ra>
// kernel: tpu_custom_call.1
= control target key start
LH: loop header
LB: loop body
LE: loop exit
PB: predicated region body
PF: predicated region fallthrough
CT: control target
= control target key end

     0   :  { %s11233_s6 = smov 1   ;;  %s11234_s10 = smov 2   ;;  %s13557_s0 = inlined_call_operand.smem [shape: u32[31], index: -1, kind: input, shape index: {}] }
   0x1   :  { %s11291_s5 = sld [smem:[%s13557_s0]]   ;;  %s11235_s14 = smov 3  }
   0x2   :  { %s11296_s9 = sld [smem:[%s13557_s0 + %s11233_s6]]   ;;  %s11236_s18 = smov 4  }
   0x3   :  { %s11301_s13 = sld [smem:[%s13557_s0 + %s11234_s10]]   ;;  %s11237_s22 = smov 5  }
   0x4   :  { %s11306_s17 = sld [smem:[%s13557_s0 + %s11235_s14]]   ;;  %s11238_s26 = smov 6  }
   0x5   :  { %s11311_s21 = sld [smem:[%s13557_s0 + %s11236_s18]]   ;;  %s11239_s30 = smov 7  }
   0x6   :  { %s11316_s25 = sld [smem:[%s13557_s0 + %s11237_s22]]   ;;  %s11240_s4 = smov 8  }
   0x7   :  { %13585 = sst [smem:[#allocation24_spill]] %s11291_s5  ;;  %s11241_s10 = smov 9  }
   0x8   :  { %13586 = sst [smem:[#allocation25_spill]] %s11296_s9  ;;  %s11242_s15 = smov 10  }
   0x9   :  { %13587 = sst [smem:[#allocation26_spill]] %s11301_s13  ;;  %s11243_s20 = smov 11  }
   0xa   :  { %13588 = sst [smem:[#allocation27_spill]] %s11306_s17  ;;  %s11245_s1 = smov 13  }
   0xb   :  { %13589 = sst [smem:[#allocation28_spill]] %s11311_s21  ;;  %s11246_s7 = smov 14  }
   0xc   :  { %13590 = sst [smem:[#allocation29_spill]] %s11316_s25  ;;  %s11248_s22 = smov 16  }
   0xd   :  { %s11321_s29 = sld [smem:[%s13557_s0 + %s11238_s26]]   ;;  %s11244_s26 = smov 12  }
   0xe   :  { %s11326_s3 = sld [smem:[%s13557_s0 + %s11239_s30]]   ;;  %s11249_s28 = smov 17  }
   0xf   :  { %s11331_s8 = sld [smem:[%s13557_s0 + %s11240_s4]]  }
  0x10   :  { %s11336_s14 = sld [smem:[%s13557_s0 + %s11241_s10]]  }
  0x11   :  { %s11341_s19 = sld [smem:[%s13557_s0 + %s11242_s15]]   ;;  %s11247_s15 = smov 15  }
  0x12   :  { %s11346_s24 = sld [smem:[%s13557_s0 + %s11243_s20]]  }
  0x13   :  { %13591 = sst [smem:[#allocation30_spill]] %s11321_s29 }
  0x14   :  { %13592 = sst [smem:[#allocation31_spill]] %s11326_s3 }
  0x15   :  { %13593 = sst [smem:[#allocation32_spill]] %s11331_s8 }
  0x16   :  { %13594 = sst [smem:[#allocation33_spill]] %s11336_s14 }
  0x17   :  { %13595 = sst [smem:[#allocation34_spill]] %s11341_s19 }
  0x18   :  { %13596 = sst [smem:[#allocation35_spill]] %s11346_s24 }
  0x19   :  { %s11351_s30 = sld [smem:[%s13557_s0 + %s11244_s26]]  }
  0x1a   :  { %s11356_s6 = sld [smem:[%s13557_s0 + %s11245_s1]]  }
  0x1b   :  { %s11361_s12 = sld [smem:[%s13557_s0 + %s11246_s7]]   ;;  %s11250_s7 = smov 18  }
  0x1c   :  { %s11366_s20 = sld [smem:[%s13557_s0 + %s11247_s15]]   ;;  %s11251_s15 = smov 19  }
  0x1d   :  { %s11371_s27 = sld [smem:[%s13557_s0 + %s11248_s22]]   ;;  %s11252_s22 = smov 20  }
  0x1e   :  { %s11376_s4 = sld [smem:[%s13557_s0 + %s11249_s28]]   ;;  %s11253_s28 = smov 21  }
  0x1f   :  { %13597 = sst [smem:[#allocation36_spill]] %s11351_s30 }
  0x20   :  { %13598 = sst [smem:[#allocation37_spill]] %s11356_s6 }
  0x21   :  { %13599 = sst [smem:[#allocation38_spill]] %s11361_s12 }
  0x22   :  { %13600 = sst [smem:[#allocation39_spill]] %s11366_s20 }
  0x23   :  { %13601 = sst [smem:[#allocation40_spill]] %s11371_s27 }
  0x24   :  { %13602 = sst [smem:[#allocation41_spill]] %s11376_s4 }
  0x25   :  { %s11381_s6 = sld [smem:[%s13557_s0 + %s11250_s7]]   ;;  %s11254_s7 = smov 22  }
  0x26   :  { %s11386_s20 = sld [smem:[%s13557_s0 + %s11251_s15]]   ;;  %s11255_s15 = smov 23  }
  0x27   :  { %s11391_s24 = sld [smem:[%s13557_s0 + %s11252_s22]]   ;;  %s11256_s22 = smov 24  }
  0x28   :  { %s11396_s4 = sld [smem:[%s13557_s0 + %s11253_s28]]   ;;  %s11257_s28 = smov 25  }
  0x29   :  { %s11401_s14 = sld [smem:[%s13557_s0 + %s11254_s7]]   ;;  %s11258_s7 = smov 26  }
  0x2b   :  { %13603 = sst [smem:[#allocation42_spill]] %s11381_s6 }
  0x2c   :  { %13604 = sst [smem:[#allocation43_spill]] %s11386_s20 }
  0x2d   :  { %13605 = sst [smem:[#allocation44_spill]] %s11391_s24 }
  0x2e   :  { %13606 = sst [smem:[#allocation45_spill]] %s11396_s4 }
  0x2f   :  { %13607 = sst [smem:[#allocation46_spill]] %s11401_s14 }
  0x30   :  { %s11406_s20 = sld [smem:[%s13557_s0 + %s11255_s15]]   ;;  %s11259_s15 = smov 27  }
  0x31   :  { %s11411_s24 = sld [smem:[%s13557_s0 + %s11256_s22]]   ;;  %s11260_s22 = smov 28  }
  0x32   :  { %s11416_s4 = sld [smem:[%s13557_s0 + %s11257_s28]]   ;;  %s11261_s28 = smov 29  }
  0x33   :  { %s11421_s14 = sld [smem:[%s13557_s0 + %s11258_s7]]   ;;  %s11262_s7 = smov 30  }
  0x34   :  { %s11426_s8 = sld [smem:[%s13557_s0 + %s11259_s15]]  }
  0x35   :  { %s11436_s3 = sld [smem:[%s13557_s0 + %s11261_s28]]  }
  0x36   :  { %13608 = sst [smem:[#allocation47_spill]] %s11406_s20 }
  0x37   :  { %13609 = sst [smem:[#allocation48_spill]] %s11411_s24 }
  0x38   :  { %13610 = sst [smem:[#allocation49_spill]] %s11416_s4 }
  0x39   :  { %13611 = sst [smem:[#allocation50_spill]] %s11421_s14 }
  0x3a   :  { %13612 = sst [smem:[#allocation51_spill]] %s11426_s8 }
  0x3b   :  { %s11431_s24 = sld [smem:[%s13557_s0 + %s11260_s22]]  }
  0x3c   :  { %13614 = sst [smem:[#allocation53_spill]] %s11436_s3 }
  0x3d   :  { %s11441_s14 = sld [smem:[%s13557_s0 + %s11262_s7]]  }
  0x41   :  { %13613 = sst [smem:[#allocation52_spill]] %s11431_s24 }
  0x43   :  { %13615 = sst [smem:[#allocation54_spill]] %s11441_s14 }
  0x44   :  { %66 = vsyncpa [#allocation3], 0 }
  0x45   :  { %67 = vsyncpa [#allocation6], 0 }
  0x46   :  { %68 = vsyncpa [#allocation9], 0 }
  0x47   :  { %69 = vsyncpa [#allocation4], 0  ;;  %s11443_s15 = smov 0   ;;  %s11445_s16 = smov 0  }
  0x48   :  { %s11447_s18 = smov 0   ;;  %s11449_s22 = smov 0  }
  0x49   :  { %s11451_s23 = smov 0   ;;  %s11453_s26 = smov 0  }
  0x4a LB: > { %s13616_s30 = sld [smem:[#allocation36_spill]]  ;;  %s11472_s0 = sadd.s32 4294967295, %s11231_s26   ;;  %s11231_s26 = sphi %s11453_s26, %s75_s26   ;;  %s11227_s23 = sphi %s11451_s23, %s13695_s23   ;;  %s11223_s22 = sphi %s11449_s22, %s13694_s22   ;;  %s11219_s18 = sphi %s11447_s18, %s13693_s18   ;;  %s11215_s16 = sphi %s11445_s16, %s13692_s16   ;;  %s11211_s15 = sphi %s11443_s15, %s13691_s15  }
  0x4b   : > { %s13617_s27 = sld [smem:[#allocation40_spill]]  ;;  %p361_p0 = scmp.ne.s32.totalorder %s11219_s18, %s11215_s16 }
  0x4c   : > { %s13618_s20 = sld [smem:[#allocation47_spill]]  ;;  %p362_p1 = scmp.eq.s32.totalorder %s11231_s26, 0 }
  0x4d   : > { %s13619_s17 = sld [smem:[#allocation27_spill]]  ;;  %p367_p2 = scmp.ne.s32.totalorder %s11215_s16, %s11211_s15 }
  0x4e   : > { %s13620_s13 = sld [smem:[#allocation26_spill]]  ;;  %p368_p3 = scmp.eq.s32.totalorder %s11472_s0, 0 }
  0x4f   : > { %s13621_s12 = sld [smem:[#allocation38_spill]]  ;;  %p11480_p4 = por %p362_p1, %p361_p0 }
  0x50   : > { %s13622_s9 = sld [smem:[#allocation25_spill]]  ;;  %p9832_p5 = scmp.ge.s32.totalorder %s11231_s26, 1 }
  0x51   : > { %s13623_s8 = sld [smem:[#allocation51_spill]]  ;;  %p11487_p6 = por %p368_p3, %p367_p2 }
  0x52   : > { %s13624_s6 = sld [smem:[#allocation42_spill]]  ;;  %p888_p7 = scmp.lt.s32.totalorder %s11231_s26, 3 }
  0x53   : > { %s13625_s4 = sld [smem:[#allocation49_spill]]  ;;  %s11263_s11 = smov [#allocation2]  }
  0x54   : > { %s13626_s19 = sld [smem:[#allocation34_spill]]  ;;  %p11493_p8 = pnand %p9832_p5, %p888_p7 }
  0x55   : > { %s13627_s5 = sld [smem:[#allocation24_spill]]  ;;  %s904_s15 = sshll.u32 %s11263_s11, 4  ;;  %s905_s15 = int_to_ptr.vmem [resolvable:$true] %s904_s15 }
  0x56   : > { %13628 = sst [smem:[#allocation55_spill]] %s11215_s16  ;;  %p10086_p9 = pneg %p11493_p8 }
  0x57   : > { %13629 = sst [smem:[#allocation56_spill]] %s11219_s18  ;;  %p10128_p11 = scmp.lt.s32.totalorder %s11231_s26, 2 }
  0x58   : > { %13630 = sst [smem:[#allocation57_spill]] %s11223_s22  ;;  %p11501_p10 = pnand %p10086_p9, %p368_p3 }
  0x59   : > { %13631 = sst [smem:[#allocation58_spill]] %s11227_s23 }
  0x5a   : > { %13632 = sst [smem:[#allocation59_spill]] %s11231_s26  ;;  %p10781_p13 = pneg %p11501_p10 }
  0x5b   : > { %13633 = sst [smem:[#allocation60_spill]] %s11472_s0  ;;  %s902_s7 = sshll.u32 %s13627_s5, 4  ;;  %s903_s7 = int_to_ptr.hbm [resolvable:$true] %s902_s7 }
  0x5c   : > { %s13635_s2 = scalar_select %p11487_p6, 1, 0 }
  0x5d   : > { %s10777_s14 = sshra.s32 %s903_s7, 4  ;;  %s10784_s11 = scalar_lea.hbm %s13627_s5, 16  ;;  %s10778_s14 = int_to_ptr.hbm [resolvable:$true] %s10777_s14 }
  0x5e   : > { %13636 = sst [smem:[#allocation61_spill]] %s13635_s2  ;;  %s10779_s3 = scalar_lea.hbm %s10778_s14, 16 }
  0x5f   : > { %p10780_p12 = scmp.ne.s32.totalorder %s10778_s14, %s10779_s3  ;;  %p10785_p2 = scmp.lt.s32.totalorder %s10778_s14, %s13627_s5 }
  0x60   : > { %p10786_p5 = scmp.lt.s32.totalorder %s10784_s11, %s10779_s3 }
  0x61   : > { %p10782_p0 = pnand %p10781_p13, %p10780_p12 }
  0x62   : > { %p10787_p7 = por %p10786_p5, %p10785_p2 }
  0x63   : > { %p10783_p1 = pneg %p10782_p0 }
  0x65   : > { %p10788_p9 = pnand %p10787_p7, %p10783_p1 }
  0x67   : > { %10791 = shalt.err (!%p10788_p9)
}
  0x68   : > { %s13560_s24 = smov 128   ;;  %s13561_s29 = smov 8  }
  0x69   : > { %10089 = dma.hbm_to_vmem [thread:$0]  (!%p11501_p10), %s903_s7, 256, %s905_s15, [#allocation3], %s13560_s24, %s13560_s24, %s13561_s29  }
  0x6a   : > { %p11522_p12 = pnand %p10128_p11, %p11480_p4  ;;  %s84_s14 = sadd.s32 1, %s11227_s23 }
  0x6b   : > { %p85_p0 = scmp.ge.s32.totalorder %s84_s14, 2  ;;  %s1019_s11 = sand.u32 1, %s11231_s26  }
  0x6c   : > { %s11531_s5 = sand.u32 1, %s11219_s18   ;;  %s11539_s1 = sshll.u32 %s11227_s23, 4 }
  0x6d   : > { %s13697_s14 = smov (%p85_p0, %s84_s14), 0  ;;  %s11536_s25 = sshll.u32 %s11531_s5, 4 }
  0x6e   : > { %13640 = sst [smem:[#allocation62_spill]] %s13697_s14  ;;  %s351_s21 = ssub.s32 %s11227_s23, %s13697_s14 }
  0x6f   : > { %p352_p1 = scmp.eq.s32.totalorder %s351_s21, 0  ;;  %s13641_s7 = sadd.s32 1, %s11219_s18 }
  0x70   : > { %s1028_s24 = scalar_lea.hbm %s13626_s19, %s11539_s1  ;;  %s1023_s29 = scalar_lea.vmem [#allocation10], %s11536_s25 }
  0x71   : > { %s11544_s15 = scalar_select %p352_p1, %s11219_s18, %s13641_s7  }
  0x72   : > { %s1031_s26 = sshll.u32 %s1023_s29, 4  ;;  %s1029_s22 = sshll.u32 %s1028_s24, 4  ;;  %s1032_s26 = int_to_ptr.vmem [resolvable:$true] %s1031_s26  ;;  %s1030_s22 = int_to_ptr.hbm [resolvable:$true] %s1029_s22 }
  0x73   : > { %13642 = sst [smem:[#allocation63_spill]] %s11544_s15  ;;  %s11549_s14 = scalar_lea.sflag [#allocation3], %s1019_s11 }
  0x74   : > { %s10807_s21 = sshra.s32 %s1030_s22, 4  ;;  %p11553_p11 = pneg %p11522_p12  ;;  %s10808_s21 = int_to_ptr.hbm [resolvable:$true] %s10807_s21 }
  0x75   : > { %s10809_s2 = scalar_lea.hbm %s10808_s21, 16  ;;  %s10814_s7 = scalar_lea.hbm %s13626_s19, 32 }
  0x76   : > { %p10810_p4 = scmp.ne.s32.totalorder %s10808_s21, %s10809_s2  ;;  %p10815_p7 = scmp.lt.s32.totalorder %s10808_s21, %s13626_s19 }
  0x77   : > { %p10816_p9 = scmp.lt.s32.totalorder %s10814_s7, %s10809_s2 }
  0x78   : > { %p10812_p2 = pnand %p11553_p11, %p10810_p4 }
  0x79   : > { %p10817_p0 = por %p10816_p9, %p10815_p7 }
  0x7a   : > { %p10813_p5 = pneg %p10812_p2 }
  0x7c   : > { %p10818_p1 = pnand %p10817_p0, %p10813_p5 }
  0x7e   : > { %10821 = shalt.err (!%p10818_p1)
}
  0x7f   : > { %s11266_s29 = smov 64   ;;  %s11267_s24 = smov 4  }
  0x80   : > { %10102 = dma.hbm_to_vmem [thread:$0]  (!%p11522_p12), %s1030_s22, 256, %s1032_s26, %s11549_s14, %s11266_s29, %s11266_s29, %s11267_s24  }
  0x81   : > { %s1056_s11 = scalar_lea.hbm %s13616_s30, %s11539_s1  ;;  %s1051_s2 = scalar_lea.vmem [#allocation11], %s11536_s25 }
  0x82   : > { %s1059_s21 = sshll.u32 %s1051_s2, 4  ;;  %s1057_s7 = sshll.u32 %s1056_s11, 4  ;;  %s1060_s21 = int_to_ptr.vmem [resolvable:$true] %s1059_s21  ;;  %s1058_s7 = int_to_ptr.hbm [resolvable:$true] %s1057_s7 }
  0x83   : > { %s10837_s19 = sshra.s32 %s1058_s7, 4  ;;  %s10844_s18 = scalar_lea.hbm %s13616_s30, 32  ;;  %s10838_s19 = int_to_ptr.hbm [resolvable:$true] %s10837_s19 }
  0x84   : > { %s10839_s15 = scalar_lea.hbm %s10838_s19, 16  ;;  %p10845_p7 = scmp.lt.s32.totalorder %s10838_s19, %s13616_s30 }
  0x85   : > { %p10840_p4 = scmp.ne.s32.totalorder %s10838_s19, %s10839_s15  ;;  %p10846_p9 = scmp.lt.s32.totalorder %s10844_s18, %s10839_s15 }
  0x87   : > { %p10842_p2 = pnand %p10840_p4, %p11553_p11  ;;  %p10847_p0 = por %p10846_p9, %p10845_p7 }
  0x89   : > { %p10843_p5 = pneg %p10842_p2 }
  0x8b   : > { %p10848_p1 = pnand %p10847_p0, %p10843_p5 }
  0x8d   : > { %10851 = shalt.err (!%p10848_p1)
}
  0x8e   : > { %10105 = dma.hbm_to_vmem [thread:$0]  (!%p11522_p12), %s1058_s7, 256, %s1060_s21, %s11549_s14, %s11266_s29, %s11266_s29, %s11267_s24  }
  0x8f   : > { %s1084_s22 = scalar_lea.hbm %s13621_s12, %s11539_s1  ;;  %s1079_s26 = scalar_lea.vmem [#allocation12], %s11536_s25 }
  0x90   : > { %s1087_s19 = sshll.u32 %s1079_s26, 4  ;;  %s1085_s18 = sshll.u32 %s1084_s22, 4  ;;  %s1088_s19 = int_to_ptr.vmem [resolvable:$true] %s1087_s19  ;;  %s1086_s18 = int_to_ptr.hbm [resolvable:$true] %s1085_s18 }
  0x91   : > { %s10867_s15 = sshra.s32 %s1086_s18, 4  ;;  %s10874_s2 = scalar_lea.hbm %s13621_s12, 32  ;;  %s10868_s15 = int_to_ptr.hbm [resolvable:$true] %s10867_s15 }
  0x92   : > { %s10869_s11 = scalar_lea.hbm %s10868_s15, 16  ;;  %p10875_p7 = scmp.lt.s32.totalorder %s10868_s15, %s13621_s12 }
  0x93   : > { %p10870_p4 = scmp.ne.s32.totalorder %s10868_s15, %s10869_s11  ;;  %p10876_p9 = scmp.lt.s32.totalorder %s10874_s2, %s10869_s11 }
  0x95   : > { %p10872_p2 = pnand %p10870_p4, %p11553_p11  ;;  %p10877_p0 = por %p10876_p9, %p10875_p7 }
  0x97   : > { %p10873_p5 = pneg %p10872_p2 }
  0x99   : > { %p10878_p1 = pnand %p10877_p0, %p10873_p5 }
  0x9b   : > { %10881 = shalt.err (!%p10878_p1)
}
  0x9c   : > { %10108 = dma.hbm_to_vmem [thread:$0]  (!%p11522_p12), %s1086_s18, 256, %s1088_s19, %s11549_s14, %s11266_s29, %s11266_s29, %s11267_s24  }
  0x9d   : > { %s1112_s21 = scalar_lea.hbm %s13617_s27, %s11539_s1  ;;  %s1107_s7 = scalar_lea.vmem [#allocation13], %s11536_s25 }
  0x9e   : > { %s1115_s22 = sshll.u32 %s1107_s7, 4  ;;  %s1113_s26 = sshll.u32 %s1112_s21, 4  ;;  %s1116_s22 = int_to_ptr.vmem [resolvable:$true] %s1115_s22  ;;  %s1114_s26 = int_to_ptr.hbm [resolvable:$true] %s1113_s26 }
  0x9f   : > { %s10897_s15 = sshra.s32 %s1114_s26, 4  ;;  %s10904_s2 = scalar_lea.hbm %s13617_s27, 32  ;;  %s10898_s15 = int_to_ptr.hbm [resolvable:$true] %s10897_s15 }
  0xa0   : > { %s10899_s11 = scalar_lea.hbm %s10898_s15, 16  ;;  %p10905_p7 = scmp.lt.s32.totalorder %s10898_s15, %s13617_s27 }
  0xa1   : > { %p10900_p4 = scmp.ne.s32.totalorder %s10898_s15, %s10899_s11  ;;  %p10906_p9 = scmp.lt.s32.totalorder %s10904_s2, %s10899_s11 }
  0xa3   : > { %p10902_p2 = pnand %p10900_p4, %p11553_p11  ;;  %p10907_p0 = por %p10906_p9, %p10905_p7 }
  0xa5   : > { %p10903_p5 = pneg %p10902_p2 }
  0xa7   : > { %p10908_p1 = pnand %p10907_p0, %p10903_p5 }
  0xa9   : > { %10911 = shalt.err (!%p10908_p1)
}
  0xaa   : > { %10111 = dma.hbm_to_vmem [thread:$0]  (!%p11522_p12), %s1114_s26, 256, %s1116_s22, %s11549_s14, %s11266_s29, %s11266_s29, %s11267_s24  }
  0xab   : > { %s1140_s19 = scalar_lea.hbm %s13624_s6, %s11539_s1  ;;  %s1135_s18 = scalar_lea.vmem [#allocation14], %s11536_s25 }
  0xac   : > { %s1143_s21 = sshll.u32 %s1135_s18, 4  ;;  %s1141_s7 = sshll.u32 %s1140_s19, 4  ;;  %s1144_s21 = int_to_ptr.vmem [resolvable:$true] %s1143_s21  ;;  %s1142_s7 = int_to_ptr.hbm [resolvable:$true] %s1141_s7 }
  0xad   : > { %s10927_s15 = sshra.s32 %s1142_s7, 4  ;;  %s10934_s2 = scalar_lea.hbm %s13624_s6, 32  ;;  %s10928_s15 = int_to_ptr.hbm [resolvable:$true] %s10927_s15 }
  0xae   : > { %s10929_s11 = scalar_lea.hbm %s10928_s15, 16  ;;  %p10935_p7 = scmp.lt.s32.totalorder %s10928_s15, %s13624_s6 }
  0xaf   : > { %p10930_p4 = scmp.ne.s32.totalorder %s10928_s15, %s10929_s11  ;;  %p10936_p9 = scmp.lt.s32.totalorder %s10934_s2, %s10929_s11 }
  0xb1   : > { %p10932_p2 = pnand %p10930_p4, %p11553_p11  ;;  %p10937_p0 = por %p10936_p9, %p10935_p7 }
  0xb3   : > { %p10933_p5 = pneg %p10932_p2 }
  0xb5   : > { %p10938_p1 = pnand %p10937_p0, %p10933_p5 }
  0xb7   : > { %10941 = shalt.err (!%p10938_p1)
}
  0xb8   : > { %10114 = dma.hbm_to_vmem [thread:$0]  (!%p11522_p12), %s1142_s7, 256, %s1144_s21, %s11549_s14, %s11266_s29, %s11266_s29, %s11267_s24  }
  0xb9   : > { %s1185_s25 = scalar_lea.hbm %s13618_s20, %s11227_s23  ;;  %s1182_s1 = scalar_lea.vmem [#allocation15], %s11531_s5 }
  0xba   : > { %s1189_s22 = sshll.u32 %s1182_s1, 4  ;;  %s1187_s26 = sshll.u32 %s1185_s25, 4  ;;  %s1190_s22 = int_to_ptr.vmem [resolvable:$true] %s1189_s22  ;;  %s1188_s26 = int_to_ptr.hbm [resolvable:$true] %s1187_s26 }
  0xbb   : > { %s920_s19 = sshll.u32 %s13622_s9, 4  ;;  %s10957_s18 = sshra.s32 %s1188_s26, 4  ;;  %s10958_s18 = int_to_ptr.hbm [resolvable:$true] %s10957_s18  ;;  %s921_s19 = int_to_ptr.hbm [resolvable:$true] %s920_s19 }
  0xbc   : > { %s10959_s15 = scalar_lea.hbm %s10958_s18, 1  ;;  %s10964_s11 = scalar_lea.hbm %s13618_s20, 2 }
  0xbd   : > { %p10960_p4 = scmp.ne.s32.totalorder %s10958_s18, %s10959_s15  ;;  %p10965_p7 = scmp.lt.s32.totalorder %s10958_s18, %s13618_s20 }
  0xbe   : > { %p10966_p9 = scmp.lt.s32.totalorder %s10964_s11, %s10959_s15 }
  0xbf   : > { %p10962_p2 = pnand %p10960_p4, %p11553_p11 }
  0xc0   : > { %p10967_p0 = por %p10966_p9, %p10965_p7 }
  0xc1   : > { %p10963_p5 = pneg %p10962_p2 }
  0xc3   : > { %p10968_p1 = pnand %p10967_p0, %p10963_p5 }
  0xc5   : > { %10971 = shalt.err (!%p10968_p1)
}
  0xc6   : > { %10117 = dma.hbm_to_vmem [thread:$0]  (!%p11522_p12), %s1188_s26, 16, %s1190_s22, %s11549_s14  }
  0xc7   : > { %s11268_s21 = smov [#allocation5]   ;;  %s1208_s2 = scalar_lea.hbm %s13625_s4, %s11227_s23 }
  0xc8   : > { %s922_s7 = sshll.u32 %s11268_s21, 4  ;;  %s10987_s25 = sshra.s32 %s921_s19, 4  ;;  %s923_s7 = int_to_ptr.vmem [resolvable:$true] %s922_s7  ;;  %s10988_s25 = int_to_ptr.hbm [resolvable:$true] %s10987_s25 }
  0xc9   : > { %s10989_s1 = scalar_lea.hbm %s10988_s25, 16  ;;  %s10994_s18 = scalar_lea.hbm %s13622_s9, 16 }
  0xca   : > { %p10990_p4 = scmp.ne.s32.totalorder %s10988_s25, %s10989_s1  ;;  %p10995_p7 = scmp.lt.s32.totalorder %s10988_s25, %s13622_s9 }
  0xcb   : > { %p10996_p9 = scmp.lt.s32.totalorder %s10994_s18, %s10989_s1 }
  0xcc   : > { %p10992_p2 = pnand %p10990_p4, %p10781_p13 }
  0xcd   : > { %p10997_p0 = por %p10996_p9, %p10995_p7 }
  0xce   : > { %p10993_p5 = pneg %p10992_p2 }
  0xd0   : > { %p10998_p1 = pnand %p10997_p0, %p10993_p5 }
  0xd2   : > { %11001 = shalt.err (!%p10998_p1)
}
  0xd3   : > { %10092 = dma.hbm_to_vmem [thread:$0]  (!%p11501_p10), %s921_s19, 256, %s923_s7, [#allocation6], %s11266_s29, %s11266_s29, %s11267_s24  }
  0xd4   : > { %s1210_s22 = sshll.u32 %s1208_s2, 4  ;;  %s1205_s26 = scalar_lea.vmem [#allocation16], %s11531_s5  ;;  %s1211_s22 = int_to_ptr.hbm [resolvable:$true] %s1210_s22 }
  0xd5   : > { %s1212_s15 = sshll.u32 %s1205_s26, 4  ;;  %s11017_s11 = sshra.s32 %s1211_s22, 4  ;;  %s1213_s15 = int_to_ptr.vmem [resolvable:$true] %s1212_s15  ;;  %s11018_s11 = int_to_ptr.hbm [resolvable:$true] %s11017_s11 }
  0xd6   : > { %s11019_s21 = scalar_lea.hbm %s11018_s11, 1  ;;  %s11024_s25 = scalar_lea.hbm %s13625_s4, 2 }
  0xd7   : > { %p11020_p4 = scmp.ne.s32.totalorder %s11018_s11, %s11019_s21  ;;  %p11025_p7 = scmp.lt.s32.totalorder %s11018_s11, %s13625_s4 }
  0xd8   : > { %p11026_p9 = scmp.lt.s32.totalorder %s11024_s25, %s11019_s21 }
  0xd9   : > { %p11022_p2 = pnand %p11020_p4, %p11553_p11 }
  0xda   : > { %p11027_p0 = por %p11026_p9, %p11025_p7 }
  0xdb   : > { %p11023_p5 = pneg %p11022_p2 }
  0xdd   : > { %p11028_p1 = pnand %p11027_p0, %p11023_p5 }
  0xdf   : > { %11031 = shalt.err (!%p11028_p1)
}
  0xe0   : > { %10120 = dma.hbm_to_vmem [thread:$0]  (!%p11522_p12), %s1211_s22, 16, %s1213_s15, %s11549_s14  }
  0xe1   : > { %s938_s19 = sshll.u32 %s13620_s13, 4  ;;  %s11269_s7 = smov [#allocation7]   ;;  %s939_s19 = int_to_ptr.hbm [resolvable:$true] %s938_s19 }
  0xe2   : > { %s940_s2 = sshll.u32 %s11269_s7, 4  ;;  %s955_s1 = sshll.u32 %s13619_s17, 4  ;;  %s941_s2 = int_to_ptr.vmem [resolvable:$true] %s940_s2  ;;  %s956_s1 = int_to_ptr.hbm [resolvable:$true] %s955_s1 }
  0xe3   : > { %s11047_s18 = sshra.s32 %s939_s19, 4  ;;  %s11054_s11 = scalar_lea.hbm %s13620_s13, 16  ;;  %s11048_s18 = int_to_ptr.hbm [resolvable:$true] %s11047_s18 }
  0xe4   : > { %s11049_s26 = scalar_lea.hbm %s11048_s18, 16  ;;  %p11055_p7 = scmp.lt.s32.totalorder %s11048_s18, %s13620_s13 }
  0xe5   : > { %p11050_p4 = scmp.ne.s32.totalorder %s11048_s18, %s11049_s26  ;;  %p11056_p9 = scmp.lt.s32.totalorder %s11054_s11, %s11049_s26 }
  0xe7   : > { %p11052_p2 = pnand %p11050_p4, %p10781_p13  ;;  %p11057_p0 = por %p11056_p9, %p11055_p7 }
  0xe9   : > { %p11053_p5 = pneg %p11052_p2 }
  0xeb   : > { %p11058_p1 = pnand %p11057_p0, %p11053_p5 }
  0xed   : > { %11061 = shalt.err (!%p11058_p1)
}
  0xee   : > { %10095 = dma.hbm_to_vmem [thread:$0]  (!%p11501_p10), %s939_s19, 256, %s941_s2, [#allocation6], %s11266_s29, %s11266_s29, %s11267_s24  }
  0xef   : > { %s11270_s22 = smov [#allocation8]   ;;  %s1231_s21 = scalar_lea.hbm %s13623_s8, %s11227_s23 }
  0xf0   : > { %s957_s15 = sshll.u32 %s11270_s22, 4  ;;  %s11077_s25 = sshra.s32 %s956_s1, 4  ;;  %s958_s15 = int_to_ptr.vmem [resolvable:$true] %s957_s15  ;;  %s11078_s25 = int_to_ptr.hbm [resolvable:$true] %s11077_s25 }
  0xf1   : > { %s11079_s7 = scalar_lea.hbm %s11078_s25, 16  ;;  %s11084_s18 = scalar_lea.hbm %s13619_s17, 16 }
  0xf2   : > { %p11080_p4 = scmp.ne.s32.totalorder %s11078_s25, %s11079_s7  ;;  %p11085_p7 = scmp.lt.s32.totalorder %s11078_s25, %s13619_s17 }
  0xf3   : > { %p11086_p9 = scmp.lt.s32.totalorder %s11084_s18, %s11079_s7 }
  0xf4   : > { %p11082_p2 = pnand %p11080_p4, %p10781_p13 }
  0xf5   : > { %p11087_p0 = por %p11086_p9, %p11085_p7 }
  0xf6   : > { %p11083_p5 = pneg %p11082_p2 }
  0xf8   : > { %p11088_p1 = pnand %p11087_p0, %p11083_p5 }
  0xfa   : > { %11091 = shalt.err (!%p11088_p1)
}
  0xfb   : > { %s13644_s29 = smov 8   ;;  %s13645_s24 = smov 128  }
  0xfc   : > { %10098 = dma.hbm_to_vmem [thread:$0]  (!%p11501_p10), %s956_s1, 256, %s958_s15, [#allocation9], %s13645_s24, %s13645_s24, %s13644_s29  }
  0xfd   : > { %s1233_s19 = sshll.u32 %s1231_s21, 4  ;;  %s1228_s2 = scalar_lea.vmem [#allocation17], %s11531_s5  ;;  %s1234_s19 = int_to_ptr.hbm [resolvable:$true] %s1233_s19 }
  0xfe   : > { %s1235_s26 = sshll.u32 %s1228_s2, 4  ;;  %s11107_s11 = sshra.s32 %s1234_s19, 4  ;;  %s1236_s26 = int_to_ptr.vmem [resolvable:$true] %s1235_s26  ;;  %s11108_s11 = int_to_ptr.hbm [resolvable:$true] %s11107_s11 }
  0xff   : > { %s11109_s22 = scalar_lea.hbm %s11108_s11, 1  ;;  %s11114_s28 = scalar_lea.hbm %s13623_s8, 2 }
 0x100   : > { %p11110_p13 = scmp.ne.s32.totalorder %s11108_s11, %s11109_s22  ;;  %p11115_p5 = scmp.lt.s32.totalorder %s11108_s11, %s13623_s8 }
 0x101   : > { %p11116_p7 = scmp.lt.s32.totalorder %s11114_s28, %s11109_s22 }
 0x102   : > { %p11112_p4 = pnand %p11110_p13, %p11553_p11 }
 0x103   : > { %p11117_p9 = por %p11116_p7, %p11115_p5 }
 0x104   : > { %p11113_p2 = pneg %p11112_p4 }
 0x106   : > { %p11118_p0 = pnand %p11117_p9, %p11113_p2 }
 0x108   : > { %11121 = shalt.err (!%p11118_p0)
}
 0x109   : > { %10123 = dma.hbm_to_vmem [thread:$0]  (!%p11522_p12), %s1234_s19, 16, %s1236_s26, %s11549_s14  }
 0x10a   : > { %1244 = sbr.rel (%p11493_p8) target bundleno = 7143 (0x1be7), region = 140 }
 0x10f   : > { %11190 = dma.done.wait (%p368_p3), [#allocation3], 256  }
 0x110   : > { %11192 = vsyncadd (%p368_p3), [#allocation3], 4294967040 }
 0x111   : > { %11194 = dma.done.wait (%p368_p3), [#allocation6], 512  }
 0x112   : > { %11196 = vsyncadd (%p368_p3), [#allocation6], 4294966784 }
 0x113   : > { %11198 = dma.done.wait (%p368_p3), [#allocation9], 256  }
 0x114   : > { %11200 = vsyncadd (%p368_p3), [#allocation9], 4294967040  ;;  %s13646_s5 = sld [smem:[#allocation55_spill]]  ;;  %s1266_s10 = sand.u32 1, %s11472_s0  }
 0x115   : > { %s1267_s1 = scalar_lea.sflag [#allocation3], %s1266_s10 }
 0x11a   : > { %s11698_s3 = sand.u32 1, %s13646_s5  }
 0x11b   : > { %s11701_s14 = sshll.u32 %s11698_s3, 4 }
 0x11c   : > { %11202 = dma.done.wait (%p11487_p6), %s1267_s1, 1328  }
 0x11d   : > { %11204 = vsyncadd (%p11487_p6), %s1267_s1, 4294965968  ;;  %s13648_s21 = sld [smem:[#allocation57_spill]]  ;;  %s1300_s19 = scalar_lea.vmem [#allocation13], %s11701_s14 }
 0x11e   : > { %s13650_s7 = sld [smem:[#allocation28_spill]]  ;;  %s1310_s20 = scalar_lea.vmem [#allocation14], %s11701_s14 }
 0x11f   : > { %s13651_s18 = sld [smem:[#allocation30_spill]]  ;;  %s1319_s2 = scalar_lea.vmem [#allocation15], %s11698_s3 }
 0x120   : > { %s13652_s29 = sld [smem:[#allocation31_spill]]  ;;  %s1328_s27 = scalar_lea.vmem [#allocation16], %s11698_s3 }
 0x121   : > { %s13653_s24 = sld [smem:[#allocation32_spill]] }
 0x122   : > { %s13656_s26 = sld [smem:[#allocation37_spill]] }
 0x123   : > { %s13657_s11 = sld [smem:[#allocation39_spill]]  ;;  %p1502_p3 = scmp.lt.s32.totalorder %s13648_s21, 1 }
 0x124   : > { %s13658_s22 = sld [smem:[#allocation41_spill]]  ;;  %p9871_p6 = scmp.ne.s32.totalorder %s13648_s21, 0 }
 0x125   : > { %s13659_s28 = sld [smem:[#allocation43_spill]] }
 0x126   : > { %s13660_s5 = sld [smem:[#allocation45_spill]] }
 0x127   : > { %s13661_s10 = sld [smem:[#allocation44_spill]] }
 0x128   : > { %s11710_s15 = scalar_select %p1502_p3, %s13648_s21, 1 }
 0x129   : > { %s13662_s16 = sld [smem:[#allocation46_spill]] }
 0x12a   : > { %s10022_s1 = sshll.u32 %s11710_s15, 4  ;;  %s13663_s4 = sld [smem:[#allocation48_spill]] }
 0x12b   : > { %s13664_s8 = sld [smem:[#allocation50_spill]]  ;;  %s11716_s9 = scalar_lea.vmem %s13650_s7, %s10022_s1 }
 0x12c   : > { %s11719_s12 = scalar_lea.vmem %s13651_s18, %s10022_s1  ;;  %s11723_s13 = scalar_lea.vmem %s13652_s29, %s11710_s15 }
 0x12d   : > { %13665 = sst [smem:[#allocation64_spill]] %s11723_s13  ;;  %s11726_s17 = scalar_lea.vmem %s13653_s24, %s10022_s1 }
 0x12e   : > { %13666 = sst [smem:[#allocation65_spill]] %s11726_s17  ;;  %s11734_s30 = scalar_lea.vmem %s13656_s26, %s11710_s15 }
 0x12f   : > { %s11738_s25 = scalar_lea.vmem %s13657_s11, %s11710_s15  ;;  %s1537_s7 = scalar_lea.vmem %s13658_s22, %s11710_s15 }
 0x130   : > { %s1540_s6 = scalar_lea.vmem %s13659_s28, %s11710_s15  ;;  %s10025_s18 = sshll.u32 %s11710_s15, 5 }
 0x131   : > { %s1548_s23 = scalar_lea.vmem %s13660_s5, %s11710_s15  ;;  %s11748_s0 = scalar_lea.vmem %s13661_s10, %s10025_s18 }
 0x132   : > { %s1551_s29 = scalar_lea.vmem %s13662_s16, %s11710_s15  ;;  %s1554_s13 = scalar_lea.vmem %s13663_s4, %s11710_s15 }
 0x133   : > { %s1557_s24 = scalar_lea.vmem %s13664_s8, %s11710_s15  ;;  %s1280_s1 = scalar_lea.vmem [#allocation11], %s11701_s14 }
 0x134   : > { %s1290_s17 = scalar_lea.vmem [#allocation12], %s11701_s14  ;;  %s1337_s26 = scalar_lea.vmem [#allocation17], %s11698_s3 }
 0x135   : > { %1563 = sbr.rel (%p9871_p6) target bundleno = 317 (0x13d), region = 192 }
 0x13a   : > { %v1564_v0 = vld [vmem:[#allocation2] sm:$0xff]  ;;  %vm1566_vm0 = vcmask 261120   ;;  %v1565_v1 = vld [vmem:[#allocation2 + $0x8] sm:$0xff] }
 0x13b   : > { %1567 = vst.msk [vmem:[#allocation18] sm:$0xff] %vm1566_vm0, %v1564_v0 }
 0x13c   : > { %1568 = vst.msk [vmem:[#allocation18 + $0x8] sm:$0xff] %vm1566_vm0, %v1565_v1 }
 0x13d PF: > { %v10031_v2 = vld [vmem:[%s11716_s9 + $0x8] sm:$0xff]  ;;  %v10030_v4 = vld [vmem:[%s11716_s9] sm:$0xff]  ;;  %s13667_s8 = sld [smem:[#allocation64_spill]]  ;;  %v1571_v8 = vld [vmem:[#allocation8] sm:$0xff]  ;;  %vm1604_vm1 = vcmask 261120   ;;  %s11271_s9 = smov 112  }
 0x13e   : > { %v10033_v3 = vld [vmem:[%s11719_s12 + $0x8] sm:$0xff]  ;;  %v10032_v5 = vld [vmem:[%s11719_s12] sm:$0xff]  ;;  %1614 = vmatpush.bf16.msra.mxu0 %v10031_v2  ;;  %v1572_v9 = vld [vmem:[#allocation8 + $0x8] sm:$0xff]  ;;  %s13668_s4 = sld [smem:[#allocation29_spill]]  ;;  %s11272_s12 = smov 104   ;;  %vm1676_vm2 = vcmask 1047556  }
 0x13f   : > { %1652 = vmatpush.bf16.msra.mxu1 %v10033_v3  ;;  %s11273_s21 = smov 120   ;;  %v11274_v23 = vmov 1983009808   ;;  %v11275_v49 = vmov 1934713408   ;;  %s11276_s22 = smov 96  }
 0x140   : > { %v1681_v24 = vunpack.c.l.s4 %v11274_v23  ;;  %v1705_v50 = vunpack.c.l.s4 %v11275_v49  ;;  %vm2343_vm3 = vcmask 1043456   ;;  %vm2339_vm4 = vcmask 64512   ;;  %s11277_s28 = smov 24   ;;  %s11278_s5 = smov 16  }
 0x141   : > { %s11279_s10 = smov 8   ;;  %s13670_s16 = sld [smem:[#allocation65_spill]]  ;;  %vm3200_vm5 = vcmask 130048   ;;  %vm3202_vm6 = vcmask 195584  }
 0x142   : > { %v1569_v6 = vld [vmem:[#allocation18] sm:$0xff]  ;;  %1615 = vmatpush.bf16.msra.mxu0 %v10030_v4  ;;  %v11783_v30 = vunpack.c.0.s8 %v1681_v24  ;;  %v11814_v61 = vunpack.c.0.s8 %v1705_v50  ;;  %s13671_s18 = sld [smem:[#allocation33_spill]] }
 0x143   : > { %v1570_v7 = vld [vmem:[#allocation18 + $0x8] sm:$0xff]  ;;  %v1581_v10 = vadd.f32 %v1571_v8, %v1569_v6  ;;  %1653 = vmatpush.bf16.msra.mxu1 %v10032_v5  ;;  %v10672_v14 = vld [vmem:[%s13667_s8] ss:$0 sm:$0xff] }
 0x144   : > { %v1582_v11 = vadd.f32 %v1572_v9, %v1570_v7  ;;  %v1622_v13 = vpack.c.bf16 %v1570_v7, %v1569_v6  ;;  %s13669_s11 = scalar_lea.vmem %s13668_s4, %s11710_s15 }
 0x145   : > { %v10671_v18 = vld [vmem:[%s13669_s11] ss:$0 sm:$0xff] }
 0x146   : > { %v1583_v12 = vpack.c.bf16 %v1582_v11, %v1581_v10  ;;  %9889 = vmatmul.msk.bf16.vlgmr.msra.gmra.mxu1 %vm1604_vm1, %v1622_v13 }
 0x148   : > { %9880 = vmatmul.msk.bf16.vlgmr.msra.gmra.mxu0 %vm1604_vm1, %v1583_v12 }
 0x1c3   : > { %v1655_v16 = vpop.f32.mrf.mxu1 }
 0x1c4   : > { %v1656_v17 = vadd.f32 %v10672_v14, %v1655_v16 }
 0x1c5   : > { %v1617_v15 = vpop.f32.mrf.mxu0 }
 0x1c6   : > { %1820 = vrot.lane.b32.xlu1 %v1656_v17, %s11271_s9  ;;  %1823 = vrot.lane.b32.xlu0 %v1656_v17, %s11272_s12  ;;  %v1618_v20 = vadd.f32 %v10671_v18, %v1617_v15  ;;  %v1828_v33 = vrot.slane %v1656_v17, 4 }
 0x1c7   : > { %1817 = vrot.lane.b32.xlu2 %v1656_v17, %s11273_s21 }
 0x1c8   : > { %v1678_v45 = vrot.slane %v1618_v20, 4 }
 0x1cd   : > { %v1619_v19 = vpop.f32.mrf.mxu0 }
 0x1ce   : > { %v11777_v21 = vadd.f32 %v10671_v18, %v1619_v19 }
 0x1d0   : > { %v10245_v22 = vpack.i.bf16 %v11777_v21, %v1618_v20  ;;  %v3216_v48 = vrot.slane %v11777_v21, 4 }
 0x1d2   : > { %10246 = vrot.lane.b32.xlu1 %v10245_v22, %s11271_s9  ;;  %10236 = vrot.lane.b32.xlu0 %v10245_v22, %s11273_s21 }
 0x1da   : > { %10241 = vrot.lane.b32.xlu0 %v10245_v22, %s11272_s12 }
 0x221   : > { %v1818_v29 = vpop.permute.xlu2 %1817 }
 0x222   : > { %v1840_v40 = vrot.slane %v1818_v29, 4 }
 0x238   : > { %v1821_v25 = vpop.permute.xlu1 %1820  ;;  %v1824_v26 = vpop.permute.xlu0 %1823 }
 0x239   : > { %v1826_v27 = vrot.slane %v1821_v25, 4  ;;  %v1838_v28 = vrot.slane %v1824_v26, 4  ;;  %v1829_v35 = vsel %vm1676_vm2, %v1821_v25, %v1828_v33  ;;  %v1841_v47 = vsel %vm1676_vm2, %v1824_v26, %v1840_v40 }
 0x23a   : > { %v11800_v39 = vperm.slane %v1829_v35, %v11783_v30  ;;  %v11809_v56 = vperm.slane %v1841_v47, %v11783_v30 }
 0x23b   : > { %v1827_v31 = vsel %vm1676_vm2, %v1826_v27, %v1656_v17  ;;  %v1839_v32 = vsel %vm1676_vm2, %v1838_v28, %v1818_v29 }
 0x23c   : > { %v11788_v34 = vperm.slane %v1827_v31, %v11783_v30  ;;  %v11793_v37 = vperm.slane %v1839_v32, %v11783_v30  ;;  %v1864_v51 = vrot.slane %v11800_v39, 4 }
 0x23e   : > { %v1852_v36 = vrot.slane %v11788_v34, 4  ;;  %v1865_v63 = vsel %vm1676_vm2, %v11809_v56, %v1864_v51 }
 0x23f   : > { %v11828_v10 = vperm.slane %v1865_v63, %v11814_v61 }
 0x240   : > { %v11797_v38 = vsel %vm1676_vm2, %v11793_v37, %v1852_v36 }
 0x244   : > { %v10247_v41 = vpop.permute.xlu1 %10246  ;;  %v10237_v42 = vpop.permute.xlu0 %10236 }
 0x245   : > { %v10249_v43 = vunpack.i.h.bf16 %v10247_v41  ;;  %v10248_v44 = vunpack.i.l.bf16 %v10247_v41  ;;  %v10238_v46 = vunpack.i.l.bf16 %v10237_v42  ;;  %v11806_v55 = vunpack.i.h.bf16 %v10237_v42 }
 0x247   : > { %v3214_v52 = vrot.slane %v10249_v43, 4  ;;  %v1675_v53 = vrot.slane %v10248_v44, 4  ;;  %v1679_v54 = vsel %vm1676_vm2, %v10248_v44, %v1678_v45  ;;  %v3217_v57 = vsel %vm1676_vm2, %v10249_v43, %v3216_v48 }
 0x248   : > { %v10250_v58 = vpack.i.bf16 %v1618_v20, %v10238_v46  ;;  %v1687_v60 = vperm.slane %v1679_v54, %v11783_v30  ;;  %v3225_v0 = vperm.slane %v3217_v57, %v11783_v30  ;;  %v3228_v1 = vrot.slane %v11806_v55, 4 }
 0x249   : > { %v1677_v59 = vsel %vm1676_vm2, %v1675_v53, %v1618_v20  ;;  %v3215_v62 = vsel %vm1676_vm2, %v3214_v52, %v11777_v21  ;;  %v1690_v4 = vrot.slane %v10238_v46, 4  ;;  %v10260_v9 = vpack.i.bf16 %v11777_v21, %v11806_v55 }
 0x24a   : > { %10251 = vrot.lane.b32.xlu1 %v10250_v58, %s11276_s22  ;;  %v1683_v3 = vperm.slane %v1677_v59, %v11783_v30  ;;  %v3221_v7 = vperm.slane %v3215_v62, %v11783_v30  ;;  %v1714_v8 = vrot.slane %v1687_v60, 4  ;;  %v3252_v19 = vrot.slane %v3225_v0, 4 }
 0x24c   : > { %v10242_v2 = vpop.permute.xlu0 %10241  ;;  %v1702_v20 = vrot.slane %v1683_v3, 4  ;;  %v3240_v27 = vrot.slane %v3221_v7, 4 }
 0x24d   : > { %v10244_v5 = vunpack.i.h.bf16 %v10242_v2  ;;  %v10243_v6 = vunpack.i.l.bf16 %v10242_v2 }
 0x24f   : > { %v3226_v11 = vrot.slane %v10244_v5, 4  ;;  %v1688_v12 = vrot.slane %v10243_v6, 4  ;;  %v1691_v13 = vsel %vm1676_vm2, %v10243_v6, %v1690_v4  ;;  %v3229_v14 = vsel %vm1676_vm2, %v10244_v5, %v3228_v1 }
 0x250   : > { %v1699_v15 = vperm.slane %v1691_v13, %v11783_v30  ;;  %v3237_v16 = vperm.slane %v3229_v14, %v11783_v30  ;;  %v10265_v17 = vpack.i.bf16 %v10249_v43, %v10244_v5  ;;  %v10255_v18 = vpack.i.bf16 %v10248_v44, %v10243_v6 }
 0x251   : > { %v1689_v22 = vsel %vm1676_vm2, %v1688_v12, %v10238_v46  ;;  %v3227_v21 = vsel %vm1676_vm2, %v3226_v11, %v11806_v55 }
 0x252   : > { %v1695_v23 = vperm.slane %v1689_v22, %v11783_v30  ;;  %v1712_v24 = vrot.slane %v1699_v15, 4  ;;  %v1715_v25 = vsel %vm1676_vm2, %v1699_v15, %v1714_v8  ;;  %v3233_v26 = vperm.slane %v3227_v21, %v11783_v30  ;;  %10266 = vrot.lane.b32.xlu0 %v10265_v17, %s11276_s22  ;;  %10256 = vrot.lane.b32.xlu2 %v10255_v18, %s11276_s22 }
 0x253   : > { %v1723_v28 = vperm.slane %v1715_v25, %v11814_v61  ;;  %v3250_v29 = vrot.slane %v3237_v16, 4  ;;  %v3253_v31 = vsel %vm1676_vm2, %v3237_v16, %v3252_v19 }
 0x254   : > { %v1700_v32 = vrot.slane %v1695_v23, 4  ;;  %v1703_v33 = vsel %vm1676_vm2, %v1695_v23, %v1702_v20  ;;  %v1713_v35 = vsel %vm1676_vm2, %v1712_v24, %v1687_v60  ;;  %v3238_v36 = vrot.slane %v3233_v26, 4 }
 0x255   : > { %v1711_v40 = vperm.slane %v1703_v33, %v11814_v61  ;;  %v1719_v41 = vperm.slane %v1713_v35, %v11814_v61  ;;  %v1730_v42 = vrot.slane %v1723_v28, 4  ;;  %v1738_v43 = vpack.c.bf16 %v1723_v28, %v1723_v28 }
 0x256   : > { %v1701_v44 = vsel %vm1676_vm2, %v1700_v32, %v1683_v3  ;;  %v3239_v45 = vsel %vm1676_vm2, %v3238_v36, %v3221_v7  ;;  %v3241_v46 = vsel %vm1676_vm2, %v3233_v26, %v3240_v27  ;;  %v3251_v47 = vsel %vm1676_vm2, %v3250_v29, %v3225_v0 }
 0x257   : > { %v1707_v48 = vperm.slane %v1701_v44, %v11814_v61  ;;  %v1726_v49 = vrot.slane %v1711_v40, 4  ;;  %v1728_v50 = vrot.slane %v1719_v41, 4  ;;  %v1731_v51 = vsel %vm1676_vm2, 0.0, %v1730_v42 }
 0x258   : > { %v1736_v52 = vpack.c.bf16 %v1719_v41, %v1719_v41  ;;  %v1739_v53 = vpack.c.bf16 %v1731_v51, %v1731_v51  ;;  %v1897_v54 = vrot.slane %v1738_v43, 4  ;;  %v3245_v55 = vperm.slane %v3239_v45, %v11814_v61 }
 0x259   : > { %v3249_v57 = vperm.slane %v3241_v46, %v11814_v61  ;;  %v3257_v58 = vperm.slane %v3251_v47, %v11814_v61  ;;  %v3261_v59 = vperm.slane %v3253_v31, %v11814_v61  ;;  %v1724_v60 = vrot.slane %v1707_v48, 4 }
 0x25a   : > { %v1890_v62 = vrot.slane %v1736_v52, 4  ;;  %v1917_v63 = vrot.slane %v1739_v53, 4  ;;  %v3262_v0 = vrot.slane %v3245_v55, 4  ;;  %v3270_v1 = vpack.c.bf16 %v3245_v55, %v3245_v55  ;;  %10261 = vrot.lane.b32.xlu2 %v10260_v9, %s11276_s22 }
 0x25b   : > { %v3264_v2 = vrot.slane %v3249_v57, 4  ;;  %v3266_v3 = vrot.slane %v3257_v58, 4  ;;  %v3268_v4 = vrot.slane %v3261_v59, 4  ;;  %v3272_v5 = vpack.c.bf16 %v3249_v57, %v3249_v57 }
 0x25c   : > { %v3263_v6 = vsel %vm1676_vm2, 0.0, %v3262_v0  ;;  %v3274_v7 = vpack.c.bf16 %v3257_v58, %v3257_v58  ;;  %v3276_v8 = vpack.c.bf16 %v3261_v59, %v3261_v59  ;;  %v1725_v11 = vsel %vm1676_vm2, 0.0, %v1724_v60 }
 0x25d   : > { %v3265_v12 = vsel %vm1676_vm2, 0.0, %v3264_v2  ;;  %v3267_v13 = vsel %vm1676_vm2, 0.0, %v3266_v3  ;;  %v3269_v14 = vsel %vm1676_vm2, 0.0, %v3268_v4  ;;  %v3271_v15 = vpack.c.bf16 %v3263_v6, %v3263_v6 }
 0x25e   : > { %v3273_v16 = vpack.c.bf16 %v3265_v12, %v3265_v12  ;;  %v3275_v17 = vpack.c.bf16 %v3267_v13, %v3267_v13  ;;  %v3277_v9 = vpack.c.bf16 %v3269_v14, %v3269_v14  ;;  %v3428_v18 = vrot.slane %v3274_v7, 4 }
 0x25f   : > { %v3434_v19 = vrot.slane %v3276_v8, 4  ;;  %v1727_v20 = vsel %vm1676_vm2, 0.0, %v1726_v49  ;;  %v1729_v22 = vsel %vm1676_vm2, 0.0, %v1728_v50  ;;  %v1732_v21 = vpack.c.bf16 %v1707_v48, %v1707_v48 }
 0x260   : > { %v3448_v23 = vrot.slane %v3275_v17, 4  ;;  %v3454_v24 = vrot.slane %v3277_v9, 4  ;;  %v1733_v25 = vpack.c.bf16 %v1725_v11, %v1725_v11  ;;  %v1734_v26 = vpack.c.bf16 %v1711_v40, %v1711_v40 }
 0x261   : > { %v3435_v27 = vsel %vm1676_vm2, %v3434_v19, %v3272_v5  ;;  %v1735_v28 = vpack.c.bf16 %v1727_v20, %v1727_v20  ;;  %v1737_v29 = vpack.c.bf16 %v1729_v22, %v1729_v22  ;;  %v1892_v31 = vsel %vm1676_vm2, %v1890_v62, %v1732_v21 }
 0x262   : > { %v1896_v32 = vperm.slane %v1892_v31, %v11783_v30  ;;  %v1898_v33 = vsel %vm1676_vm2, %v1897_v54, %v1734_v26  ;;  %v3429_v35 = vsel %vm1676_vm2, %v3428_v18, %v3270_v1  ;;  %v3439_v36 = vperm.slane %v3435_v27, %v11783_v30 }
 0x263   : > { %v1902_v41 = vperm.slane %v1898_v33, %v11783_v30  ;;  %v1911_v42 = vrot.slane %v1737_v29, 4  ;;  %v1918_v43 = vsel %vm1676_vm2, %v1917_v63, %v1735_v28  ;;  %v3433_v40 = vperm.slane %v3429_v35, %v11783_v30 }
 0x264   : > { %v1922_v44 = vperm.slane %v1918_v43, %v11783_v30  ;;  %v3440_v45 = vrot.slane %v3439_v36, 4  ;;  %v3449_v46 = vsel %vm1676_vm2, %v3448_v23, %v3271_v15  ;;  %v3455_v47 = vsel %vm1676_vm2, %v3454_v24, %v3273_v16 }
 0x265   : > { %v1903_v48 = vrot.slane %v1902_v41, 4  ;;  %v1912_v49 = vsel %vm1676_vm2, %v1911_v42, %v1733_v25  ;;  %v3453_v50 = vperm.slane %v3449_v46, %v11783_v30  ;;  %v3459_v51 = vperm.slane %v3455_v47, %v11783_v30 }
 0x266   : > { %v1916_v52 = vperm.slane %v1912_v49, %v11783_v30  ;;  %v1923_v53 = vrot.slane %v1922_v44, 4  ;;  %v3441_v54 = vsel %vm1676_vm2, %v3440_v45, %v3433_v40  ;;  %v1862_v59 = vrot.slane %v11809_v56, 4 }
 0x267   : > { %v1904_v55 = vsel %vm1676_vm2, %v1903_v48, %v1896_v32  ;;  %v11885_v57 = vperm.slane %v3441_v54, %v11814_v61  ;;  %v3460_v58 = vrot.slane %v3459_v51, 4  ;;  %v1880_v63 = vrot.slane %v11828_v10, 4 }
 0x268   : > { %v11889_v60 = vperm.slane %v1904_v55, %v11814_v61  ;;  %v1924_v62 = vsel %vm1676_vm2, %v1923_v53, %v1916_v52  ;;  %v1850_v16 = vrot.slane %v11793_v37, 4  ;;  %v1863_v26 = vsel %vm1676_vm2, %v1862_v59, %v11800_v39 }
 0x269   : > { %v11894_v0 = vperm.slane %v1924_v62, %v11814_v61  ;;  %v3461_v1 = vsel %vm1676_vm2, %v3460_v58, %v3453_v50  ;;  %v3446_v2 = vrot.slane %v11885_v57, 4  ;;  %v3471_v5 = vshrl.u32 %v11885_v57, 16 }
 0x26a   : > { %v1934_v3 = vshrl.u32 %v11889_v60, 16  ;;  %v1909_v4 = vrot.slane %v11889_v60, 4  ;;  %v11901_v56 = vperm.slane %v3461_v1, %v11814_v61  ;;  %v1881_v23 = vsel %vm1676_vm2, 0.0, %v1880_v63 }
 0x26b   : > { %v1933_v6 = vpack.i.b16 %v11894_v0, %v11889_v60  ;;  %v1935_v7 = vshrl.u32 %v11894_v0, 16  ;;  %v1929_v8 = vrot.slane %v11894_v0, 4  ;;  %v11909_v11 = vsel %vm1676_vm2, 0, %v3446_v2 }
 0x26c   : > { %v11912_v12 = vsel %vm1676_vm2, 0, %v1909_v4  ;;  %v3470_v13 = vpack.i.b16 %v11901_v56, %v11885_v57  ;;  %v3472_v14 = vshrl.u32 %v11901_v56, 16  ;;  %v3466_v15 = vrot.slane %v11901_v56, 4 }
 0x26d   : > { %v11919_v17 = vpack.i.b16 %v1935_v7, %v1934_v3  ;;  %v11922_v9 = vsel %vm1676_vm2, 0, %v1929_v8  ;;  %v1940_v18 = vshrl.u32 %v11912_v12, 16  ;;  %v3477_v24 = vshrl.u32 %v11909_v11, 16 }
 0x26e   : > { %v1939_v19 = vpack.i.b16 %v11922_v9, %v11912_v12  ;;  %v1941_v20 = vshrl.u32 %v11922_v9, 16  ;;  %v11928_v22 = vpack.i.b16 %v3472_v14, %v3471_v5  ;;  %v11931_v21 = vsel %vm1676_vm2, 0, %v3466_v15 }
 0x26f   : > { %v3476_v37 = vpack.i.b16 %v11931_v21, %v11909_v11  ;;  %v3478_v25 = vshrl.u32 %v11931_v21, 16  ;;  %v1851_v28 = vsel %vm1676_vm2, %v1850_v16, %v11788_v34  ;;  %v1888_v31 = vpack.c.bf16 %v11828_v10, %v11828_v10 }
 0x270   : > { %v11940_v27 = vpack.i.b16 %v1941_v20, %v1940_v18  ;;  %v1889_v32 = vpack.c.bf16 %v1881_v23, %v1881_v23  ;;  %v1869_v33 = vperm.slane %v1863_v26, %v11814_v61  ;;  %v1857_v35 = vperm.slane %v1851_v28, %v11814_v61 }
 0x271   : > { %v11944_v29 = vpack.i.b16 %v3478_v25, %v3477_v24 }
 0x272   : > { %v1878_v36 = vrot.slane %v1869_v33, 4  ;;  %v1874_v41 = vrot.slane %v1857_v35, 4  ;;  %v1886_v43 = vpack.c.bf16 %v1869_v33, %v1869_v33  ;;  %v1882_v34 = vpack.c.bf16 %v1857_v35, %v1857_v35 }
 0x274   : > { %10270 = vxpose.binary.xlu0.c.b16.start.end [1/2] (short) (narrow) %v1889_v32, %v1888_v31, 16  ;;  %v1879_v39 = vsel %vm1676_vm2, 0.0, %v1878_v36  ;;  %v1875_v42 = vsel %vm1676_vm2, 0.0, %v1874_v41 }
 0x275   : > { %v1887_v40 = vpack.c.bf16 %v1879_v39, %v1879_v39  ;;  %v1883_v44 = vpack.c.bf16 %v1875_v42, %v1875_v42 }
 0x27f   : > { %10273 = vxpose.binary.xlu1.c.b16.start.end [1/2] (short) (narrow) %v1887_v40, %v1886_v43, 16 }
 0x280   : > { %10276 = vxpose.binary.xlu2.c.b16.start.end [1/2] (short) (narrow) %v1883_v44, %v1882_v34, 16 }
 0x2ac   : > { %v10257_v45 = vpop.permute.xlu2 %10256 }
 0x2ad   : > { %v10258_v10 = vunpack.i.l.bf16 %v10257_v45  ;;  %v10259_v46 = vunpack.i.h.bf16 %v10257_v45 }
 0x2af   : > { %v1764_v49 = vrot.slane %v10258_v10, 4  ;;  %v1752_v52 = vrot.slane %v10259_v46, 4 }
 0x2b4   : > { %v10262_v47 = vpop.permute.xlu2 %10261 }
 0x2b5   : > { %v10264_v53 = vunpack.i.h.bf16 %v10262_v47  ;;  %v10263_v63 = vunpack.i.l.bf16 %v10262_v47 }
 0x2b7   : > { %v3292_v7 = vrot.slane %v10264_v53, 4  ;;  %v3304_v23 = vrot.slane %v10263_v63, 4 }
 0x2bc   : > { %v10252_v48 = vpop.permute.xlu1 %10251 }
 0x2bd   : > { %v10254_v50 = vunpack.i.h.bf16 %v10252_v48  ;;  %v10253_v51 = vunpack.i.l.bf16 %v10252_v48 }
 0x2bf   : > { %v1754_v54 = vrot.slane %v10254_v50, 4  ;;  %v1765_v55 = vsel %vm1676_vm2, %v1764_v49, %v10253_v51  ;;  %v1766_v58 = vrot.slane %v10253_v51, 4  ;;  %v1753_v59 = vsel %vm1676_vm2, %v1752_v52, %v10254_v50 }
 0x2c0   : > { %v1771_v62 = vperm.slane %v1765_v55, %v11783_v30  ;;  %v1759_v8 = vperm.slane %v1753_v59, %v11783_v30 }
 0x2c1   : > { %v1755_v1 = vsel %vm1676_vm2, %v10259_v46, %v1754_v54  ;;  %v1767_v2 = vsel %vm1676_vm2, %v10258_v10, %v1766_v58 }
 0x2c2   : > { %v1763_v3 = vperm.slane %v1755_v1, %v11783_v30  ;;  %v1775_v4 = vperm.slane %v1767_v2, %v11783_v30  ;;  %v1776_v5 = vrot.slane %v1771_v62, 4  ;;  %v1778_v58 = vrot.slane %v1759_v8, 4 }
 0x2c4   : > { %v10267_v14 = vpop.permute.xlu0 %10266  ;;  %v1790_v15 = vrot.slane %v1763_v3, 4  ;;  %v1788_v16 = vrot.slane %v1775_v4, 4  ;;  %v1777_v24 = vsel %vm1676_vm2, %v1776_v5, %v1759_v8  ;;  %v1779_v5 = vsel %vm1676_vm2, %v1771_v62, %v1778_v58 }
 0x2c5   : > { %v10269_v18 = vunpack.i.h.bf16 %v10267_v14  ;;  %v10268_v20 = vunpack.i.l.bf16 %v10267_v14  ;;  %v1783_v33 = vperm.slane %v1777_v24, %v11814_v61 }
 0x2c6   : > { %v1791_v35 = vsel %vm1676_vm2, %v1775_v4, %v1790_v15  ;;  %v1789_v42 = vsel %vm1676_vm2, %v1788_v16, %v1763_v3 }
 0x2c7   : > { %v3290_v25 = vrot.slane %v10269_v18, 4  ;;  %v3293_v26 = vsel %vm1676_vm2, %v10269_v18, %v3292_v7  ;;  %v3302_v28 = vrot.slane %v10268_v20, 4  ;;  %v3305_v32 = vsel %vm1676_vm2, %v10268_v20, %v3304_v23 }
 0x2c8   : > { %v3301_v31 = vperm.slane %v3293_v26, %v11783_v30  ;;  %v1799_v39 = vperm.slane %v1791_v35, %v11814_v61  ;;  %v3313_v44 = vperm.slane %v3305_v32, %v11783_v30  ;;  %v1800_v45 = vrot.slane %v1783_v33, 4 }
 0x2c9   : > { %v3291_v36 = vsel %vm1676_vm2, %v3290_v25, %v10264_v53  ;;  %v3303_v41 = vsel %vm1676_vm2, %v3302_v28, %v10263_v63  ;;  %v1795_v48 = vperm.slane %v1789_v42, %v11814_v61  ;;  %v1808_v52 = vpack.c.bf16 %v1783_v33, %v1783_v33 }
 0x2ca   : > { %v3297_v43 = vperm.slane %v3291_v36, %v11783_v30  ;;  %v3309_v40 = vperm.slane %v3303_v41, %v11783_v30  ;;  %v3328_v34 = vrot.slane %v3301_v31, 4  ;;  %v1806_v10 = vrot.slane %v1799_v39, 4 }
 0x2cb   : > { %v1801_v49 = vsel %vm1676_vm2, 0.0, %v1800_v45  ;;  %v1804_v55 = vrot.slane %v1795_v48, 4  ;;  %v1814_v59 = vpack.c.bf16 %v1799_v39, %v1799_v39  ;;  %v1812_v3 = vpack.c.bf16 %v1795_v48, %v1795_v48 }
 0x2cc   : > { %v3314_v46 = vrot.slane %v3309_v40, 4  ;;  %v3316_v47 = vrot.slane %v3297_v43, 4  ;;  %v1807_v50 = vsel %vm1676_vm2, 0.0, %v1806_v10  ;;  %v11977_v51 = vsel %vm1676_vm2, %v3313_v44, %v3328_v34 }
 0x2cd   : > { %v1809_v53 = vpack.c.bf16 %v1801_v49, %v1801_v49  ;;  %v1815_v54 = vpack.c.bf16 %v1807_v50, %v1807_v50  ;;  %v1805_v1 = vsel %vm1676_vm2, 0.0, %v1804_v55  ;;  %v1787_v7 = vperm.slane %v1779_v5, %v11814_v61 }
 0x2ce   : > { %v11980_v63 = vsel %vm1676_vm2, %v3314_v46, %v3297_v43  ;;  %v11984_v2 = vsel %vm1676_vm2, %v3309_v40, %v3316_v47  ;;  %v1813_v4 = vpack.c.bf16 %v1805_v1, %v1805_v1  ;;  %v1861_v18 = vperm.slane %v11797_v38, %v11814_v61 }
 0x2cf   : > { %10285 = vxpose.binary.xlu0.c.b16.start.end [1/2] (short) (narrow) %v1809_v53, %v1808_v52, 16  ;;  %v1802_v14 = vrot.slane %v1787_v7, 4  ;;  %v1810_v15 = vpack.c.bf16 %v1787_v7, %v1787_v7  ;;  %v3326_v24 = vrot.slane %v3313_v44, 4 }
 0x2d0   : > { %10279 = vxpose.binary.xlu1.c.b16.start.end [1/2] (short) (narrow) %v1815_v54, %v1814_v59, 16  ;;  %v1876_v20 = vrot.slane %v1861_v18, 4  ;;  %v1884_v25 = vpack.c.bf16 %v1861_v18, %v1861_v18 }
 0x2d1   : > { %10282 = vxpose.binary.xlu2.c.b16.start.end [1/2] (short) (narrow) %v1813_v4, %v1812_v3, 16  ;;  %v1803_v8 = vsel %vm1676_vm2, 0.0, %v1802_v14  ;;  %v3327_v62 = vsel %vm1676_vm2, %v3326_v24, %v3301_v31 }
 0x2d2   : > { %v1811_v16 = vpack.c.bf16 %v1803_v8, %v1803_v8  ;;  %v1877_v23 = vsel %vm1676_vm2, 0.0, %v1876_v20  ;;  %v3333_v28 = vperm.slane %v3327_v62, %v11814_v61 }
 0x2d3   : > { %v1885_v26 = vpack.c.bf16 %v1877_v23, %v1877_v23 }
 0x2d4   : > { %v3342_v32 = vrot.slane %v3333_v28, 4  ;;  %v3350_v35 = vpack.c.bf16 %v3333_v28, %v3333_v28 }
 0x2d6   : > { %v3343_v33 = vsel %vm1676_vm2, 0.0, %v3342_v32 }
 0x2d7   : > { %v3351_v36 = vpack.c.bf16 %v3343_v33, %v3343_v33 }
 0x2e1   : > { %10288 = vxpose.binary.xlu2.c.b16.start.end [1/2] (short) (narrow) %v1811_v16, %v1810_v15, 16 }
 0x2f1   : > { %10291 = vxpose.binary.xlu2.c.b16.start.end [1/2] (short) (narrow) %v1885_v26, %v1884_v25, 16 }
 0x301   : > { %10294 = vxpose.binary.xlu2.c.b16.start.end [1/2] (short) (narrow) %v3351_v36, %v3350_v35, 16 }
 0x320   : > { %v10271_v39 = vpop.trf.xlu0 }
 0x321   : > { %v10277_v41 = vpop.trf.xlu2  ;;  %v2611_v32 = vrot.slane %v10271_v39, 4 }
 0x328   : > { %v11995_v43 = vpop.trf.xlu0 }
 0x329   : > { %v10278_v38 = vpop.trf.xlu2 }
 0x32b   : > { %v10274_v42 = vpop.trf.xlu1 }
 0x32c   : > { %v2605_v5 = vrot.slane %v10274_v42, 4 }
 0x32e   : > { %v2606_v23 = vsel %vm1676_vm2, %v2605_v5, %v10277_v41  ;;  %v2639_v5 = vrot.slane %v11995_v43, 4 }
 0x32f   : > { %v2610_v28 = vperm.slane %v2606_v23, %v11783_v30 }
 0x331   : > { %v2619_v39 = vrot.slane %v2610_v28, 4 }
 0x333   : > { %v10275_v34 = vpop.trf.xlu1 }
 0x334   : > { %v2633_v36 = vrot.slane %v10275_v34, 4 }
 0x372   : > { %v10283_v40 = vpop.trf.xlu2 }
 0x373   : > { %v2071_v31 = vrot.slane %v10283_v40, 4 }
 0x37a   : > { %v10284_v44 = vpop.trf.xlu2 }
 0x37b   : > { %v10286_v45 = vpop.trf.xlu0  ;;  %v2099_v50 = vrot.slane %v10284_v44, 4 }
 0x37c   : > { %v10280_v10 = vpop.trf.xlu1  ;;  %v2072_v47 = vsel %vm1676_vm2, %v2071_v31, %v10286_v45 }
 0x37d   : > { %v2077_v46 = vrot.slane %v10280_v10, 4  ;;  %v2076_v53 = vperm.slane %v2072_v47, %v11783_v30 }
 0x37f   : > { %v2085_v3 = vrot.slane %v2076_v53, 4 }
 0x382   : > { %v10289_v48 = vpop.trf.xlu2 }
 0x383   : > { %v10287_v49 = vpop.trf.xlu0  ;;  %v2078_v52 = vsel %vm1676_vm2, %v2077_v46, %v10289_v48 }
 0x384   : > { %v2082_v54 = vperm.slane %v2078_v52, %v11783_v30  ;;  %v10281_v55 = vpop.trf.xlu1  ;;  %v2100_v58 = vsel %vm1676_vm2, %v2099_v50, %v10287_v49  ;;  %v2634_v50 = vsel %vm1676_vm2, %v2633_v36, %v10278_v38 }
 0x385   : > { %v2105_v1 = vrot.slane %v10281_v55, 4  ;;  %v2104_v4 = vperm.slane %v2100_v58, %v11783_v30 }
 0x386   : > { %v2083_v59 = vrot.slane %v2082_v54, 4  ;;  %v2086_v14 = vsel %vm1676_vm2, %v2082_v54, %v2085_v3  ;;  %v2638_v3 = vperm.slane %v2634_v50, %v11783_v30 }
 0x387   : > { %v2113_v16 = vrot.slane %v2104_v4, 4  ;;  %v12010_v24 = vperm.slane %v2086_v14, %v11814_v61 }
 0x388   : > { %v2084_v7 = vsel %vm1676_vm2, %v2083_v59, %v2076_v53 }
 0x389   : > { %v2090_v20 = vperm.slane %v2084_v7, %v11814_v61  ;;  %v2147_v42 = vshrl.u32 %v12010_v24, 16 }
 0x38a   : > { %v10290_v8 = vpop.trf.xlu2 }
 0x38b   : > { %v2106_v15 = vsel %vm1676_vm2, %v2105_v1, %v10290_v8  ;;  %v2095_v35 = vrot.slane %v2090_v20, 4  ;;  %v2131_v45 = vshrl.u32 %v2090_v20, 16 }
 0x38c   : > { %v2110_v18 = vperm.slane %v2106_v15, %v11783_v30 }
 0x38d   : > { %v2096_v34 = vsel %vm1676_vm2, 0, %v2095_v35 }
 0x38e   : > { %v2111_v25 = vrot.slane %v2110_v18, 4  ;;  %v2114_v26 = vsel %vm1676_vm2, %v2110_v18, %v2113_v16  ;;  %v2139_v59 = vshrl.u32 %v2096_v34, 16  ;;  %v2647_v18 = vrot.slane %v2638_v3, 4 }
 0x38f   : > { %v12014_v62 = vperm.slane %v2114_v26, %v11814_v61 }
 0x390   : > { %v2112_v33 = vsel %vm1676_vm2, %v2111_v25, %v2104_v4  ;;  %v3321_v25 = vperm.slane %v11980_v63, %v11814_v61 }
 0x391   : > { %v2148_v41 = vshrl.u32 %v12014_v62, 16  ;;  %v2118_v40 = vperm.slane %v2112_v33, %v11814_v61  ;;  %v2145_v31 = vpack.i.b16 %v12014_v62, %v12010_v24 }
 0x392   : > { %v10292_v44 = vpop.trf.xlu2 }
 0x393   : > { %v2612_v10 = vsel %vm1676_vm2, %v2611_v32, %v10292_v44  ;;  %v2149_v46 = vpack.i.b16 %v2148_v41, %v2147_v42  ;;  %v2132_v47 = vshrl.u32 %v2118_v40, 16  ;;  %v2123_v49 = vrot.slane %v2118_v40, 4 }
 0x394   : > { %v2616_v48 = vperm.slane %v2612_v10, %v11783_v30  ;;  %v2129_v52 = vpack.i.b16 %v2118_v40, %v2090_v20  ;;  %v3338_v41 = vrot.slane %v3321_v25, 4 }
 0x395   : > { %10300 = vxpose.binary.xlu0.c.b16.start.end [1/2] (short) (narrow) %v2149_v46, %v2145_v31, 16  ;;  %v2133_v53 = vpack.i.b16 %v2132_v47, %v2131_v45  ;;  %v2124_v58 = vsel %vm1676_vm2, 0, %v2123_v49 }
 0x396   : > { %v2617_v54 = vrot.slane %v2616_v48, 4  ;;  %v2620_v55 = vsel %vm1676_vm2, %v2616_v48, %v2619_v39  ;;  %v2140_v1 = vshrl.u32 %v2124_v58, 16  ;;  %v2137_v38 = vpack.i.b16 %v2124_v58, %v2096_v34 }
 0x397   : > { %10297 = vxpose.binary.xlu1.c.b16.start.end [1/2] (short) (narrow) %v2133_v53, %v2129_v52, 16  ;;  %v2628_v7 = vperm.slane %v2620_v55, %v11814_v61  ;;  %v3339_v46 = vsel %vm1676_vm2, 0.0, %v3338_v41  ;;  %v3346_v52 = vpack.c.bf16 %v3321_v25, %v3321_v25 }
 0x398   : > { %v2618_v4 = vsel %vm1676_vm2, %v2617_v54, %v2610_v28  ;;  %v2141_v14 = vpack.i.b16 %v2140_v1, %v2139_v59  ;;  %v3347_v53 = vpack.c.bf16 %v3339_v46, %v3339_v46  ;;  %v3337_v54 = vperm.slane %v11977_v51, %v11814_v61 }
 0x399   : > { %v2624_v15 = vperm.slane %v2618_v4, %v11814_v61  ;;  %v2631_v23 = vrot.slane %v2628_v7, 4  ;;  %v3325_v51 = vperm.slane %v11984_v2, %v11814_v61 }
 0x39a   : > { %v10293_v8 = vpop.trf.xlu2  ;;  %10303 = vxpose.binary.xlu2.c.b16.start.end [1/2] (short) (narrow) %v2141_v14, %v2137_v38, 16  ;;  %v3344_v58 = vrot.slane %v3337_v54, 4 }
 0x39b   : > { %v2640_v16 = vsel %vm1676_vm2, %v2639_v5, %v10293_v8  ;;  %v2629_v32 = vrot.slane %v2624_v15, 4  ;;  %v2632_v36 = vsel %vm1676_vm2, 0, %v2631_v23  ;;  %v2665_v59 = vshrl.u32 %v2624_v15, 16 }
 0x39c   : > { %v2644_v20 = vperm.slane %v2640_v16, %v11783_v30  ;;  %v2689_v63 = vshrl.u32 %v2632_v36, 16  ;;  %v2681_v5 = vshrl.u32 %v2628_v7, 16  ;;  %v3345_v38 = vsel %vm1676_vm2, 0.0, %v3344_v58 }
 0x39d   : > { %v2630_v44 = vsel %vm1676_vm2, 0, %v2629_v32  ;;  %v3352_v16 = vpack.c.bf16 %v3337_v54, %v3337_v54  ;;  %v2097_v23 = vrot.slane %v12010_v24, 4  ;;  %v3340_v25 = vrot.slane %v3325_v51, 4 }
 0x39e   : > { %v2645_v26 = vrot.slane %v2644_v20, 4  ;;  %v2648_v43 = vsel %vm1676_vm2, %v2644_v20, %v2647_v18  ;;  %v2673_v48 = vshrl.u32 %v2630_v44, 16  ;;  %v3353_v18 = vpack.c.bf16 %v3345_v38, %v3345_v38 }
 0x39f   : > { %v2656_v28 = vperm.slane %v2648_v43, %v11814_v61  ;;  %v2125_v20 = vrot.slane %v12014_v62, 4 }
 0x3a0   : > { %v2646_v33 = vsel %vm1676_vm2, %v2645_v26, %v2638_v3  ;;  %v2098_v26 = vsel %vm1676_vm2, 0, %v2097_v23 }
 0x3a1   : > { %v2652_v35 = vperm.slane %v2646_v33, %v11814_v61  ;;  %v2659_v42 = vrot.slane %v2656_v28, 4  ;;  %v2682_v1 = vshrl.u32 %v2656_v28, 16  ;;  %v2679_v14 = vpack.i.b16 %v2656_v28, %v2628_v7 }
 0x3a2   : > { %v2155_v32 = vshrl.u32 %v2098_v26, 16  ;;  %v3341_v7 = vsel %vm1676_vm2, 0.0, %v3340_v25  ;;  %v10295_v62 = vpop.trf.xlu2 }
 0x3a3   : > { %v2660_v40 = vsel %vm1676_vm2, 0, %v2659_v42  ;;  %v2657_v45 = vrot.slane %v2652_v35, 4  ;;  %v2666_v55 = vshrl.u32 %v2652_v35, 16  ;;  %v2663_v3 = vpack.i.b16 %v2652_v35, %v2624_v15 }
 0x3a4   : > { %v2690_v10 = vshrl.u32 %v2660_v40, 16  ;;  %v2687_v47 = vpack.i.b16 %v2660_v40, %v2632_v36  ;;  %v2683_v8 = vpack.i.b16 %v2682_v1, %v2681_v5  ;;  %v2126_v15 = vsel %vm1676_vm2, 0, %v2125_v20 }
 0x3a5   : > { %v2658_v31 = vsel %vm1676_vm2, 0, %v2657_v45  ;;  %v2667_v4 = vpack.i.b16 %v2666_v55, %v2665_v59  ;;  %v2156_v43 = vshrl.u32 %v2126_v15, 16  ;;  %v2153_v28 = vpack.i.b16 %v2126_v15, %v2098_v26 }
 0x3a6   : > { %v2691_v39 = vpack.i.b16 %v2690_v10, %v2689_v63  ;;  %v2674_v34 = vshrl.u32 %v2658_v31, 16  ;;  %v2671_v49 = vpack.i.b16 %v2658_v31, %v2630_v44  ;;  %v3348_v35 = vpack.c.bf16 %v3325_v51, %v3325_v51 }
 0x3a7   : > { %v2157_v33 = vpack.i.b16 %v2156_v43, %v2155_v32  ;;  %v3349_v36 = vpack.c.bf16 %v3341_v7, %v3341_v7 }
 0x3a8   : > { %10315 = vxpose.binary.xlu1.c.b16.start.end [1/2] (short) (narrow) %v2691_v39, %v2687_v47, 16  ;;  %v2675_v50 = vpack.i.b16 %v2674_v34, %v2673_v48 }
 0x3aa   : > { %10318 = vxpose.binary.xlu0.c.b16.start.end [1/2] (short) (narrow) %v2675_v50, %v2671_v49, 16  ;;  %v10296_v42 = vpop.trf.xlu2  ;;  %v3608_v50 = vrot.slane %v10295_v62, 4 }
 0x3ab   : > { %10306 = vxpose.binary.xlu2.c.b16.start.end [1/2] (short) (narrow) %v3347_v53, %v3346_v52, 16  ;;  %v3636_v59 = vrot.slane %v10296_v42, 4 }
 0x3b8   : > { %10324 = vxpose.binary.xlu1.c.b16.start.end [1/2] (short) (narrow) %v2667_v4, %v2663_v3, 16 }
 0x3ba   : > { %10321 = vxpose.binary.xlu0.c.b16.start.end [1/2] (short) (narrow) %v2683_v8, %v2679_v14, 16 }
 0x3bb   : > { %10309 = vxpose.binary.xlu2.c.b16.start.end [1/2] (short) (narrow) %v3353_v18, %v3352_v16, 16 }
 0x3ca   : > { %10327 = vxpose.binary.xlu0.c.b16.start.end [1/2] (short) (narrow) %v2157_v33, %v2153_v28, 16 }
 0x3cb   : > { %10312 = vxpose.binary.xlu2.c.b16.start.end [1/2] (short) (narrow) %v3349_v36, %v3348_v35, 16 }
 0x43b   : > { %v10304_v2 = vpop.trf.xlu2 }
 0x441   : > { %v10301_v41 = vpop.trf.xlu0 }
 0x442   : > { %v2287_v15 = vrot.slane %v10301_v41, 4 }
 0x443   : > { %v10298_v24 = vpop.trf.xlu1  ;;  %v12057_v40 = vpop.trf.xlu2 }
 0x444   : > { %v2288_v41 = vsel %vm1676_vm2, %v2287_v15, %v10298_v24 }
 0x449   : > { %v12061_v63 = vpop.trf.xlu0 }
 0x44a   : > { %v2307_v24 = vrot.slane %v12061_v63, 4 }
 0x44b   : > { %v12059_v44 = vpop.trf.xlu1 }
 0x44c   : > { %v10307_v45 = vpop.trf.xlu2 }
 0x44d   : > { %v3609_v55 = vsel %vm1676_vm2, %v3608_v50, %v10307_v45 }
 0x44e   : > { %v3613_v1 = vperm.slane %v3609_v55, %v11783_v30 }
 0x450   : > { %v3622_v5 = vrot.slane %v3613_v1, 4 }
 0x454   : > { %v10308_v10 = vpop.trf.xlu2  ;;  %v12063_v31 = vpop.trf.xlu1 }
 0x455   : > { %v3637_v38 = vsel %vm1676_vm2, %v3636_v59, %v10308_v10 }
 0x456   : > { %v12065_v46 = vpop.trf.xlu0  ;;  %v3641_v25 = vperm.slane %v3637_v38, %v11783_v30 }
 0x458   : > { %v3650_v45 = vrot.slane %v3641_v25, 4 }
 0x45c   : > { %v10310_v47 = vpop.trf.xlu2  ;;  %v10317_v39 = vpop.trf.xlu1 }
 0x45d   : > { %v2847_v48 = vrot.slane %v10317_v39, 4  ;;  %v3614_v58 = vrot.slane %v10310_v47, 4 }
 0x45e   : > { %v10320_v34 = vpop.trf.xlu0 }
 0x45f   : > { %v2848_v49 = vsel %vm1676_vm2, %v2847_v48, %v10320_v34 }
 0x460   : > { %v2852_v14 = vperm.slane %v2848_v49, %v11783_v30 }
 0x462   : > { %v2853_v32 = vrot.slane %v2852_v14, 4 }
 0x464   : > { %v10311_v52 = vpop.trf.xlu2  ;;  %v12068_v53 = vpop.trf.xlu1 }
 0x465   : > { %v3642_v26 = vrot.slane %v10311_v52, 4  ;;  %v2292_v52 = vperm.slane %v2288_v41, %v11783_v30 }
 0x466   : > { %v12070_v54 = vpop.trf.xlu0 }
 0x46c   : > { %v10313_v3 = vpop.trf.xlu2  ;;  %v10326_v18 = vpop.trf.xlu1 }
 0x46d   : > { %v3615_v4 = vsel %vm1676_vm2, %v3614_v58, %v10313_v3 }
 0x46e   : > { %v3619_v8 = vperm.slane %v3615_v4, %v11783_v30  ;;  %v10323_v16 = vpop.trf.xlu0 }
 0x46f   : > { %v2841_v20 = vrot.slane %v10323_v16, 4 }
 0x470   : > { %v3620_v51 = vrot.slane %v3619_v8, 4  ;;  %v3623_v23 = vsel %vm1676_vm2, %v3619_v8, %v3622_v5 }
 0x471   : > { %v2842_v43 = vsel %vm1676_vm2, %v2841_v20, %v10326_v18  ;;  %v12083_v28 = vperm.slane %v3623_v23, %v11814_v61 }
 0x472   : > { %v3621_v7 = vsel %vm1676_vm2, %v3620_v51, %v3613_v1  ;;  %v2846_v33 = vperm.slane %v2842_v43, %v11783_v30 }
 0x473   : > { %v12087_v35 = vperm.slane %v3621_v7, %v11814_v61  ;;  %v3634_v39 = vrot.slane %v12083_v28, 4  ;;  %v3684_v16 = vshrl.u32 %v12083_v28, 16 }
 0x474   : > { %v12090_v36 = vsel %vm1676_vm2, %v2853_v32, %v2846_v33  ;;  %v10314_v62 = vpop.trf.xlu2 }
 0x475   : > { %v3643_v42 = vsel %vm1676_vm2, %v3642_v26, %v10314_v62  ;;  %v3632_v50 = vrot.slane %v12087_v35, 4  ;;  %v3635_v3 = vsel %vm1676_vm2, 0, %v3634_v39  ;;  %v3668_v63 = vshrl.u32 %v12087_v35, 16 }
 0x476   : > { %v3647_v10 = vperm.slane %v3643_v42, %v11783_v30  ;;  %v10328_v47 = vpop.trf.xlu0 }
 0x477   : > { %v2293_v48 = vrot.slane %v10328_v47, 4  ;;  %v2308_v47 = vsel %vm1676_vm2, %v2307_v24, %v12059_v44 }
 0x478   : > { %v3648_v34 = vrot.slane %v3647_v10, 4  ;;  %v3651_v49 = vsel %vm1676_vm2, %v3647_v10, %v3650_v45 }
 0x479   : > { %v12100_v55 = vperm.slane %v3651_v49, %v11814_v61  ;;  %v2294_v58 = vsel %vm1676_vm2, %v2293_v48, %v10304_v2  ;;  %v3633_v2 = vsel %vm1676_vm2, 0, %v3632_v50 }
 0x47a   : > { %v3649_v59 = vsel %vm1676_vm2, %v3648_v34, %v3641_v25  ;;  %v2298_v1 = vperm.slane %v2294_v58, %v11783_v30  ;;  %v3692_v25 = vshrl.u32 %v3635_v3, 16  ;;  %v3676_v45 = vshrl.u32 %v3633_v2, 16 }
 0x47b   : > { %v12108_v4 = vperm.slane %v3649_v59, %v11814_v61  ;;  %v3662_v5 = vrot.slane %v12100_v55, 4  ;;  %v3682_v38 = vpack.i.b16 %v12100_v55, %v12083_v28  ;;  %v3685_v14 = vshrl.u32 %v12100_v55, 16 }
 0x47c   : > { %v2299_v8 = vrot.slane %v2298_v1, 4  ;;  %v2827_v28 = vrot.slane %v12063_v31, 4  ;;  %v2821_v55 = vrot.slane %v12070_v54, 4 }
 0x47d   : > { %v3663_v18 = vsel %vm1676_vm2, 0, %v3662_v5  ;;  %v3660_v20 = vrot.slane %v12108_v4, 4  ;;  %v3666_v51 = vpack.i.b16 %v12108_v4, %v12087_v35  ;;  %v3669_v23 = vshrl.u32 %v12108_v4, 16 }
 0x47e   : > { %v10329_v15 = vpop.trf.xlu0  ;;  %v3693_v26 = vshrl.u32 %v3663_v18, 16  ;;  %v2300_v43 = vsel %vm1676_vm2, %v2299_v8, %v2292_v52  ;;  %v12123_v32 = vpack.i.b16 %v3685_v14, %v3684_v16  ;;  %v3690_v42 = vpack.i.b16 %v3663_v18, %v3635_v3 }
 0x47f   : > { %v2313_v7 = vrot.slane %v10329_v15, 4  ;;  %v3661_v33 = vsel %vm1676_vm2, 0, %v3660_v20  ;;  %v3670_v62 = vpack.i.b16 %v3669_v23, %v3668_v63  ;;  %v2304_v48 = vperm.slane %v2300_v43, %v11814_v61 }
 0x480   : > { %v3694_v41 = vpack.i.b16 %v3693_v26, %v3692_v25  ;;  %v3677_v10 = vshrl.u32 %v3661_v33, 16  ;;  %v3674_v49 = vpack.i.b16 %v3661_v33, %v3633_v2  ;;  %v2312_v52 = vperm.slane %v2308_v47, %v11783_v30 }
 0x481   : > { %v2314_v39 = vsel %vm1676_vm2, %v2313_v7, %v12057_v40  ;;  %v2305_v59 = vrot.slane %v2304_v48, 4  ;;  %v2330_v44 = vshrl.u32 %v2304_v48, 16 }
 0x482   : > { %v2318_v34 = vperm.slane %v2314_v39, %v11783_v30  ;;  %10333 = vxpose.binary.xlu0.c.b16.start.end [1/2] (short) (narrow) %v3694_v41, %v3690_v42, 16  ;;  %v3678_v50 = vpack.i.b16 %v3677_v10, %v3676_v45  ;;  %v1657_v41 = vpop.f32.mrf.mxu1  ;;  %v10764_v45 = vld [vmem:[%s13667_s8] ss:$0 sm:$0xff] }
 0x483   : > { %v2306_v5 = vsel %vm1676_vm2, 0, %v2305_v59  ;;  %v12158_v10 = vadd.f32 %v10764_v45, %v1657_v41 }
 0x484   : > { %v2319_v58 = vrot.slane %v2318_v34, 4  ;;  %10330 = vxpose.binary.xlu1.c.b16.start.end [1/2] (short) (narrow) %v3678_v50, %v3674_v49, 16  ;;  %v2336_v18 = vshrl.u32 %v2306_v5, 16 }
 0x486   : > { %v2320_v1 = vsel %vm1676_vm2, %v2319_v58, %v2312_v52 }
 0x487   : > { %v2324_v3 = vperm.slane %v2320_v1, %v11814_v61 }
 0x489   : > { %v2329_v24 = vpack.i.b16 %v2324_v3, %v2304_v48  ;;  %v2331_v40 = vshrl.u32 %v2324_v3, 16  ;;  %v2325_v14 = vrot.slane %v2324_v3, 4 }
 0x48b   : > { %v2345_v8 = vsel %vm2343_vm3, %v2329_v24, 0  ;;  %v2332_v2 = vpack.i.b16 %v2331_v40, %v2330_v44  ;;  %v2326_v63 = vsel %vm1676_vm2, 0, %v2325_v14 }
 0x48c   : > { %2354 = vmatpush.bf16.msra.mxu2 %v2345_v8  ;;  %v2335_v16 = vpack.i.b16 %v2326_v63, %v2306_v5  ;;  %v2337_v20 = vshrl.u32 %v2326_v63, 16 }
 0x48d   : > { %v2364_v23 = vsel %vm2343_vm3, %v2332_v2, 0 }
 0x48e   : > { %2373 = vmatpush.bf16.msra.mxu3 %v2364_v23  ;;  %v2383_v15 = vsel %vm2343_vm3, %v2335_v16, 0  ;;  %v2338_v25 = vpack.i.b16 %v2337_v20, %v2336_v18 }
 0x48f   : > { %9890 = vmatmul.msk.bf16.vlgmr.msra.gmra.mxu2 %vm2339_vm4, %v1933_v6 }
 0x490   : > { %2392 = vmatpush.bf16.msrb.mxu2 %v2383_v15  ;;  %v2402_v26 = vsel %vm2343_vm3, %v2338_v25, 0 }
 0x491   : > { %9891 = vmatmul.msk.bf16.vlgmr.msra.gmra.mxu3 %vm2339_vm4, %v11919_v17 }
 0x492   : > { %2411 = vmatpush.bf16.msrb.mxu3 %v2402_v26  ;;  %v2822_v26 = vsel %vm1676_vm2, %v2821_v55, %v12068_v53 }
 0x49f   : > { %9892 = vmatmul.msk.bf16.vlgmr.msrb.gmra.mxu2 %vm2339_vm4, %v1939_v19 }
 0x4a1   : > { %9893 = vmatmul.msk.bf16.vlgmr.msrb.gmra.mxu3 %vm2339_vm4, %v11940_v27 }
 0x512   : > { %v2356_v43 = vpop.f32.mrf.mxu2 }
 0x513   : > { %v2417_v60 = vsel %vm2339_vm4, %v2356_v43, -inf }
 0x514   : > { %v2375_v0 = vpop.f32.mrf.mxu3  ;;  %2418 = vmax.xlane.f32.xlu0 %v2417_v60 }
 0x515   : > { %v2420_v6 = vsel %vm2339_vm4, %v2375_v0, -inf }
 0x516   : > { %2421 = vmax.xlane.f32.xlu1 %v2420_v6 }
 0x51a   : > { %v2358_v7 = vpop.f32.mrf.mxu2 }
 0x51c   : > { %v2377_v17 = vpop.f32.mrf.mxu3 }
 0x51d   : > { %v2826_v17 = vperm.slane %v2822_v26, %v11783_v30 }
 0x522   : > { %v2394_v33 = vpop.f32.mrf.mxu2 }
 0x523   : > { %v2423_v42 = vsel %vm2339_vm4, %v2394_v33, -inf }
 0x524   : > { %v2413_v12 = vpop.f32.mrf.mxu3  ;;  %2424 = vmax.xlane.f32.xlu1 %v2423_v42 }
 0x525   : > { %v2426_v9 = vsel %vm2339_vm4, %v2413_v12, -inf }
 0x526   : > { %2427 = vmax.xlane.f32.xlu2 %v2426_v9  ;;  %v2858_v9 = vperm.slane %v12090_v36, %v11814_v61 }
 0x52a   : > { %v2396_v19 = vpop.f32.mrf.mxu2 }
 0x52c   : > { %v2415_v27 = vpop.f32.mrf.mxu3 }
 0x52e   : > { %v12165_v47 = vpop.trf.xlu0 }
 0x530   : > { %v12167_v39 = vpop.trf.xlu1 }
 0x536   : > { %v12169_v48 = vpop.trf.xlu0 }
 0x538   : > { %v12171_v34 = vpop.trf.xlu1 }
 0x53d   : > { %10339 = vxpose.binary.xlu0.c.b16.start.end [1/2] (short) (narrow) %v3670_v62, %v3666_v51, 16 }
 0x53e   : > { %3355 = vrot.lane.b32.xlu1 %v12158_v10, %s11273_s21 }
 0x587   : > { %v2419_v49 = vpop.xlane.xlu0 %2418 }
 0x588   : > { %v2429_v50 = vsub.f32 %v2356_v43, %v2419_v49  ;;  %v2865_v49 = vshrl.u32 %v2858_v9, 16 }
 0x589   : > { %v2422_v52 = vpop.xlane.xlu1 %2421 }
 0x58a   : > { %v2433_v58 = vmul.f32 1.442695, %v2429_v50  ;;  %v2430_v59 = vsub.f32 %v2375_v0, %v2422_v52 }
 0x58c   : > { %10686 = vpow2.f32 %v2433_v58  ;;  %v2435_v1 = vmul.f32 1.442695, %v2430_v59 }
 0x58e   : > { %10688 = vpow2.f32 %v2435_v1 }
 0x592   : > { %v10687_v35 = vpop.eup %10686 }
 0x593   : > { %v2441_v4 = vsel %vm2339_vm4, %v10687_v35, 0.0 }
 0x594   : > { %v10689_v51 = vpop.eup %10688  ;;  %2442 = vadd.xlane.f32.xlu2 %v2441_v4  ;;  %v2859_v4 = vrot.slane %v2858_v9, 4 }
 0x595   : > { %v2444_v62 = vsel %vm2339_vm4, %v10689_v51, 0.0 }
 0x596   : > { %2445 = vadd.xlane.f32.xlu1 %v2444_v62 }
 0x597   : > { %v2425_v14 = vpop.xlane.xlu1 %2424 }
 0x598   : > { %v2431_v8 = vsub.f32 %v2394_v33, %v2425_v14 }
 0x599   : > { %v2428_v3 = vpop.xlane.xlu2 %2427 }
 0x59a   : > { %v2432_v44 = vsub.f32 %v2413_v12, %v2428_v3  ;;  %v2437_v2 = vmul.f32 1.442695, %v2431_v8 }
 0x59c   : > { %v2439_v24 = vmul.f32 1.442695, %v2432_v44  ;;  %v2860_v44 = vsel %vm1676_vm2, 0, %v2859_v4 }
 0x59d   : > { %v2871_v8 = vshrl.u32 %v2860_v44, 16 }
 0x59e   : > { %10690 = vpow2.f32 %v2439_v24 }
 0x59f   : > { %10692 = vpow2.f32 %v2437_v2 }
 0x5a4   : > { %v10691_v40 = vpop.eup %10690 }
 0x5a5   : > { %v2450_v5 = vsel %vm2339_vm4, %v10691_v40, 0.0  ;;  %v12182_v63 = vpop.eup %10692 }
 0x5a6   : > { %2451 = vadd.xlane.f32.xlu1 %v2450_v5  ;;  %v2447_v16 = vsel %vm2339_vm4, %v12182_v63, 0.0 }
 0x5ab   : > { %3361 = vrot.lane.b32.xlu0 %v12158_v10, %s11272_s12 }
 0x5b0   : > { %v12186_v18 = vpop.permute.xlu1 %3355 }
 0x5bd   : > { %10336 = vxpose.binary.xlu2.c.b16.start.end [1/2] (short) (narrow) %v12123_v32, %v3682_v38, 16  ;;  %v2828_v32 = vsel %vm1676_vm2, %v2827_v28, %v12065_v46 }
 0x5be   : > { %v2832_v0 = vperm.slane %v2828_v32, %v11783_v30 }
 0x5c0   : > { %v2833_v54 = vrot.slane %v2832_v0, 4 }
 0x5c2   : > { %v2834_v46 = vsel %vm1676_vm2, %v2833_v54, %v2826_v17 }
 0x5c3   : > { %v2838_v41 = vperm.slane %v2834_v46, %v11814_v61 }
 0x5c5   : > { %v2863_v50 = vpack.i.b16 %v2858_v9, %v2838_v41  ;;  %v2864_v52 = vshrl.u32 %v2838_v41, 16  ;;  %v2839_v62 = vrot.slane %v2838_v41, 4 }
 0x5c7   : > { %v2866_v1 = vpack.i.b16 %v2865_v49, %v2864_v52  ;;  %v2840_v5 = vsel %vm1676_vm2, 0, %v2839_v62 }
 0x5c8   : > { %v2870_v2 = vshrl.u32 %v2840_v5, 16 }
 0x5d5   : > { %2448 = vadd.xlane.f32.xlu0 %v2447_v16  ;;  %v2872_v16 = vpack.i.b16 %v2871_v8, %v2870_v2 }
 0x5e9   : > { %v10340_v14 = vpop.trf.xlu0 }
 0x607   : > { %v2443_v20 = vpop.xlane.xlu2 %2442 }
 0x608   : > { %10694 = vrcp.f32 %v2443_v20 }
 0x609   : > { %v2446_v23 = vpop.xlane.xlu1 %2445 }
 0x60a   : > { %10696 = vrcp.f32 %v2446_v23 }
 0x60e   : > { %v10695_v38 = vpop.eup %10694 }
 0x60f   : > { %v2457_v15 = vmul.f32 %v10695_v38, %v2443_v20  ;;  %v10341_v20 = vpop.trf.xlu0 }
 0x610   : > { %v10697_v25 = vpop.eup %10696 }
 0x611   : > { %v2461_v43 = vsub.f32 2.0, %v2457_v15  ;;  %v2458_v60 = vmul.f32 %v10697_v25, %v2446_v23 }
 0x613   : > { %v2462_v6 = vsub.f32 2.0, %v2458_v60  ;;  %v2465_v7 = vmul.f32 %v10695_v38, %v2461_v43 }
 0x615   : > { %v2469_v31 = vmul.f32 %v10687_v35, %v2465_v7  ;;  %v2466_v33 = vmul.f32 %v10697_v25, %v2462_v6  ;;  %v3830_v25 = vrot.slane %v12165_v47, 4  ;;  %v3850_v7 = vrot.slane %v12169_v48, 4 }
 0x617   : > { %v2473_v42 = vpack.c.bf16 %v2469_v31, %v2469_v31  ;;  %v2470_v12 = vmul.f32 %v10689_v51, %v2466_v33  ;;  %v3831_v60 = vsel %vm1676_vm2, %v3830_v25, %v12167_v39  ;;  %v2869_v31 = vpack.i.b16 %v2860_v44, %v2840_v5 }
 0x618   : > { %v3835_v0 = vperm.slane %v3831_v60, %v11783_v30  ;;  %v3851_v47 = vsel %vm1676_vm2, %v3850_v7, %v12171_v34  ;;  %v3378_v5 = vrot.slane %v12186_v18, 4 }
 0x619   : > { %v2452_v19 = vpop.xlane.xlu1 %2451  ;;  %v2877_v53 = vsel %vm2339_vm4, %v2473_v42, 0  ;;  %v2474_v27 = vpack.c.bf16 %v2470_v12, %v2470_v12  ;;  %v3855_v42 = vperm.slane %v3851_v47, %v11783_v30 }
 0x61a   : > { %10698 = vrcp.f32 %v2452_v19  ;;  %2886 = vmatpush.bf16.xpose.msrb.mxu0 %v2877_v53  ;;  %v3836_v54 = vrot.slane %v3835_v0, 4 }
 0x61b   : > { %v2896_v45 = vsel %vm2339_vm4, %v2474_v27, 0 }
 0x61c   : > { %2905 = vmatpush.bf16.xpose.msrb.mxu1 %v2896_v45 }
 0x61d   : > { %v3362_v23 = vpop.permute.xlu0 %3361 }
 0x61e   : > { %v3379_v57 = vsel %vm1676_vm2, %v3362_v23, %v3378_v5 }
 0x620   : > { %v10699_v58 = vpop.eup %10698 }
 0x621   : > { %v2460_v59 = vmul.f32 %v10699_v58, %v2452_v19  ;;  %9894 = vmatmul.msk.bf16.vlgmr.msrb.gmra.mxu0 %vm2339_vm4, %v2863_v50  ;;  %v3856_v19 = vrot.slane %v3855_v42, 4 }
 0x623   : > { %v2464_v36 = vsub.f32 2.0, %v2460_v59  ;;  %9895 = vmatmul.msk.bf16.vlgmr.msrb.gmra.mxu1 %vm2339_vm4, %v2866_v1 }
 0x625   : > { %v2468_v35 = vmul.f32 %v10699_v58, %v2464_v36 }
 0x626   : > { %3358 = vrot.lane.b32.xlu2 %v12158_v10, %s11271_s9 }
 0x627   : > { %v2472_v51 = vmul.f32 %v10691_v40, %v2468_v35 }
 0x629   : > { %v2476_v3 = vpack.c.bf16 %v2472_v51, %v2472_v51 }
 0x62b   : > { %v2934_v24 = vsel %vm2339_vm4, %v2476_v3, 0 }
 0x62c   : > { %2943 = vmatpush.bf16.xpose.msra.mxu3 %v2934_v24 }
 0x633   : > { %9897 = vmatmul.msk.bf16.vlgmr.msra.gmra.mxu3 %vm2339_vm4, %v2872_v16 }
 0x648   : > { %v2449_v28 = vpop.xlane.xlu0 %2448 }
 0x649   : > { %10700 = vrcp.f32 %v2449_v28 }
 0x64f   : > { %v10701_v40 = vpop.eup %10700 }
 0x650   : > { %v2459_v55 = vmul.f32 %v10701_v40, %v2449_v28 }
 0x652   : > { %v2463_v38 = vsub.f32 2.0, %v2459_v55 }
 0x654   : > { %v2467_v32 = vmul.f32 %v10701_v40, %v2463_v38 }
 0x656   : > { %v2471_v15 = vmul.f32 %v12182_v63, %v2467_v32 }
 0x658   : > { %v2475_v26 = vpack.c.bf16 %v2471_v15, %v2471_v15 }
 0x65a   : > { %v2915_v43 = vsel %vm2339_vm4, %v2475_v26, 0 }
 0x65b   : > { %2924 = vmatpush.bf16.xpose.msra.mxu2 %v2915_v43 }
 0x65e   : > { %v10337_v6 = vpop.trf.xlu2 }
 0x65f   : > { %v3824_v17 = vrot.slane %v10337_v6, 4 }
 0x661   : > { %v3825_v33 = vsel %vm1676_vm2, %v3824_v17, %v10340_v14  ;;  %v3376_v14 = vrot.slane %v3362_v23, 4 }
 0x662   : > { %v3829_v63 = vperm.slane %v3825_v33, %v11783_v30  ;;  %9896 = vmatmul.msk.bf16.vlgmr.msra.gmra.mxu2 %vm2339_vm4, %v2869_v31 }
 0x663   : > { %v3377_v56 = vsel %vm1676_vm2, %v3376_v14, %v12186_v18 }
 0x664   : > { %v3837_v39 = vsel %vm1676_vm2, %v3836_v54, %v3829_v63  ;;  %v3383_v8 = vperm.slane %v3377_v56, %v11783_v30 }
 0x665   : > { %v3841_v48 = vperm.slane %v3837_v39, %v11814_v61 }
 0x666   : > { %v10338_v12 = vpop.trf.xlu2 }
 0x667   : > { %v3844_v46 = vrot.slane %v10338_v12, 4  ;;  %v3842_v27 = vrot.slane %v3841_v48, 4  ;;  %v3867_v49 = vshrl.u32 %v3841_v48, 16 }
 0x669   : > { %v3845_v9 = vsel %vm1676_vm2, %v3844_v46, %v10341_v20  ;;  %v3843_v52 = vsel %vm1676_vm2, 0, %v3842_v27  ;;  %v3388_v20 = vrot.slane %v3383_v8, 4 }
 0x66a   : > { %v3849_v53 = vperm.slane %v3845_v9, %v11783_v30  ;;  %v3873_v4 = vshrl.u32 %v3843_v52, 16 }
 0x66c   : > { %v3857_v41 = vsel %vm1676_vm2, %v3856_v19, %v3849_v53 }
 0x66d   : > { %v3861_v45 = vperm.slane %v3857_v41, %v11814_v61 }
 0x66f   : > { %v3866_v34 = vpack.i.b16 %v3861_v45, %v3841_v48  ;;  %v3868_v50 = vshrl.u32 %v3861_v45, 16  ;;  %v3862_v58 = vrot.slane %v3861_v45, 4 }
 0x671   : > { %v3880_v59 = vsel %vm2343_vm3, %v3866_v34, 0  ;;  %v3869_v1 = vpack.i.b16 %v3868_v50, %v3867_v49  ;;  %v3863_v36 = vsel %vm1676_vm2, 0, %v3862_v58 }
 0x672   : > { %3889 = vmatpush.bf16.msra.mxu0 %v3880_v59  ;;  %v3872_v35 = vpack.i.b16 %v3863_v36, %v3843_v52  ;;  %v3874_v51 = vshrl.u32 %v3863_v36, 16 }
 0x673   : > { %v3899_v62 = vsel %vm2343_vm3, %v3869_v1, 0 }
 0x674   : > { %3908 = vmatpush.bf16.msra.mxu1 %v3899_v62  ;;  %v3918_v3 = vsel %vm2343_vm3, %v3872_v35, 0  ;;  %v3875_v44 = vpack.i.b16 %v3874_v51, %v3873_v4 }
 0x675   : > { %9898 = vmatmul.msk.bf16.vlgmr.msra.gmra.mxu0 %vm2339_vm4, %v3470_v13  ;;  %3927 = vmatpush.bf16.msrb.mxu2 %v3918_v3  ;;  %v3387_v13 = vperm.slane %v3379_v57, %v11783_v30 }
 0x676   : > { %v3937_v24 = vsel %vm2343_vm3, %v3875_v44, 0 }
 0x677   : > { %9899 = vmatmul.msk.bf16.vlgmr.msra.gmra.mxu1 %vm2339_vm4, %v11928_v22  ;;  %3946 = vmatpush.bf16.msrb.mxu3 %v3937_v24  ;;  %v3366_v22 = vrot.slane %v12158_v10, 4  ;;  %v3400_v2 = vrot.slane %v3387_v13, 4 }
 0x678   : > { %9900 = vmatmul.msk.bf16.vlgmr.msrb.gmra.mxu2 %vm2339_vm4, %v3476_v37 }
 0x67a   : > { %9901 = vmatmul.msk.bf16.vlgmr.msrb.gmra.mxu3 %vm2339_vm4, %v11944_v29 }
 0x680   : > { %v3359_v11 = vpop.permute.xlu2 %3358 }
 0x681   : > { %v3364_v21 = vrot.slane %v3359_v11, 4  ;;  %v3367_v37 = vsel %vm1676_vm2, %v3359_v11, %v3366_v22 }
 0x682   : > { %v3375_v16 = vperm.slane %v3367_v37, %v11783_v30 }
 0x683   : > { %v3365_v29 = vsel %vm1676_vm2, %v3364_v21, %v12158_v10 }
 0x684   : > { %v3371_v23 = vperm.slane %v3365_v29, %v11783_v30  ;;  %v3401_v18 = vsel %vm1676_vm2, %v3400_v2, %v3375_v16  ;;  %v3402_v34 = vrot.slane %v3375_v16, 4 }
 0x685   : > { %v3407_v28 = vperm.slane %v3401_v18, %v11814_v61 }
 0x686   : > { %v3389_v40 = vsel %vm1676_vm2, %v3388_v20, %v3371_v23  ;;  %v3403_v50 = vsel %vm1676_vm2, %v3387_v13, %v3402_v34  ;;  %v3390_v35 = vrot.slane %v3371_v23, 4 }
 0x687   : > { %v3416_v55 = vrot.slane %v3407_v28, 4  ;;  %v3395_v38 = vperm.slane %v3389_v40, %v11814_v61  ;;  %v3424_v25 = vpack.c.bf16 %v3407_v28, %v3407_v28  ;;  %v3411_v52 = vperm.slane %v3403_v50, %v11814_v61 }
 0x688   : > { %v3391_v4 = vsel %vm1676_vm2, %v3383_v8, %v3390_v35 }
 0x689   : > { %v3417_v32 = vsel %vm1676_vm2, 0.0, %v3416_v55  ;;  %v3412_v15 = vrot.slane %v3395_v38, 4  ;;  %v3420_v10 = vpack.c.bf16 %v3395_v38, %v3395_v38  ;;  %v3418_v58 = vrot.slane %v3411_v52, 4 }
 0x68a   : > { %v3425_v26 = vpack.c.bf16 %v3417_v32, %v3417_v32  ;;  %v3426_v1 = vpack.c.bf16 %v3411_v52, %v3411_v52  ;;  %v3399_v51 = vperm.slane %v3391_v4, %v11814_v61 }
 0x68b   : > { %v3413_v43 = vsel %vm1676_vm2, 0.0, %v3412_v15  ;;  %v3419_v59 = vsel %vm1676_vm2, 0.0, %v3418_v58 }
 0x68c   : > { %10342 = vxpose.binary.xlu1.c.b16.start.end [1/2] (short) (narrow) %v3425_v26, %v3424_v25, 16  ;;  %v3421_v60 = vpack.c.bf16 %v3413_v43, %v3413_v43  ;;  %v3427_v36 = vpack.c.bf16 %v3419_v59, %v3419_v59  ;;  %v3414_v62 = vrot.slane %v3399_v51, 4  ;;  %v3422_v44 = vpack.c.bf16 %v3399_v51, %v3399_v51 }
 0x68e   : > { %10345 = vxpose.binary.xlu0.c.b16.start.end [1/2] (short) (narrow) %v3421_v60, %v3420_v10, 16  ;;  %v3415_v3 = vsel %vm1676_vm2, 0.0, %v3414_v62 }
 0x68f   : > { %v3423_v24 = vpack.c.bf16 %v3415_v3, %v3415_v3 }
 0x69e   : > { %v12265_v0 = vpop.f32.mrf.mxu0 }
 0x6a0   : > { %v12267_v6 = vpop.f32.mrf.mxu1 }
 0x6a6   : > { %v2890_v7 = vpop.f32.mrf.mxu0 }
 0x6a8   : > { %v2909_v17 = vpop.f32.mrf.mxu1 }
 0x6b6   : > { %v12269_v31 = vpop.f32.mrf.mxu3 }
 0x6b7   : > { %v10366_v33 = vpack.i.bf16 %v12269_v31, %v12265_v0 }
 0x6be   : > { %v2947_v54 = vpop.f32.mrf.mxu3 }
 0x6e5   : > { %v12273_v63 = vpop.f32.mrf.mxu2 }
 0x6ed   : > { %v2928_v47 = vpop.f32.mrf.mxu2 }
 0x6f2   : > { %v3891_v39 = vpop.f32.mrf.mxu0 }
 0x6f3   : > { %v3952_v42 = vsel %vm2339_vm4, %v3891_v39, -inf }
 0x6f4   : > { %3953 = vmax.xlane.f32.xlu1 %v3952_v42  ;;  %v3910_v12 = vpop.f32.mrf.mxu1 }
 0x6f5   : > { %v3955_v46 = vsel %vm2339_vm4, %v3910_v12, -inf }
 0x6f6   : > { %3956 = vmax.xlane.f32.xlu2 %v3955_v46 }
 0x6fa   : > { %v3893_v48 = vpop.f32.mrf.mxu0 }
 0x6fb   : > { %v12277_v9 = vpop.f32.mrf.mxu2 }
 0x6fc   : > { %v3912_v19 = vpop.f32.mrf.mxu1  ;;  %v3958_v53 = vsel %vm2339_vm4, %v12277_v9, -inf }
 0x6fd   : > { %v3948_v27 = vpop.f32.mrf.mxu3  ;;  %3959 = vmax.xlane.f32.xlu1 %v3958_v53 }
 0x6fe   : > { %v3961_v41 = vsel %vm2339_vm4, %v3948_v27, -inf }
 0x6ff   : > { %3962 = vmax.xlane.f32.xlu0 %v3961_v41 }
 0x703   : > { %v3931_v45 = vpop.f32.mrf.mxu2 }
 0x705   : > { %v3950_v49 = vpop.f32.mrf.mxu3 }
 0x71f   : > { %10348 = vxpose.binary.xlu2.c.b16.start.end [1/2] (short) (narrow) %v3427_v36, %v3426_v1, 16 }
 0x737   : > { %10351 = vxpose.binary.xlu1.c.b16.start.end [1/2] (short) (narrow) %v3423_v24, %v3422_v44, 16 }
 0x738   : > { %v10343_v5 = vpop.trf.xlu1 }
 0x739   : > { %v4140_v15 = vrot.slane %v10343_v5, 4 }
 0x73a   : > { %v10346_v14 = vpop.trf.xlu0 }
 0x73b   : > { %v4141_v43 = vsel %vm1676_vm2, %v4140_v15, %v10346_v14 }
 0x73c   : > { %v4145_v60 = vperm.slane %v4141_v43, %v11783_v30 }
 0x73e   : > { %v4154_v54 = vrot.slane %v4145_v60, 4 }
 0x740   : > { %v10344_v57 = vpop.trf.xlu1 }
 0x741   : > { %v4168_v56 = vrot.slane %v10344_v57, 4 }
 0x742   : > { %v10347_v13 = vpop.trf.xlu0 }
 0x743   : > { %v4169_v22 = vsel %vm1676_vm2, %v4168_v56, %v10347_v13 }
 0x744   : > { %v4173_v48 = vperm.slane %v4169_v22, %v11783_v30 }
 0x746   : > { %v4182_v49 = vrot.slane %v4173_v48, 4 }
 0x767   : > { %v3954_v11 = vpop.xlane.xlu1 %3953 }
 0x768   : > { %v3964_v21 = vsub.f32 %v3891_v39, %v3954_v11 }
 0x769   : > { %v3957_v2 = vpop.xlane.xlu2 %3956 }
 0x76a   : > { %v3968_v37 = vmul.f32 1.442695, %v3964_v21  ;;  %v3965_v8 = vsub.f32 %v3910_v12, %v3957_v2 }
 0x76c   : > { %10702 = vpow2.f32 %v3968_v37  ;;  %v3970_v16 = vmul.f32 1.442695, %v3965_v8 }
 0x76e   : > { %10704 = vpow2.f32 %v3970_v16 }
 0x770   : > { %v12301_v25 = vpop.xlane.xlu1 %3959 }
 0x772   : > { %v3963_v29 = vpop.xlane.xlu0 %3962  ;;  %v12289_v20 = vpop.eup %10702 }
 0x773   : > { %v3967_v23 = vsub.f32 %v3948_v27, %v3963_v29  ;;  %v3976_v18 = vsel %vm2339_vm4, %v12289_v20, 0.0 }
 0x774   : > { %v12293_v40 = vpop.eup %10704 }
 0x775   : > { %v3974_v28 = vmul.f32 1.442695, %v3967_v23  ;;  %v3979_v55 = vsel %vm2339_vm4, %v12293_v40, 0.0 }
 0x777   : > { %10706 = vpow2.f32 %v3974_v28 }
 0x77d   : > { %v12297_v38 = vpop.eup %10706 }
 0x77e   : > { %v3985_v32 = vsel %vm2339_vm4, %v12297_v38, 0.0 }
 0x790   : > { %3977 = vadd.xlane.f32.xlu2 %v3976_v18 }
 0x797   : > { %3980 = vadd.xlane.f32.xlu1 %v3979_v55 }
 0x79f   : > { %3986 = vadd.xlane.f32.xlu1 %v3985_v32 }
 0x7c0   : > { %v10349_v26 = vpop.trf.xlu2 }
 0x7c1   : > { %v4146_v10 = vrot.slane %v10349_v26, 4 }
 0x7c8   : > { %v10350_v39 = vpop.trf.xlu2 }
 0x7c9   : > { %v4174_v46 = vrot.slane %v10350_v39, 4 }
 0x7e3   : > { %v10352_v7 = vpop.trf.xlu1 }
 0x7e4   : > { %v4147_v17 = vsel %vm1676_vm2, %v4146_v10, %v10352_v7 }
 0x7e5   : > { %v4151_v47 = vperm.slane %v4147_v17, %v11783_v30 }
 0x7e7   : > { %v4152_v42 = vrot.slane %v4151_v47, 4  ;;  %v4155_v12 = vsel %vm1676_vm2, %v4151_v47, %v4154_v54 }
 0x7e8   : > { %v4163_v53 = vperm.slane %v4155_v12, %v11814_v61 }
 0x7e9   : > { %v4153_v19 = vsel %vm1676_vm2, %v4152_v42, %v4145_v60 }
 0x7ea   : > { %v12312_v27 = vperm.slane %v4153_v19, %v11814_v61  ;;  %v4166_v50 = vrot.slane %v4163_v53, 4  ;;  %v4216_v35 = vshrl.u32 %v4163_v53, 16 }
 0x7eb   : > { %v10353_v41 = vpop.trf.xlu1 }
 0x7ec   : > { %v4175_v45 = vsel %vm1676_vm2, %v4174_v46, %v10353_v41  ;;  %v4164_v59 = vrot.slane %v12312_v27, 4  ;;  %v4167_v62 = vsel %vm1676_vm2, 0, %v4166_v50  ;;  %v4200_v11 = vshrl.u32 %v12312_v27, 16 }
 0x7ed   : > { %v4179_v34 = vperm.slane %v4175_v45, %v11783_v30  ;;  %v4224_v13 = vshrl.u32 %v4167_v62, 16  ;;  %v3966_v45 = vsub.f32 %v12277_v9, %v12301_v25 }
 0x7ee   : > { %v4165_v24 = vsel %vm1676_vm2, 0, %v4164_v59 }
 0x7ef   : > { %v4180_v52 = vrot.slane %v4179_v34, 4  ;;  %v4183_v58 = vsel %vm1676_vm2, %v4179_v34, %v4182_v49  ;;  %v4208_v2 = vshrl.u32 %v4165_v24, 16  ;;  %v3972_v49 = vmul.f32 1.442695, %v3966_v45 }
 0x7f0   : > { %v4191_v1 = vperm.slane %v4183_v58, %v11814_v61 }
 0x7f1   : > { %v4181_v36 = vsel %vm1676_vm2, %v4180_v52, %v4173_v48 }
 0x7f2   : > { %v12321_v4 = vperm.slane %v4181_v36, %v11814_v61  ;;  %v4217_v51 = vshrl.u32 %v4191_v1, 16  ;;  %v4194_v3 = vrot.slane %v4191_v1, 4  ;;  %v4214_v44 = vpack.i.b16 %v4191_v1, %v4163_v53 }
 0x7f4   : > { %v4218_v5 = vpack.i.b16 %v4217_v51, %v4216_v35  ;;  %v4195_v14 = vsel %vm1676_vm2, 0, %v4194_v3  ;;  %v4192_v57 = vrot.slane %v12321_v4, 4  ;;  %v4198_v56 = vpack.i.b16 %v12321_v4, %v12312_v27  ;;  %v10039_v51 = vld [vmem:[%s1280_s1 + $0x8] sm:$0xff] }
 0x7f5   : > { %v4225_v22 = vshrl.u32 %v4195_v14, 16  ;;  %v4201_v21 = vshrl.u32 %v12321_v4, 16  ;;  %v4222_v8 = vpack.i.b16 %v4195_v14, %v4167_v62 }
 0x7f6   : > { %10360 = vxpose.binary.xlu2.c.b16.start.end [1/2] (short) (narrow) %v4218_v5, %v4214_v44, 16  ;;  %v4193_v37 = vsel %vm1676_vm2, 0, %v4192_v57  ;;  %v10038_v44 = vld [vmem:[%s1280_s1] sm:$0xff]  ;;  %s13672_s1 = scalar_lea.vmem %s13671_s18, %s11710_s15 }
 0x7f7   : > { %v4226_v16 = vpack.i.b16 %v4225_v22, %v4224_v13  ;;  %v4209_v29 = vshrl.u32 %v4193_v37, 16  ;;  %v4202_v23 = vpack.i.b16 %v4201_v21, %v4200_v11  ;;  %v4206_v18 = vpack.i.b16 %v4193_v37, %v4165_v24 }
 0x7f9   : > { %10354 = vxpose.binary.xlu0.c.b16.start.end [1/2] (short) (narrow) %v4226_v16, %v4222_v8, 16  ;;  %v4210_v28 = vpack.i.b16 %v4209_v29, %v4208_v2 }
 0x7fb   : > { %10357 = vxpose.binary.xlu1.c.b16.start.end [1/2] (short) (narrow) %v4210_v28, %v4206_v18, 16 }
 0x803   : > { %v3978_v55 = vpop.xlane.xlu2 %3977 }
 0x804   : > { %10708 = vrcp.f32 %v3978_v55 }
 0x806   : > { %10367 = vxpose.xlu2.b32.start.end [1/1] (short) (narrow) %v10366_v33, 8 }
 0x80a   : > { %v10709_v32 = vpop.eup %10708  ;;  %v3981_v15 = vpop.xlane.xlu1 %3980 }
 0x80b   : > { %v3992_v26 = vmul.f32 %v10709_v32, %v3978_v55  ;;  %10710 = vrcp.f32 %v3981_v15 }
 0x80d   : > { %v3996_v43 = vsub.f32 2.0, %v3992_v26 }
 0x80f   : > { %v4000_v10 = vmul.f32 %v10709_v32, %v3996_v43 }
 0x811   : > { %v10711_v60 = vpop.eup %10710  ;;  %v4004_v7 = vmul.f32 %v12289_v20, %v4000_v10 }
 0x812   : > { %v3993_v17 = vmul.f32 %v10711_v60, %v3981_v15  ;;  %v3987_v54 = vpop.xlane.xlu1 %3986 }
 0x813   : > { %10712 = vrcp.f32 %v3987_v54  ;;  %v4008_v47 = vpack.c.bf16 %v4004_v7, %v4004_v7 }
 0x814   : > { %v3997_v39 = vsub.f32 2.0, %v3993_v17  ;;  %10714 = vpow2.f32 %v3972_v49 }
 0x815   : > { %v4412_v42 = vsel %vm2339_vm4, %v4008_v47, 0 }
 0x816   : > { %v4001_v12 = vmul.f32 %v10711_v60, %v3997_v39  ;;  %4421 = vmatpush.bf16.xpose.msrb.mxu0 %v4412_v42 }
 0x818   : > { %v4005_v0 = vmul.f32 %v12293_v40, %v4001_v12 }
 0x819   : > { %v10713_v31 = vpop.eup %10712 }
 0x81a   : > { %v3995_v33 = vmul.f32 %v10713_v31, %v3987_v54  ;;  %v4009_v46 = vpack.c.bf16 %v4005_v0, %v4005_v0  ;;  %v10715_v40 = vpop.eup %10714 }
 0x81b   : > { %v3982_v34 = vsel %vm2339_vm4, %v10715_v40, 0.0 }
 0x81c   : > { %v3999_v48 = vsub.f32 2.0, %v3995_v33  ;;  %v4431_v19 = vsel %vm2339_vm4, %v4009_v46, 0  ;;  %v10028_v33 = vld [vmem:[#allocation7] sm:$0xff] }
 0x81d   : > { %4440 = vmatpush.bf16.xpose.msrb.mxu1 %v4431_v19 }
 0x81e   : > { %v4003_v53 = vmul.f32 %v10713_v31, %v3999_v48 }
 0x820   : > { %v4007_v20 = vmul.f32 %v12297_v38, %v4003_v53 }
 0x822   : > { %v4011_v27 = vpack.c.bf16 %v4007_v20, %v4007_v20 }
 0x824   : > { %v4469_v41 = vsel %vm2339_vm4, %v4011_v27, 0 }
 0x825   : > { %4478 = vmatpush.bf16.xpose.msra.mxu3 %v4469_v41 }
 0x86a   : > { %3983 = vadd.xlane.f32.xlu0 %v3982_v34 }
 0x893   : > { %10363 = vxpose.binary.xlu0.c.b16.start.end [1/2] (short) (narrow) %v4202_v23, %v4198_v56, 16 }
 0x897   : > { %v10361_v3 = vpop.trf.xlu2 }
 0x898   : > { %v4356_v5 = vrot.slane %v10361_v3, 4 }
 0x89f   : > { %v10362_v37 = vpop.trf.xlu2 }
 0x8a0   : > { %v4376_v16 = vrot.slane %v10362_v37, 4 }
 0x8a5   : > { %v10355_v50 = vpop.trf.xlu0 }
 0x8a6   : > { %v4362_v62 = vrot.slane %v10355_v50, 4 }
 0x8a7   : > { %v10358_v25 = vpop.trf.xlu1 }
 0x8a8   : > { %v4363_v24 = vsel %vm1676_vm2, %v4362_v62, %v10358_v25 }
 0x8a9   : > { %v4367_v14 = vperm.slane %v4363_v24, %v11783_v30 }
 0x8ab   : > { %v4368_v11 = vrot.slane %v4367_v14, 4 }
 0x8ad   : > { %v10356_v52 = vpop.trf.xlu0 }
 0x8ae   : > { %v4382_v57 = vrot.slane %v10356_v52, 4  ;;  %v12371_v52 = vld [vmem:[%s11734_s30] ss:$0 sm:$0xff] }
 0x8af   : > { %v10359_v56 = vpop.trf.xlu1 }
 0x8b0   : > { %v4383_v2 = vsel %vm1676_vm2, %v4382_v57, %v10359_v56 }
 0x8b1   : > { %v4387_v29 = vperm.slane %v4383_v2, %v11783_v30 }
 0x8b3   : > { %v4388_v55 = vrot.slane %v4387_v29, 4 }
 0x8dd   : > { %v3984_v58 = vpop.xlane.xlu0 %3983 }
 0x8de   : > { %10716 = vrcp.f32 %v3984_v58 }
 0x8e4   : > { %v10717_v38 = vpop.eup %10716 }
 0x8e5   : > { %v3994_v59 = vmul.f32 %v10717_v38, %v3984_v58 }
 0x8e7   : > { %v3998_v1 = vsub.f32 2.0, %v3994_v59  ;;  %v10368_v59 = vpop.trf.xlu2 }
 0x8e8   : > { %v10369_v25 = vunpack.i.l.bf16 %v10368_v59 }
 0x8e9   : > { %v4002_v36 = vmul.f32 %v10717_v38, %v3998_v1  ;;  %v10372_v1 = vunpack.i.h.bf16 %v10368_v59 }
 0x8ea   : > { %v3079_v24 = vrot.slane %v10369_v25, 4 }
 0x8eb   : > { %v4006_v35 = vmul.f32 %v10715_v40, %v4002_v36 }
 0x8ed   : > { %v4010_v4 = vpack.c.bf16 %v4006_v35, %v4006_v35  ;;  %v3089_v35 = vrot.slane %v10372_v1, 4 }
 0x8ef   : > { %v4450_v9 = vsel %vm2339_vm4, %v4010_v4, 0 }
 0x8f0   : > { %4459 = vmatpush.bf16.xpose.msra.mxu2 %v4450_v9 }
 0x8f8   : > { %4917 = vmatpush.bf16.msrb.mxu2 %v10039_v51 }
 0x8fc   : > { %4918 = vmatpush.bf16.msrb.mxu2 %v10038_v44 }
 0x93f   : > { %v10364_v13 = vpop.trf.xlu0 }
 0x940   : > { %v4357_v22 = vsel %vm1676_vm2, %v4356_v5, %v10364_v13 }
 0x941   : > { %v4361_v21 = vperm.slane %v4357_v22, %v11783_v30 }
 0x943   : > { %v4369_v8 = vsel %vm1676_vm2, %v4368_v11, %v4361_v21 }
 0x944   : > { %v4373_v23 = vperm.slane %v4369_v8, %v11814_v61 }
 0x946   : > { %v4374_v15 = vrot.slane %v4373_v23, 4  ;;  %v4399_v10 = vshrl.u32 %v4373_v23, 16 }
 0x947   : > { %v10365_v18 = vpop.trf.xlu0 }
 0x948   : > { %v4377_v28 = vsel %vm1676_vm2, %v4376_v16, %v10365_v18  ;;  %v4375_v54 = vsel %vm1676_vm2, 0, %v4374_v15 }
 0x949   : > { %v4381_v32 = vperm.slane %v4377_v28, %v11783_v30  ;;  %v4405_v12 = vshrl.u32 %v4375_v54, 16 }
 0x94b   : > { %v4389_v26 = vsel %vm1676_vm2, %v4388_v55, %v4381_v32 }
 0x94c   : > { %v4393_v43 = vperm.slane %v4389_v26, %v11814_v61 }
 0x94e   : > { %v4394_v60 = vrot.slane %v4393_v43, 4  ;;  %v4400_v7 = vshrl.u32 %v4393_v43, 16  ;;  %v4398_v17 = vpack.i.b16 %v4393_v43, %v4373_v23 }
 0x950   : > { %9902 = vmatmul.msk.bf16.vlgmr.msrb.gmra.mxu0 %vm2339_vm4, %v4398_v17  ;;  %v4401_v47 = vpack.i.b16 %v4400_v7, %v4399_v10  ;;  %v4395_v39 = vsel %vm1676_vm2, 0, %v4394_v60 }
 0x951   : > { %v4404_v42 = vpack.i.b16 %v4395_v39, %v4375_v54  ;;  %v4406_v0 = vshrl.u32 %v4395_v39, 16 }
 0x952   : > { %9903 = vmatmul.msk.bf16.vlgmr.msrb.gmra.mxu1 %vm2339_vm4, %v4401_v47 }
 0x953   : > { %9904 = vmatmul.msk.bf16.vlgmr.msra.gmra.mxu2 %vm2339_vm4, %v4404_v42  ;;  %v4407_v31 = vpack.i.b16 %v4406_v0, %v4405_v12 }
 0x955   : > { %9905 = vmatmul.msk.bf16.vlgmr.msra.gmra.mxu3 %vm2339_vm4, %v4407_v31 }
 0x963   : > { %9940 = vmatmul.msk.bf16.vlgmr.msrb.gmra.mxu2 %vm1604_vm1, %v10028_v33 }
 0x9cd   : > { %v4423_v46 = vpop.f32.mrf.mxu0 }
 0x9cf   : > { %v4442_v48 = vpop.f32.mrf.mxu1 }
 0x9d0   : > { %v10373_v19 = vpack.i.bf16 %v4442_v48, %v12267_v6 }
 0x9d2   : > { %10374 = vxpose.xlu0.b32.start.end [1/1] (short) (narrow) %v10373_v19, 8 }
 0x9d5   : > { %v4425_v53 = vpop.f32.mrf.mxu0 }
 0x9d6   : > { %v4461_v20 = vpop.f32.mrf.mxu2 }
 0x9d7   : > { %v10380_v27 = vpack.i.bf16 %v4461_v20, %v12273_v63  ;;  %v4444_v41 = vpop.f32.mrf.mxu1 }
 0x9d8   : > { %v4480_v45 = vpop.f32.mrf.mxu3 }
 0x9d9   : > { %v10387_v49 = vpack.i.bf16 %v4480_v45, %v4423_v46 }
 0x9da   : > { %10381 = vxpose.xlu0.b32.start.end [1/1] (short) (narrow) %v10380_v27, 8 }
 0x9db   : > { %10388 = vxpose.xlu1.b32.start.end [1/1] (short) (narrow) %v10387_v49, 8 }
 0x9de   : > { %v4463_v40 = vpop.f32.mrf.mxu2 }
 0x9e0   : > { %v4482_v34 = vpop.f32.mrf.mxu3 }
 0x9e6   : > { %v4920_v50 = vpop.f32.mrf.mxu2 }
 0x9e7   : > { %v12374_v38 = vadd.f32 %v12371_v52, %v4920_v50 }
 0x9ee   : > { %v4922_v58 = vpop.f32.mrf.mxu2 }
 0x9ef   : > { %v12377_v6 = vadd.f32 %v12371_v52, %v4922_v58 }
 0x9f1   : > { %v10399_v63 = vpack.i.bf16 %v12377_v6, %v12374_v38 }
 0x9f3   : > { %10400 = vrot.lane.b32.xlu2 %v10399_v63, %s11272_s12 }
 0xa35   : > { %10395 = vrot.lane.b32.xlu1 %v10399_v63, %s11273_s21 }
 0xa48   : > { %10405 = vrot.lane.b32.xlu0 %v10399_v63, %s11271_s9 }
 0xa76   : > { %v10375_v36 = vpop.trf.xlu0 }
 0xa77   : > { %v10376_v4 = vunpack.i.l.bf16 %v10375_v36  ;;  %v10379_v51 = vunpack.i.h.bf16 %v10375_v36 }
 0xa79   : > { %v3091_v9 = vrot.slane %v10376_v4, 4  ;;  %v3090_v62 = vsel %vm1676_vm2, %v3089_v35, %v10376_v4  ;;  %v4626_v14 = vrot.slane %v10379_v51, 4 }
 0xa7a   : > { %v3096_v5 = vperm.slane %v3090_v62, %v11783_v30 }
 0xa7b   : > { %v3092_v3 = vsel %vm1676_vm2, %v10372_v1, %v3091_v9 }
 0xa7c   : > { %v3100_v44 = vperm.slane %v3092_v3, %v11783_v30  ;;  %v3101_v29 = vrot.slane %v3096_v5, 4 }
 0xa7e   : > { %v10382_v57 = vpop.trf.xlu0  ;;  %v3113_v56 = vrot.slane %v3100_v44, 4 }
 0xa7f   : > { %v10386_v13 = vunpack.i.h.bf16 %v10382_v57  ;;  %v10383_v22 = vunpack.i.l.bf16 %v10382_v57  ;;  %v10389_v11 = vpop.trf.xlu1 }
 0xa80   : > { %v10393_v21 = vunpack.i.h.bf16 %v10389_v11  ;;  %v10390_v37 = vunpack.i.l.bf16 %v10389_v11 }
 0xa81   : > { %v4612_v2 = vrot.slane %v10386_v13, 4  ;;  %v3077_v8 = vrot.slane %v10383_v22, 4  ;;  %v3080_v16 = vsel %vm1676_vm2, %v10383_v22, %v3079_v24 }
 0xa82   : > { %v3088_v23 = vperm.slane %v3080_v16, %v11783_v30  ;;  %v4624_v18 = vrot.slane %v10393_v21, 4  ;;  %v4627_v28 = vsel %vm1676_vm2, %v10393_v21, %v4626_v14  ;;  %v4614_v55 = vrot.slane %v10390_v37, 4 }
 0xa83   : > { %v3078_v32 = vsel %vm1676_vm2, %v3077_v8, %v10369_v25  ;;  %v4635_v15 = vperm.slane %v4627_v28, %v11783_v30  ;;  %v4613_v26 = vsel %vm1676_vm2, %v4612_v2, %v10390_v37 }
 0xa84   : > { %v3084_v43 = vperm.slane %v3078_v32, %v11783_v30  ;;  %v3114_v10 = vsel %vm1676_vm2, %v3113_v56, %v3088_v23  ;;  %v3115_v60 = vrot.slane %v3088_v23, 4  ;;  %v4625_v7 = vsel %vm1676_vm2, %v4624_v18, %v10379_v51 }
 0xa85   : > { %v3120_v17 = vperm.slane %v3114_v10, %v11814_v61  ;;  %v4631_v54 = vperm.slane %v4625_v7, %v11783_v30  ;;  %v4648_v47 = vrot.slane %v4635_v15, 4  ;;  %v4615_v39 = vsel %vm1676_vm2, %v10386_v13, %v4614_v55 }
 0xa86   : > { %v3102_v42 = vsel %vm1676_vm2, %v3101_v29, %v3084_v43  ;;  %v3103_v12 = vrot.slane %v3084_v43, 4  ;;  %v3116_v0 = vsel %vm1676_vm2, %v3100_v44, %v3115_v60  ;;  %v4619_v31 = vperm.slane %v4613_v26, %v11783_v30 }
 0xa87   : > { %v3108_v33 = vperm.slane %v3102_v42, %v11814_v61  ;;  %v3124_v46 = vperm.slane %v3116_v0, %v11814_v61  ;;  %v4636_v48 = vrot.slane %v4631_v54, 4  ;;  %v3129_v53 = vrot.slane %v3120_v17, 4 }
 0xa88   : > { %v3104_v19 = vsel %vm1676_vm2, %v3096_v5, %v3103_v12  ;;  %v4623_v20 = vperm.slane %v4615_v39, %v11783_v30  ;;  %v4638_v27 = vrot.slane %v4619_v31, 4 }
 0xa89   : > { %v3112_v41 = vperm.slane %v3104_v19, %v11814_v61  ;;  %v3125_v45 = vrot.slane %v3108_v33, 4  ;;  %v3131_v49 = vrot.slane %v3124_v46, 4  ;;  %v4637_v40 = vsel %vm1676_vm2, %v4636_v48, %v4619_v31 }
 0xa8a   : > { %v4639_v34 = vsel %vm1676_vm2, %v4631_v54, %v4638_v27  ;;  %v4643_v50 = vperm.slane %v4637_v40, %v11814_v61  ;;  %v4649_v58 = vsel %vm1676_vm2, %v4648_v47, %v4623_v20  ;;  %v4650_v63 = vrot.slane %v4623_v20, 4 }
 0xa8b   : > { %v3127_v59 = vrot.slane %v3112_v41, 4  ;;  %v3132_v1 = vsel %vm1676_vm2, 0.0, %v3131_v49  ;;  %v4647_v36 = vperm.slane %v4639_v34, %v11814_v61  ;;  %v4655_v35 = vperm.slane %v4649_v58, %v11814_v61 }
 0xa8c   : > { %v3149_v4 = vrot.slane %v3132_v1, 4  ;;  %v4651_v9 = vsel %vm1676_vm2, %v4635_v15, %v4650_v63  ;;  %v3126_v25 = vsel %vm1676_vm2, 0.0, %v3125_v45  ;;  %v3130_v51 = vsel %vm1676_vm2, 0.0, %v3129_v53 }
 0xa8d   : > { %v4659_v62 = vperm.slane %v4651_v9, %v11814_v61  ;;  %v4662_v3 = vrot.slane %v4647_v36, 4  ;;  %v3128_v44 = vsel %vm1676_vm2, 0.0, %v3127_v59  ;;  %v3133_v24 = vsel %vm1676_vm2, %v3127_v59, %v3108_v33 }
 0xa8e   : > { %v3137_v5 = vperm.slane %v3133_v24, %v11783_v30  ;;  %v3138_v14 = vrot.slane %v3128_v44, 4  ;;  %v3144_v57 = vsel %vm1676_vm2, %v3131_v49, %v3120_v17  ;;  %v3150_v56 = vsel %vm1676_vm2, %v3149_v4, %v3130_v51 }
 0xa8f   : > { %v4666_v13 = vrot.slane %v4659_v62, 4  ;;  %v3148_v22 = vperm.slane %v3144_v57, %v11783_v30  ;;  %v3154_v11 = vperm.slane %v3150_v56, %v11783_v30  ;;  %v4660_v21 = vrot.slane %v4643_v50, 4 }
 0xa90   : > { %v3139_v37 = vsel %vm1676_vm2, %v3138_v14, %v3126_v25  ;;  %v3157_v2 = vrot.slane %v3137_v5, 4  ;;  %v4663_v8 = vsel %vm1676_vm2, 0.0, %v4662_v3  ;;  %v4664_v16 = vrot.slane %v4655_v35, 4 }
 0xa91   : > { %v4667_v29 = vsel %vm1676_vm2, 0.0, %v4666_v13  ;;  %v3143_v23 = vperm.slane %v3139_v37, %v11783_v30  ;;  %v3169_v18 = vrot.slane %v3148_v22, 4  ;;  %v4661_v28 = vsel %vm1676_vm2, 0.0, %v4660_v21 }
 0xa92   : > { %v4684_v55 = vrot.slane %v4667_v29, 4  ;;  %v4665_v32 = vsel %vm1676_vm2, 0.0, %v4664_v16  ;;  %v4668_v15 = vsel %vm1676_vm2, %v4662_v3, %v4643_v50  ;;  %v4673_v26 = vrot.slane %v4663_v8, 4 }
 0xa93   : > { %v3158_v43 = vsel %vm1676_vm2, %v3143_v23, %v3157_v2  ;;  %v3170_v10 = vsel %vm1676_vm2, %v3154_v11, %v3169_v18  ;;  %v4672_v60 = vperm.slane %v4668_v15, %v11783_v30  ;;  %v4679_v7 = vsel %vm1676_vm2, %v4666_v13, %v4655_v35  ;;  %v10401_v2 = vpop.permute.xlu2 %10400 }
 0xa94   : > { %v3166_v17 = vperm.slane %v3158_v43, %v11814_v61  ;;  %v3178_v54 = vperm.slane %v3170_v10, %v11814_v61  ;;  %v4674_v47 = vsel %vm1676_vm2, %v4673_v26, %v4661_v28  ;;  %v4683_v39 = vperm.slane %v4679_v7, %v11783_v30 }
 0xa95   : > { %v4678_v42 = vperm.slane %v4674_v47, %v11783_v30  ;;  %v4685_v12 = vsel %vm1676_vm2, %v4684_v55, %v4665_v32  ;;  %v4692_v0 = vrot.slane %v4672_v60, 4  ;;  %v3155_v31 = vrot.slane %v3143_v23, 4 }
 0xa96   : > { %v3183_v33 = vrot.slane %v3178_v54, 4  ;;  %v4689_v46 = vperm.slane %v4685_v12, %v11783_v30  ;;  %v4704_v48 = vrot.slane %v4683_v39, 4  ;;  %v3185_v19 = vrot.slane %v3166_v17, 4 }
 0xa97   : > { %v4693_v53 = vsel %vm1676_vm2, %v4678_v42, %v4692_v0  ;;  %v3156_v20 = vsel %vm1676_vm2, %v3155_v31, %v3137_v5  ;;  %v3167_v27 = vrot.slane %v3154_v11, 4  ;;  %v4690_v41 = vrot.slane %v4678_v42, 4 }
 0xa98   : > { %v4701_v45 = vperm.slane %v4693_v53, %v11814_v61  ;;  %v4705_v49 = vsel %vm1676_vm2, %v4689_v46, %v4704_v48  ;;  %v3186_v40 = vsel %vm1676_vm2, %v3178_v54, %v3185_v19  ;;  %v3162_v50 = vperm.slane %v3156_v20, %v11814_v61 }
 0xa99   : > { %v4713_v34 = vperm.slane %v4705_v49, %v11814_v61  ;;  %v3168_v58 = vsel %vm1676_vm2, %v3167_v27, %v3148_v22  ;;  %v4691_v63 = vsel %vm1676_vm2, %v4690_v41, %v4672_v60  ;;  %v4702_v35 = vrot.slane %v4689_v46, 4 }
 0xa9a   : > { %v4720_v59 = vrot.slane %v4701_v45, 4  ;;  %v3174_v1 = vperm.slane %v3168_v58, %v11814_v61  ;;  %v4697_v36 = vperm.slane %v4691_v63, %v11814_v61  ;;  %v3184_v4 = vsel %vm1676_vm2, %v3183_v33, %v3166_v17 }
 0xa9b   : > { %v4718_v9 = vrot.slane %v4713_v34, 4  ;;  %v3181_v25 = vrot.slane %v3162_v50, 4  ;;  %v4703_v3 = vsel %vm1676_vm2, %v4702_v35, %v4683_v39  ;;  %v10402_v16 = vunpack.i.l.bf16 %v10401_v2 }
 0xa9c   : > { %v4721_v51 = vsel %vm1676_vm2, %v4713_v34, %v4720_v59  ;;  %v3179_v62 = vrot.slane %v3174_v1, 4  ;;  %v4716_v44 = vrot.slane %v4697_v36, 4  ;;  %v4709_v57 = vperm.slane %v4703_v3, %v11814_v61 }
 0xa9d   : > { %v4719_v24 = vsel %vm1676_vm2, %v4718_v9, %v4701_v45  ;;  %v10414_v5 = vpack.i.bf16 %v4721_v51, %v3186_v40  ;;  %v3182_v14 = vsel %vm1676_vm2, %v3174_v1, %v3181_v25  ;;  %v5096_v23 = vrot.slane %v10402_v16, 4 }
 0xa9e   : > { %v10409_v56 = vpack.i.bf16 %v4719_v24, %v3184_v4  ;;  %v12462_v13 = vsel %vm1676_vm2, %v3179_v62, %v3162_v50  ;;  %v4714_v22 = vrot.slane %v4709_v57, 4  ;;  %v4717_v11 = vsel %vm1676_vm2, %v4709_v57, %v4716_v44 }
 0xa9f   : > { %10415 = vrot.lane.b32.xlu0 %v10414_v5, %s11277_s28  ;;  %v10419_v21 = vpack.i.bf16 %v4717_v11, %v3182_v14  ;;  %v5086_v26 = vrot.slane %v12374_v38, 4  ;;  %v5142_v7 = vrot.slane %v12377_v6, 4  ;;  %v10403_v48 = vunpack.i.h.bf16 %v10401_v2 }
 0xaa0   : > { %10410 = vrot.lane.b32.xlu1 %v10409_v56, %s11278_s5  ;;  %v12468_v37 = vsel %vm1676_vm2, %v4714_v22, %v4697_v36 }
 0xaa1   : > { %10420 = vrot.lane.b32.xlu2 %v10419_v21, %s11279_s10  ;;  %v5152_v51 = vrot.slane %v10403_v48, 4 }
 0xaa7   : > { %v10396_v8 = vpop.permute.xlu1 %10395 }
 0xaa8   : > { %v10397_v29 = vunpack.i.l.bf16 %v10396_v8  ;;  %v10398_v43 = vunpack.i.h.bf16 %v10396_v8 }
 0xaaa   : > { %v5098_v18 = vrot.slane %v10397_v29, 4  ;;  %v5097_v28 = vsel %vm1676_vm2, %v5096_v23, %v10397_v29  ;;  %v5154_v0 = vrot.slane %v10398_v43, 4  ;;  %v5153_v24 = vsel %vm1676_vm2, %v5152_v51, %v10398_v43 }
 0xaab   : > { %v5103_v60 = vperm.slane %v5097_v28, %v11783_v30  ;;  %v5159_v22 = vperm.slane %v5153_v24, %v11783_v30 }
 0xaac   : > { %v5099_v10 = vsel %vm1676_vm2, %v10402_v16, %v5098_v18  ;;  %v5155_v49 = vsel %vm1676_vm2, %v10403_v48, %v5154_v0 }
 0xaad   : > { %v5107_v39 = vperm.slane %v5099_v10, %v11783_v30  ;;  %v5108_v31 = vrot.slane %v5103_v60, 4  ;;  %v5163_v58 = vperm.slane %v5155_v49, %v11783_v30  ;;  %v5164_v16 = vrot.slane %v5159_v22, 4 }
 0xaaf   : > { %v5120_v27 = vrot.slane %v5107_v39, 4  ;;  %v5176_v43 = vrot.slane %v5163_v58, 4 }
 0xaba   : > { %v10406_v55 = vpop.permute.xlu0 %10405 }
 0xabb   : > { %v10408_v32 = vunpack.i.h.bf16 %v10406_v55  ;;  %v10407_v15 = vunpack.i.l.bf16 %v10406_v55 }
 0xabd   : > { %v5084_v17 = vrot.slane %v10407_v15, 4  ;;  %v5087_v54 = vsel %vm1676_vm2, %v10407_v15, %v5086_v26  ;;  %v5143_v42 = vsel %vm1676_vm2, %v10408_v32, %v5142_v7  ;;  %v5140_v62 = vrot.slane %v10408_v32, 4 }
 0xabe   : > { %v5095_v47 = vperm.slane %v5087_v54, %v11783_v30  ;;  %v5151_v19 = vperm.slane %v5143_v42, %v11783_v30  ;;  %v10035_v42 = vld [vmem:[%s13670_s16 + $0x8] sm:$0xff] }
 0xabf   : > { %v5085_v12 = vsel %vm1676_vm2, %v5084_v17, %v12374_v38  ;;  %v5141_v57 = vsel %vm1676_vm2, %v5140_v62, %v12377_v6  ;;  %4762 = vmatpush.bf16.msra.mxu0 %v10035_v42 }
 0xac0   : > { %v5091_v33 = vperm.slane %v5085_v12, %v11783_v30  ;;  %v5122_v46 = vrot.slane %v5095_v47, 4  ;;  %v5121_v34 = vsel %vm1676_vm2, %v5120_v27, %v5095_v47  ;;  %v5178_v50 = vrot.slane %v5151_v19, 4 }
 0xac1   : > { %v5127_v9 = vperm.slane %v5121_v34, %v11814_v61  ;;  %v5147_v21 = vperm.slane %v5141_v57, %v11783_v30  ;;  %v5177_v7 = vsel %vm1676_vm2, %v5176_v43, %v5151_v19 }
 0xac2   : > { %v5109_v53 = vsel %vm1676_vm2, %v5108_v31, %v5091_v33  ;;  %v5123_v20 = vsel %vm1676_vm2, %v5107_v39, %v5122_v46  ;;  %v5110_v1 = vrot.slane %v5091_v33, 4  ;;  %v5179_v3 = vsel %vm1676_vm2, %v5163_v58, %v5178_v50 }
 0xac3   : > { %v5115_v41 = vperm.slane %v5109_v53, %v11814_v61  ;;  %v5131_v45 = vperm.slane %v5123_v20, %v11814_v61  ;;  %v5136_v5 = vrot.slane %v5127_v9, 4  ;;  %v5187_v14 = vperm.slane %v5179_v3, %v11814_v61 }
 0xac4   : > { %v5111_v44 = vsel %vm1676_vm2, %v5103_v60, %v5110_v1  ;;  %v5200_v29 = vpack.c.bf16 %v5127_v9, %v5127_v9  ;;  %v5165_v28 = vsel %vm1676_vm2, %v5164_v16, %v5147_v21  ;;  %v5166_v55 = vrot.slane %v5147_v21, 4 }
 0xac5   : > { %v5132_v38 = vrot.slane %v5115_v41, 4  ;;  %v5138_v40 = vrot.slane %v5131_v45, 4  ;;  %v5196_v36 = vpack.c.bf16 %v5115_v41, %v5115_v41  ;;  %v5202_v25 = vpack.c.bf16 %v5131_v45, %v5131_v45  ;;  %v10034_v45 = vld [vmem:[%s13670_s16] sm:$0xff] }
 0xac6   : > { %v5119_v56 = vperm.slane %v5111_v44, %v11814_v61  ;;  %v5137_v11 = vsel %vm1676_vm2, 0.0, %v5136_v5  ;;  %v5194_v2 = vrot.slane %v5187_v14, 4  ;;  %v5210_v32 = vpack.c.bf16 %v5187_v14, %v5187_v14  ;;  %4763 = vmatpush.bf16.msra.mxu0 %v10034_v45 }
 0xac7   : > { %v5133_v63 = vsel %vm1676_vm2, 0.0, %v5132_v38  ;;  %v5139_v59 = vsel %vm1676_vm2, 0.0, %v5138_v40  ;;  %v5201_v23 = vpack.c.bf16 %v5137_v11, %v5137_v11  ;;  %v5171_v26 = vperm.slane %v5165_v28, %v11814_v61 }
 0xac8   : > { %v5197_v35 = vpack.c.bf16 %v5133_v63, %v5133_v63  ;;  %v5203_v4 = vpack.c.bf16 %v5139_v59, %v5139_v59  ;;  %v5134_v8 = vrot.slane %v5119_v56, 4  ;;  %v5195_v18 = vsel %vm1676_vm2, 0.0, %v5194_v2 }
 0xac9   : > { %v5211_v15 = vpack.c.bf16 %v5195_v18, %v5195_v18  ;;  %v5198_v10 = vpack.c.bf16 %v5119_v56, %v5119_v56  ;;  %v5167_v17 = vsel %vm1676_vm2, %v5159_v22, %v5166_v55  ;;  %v5188_v54 = vrot.slane %v5171_v26, 4 }
 0xaca   : > { %10430 = vxpose.binary.xlu2.c.b16.start.end [1/2] (short) (narrow) %v5197_v35, %v5196_v36, 16  ;;  %v5135_v6 = vsel %vm1676_vm2, 0.0, %v5134_v8  ;;  %v5183_v47 = vperm.slane %v5177_v7, %v11814_v61  ;;  %v5175_v39 = vperm.slane %v5167_v17, %v11814_v61  ;;  %v5204_v33 = vpack.c.bf16 %v5171_v26, %v5171_v26 }
 0xacb   : > { %10424 = vxpose.binary.xlu0.c.b16.start.end [1/2] (short) (narrow) %v5203_v4, %v5202_v25, 16  ;;  %v5199_v60 = vpack.c.bf16 %v5135_v6, %v5135_v6  ;;  %v5189_v12 = vsel %vm1676_vm2, 0.0, %v5188_v54 }
 0xacc   : > { %v5192_v0 = vrot.slane %v5183_v47, 4  ;;  %v5190_v31 = vrot.slane %v5175_v39, 4  ;;  %v5205_v46 = vpack.c.bf16 %v5189_v12, %v5189_v12  ;;  %v5208_v53 = vpack.c.bf16 %v5183_v47, %v5183_v47 }
 0xacd   : > { %v5206_v27 = vpack.c.bf16 %v5175_v39, %v5175_v39 }
 0xace   : > { %v5193_v48 = vsel %vm1676_vm2, 0.0, %v5192_v0  ;;  %v5191_v19 = vsel %vm1676_vm2, 0.0, %v5190_v31 }
 0xacf   : > { %v5209_v20 = vpack.c.bf16 %v5193_v48, %v5193_v48  ;;  %v5207_v41 = vpack.c.bf16 %v5191_v19, %v5191_v19 }
 0xad5   : > { %10427 = vxpose.binary.xlu1.c.b16.start.end [1/2] (short) (narrow) %v5201_v23, %v5200_v29, 16 }
 0xada   : > { %10436 = vxpose.binary.xlu2.c.b16.start.end [1/2] (short) (narrow) %v5211_v15, %v5210_v32, 16 }
 0xadb   : > { %10433 = vxpose.binary.xlu0.c.b16.start.end [1/2] (short) (narrow) %v5199_v60, %v5198_v10, 16 }
 0xae5   : > { %10442 = vxpose.binary.xlu1.c.b16.start.end [1/2] (short) (narrow) %v5205_v46, %v5204_v33, 16 }
 0xaea   : > { %10439 = vxpose.binary.xlu2.c.b16.start.end [1/2] (short) (narrow) %v5209_v20, %v5208_v53, 16 }
 0xaeb   : > { %10445 = vxpose.binary.xlu0.c.b16.start.end [1/2] (short) (narrow) %v5207_v41, %v5206_v27, 16 }
 0xafb   : > { %v10421_v49 = vpop.permute.xlu2 %10420 }
 0xafc   : > { %v10423_v38 = vunpack.i.h.bf16 %v10421_v49  ;;  %v10422_v40 = vunpack.i.l.bf16 %v10421_v49 }
 0xafe   : > { %v4734_v59 = vsel %vm2339_vm4, %v12468_v37, %v10423_v38  ;;  %v3199_v1 = vsel %vm2339_vm4, %v12462_v13, %v10422_v40 }
 0xb11   : > { %v10416_v34 = vpop.permute.xlu0 %10415 }
 0xb12   : > { %v10411_v50 = vpop.permute.xlu1 %10410  ;;  %v10418_v36 = vunpack.i.h.bf16 %v10416_v34  ;;  %v10417_v35 = vunpack.i.l.bf16 %v10416_v34 }
 0xb13   : > { %v10413_v58 = vunpack.i.h.bf16 %v10411_v50  ;;  %v10412_v63 = vunpack.i.l.bf16 %v10411_v50 }
 0xb15   : > { %v4735_v4 = vsel %vm3200_vm5, %v4734_v59, %v10413_v58  ;;  %v3201_v9 = vsel %vm3200_vm5, %v3199_v1, %v10412_v63 }
 0xb16   : > { %v3203_v25 = vsel %vm3202_vm6, %v3201_v9, %v10417_v35  ;;  %v4736_v51 = vsel %vm3202_vm6, %v4735_v4, %v10418_v36 }
 0xb17   : > { %v4737_v62 = vpack.c.bf16 %v4736_v51, %v3203_v25 }
 0xb19   : > { %9914 = vmatmul.msk.bf16.vlgmr.msra.gmra.mxu0 %vm1604_vm1, %v4737_v62 }
 0xb6b   : > { %v10431_v3 = vpop.trf.xlu2 }
 0xb73   : > { %v10432_v44 = vpop.trf.xlu2 }
 0xb77   : > { %v10425_v24 = vpop.trf.xlu0 }
 0xb78   : > { %v5674_v8 = vrot.slane %v10425_v24, 4 }
 0xb7b   : > { %v10437_v37 = vpop.trf.xlu2 }
 0xb7c   : > { %v5686_v60 = vrot.slane %v10437_v37, 4 }
 0xb7f   : > { %v10426_v5 = vpop.trf.xlu0 }
 0xb80   : > { %v5730_v29 = vrot.slane %v10426_v5, 4 }
 0xb81   : > { %v10428_v14 = vpop.trf.xlu1 }
 0xb82   : > { %v5668_v11 = vrot.slane %v10428_v14, 4 }
 0xb83   : > { %v10438_v13 = vpop.trf.xlu2 }
 0xb84   : > { %v5669_v23 = vsel %vm1676_vm2, %v5668_v11, %v10431_v3  ;;  %v5742_v49 = vrot.slane %v10438_v13, 4 }
 0xb85   : > { %v5673_v26 = vperm.slane %v5669_v23, %v11783_v30 }
 0xb87   : > { %v10434_v57 = vpop.trf.xlu0  ;;  %v5694_v42 = vrot.slane %v5673_v26, 4 }
 0xb88   : > { %v5675_v28 = vsel %vm1676_vm2, %v5674_v8, %v10434_v57 }
 0xb89   : > { %v10429_v56 = vpop.trf.xlu1  ;;  %v5679_v10 = vperm.slane %v5675_v28, %v11783_v30 }
 0xb8a   : > { %v5724_v16 = vrot.slane %v10429_v56, 4 }
 0xb8b   : > { %v10440_v22 = vpop.trf.xlu2  ;;  %v5692_v0 = vrot.slane %v5679_v10, 4  ;;  %v5695_v46 = vsel %vm1676_vm2, %v5679_v10, %v5694_v42 }
 0xb8c   : > { %v5680_v21 = vrot.slane %v10440_v22, 4  ;;  %v5725_v43 = vsel %vm1676_vm2, %v5724_v16, %v10432_v44  ;;  %v5703_v34 = vperm.slane %v5695_v46, %v11814_v61 }
 0xb8d   : > { %v5729_v54 = vperm.slane %v5725_v43, %v11783_v30  ;;  %v5693_v45 = vsel %vm1676_vm2, %v5692_v0, %v5673_v26 }
 0xb8e   : > { %v5699_v36 = vperm.slane %v5693_v45, %v11814_v61  ;;  %v5722_v62 = vrot.slane %v5703_v34, 4 }
 0xb8f   : > { %v10435_v2 = vpop.trf.xlu0  ;;  %v5750_v53 = vrot.slane %v5729_v54, 4 }
 0xb90   : > { %v5731_v55 = vsel %vm1676_vm2, %v5730_v29, %v10435_v2  ;;  %v5718_v56 = vrot.slane %v5699_v36, 4 }
 0xb91   : > { %v10443_v18 = vpop.trf.xlu1  ;;  %v5735_v7 = vperm.slane %v5731_v55, %v11783_v30 }
 0xb92   : > { %v5681_v6 = vsel %vm1676_vm2, %v5680_v21, %v10443_v18 }
 0xb93   : > { %v5685_v32 = vperm.slane %v5681_v6, %v11783_v30  ;;  %v10441_v15 = vpop.trf.xlu2  ;;  %v5748_v48 = vrot.slane %v5735_v7, 4  ;;  %v5751_v38 = vsel %vm1676_vm2, %v5735_v7, %v5750_v53 }
 0xb94   : > { %v5736_v17 = vrot.slane %v10441_v15, 4  ;;  %v5759_v35 = vperm.slane %v5751_v38, %v11814_v61 }
 0xb95   : > { %v5706_v47 = vrot.slane %v5685_v32, 4  ;;  %v5749_v50 = vsel %vm1676_vm2, %v5748_v48, %v5729_v54  ;;  %v10765_v48 = vld [vmem:[#allocation18] sm:$0xff] }
 0xb96   : > { %v5755_v25 = vperm.slane %v5749_v50, %v11814_v61  ;;  %v5778_v13 = vrot.slane %v5759_v35, 4 }
 0xb97   : > { %v10446_v39 = vpop.trf.xlu0 }
 0xb98   : > { %v5687_v12 = vsel %vm1676_vm2, %v5686_v60, %v10446_v39  ;;  %v5774_v22 = vrot.slane %v5755_v25, 4 }
 0xb99   : > { %v5691_v31 = vperm.slane %v5687_v12, %v11783_v30  ;;  %v10444_v33 = vpop.trf.xlu1 }
 0xb9a   : > { %v5737_v19 = vsel %vm1676_vm2, %v5736_v17, %v10444_v33  ;;  %v4765_v33 = vpop.f32.mrf.mxu0 }
 0xb9b   : > { %v5704_v20 = vrot.slane %v5691_v31, 4  ;;  %v5707_v27 = vsel %vm1676_vm2, %v5691_v31, %v5706_v47  ;;  %v5741_v41 = vperm.slane %v5737_v19, %v11783_v30  ;;  %v10674_v31 = vld [vmem:[%s13672_s1] ss:$0 sm:$0xff] }
 0xb9c   : > { %v5715_v58 = vperm.slane %v5707_v27, %v11814_v61  ;;  %v4766_v46 = vadd.f32 %v10674_v31, %v4765_v33 }
 0xb9d   : > { %v5705_v40 = vsel %vm1676_vm2, %v5704_v20, %v5685_v32  ;;  %v5762_v59 = vrot.slane %v5741_v41, 4 }
 0xb9e   : > { %v5711_v63 = vperm.slane %v5705_v40, %v11814_v61  ;;  %v5720_v3 = vrot.slane %v5715_v58, 4  ;;  %v5723_v14 = vsel %vm1676_vm2, %v5715_v58, %v5722_v62  ;;  %v4770_v19 = vadd.f32 %v10765_v48, %v4766_v46  ;;  %v10041_v62 = vld [vmem:[%s1290_s17 + $0x8] sm:$0xff] }
 0xb9f   : > { %v10447_v1 = vpop.trf.xlu0  ;;  %v5808_v16 = vshrl.u32 %v5723_v14, 16  ;;  %v11280_v58 = vmov 32.0   ;;  %4972 = vmatpush.bf16.msrb.mxu3 %v10041_v62 }
 0xba0   : > { %v5743_v4 = vsel %vm1676_vm2, %v5742_v49, %v10447_v1  ;;  %v5716_v9 = vrot.slane %v5711_v63, 4  ;;  %v5721_v21 = vsel %vm1676_vm2, %v5720_v3, %v5703_v34  ;;  %v5719_v23 = vsel %vm1676_vm2, %v5711_v63, %v5718_v56  ;;  %v10029_v3 = vld [vmem:[#allocation7 + $0x8] sm:$0xff] }
 0xba1   : > { %v5747_v51 = vperm.slane %v5743_v4, %v11783_v30  ;;  %v5800_v15 = vshrl.u32 %v5721_v21, 16  ;;  %v5792_v43 = vshrl.u32 %v5719_v23, 16  ;;  %v4774_v53 = vsel %vm1604_vm1, %v4770_v19, 0.0  ;;  %9941 = vmatmul.msk.bf16.gmra.mxu2 %vm1604_vm1, %v10029_v3 }
 0xba2   : > { %v12555_v44 = vsel %vm1676_vm2, %v5716_v9, %v5699_v36  ;;  %v4767_v20 = vpop.f32.mrf.mxu0  ;;  %10718 = vrcp.f32 %v11280_v58 }
 0xba3   : > { %v5760_v24 = vrot.slane %v5747_v51, 4  ;;  %v5763_v37 = vsel %vm1676_vm2, %v5747_v51, %v5762_v59  ;;  %v5784_v7 = vshrl.u32 %v12555_v44, 16  ;;  %v4768_v27 = vadd.f32 %v10674_v31, %v4767_v20  ;;  %v10675_v20 = vld [vmem:[%s1551_s29] ss:$0 sm:$0xff]  ;;  %s13676_s29 = sld [smem:[#allocation35_spill]] }
 0xba4   : > { %v5771_v5 = vperm.slane %v5763_v37, %v11814_v61 }
 0xba5   : > { %v5761_v57 = vsel %vm1676_vm2, %v5760_v24, %v5741_v41  ;;  %v10766_v41 = vld [vmem:[#allocation18 + $0x8] sm:$0xff] }
 0xba6   : > { %v5779_v11 = vsel %vm1676_vm2, %v5771_v5, %v5778_v13  ;;  %v5776_v2 = vrot.slane %v5771_v5, 4  ;;  %v5767_v8 = vperm.slane %v5761_v57, %v11814_v61  ;;  %v4771_v45 = vadd.f32 %v10766_v41, %v4768_v27  ;;  %v10026_v5 = vld [vmem:[#allocation5] sm:$0xff] }
 0xba7   : > { %v5809_v29 = vshrl.u32 %v5779_v11, 16  ;;  %v5806_v55 = vpack.i.b16 %v5779_v11, %v5723_v14 }
 0xba8   : > { %v5777_v18 = vsel %vm1676_vm2, %v5776_v2, %v5759_v35  ;;  %v5775_v28 = vsel %vm1676_vm2, %v5767_v8, %v5774_v22  ;;  %v5772_v6 = vrot.slane %v5767_v8, 4  ;;  %v4777_v49 = vsel %vm1604_vm1, %v4771_v45, 0.0  ;;  %v10719_v1 = vpop.eup %10718 }
 0xba9   : > { %v5810_v32 = vpack.i.b16 %v5809_v29, %v5808_v16  ;;  %v5801_v26 = vshrl.u32 %v5777_v18, 16  ;;  %v5793_v10 = vshrl.u32 %v5775_v28, 16  ;;  %v5798_v17 = vpack.i.b16 %v5777_v18, %v5721_v21 }
 0xbaa   : > { %v12568_v60 = vsel %vm1676_vm2, %v5772_v6, %v5755_v25  ;;  %v5790_v42 = vpack.i.b16 %v5775_v28, %v5719_v23  ;;  %v4781_v4 = vmul.f32 32.0, %v10719_v1  ;;  %vm4785_vm7 = vweird.f32 %v10719_v1 }
 0xbab   : > { %10451 = vxpose.binary.xlu1.c.b16.start.end [1/2] (short) (narrow) %v5810_v32, %v5806_v55, 16  ;;  %v5802_v54 = vpack.i.b16 %v5801_v26, %v5800_v15  ;;  %v5782_v47 = vpack.i.b16 %v12568_v60, %v12555_v44  ;;  %v5785_v39 = vshrl.u32 %v12568_v60, 16  ;;  %v5794_v12 = vpack.i.b16 %v5793_v10, %v5792_v43  ;;  %v10040_v44 = vld [vmem:[%s1290_s17] sm:$0xff]  ;;  %s13673_s17 = scalar_lea.vmem [#allocation10], %s11701_s14 }
 0xbac   : > { %v4782_v9 = vsub.f32 1.0, %v4781_v4  ;;  %4973 = vmatpush.bf16.msrb.mxu3 %v10040_v44  ;;  %v10037_v15 = vld [vmem:[%s13673_s17 + $0x8] sm:$0xff]  ;;  %v12607_v43 = vld [vmem:[%s11738_s25] ss:$0 sm:$0xff]  ;;  %s13674_s8 = smov %s13673_s17 }
 0xbad   : > { %10454 = vxpose.binary.xlu0.c.b16.start.end [1/2] (short) (narrow) %v5802_v54, %v5798_v17, 16  ;;  %v5786_v0 = vpack.i.b16 %v5785_v39, %v5784_v7  ;;  %v10036_v10 = vld [vmem:[%s13674_s8] sm:$0xff]  ;;  %v10768_v4 = vld [vmem:[#allocation8 + $0x8] sm:$0xff] }
 0xbae   : > { %10448 = vxpose.binary.xlu2.c.b16.start.end [1/2] (short) (narrow) %v5794_v12, %v5790_v42, 16  ;;  %v4783_v25 = vmul.f32 %v10719_v1, %v4782_v9 }
 0xbaf   : > { %9958 = vmatmul.msk.bf16.vlgmr.msrb.gmra.mxu3 %vm1604_vm1, %v10026_v5  ;;  %4867 = vmatpush.bf16.msra.mxu1 %v10037_v15 }
 0xbb0   : > { %v4784_v51 = vadd.f32 %v10719_v1, %v4783_v25 }
 0xbb2   : > { %v12589_v24 = vsel %vm4785_vm7, %v10719_v1, %v4784_v51  ;;  %v10767_v1 = vld [vmem:[#allocation8] sm:$0xff] }
 0xbb3   : > { %4868 = vmatpush.bf16.msra.mxu1 %v10036_v10 }
 0xc0b   : > { %4775 = vadd.xlane.f32.xlu1 %v4774_v53 }
 0xc1f   : > { %4778 = vadd.xlane.f32.xlu2 %v4777_v49  ;;  %v10676_v49 = vld [vmem:[%s1319_s2] ss:$0 sm:$0xff]  ;;  %s13677_s2 = scalar_lea.vmem %s13676_s29, %s11710_s15 }
 0xc24   : > { %v4925_v26 = vpop.f32.mrf.mxu2 }
 0xc25   : > { %v12612_v7 = vadd.f32 %v12371_v52, %v4925_v26 }
 0xc32   : > { %v12602_v55 = vpop.f32.mrf.mxu3 }
 0xc3a   : > { %v4977_v54 = vpop.f32.mrf.mxu3 }
 0xc3b   : > { %v12616_v39 = vadd.f32 %v12607_v43, %v4977_v54 }
 0xc4f   : > { %v10449_v34 = vpop.trf.xlu2 }
 0xc57   : > { %v10452_v38 = vpop.trf.xlu1  ;;  %v10450_v36 = vpop.trf.xlu2 }
 0xc58   : > { %v5946_v40 = vrot.slane %v10452_v38, 4 }
 0xc59   : > { %v12597_v16 = vpop.trf.xlu0 }
 0xc5a   : > { %v12580_v50 = vsel %vm1676_vm2, %v5946_v40, %v10449_v34  ;;  %v5940_v62 = vrot.slane %v12597_v16, 4 }
 0xc5b   : > { %v5951_v51 = vperm.slane %v12580_v50, %v11783_v30 }
 0xc5f   : > { %v10453_v63 = vpop.trf.xlu1 }
 0xc60   : > { %v5966_v59 = vrot.slane %v10453_v63, 4 }
 0xc61   : > { %v12599_v29 = vpop.trf.xlu0 }
 0xc62   : > { %v12583_v35 = vsel %vm1676_vm2, %v5966_v59, %v10450_v36 }
 0xc7e   : > { %v4776_v37 = vpop.xlane.xlu1 %4775 }
 0xc7f   : > { %v4787_v14 = vmul.f32 %v12589_v24, %v4776_v37  ;;  %v5952_v37 = vrot.slane %v5951_v51, 4  ;;  %v5290_v51 = vrot.slane %v12616_v39, 4 }
 0xc81   : > { %v4789_v13 = vsub.f32 %v4770_v19, %v4787_v14 }
 0xc83   : > { %v4791_v57 = vmul.f32 %v4789_v13, %v4789_v13 }
 0xc85   : > { %v4793_v56 = vsel %vm1604_vm1, %v4791_v57, 0.0  ;;  %v5960_v57 = vrot.slane %v12599_v29, 4 }
 0xc86   : > { %4794 = vadd.xlane.f32.xlu0 %v4793_v56 }
 0xc92   : > { %v4779_v22 = vpop.xlane.xlu2 %4778 }
 0xc93   : > { %v4788_v11 = vmul.f32 %v12589_v24, %v4779_v22 }
 0xc95   : > { %v4790_v21 = vsub.f32 %v4771_v45, %v4788_v11 }
 0xc97   : > { %v4792_v2 = vmul.f32 %v4790_v21, %v4790_v21 }
 0xc99   : > { %v4796_v8 = vsel %vm1604_vm1, %v4792_v2, 0.0 }
 0xc9a   : > { %4797 = vadd.xlane.f32.xlu1 %v4796_v8 }
 0xcd4   : > { %10457 = vxpose.binary.xlu1.c.b16.start.end [1/2] (short) (narrow) %v5786_v0, %v5782_v47, 16  ;;  %v10465_v0 = vpack.i.bf16 %v12612_v7, %v12616_v39 }
 0xcd6   : > { %10466 = vrot.lane.b32.xlu0 %v10465_v0, %s11272_s12  ;;  %10461 = vrot.lane.b32.xlu2 %v10465_v0, %s11273_s21 }
 0xcf9   : > { %v4795_v23 = vpop.xlane.xlu0 %4794 }
 0xcfa   : > { %v4799_v18 = vmul.f32 %v4795_v23, %v12589_v24 }
 0xcfc   : > { %v4801_v28 = vadd.f32 1e-05, %v4799_v18 }
 0xcfe   : > { %10720 = vrsqrt.f32 %v4801_v28  ;;  %vm4809_vm9 = vweird.f32 %v4801_v28 }
 0xd04   : > { %v10721_v6 = vpop.eup %10720 }
 0xd05   : > { %v4804_v32 = vmul.f32 %v10721_v6, %v4801_v28  ;;  %vm4810_vm8 = vweird.f32 %v10721_v6 }
 0xd06   : > { %vm4811_vm10 = vmor %vm4809_vm9, %vm4810_vm8 }
 0xd07   : > { %v4805_v60 = vmul.f32 %v10721_v6, %v4804_v32 }
 0xd09   : > { %v4806_v42 = vmul.f32 0.5, %v4805_v60 }
 0xd0b   : > { %v4807_v52 = vsub.f32 1.5, %v4806_v42 }
 0xd0d   : > { %v4798_v17 = vpop.xlane.xlu1 %4797  ;;  %v4808_v31 = vmul.f32 %v10721_v6, %v4807_v52  ;;  %v4976_v52 = vadd.f32 %v12607_v43, %v12602_v55 }
 0xd0e   : > { %v4800_v47 = vmul.f32 %v4798_v17, %v12589_v24 }
 0xd0f   : > { %v4812_v48 = vsel %vm4811_vm10, %v10721_v6, %v4808_v31 }
 0xd10   : > { %v4802_v12 = vadd.f32 1e-05, %v4800_v47  ;;  %v4823_v27 = vmul.f32 %v4812_v48, %v4789_v13  ;;  %v5971_v13 = vperm.slane %v12583_v35, %v11783_v30 }
 0xd12   : > { %10722 = vrsqrt.f32 %v4802_v12  ;;  %vm4819_vm12 = vweird.f32 %v4802_v12  ;;  %v4828_v38 = vmul.f32 %v10675_v20, %v4823_v27  ;;  %v5972_v11 = vrot.slane %v5971_v13, 4 }
 0xd14   : > { %v12627_v58 = vadd.f32 %v10676_v49, %v4828_v38 }
 0xd16   : > { %v4835_v36 = vadd.f32 %v10767_v1, %v12627_v58 }
 0xd18   : > { %v10723_v33 = vpop.eup %10722 }
 0xd19   : > { %v4814_v46 = vmul.f32 %v10723_v33, %v4802_v12  ;;  %vm4820_vm11 = vweird.f32 %v10723_v33  ;;  %v12658_v12 = vld [vmem:[%s13677_s2] ss:$0 sm:$0xff] }
 0xd1a   : > { %vm4821_vm13 = vmor %vm4819_vm12, %vm4820_vm11 }
 0xd1b   : > { %v4815_v19 = vmul.f32 %v10723_v33, %v4814_v46 }
 0xd1d   : > { %v4816_v53 = vmul.f32 0.5, %v4815_v19 }
 0xd1f   : > { %v4817_v41 = vsub.f32 1.5, %v4816_v53 }
 0xd21   : > { %v4818_v45 = vmul.f32 %v10723_v33, %v4817_v41 }
 0xd23   : > { %v4822_v40 = vsel %vm4821_vm13, %v10723_v33, %v4818_v45 }
 0xd24   : > { %v4824_v34 = vmul.f32 %v4822_v40, %v4790_v21 }
 0xd26   : > { %v4829_v63 = vmul.f32 %v10675_v20, %v4824_v34 }
 0xd28   : > { %v12629_v59 = vadd.f32 %v10676_v49, %v4829_v63 }
 0xd2a   : > { %v4836_v9 = vadd.f32 %v10768_v4, %v12629_v59 }
 0xd2c   : > { %v4837_v25 = vpack.c.bf16 %v4836_v9, %v4835_v36 }
 0xd2e   : > { %9923 = vmatmul.msk.bf16.vlgmr.msra.gmra.mxu1 %vm1604_vm1, %v4837_v25  ;;  %10471 = vrot.lane.b32.xlu1 %v10465_v0, %s11271_s9 }
 0xd30   : > { %v12666_v46 = vpop.permute.xlu2 %10461 }
 0xd31   : > { %v10463_v20 = vunpack.i.l.bf16 %v12666_v46 }
 0xd33   : > { %v5302_v45 = vrot.slane %v10463_v20, 4 }
 0xd48   : > { %v12668_v48 = vpop.permute.xlu0 %10466 }
 0xd49   : > { %v10468_v19 = vunpack.i.l.bf16 %v12668_v48 }
 0xd4b   : > { %v5300_v43 = vrot.slane %v10468_v19, 4  ;;  %v5303_v34 = vsel %vm1676_vm2, %v10468_v19, %v5302_v45 }
 0xd4c   : > { %v12683_v4 = vperm.slane %v5303_v34, %v11783_v30 }
 0xd4d   : > { %v5301_v49 = vsel %vm1676_vm2, %v5300_v43, %v10463_v20 }
 0xd4e   : > { %v12678_v63 = vperm.slane %v5301_v49, %v11783_v30 }
 0xd80   : > { %v10458_v3 = vpop.trf.xlu1 }
 0xd81   : > { %v5941_v44 = vsel %vm1676_vm2, %v5940_v62, %v10458_v3  ;;  %v5234_v62 = vrot.slane %v4976_v52, 4  ;;  %v5312_v3 = vrot.slane %v12678_v63, 4 }
 0xd82   : > { %v5945_v5 = vperm.slane %v5941_v44, %v11783_v30 }
 0xd84   : > { %v5953_v14 = vsel %vm1676_vm2, %v5952_v37, %v5945_v5 }
 0xd85   : > { %v5957_v56 = vperm.slane %v5953_v14, %v11814_v61 }
 0xd87   : > { %v5958_v2 = vrot.slane %v5957_v56, 4  ;;  %v5983_v23 = vshrl.u32 %v5957_v56, 16 }
 0xd88   : > { %v10459_v22 = vpop.trf.xlu1 }
 0xd89   : > { %v5961_v50 = vsel %vm1676_vm2, %v5960_v57, %v10459_v22  ;;  %v5959_v35 = vsel %vm1676_vm2, 0, %v5958_v2 }
 0xd8a   : > { %v5965_v21 = vperm.slane %v5961_v50, %v11783_v30  ;;  %v5989_v10 = vshrl.u32 %v5959_v35, 16 }
 0xd8c   : > { %v5973_v8 = vsel %vm1676_vm2, %v5972_v11, %v5965_v21  ;;  %v5324_v11 = vrot.slane %v12683_v4, 4 }
 0xd8d   : > { %v5977_v16 = vperm.slane %v5973_v8, %v11814_v61 }
 0xd8f   : > { %v5982_v18 = vpack.i.b16 %v5977_v16, %v5957_v56  ;;  %v5984_v28 = vshrl.u32 %v5977_v16, 16  ;;  %v5978_v29 = vrot.slane %v5977_v16, 4 }
 0xd91   : > { %v5996_v6 = vsel %vm2343_vm3, %v5982_v18, 0  ;;  %v5985_v32 = vpack.i.b16 %v5984_v28, %v5983_v23  ;;  %v5979_v15 = vsel %vm1676_vm2, 0, %v5978_v29 }
 0xd92   : > { %6005 = vmatpush.bf16.msrb.mxu0 %v5996_v6  ;;  %v5988_v26 = vpack.i.b16 %v5979_v15, %v5959_v35  ;;  %v5990_v60 = vshrl.u32 %v5979_v15, 16 }
 0xd93   : > { %v6015_v17 = vsel %vm2343_vm3, %v5985_v32, 0 }
 0xd94   : > { %6024 = vmatpush.bf16.msrb.mxu1 %v6015_v17  ;;  %v6034_v54 = vsel %vm2343_vm3, %v5988_v26, 0  ;;  %v5991_v47 = vpack.i.b16 %v5990_v60, %v5989_v10 }
 0xd96   : > { %6043 = vmatpush.bf16.msra.mxu0 %v6034_v54  ;;  %v6053_v42 = vsel %vm2343_vm3, %v5991_v47, 0 }
 0xd98   : > { %6062 = vmatpush.bf16.msra.mxu1 %v6053_v42 }
 0xda0   : > { %v12671_v53 = vpop.permute.xlu1 %10471 }
 0xda1   : > { %v10473_v27 = vunpack.i.l.bf16 %v12671_v53 }
 0xda3   : > { %v5288_v38 = vrot.slane %v10473_v27, 4  ;;  %v12697_v8 = vsel %vm1676_vm2, %v10473_v27, %v5290_v51 }
 0xda5   : > { %v5289_v36 = vsel %vm1676_vm2, %v5288_v38, %v12616_v39  ;;  %v10474_v39 = vunpack.i.h.bf16 %v12671_v53 }
 0xda6   : > { %v12689_v44 = vperm.slane %v5289_v36, %v11783_v30 }
 0xda8   : > { %v12706_v10 = vsel %vm1676_vm2, %v5312_v3, %v12689_v44 }
 0xdab   : > { %v4870_v0 = vpop.f32.mrf.mxu1 }
 0xdac   : > { %v4871_v31 = vadd.f32 %v12658_v12, %v4870_v0 }
 0xdae   : > { %v10485_v33 = vpack.i.bf16 %v4976_v52, %v4871_v31  ;;  %v5002_v9 = vrot.slane %v4871_v31, 4 }
 0xdb0   : > { %10486 = vrot.lane.b32.xlu0 %v10485_v33, %s11272_s12  ;;  %10481 = vrot.lane.b32.xlu2 %v10485_v33, %s11271_s9 }
 0xdb1   : > { %10476 = vrot.lane.b32.xlu1 %v10485_v33, %s11273_s21 }
 0xe0a   : > { %v10482_v55 = vpop.permute.xlu2 %10481 }
 0xe0b   : > { %v10483_v41 = vunpack.i.l.bf16 %v10482_v55  ;;  %v10484_v1 = vunpack.i.h.bf16 %v10482_v55 }
 0xe0d   : > { %v5000_v40 = vrot.slane %v10483_v41, 4  ;;  %v5232_v37 = vrot.slane %v10484_v1, 4  ;;  %v5003_v5 = vsel %vm1676_vm2, %v10483_v41, %v5002_v9  ;;  %v5235_v13 = vsel %vm1676_vm2, %v10484_v1, %v5234_v62 }
 0xe0e   : > { %v5011_v16 = vperm.slane %v5003_v5, %v11783_v30  ;;  %v5243_v35 = vperm.slane %v5235_v13, %v11783_v30 }
 0xe0f   : > { %v5001_v25 = vsel %vm1676_vm2, %v5000_v40, %v4871_v31  ;;  %v5233_v28 = vsel %vm1676_vm2, %v5232_v37, %v4976_v52 }
 0xe10   : > { %v5007_v57 = vperm.slane %v5001_v25, %v11783_v30  ;;  %v12715_v42 = vperm.slane %v5233_v28, %v11783_v30  ;;  %v5038_v0 = vrot.slane %v5011_v16, 4  ;;  %v5270_v33 = vrot.slane %v5243_v35, 4 }
 0xe12   : > { %v5026_v32 = vrot.slane %v5007_v57, 4 }
 0xe22   : > { %v10487_v14 = vpop.permute.xlu0 %10486 }
 0xe23   : > { %v10489_v56 = vunpack.i.h.bf16 %v10487_v14  ;;  %v10488_v22 = vunpack.i.l.bf16 %v10487_v14  ;;  %v10477_v50 = vpop.permute.xlu1 %10476 }
 0xe24   : > { %v10479_v21 = vunpack.i.h.bf16 %v10477_v50  ;;  %v10478_v2 = vunpack.i.l.bf16 %v10477_v50 }
 0xe25   : > { %v5244_v23 = vrot.slane %v10489_v56, 4  ;;  %v5012_v18 = vrot.slane %v10488_v22, 4 }
 0xe26   : > { %v5246_v29 = vrot.slane %v10479_v21, 4  ;;  %v5014_v6 = vrot.slane %v10478_v2, 4 }
 0xe27   : > { %v5245_v15 = vsel %vm1676_vm2, %v5244_v23, %v10479_v21  ;;  %v5013_v26 = vsel %vm1676_vm2, %v5012_v18, %v10478_v2 }
 0xe28   : > { %v5247_v60 = vsel %vm1676_vm2, %v10489_v56, %v5246_v29  ;;  %v12710_v17 = vperm.slane %v5245_v15, %v11783_v30  ;;  %v5015_v54 = vsel %vm1676_vm2, %v10488_v22, %v5014_v6  ;;  %v5019_v47 = vperm.slane %v5013_v26, %v11783_v30 }
 0xe29   : > { %v5255_v52 = vperm.slane %v5247_v60, %v11783_v30  ;;  %v5023_v31 = vperm.slane %v5015_v54, %v11783_v30 }
 0xe2a   : > { %v5256_v19 = vrot.slane %v12710_v17, 4  ;;  %v5024_v20 = vrot.slane %v5019_v47, 4  ;;  %v5027_v55 = vsel %vm1676_vm2, %v5019_v47, %v5026_v32 }
 0xe2b   : > { %v5268_v43 = vrot.slane %v5255_v52, 4  ;;  %v5035_v27 = vperm.slane %v5027_v55, %v11814_v61  ;;  %v5036_v41 = vrot.slane %v5023_v31, 4  ;;  %v5039_v45 = vsel %vm1676_vm2, %v5023_v31, %v5038_v0 }
 0xe2c   : > { %v5025_v49 = vsel %vm1676_vm2, %v5024_v20, %v5007_v57  ;;  %v5047_v38 = vperm.slane %v5039_v45, %v11814_v61  ;;  %v5271_v40 = vsel %vm1676_vm2, %v5255_v52, %v5270_v33  ;;  %v5257_v34 = vsel %vm1676_vm2, %v5256_v19, %v12715_v42 }
 0xe2d   : > { %v5031_v1 = vperm.slane %v5025_v49, %v11814_v61  ;;  %v5037_v36 = vsel %vm1676_vm2, %v5036_v41, %v5011_v16  ;;  %v5050_v9 = vrot.slane %v5035_v27, 4  ;;  %v5058_v25 = vpack.c.bf16 %v5035_v27, %v5035_v27 }
 0xe2e   : > { %v5043_v51 = vperm.slane %v5037_v36, %v11814_v61  ;;  %v5054_v62 = vrot.slane %v5047_v38, 4  ;;  %v5062_v3 = vpack.c.bf16 %v5047_v38, %v5047_v38  ;;  %v5279_v37 = vperm.slane %v5271_v40, %v11814_v61 }
 0xe2f   : > { %v5048_v5 = vrot.slane %v5031_v1, 4  ;;  %v5051_v14 = vsel %vm1676_vm2, 0.0, %v5050_v9  ;;  %v5056_v13 = vpack.c.bf16 %v5031_v1, %v5031_v1  ;;  %v5269_v57 = vsel %vm1676_vm2, %v5268_v43, %v5243_v35 }
 0xe30   : > { %v5052_v56 = vrot.slane %v5043_v51, 4  ;;  %v5055_v22 = vsel %vm1676_vm2, 0.0, %v5054_v62  ;;  %v5059_v50 = vpack.c.bf16 %v5051_v14, %v5051_v14  ;;  %v5060_v21 = vpack.c.bf16 %v5043_v51, %v5043_v51 }
 0xe31   : > { %v5049_v2 = vsel %vm1676_vm2, 0.0, %v5048_v5  ;;  %v5063_v16 = vpack.c.bf16 %v5055_v22, %v5055_v22  ;;  %v5366_v23 = vrot.slane %v5062_v3, 4  ;;  %v5286_v18 = vrot.slane %v5279_v37, 4 }
 0xe32   : > { %v5053_v28 = vsel %vm1676_vm2, 0.0, %v5052_v56  ;;  %v5057_v29 = vpack.c.bf16 %v5049_v2, %v5049_v2  ;;  %v5360_v6 = vrot.slane %v5060_v21, 4  ;;  %v5350_v32 = vpack.c.bf16 %v5279_v37, %v5279_v37 }
 0xe33   : > { %v5061_v15 = vpack.c.bf16 %v5053_v28, %v5053_v28  ;;  %v5367_v26 = vsel %vm1676_vm2, %v5366_v23, %v5058_v25  ;;  %v5386_v60 = vrot.slane %v5063_v16, 4  ;;  %v5287_v35 = vsel %vm1676_vm2, 0.0, %v5286_v18 }
 0xe34   : > { %v5361_v54 = vsel %vm1676_vm2, %v5360_v6, %v5056_v13  ;;  %v5371_v47 = vperm.slane %v5367_v26, %v11783_v30  ;;  %v5351_v0 = vpack.c.bf16 %v5287_v35, %v5287_v35  ;;  %v5275_v52 = vperm.slane %v5269_v57, %v11814_v61 }
 0xe35   : > { %v5380_v31 = vrot.slane %v5061_v15, 4  ;;  %v5387_v33 = vsel %vm1676_vm2, %v5386_v60, %v5059_v50  ;;  %v5263_v19 = vperm.slane %v5257_v34, %v11814_v61  ;;  %v5365_v20 = vperm.slane %v5361_v54, %v11783_v30 }
 0xe36   : > { %v12747_v55 = vperm.slane %v12697_v8, %v11783_v30  ;;  %v5372_v43 = vrot.slane %v5371_v47, 4  ;;  %10496 = vxpose.binary.xlu0.c.b16.start.end [1/2] (short) (narrow) %v5351_v0, %v5350_v32, 16  ;;  %v5284_v27 = vrot.slane %v5275_v52, 4  ;;  %v5391_v41 = vperm.slane %v5387_v33, %v11783_v30 }
 0xe37   : > { %v5258_v45 = vrot.slane %v12715_v42, 4  ;;  %v5280_v49 = vrot.slane %v5263_v19, 4  ;;  %v5381_v38 = vsel %vm1676_vm2, %v5380_v31, %v5057_v29  ;;  %v5319_v40 = vperm.slane %v12706_v10, %v11814_v61 }
 0xe38   : > { %v5285_v34 = vsel %vm1676_vm2, 0.0, %v5284_v27  ;;  %v5373_v1 = vsel %vm1676_vm2, %v5372_v43, %v5365_v20  ;;  %v5385_v8 = vperm.slane %v5381_v38, %v11783_v30  ;;  %v5392_v36 = vrot.slane %v5391_v41, 4 }
 0xe39   : > { %v5348_v9 = vpack.c.bf16 %v5275_v52, %v5275_v52  ;;  %v5349_v25 = vpack.c.bf16 %v5285_v34, %v5285_v34  ;;  %v5281_v51 = vsel %vm1676_vm2, 0.0, %v5280_v49  ;;  %v5377_v62 = vperm.slane %v5373_v1, %v11814_v61 }
 0xe3a   : > { %v5344_v42 = vpack.c.bf16 %v5263_v19, %v5263_v19  ;;  %v5345_v3 = vpack.c.bf16 %v5281_v51, %v5281_v51  ;;  %v5393_v37 = vsel %vm1676_vm2, %v5392_v36, %v5385_v8  ;;  %v5259_v5 = vsel %vm1676_vm2, %v12710_v17, %v5258_v45 }
 0xe3b   : > { %10490 = vxpose.binary.xlu1.c.b16.start.end [1/2] (short) (narrow) %v5349_v25, %v5348_v9, 16  ;;  %v5397_v10 = vperm.slane %v5393_v37, %v11814_v61  ;;  %v7131_v14 = vrot.slane %v10474_v39, 4  ;;  %v5325_v13 = vsel %vm1676_vm2, %v5324_v11, %v12747_v55  ;;  %v5403_v56 = vshrl.u32 %v5377_v62, 16 }
 0xe3c   : > { %10493 = vxpose.binary.xlu2.c.b16.start.end [1/2] (short) (narrow) %v5345_v3, %v5344_v42, 16  ;;  %v5336_v50 = vrot.slane %v5319_v40, 4  ;;  %v10469_v21 = vunpack.i.h.bf16 %v12668_v48  ;;  %v5267_v2 = vperm.slane %v5259_v5, %v11814_v61  ;;  %v5331_v16 = vperm.slane %v5325_v13, %v11814_v61 }
 0xe3d   : > { %v5402_v57 = vpack.i.b16 %v5397_v10, %v5377_v62  ;;  %v5404_v22 = vshrl.u32 %v5397_v10, 16  ;;  %v7132_v23 = vsel %vm1676_vm2, %v7131_v14, %v12612_v7  ;;  %v10464_v28 = vunpack.i.h.bf16 %v12666_v46 }
 0xe3e   : > { %v5337_v11 = vsel %vm1676_vm2, 0.0, %v5336_v50  ;;  %v7143_v18 = vrot.slane %v10469_v21, 4  ;;  %v5314_v29 = vrot.slane %v12689_v44, 4  ;;  %v5282_v48 = vrot.slane %v5267_v2, 4 }
 0xe3f   : > { %9960 = vmatmul.msk.bf16.vlgmr.msrb.gmra.mxu0 %vm2339_vm4, %v5402_v57  ;;  %v5405_v17 = vpack.i.b16 %v5404_v22, %v5403_v56  ;;  %v12780_v6 = vperm.slane %v7132_v23, %v11783_v30  ;;  %v5340_v32 = vrot.slane %v5331_v16, 4  ;;  %v5352_v15 = vpack.c.bf16 %v5319_v40, %v5319_v40 }
 0xe40   : > { %v5353_v26 = vpack.c.bf16 %v5337_v11, %v5337_v11  ;;  %v5398_v60 = vrot.slane %v5397_v10, 4  ;;  %v7144_v35 = vsel %vm1676_vm2, %v7143_v18, %v10464_v28  ;;  %v5283_v54 = vsel %vm1676_vm2, 0.0, %v5282_v48 }
 0xe41   : > { %9961 = vmatmul.msk.bf16.vlgmr.msrb.gmra.mxu1 %vm2339_vm4, %v5405_v17  ;;  %v5378_v47 = vrot.slane %v5377_v62, 4  ;;  %v5315_v0 = vsel %vm1676_vm2, %v12678_v63, %v5314_v29  ;;  %v7145_v46 = vrot.slane %v10464_v28, 4  ;;  %v7157_v44 = vrot.slane %v12780_v6, 4 }
 0xe42   : > { %v5341_v52 = vsel %vm1676_vm2, 0.0, %v5340_v32  ;;  %v5326_v31 = vrot.slane %v12747_v55, 4  ;;  %v5399_v33 = vsel %vm1676_vm2, 0, %v5398_v60  ;;  %v7150_v19 = vperm.slane %v7144_v35, %v11783_v30 }
 0xe43   : > { %v5346_v20 = vpack.c.bf16 %v5267_v2, %v5267_v2  ;;  %v5347_v43 = vpack.c.bf16 %v5283_v54, %v5283_v54  ;;  %v5323_v27 = vperm.slane %v5315_v0, %v11814_v61  ;;  %v5356_v41 = vpack.c.bf16 %v5331_v16, %v5331_v16 }
 0xe44   : > { %v5357_v45 = vpack.c.bf16 %v5341_v52, %v5341_v52  ;;  %v5379_v49 = vsel %vm1676_vm2, 0, %v5378_v47  ;;  %v7146_v63 = vsel %vm1676_vm2, %v10469_v21, %v7145_v46  ;;  %v7133_v38 = vrot.slane %v12612_v7, 4  ;;  %v4927_v52 = vpop.f32.mrf.mxu2 }
 0xe45   : > { %v5410_v40 = vshrl.u32 %v5399_v33, 16  ;;  %v7158_v55 = vsel %vm1676_vm2, %v7150_v19, %v7157_v44  ;;  %v5327_v34 = vsel %vm1676_vm2, %v12683_v4, %v5326_v31  ;;  %v5408_v1 = vpack.i.b16 %v5399_v33, %v5379_v49 }
 0xe46   : > { %10505 = vxpose.binary.xlu0.c.b16.start.end [1/2] (short) (narrow) %v5353_v26, %v5352_v15, 16  ;;  %v5409_v8 = vshrl.u32 %v5379_v49, 16  ;;  %v5338_v36 = vrot.slane %v5323_v27, 4  ;;  %v7154_v9 = vperm.slane %v7146_v63, %v11783_v30  ;;  %v7166_v25 = vperm.slane %v7158_v55, %v11814_v61 }
 0xe47   : > { %v7134_v51 = vsel %vm1676_vm2, %v10474_v39, %v7133_v38  ;;  %v5335_v62 = vperm.slane %v5327_v34, %v11814_v61  ;;  %v5354_v5 = vpack.c.bf16 %v5323_v27, %v5323_v27  ;;  %v7155_v16 = vrot.slane %v7150_v19, 4  ;;  %v10769_v19 = vld [vmem:[%s11734_s30] ss:$0 sm:$0xff] }
 0xe48   : > { %v5411_v7 = vpack.i.b16 %v5410_v40, %v5409_v8  ;;  %v5339_v4 = vsel %vm1676_vm2, 0.0, %v5338_v36  ;;  %v7167_v42 = vrot.slane %v7154_v9, 4  ;;  %v7142_v3 = vperm.slane %v7134_v51, %v11783_v30 }
 0xe49   : > { %v7181_v37 = vrot.slane %v7166_v25, 4  ;;  %v5342_v10 = vrot.slane %v5335_v62, 4  ;;  %v5355_v14 = vpack.c.bf16 %v5339_v4, %v5339_v4  ;;  %v7245_v57 = vpack.c.bf16 %v7166_v25, %v7166_v25 }
 0xe4a   : > { %v7168_v39 = vsel %vm1676_vm2, %v7167_v42, %v7142_v3  ;;  %v5358_v50 = vpack.c.bf16 %v5335_v62, %v5335_v62  ;;  %v7156_v18 = vsel %vm1676_vm2, %v7155_v16, %v12780_v6  ;;  %v7169_v32 = vrot.slane %v7142_v3, 4  ;;  %v4872_v6 = vpop.f32.mrf.mxu1 }
 0xe4b   : > { %10502 = vxpose.binary.xlu1.c.b16.start.end [1/2] (short) (narrow) %v5347_v43, %v5346_v20, 16  ;;  %v7182_v53 = vsel %vm1676_vm2, 0.0, %v7181_v37  ;;  %v5343_v13 = vsel %vm1676_vm2, 0.0, %v5342_v10  ;;  %v7174_v22 = vperm.slane %v7168_v39, %v11814_v61  ;;  %v7162_v28 = vperm.slane %v7156_v18, %v11814_v61 }
 0xe4c   : > { %10499 = vxpose.binary.xlu2.c.b16.start.end [1/2] (short) (narrow) %v5357_v45, %v5356_v41, 16  ;;  %v7246_v56 = vpack.c.bf16 %v7182_v53, %v7182_v53  ;;  %v5359_v21 = vpack.c.bf16 %v5343_v13, %v5343_v13  ;;  %v7170_v60 = vsel %vm1676_vm2, %v7154_v9, %v7169_v32 }
 0xe4d   : > { %v7183_v2 = vrot.slane %v7174_v22, 4  ;;  %v7247_v23 = vpack.c.bf16 %v7174_v22, %v7174_v22  ;;  %v7179_v29 = vrot.slane %v7162_v28, 4  ;;  %v7243_v15 = vpack.c.bf16 %v7162_v28, %v7162_v28 }
 0xe4e   : > { %v7178_v35 = vperm.slane %v7170_v60, %v11814_v61  ;;  %v12825_v33 = vadd.f32 %v12658_v12, %v4872_v6  ;;  %v12828_v20 = vadd.f32 %v10769_v19, %v4927_v52 }
 0xe4f   : > { %9962 = vmatmul.msk.bf16.vlgmr.msra.gmra.mxu0 %vm2339_vm4, %v5408_v1  ;;  %v7184_v17 = vsel %vm1676_vm2, 0.0, %v7183_v2  ;;  %v7180_v48 = vsel %vm1676_vm2, 0.0, %v7179_v29 }
 0xe50   : > { %v7248_v11 = vpack.c.bf16 %v7184_v17, %v7184_v17  ;;  %v7244_v26 = vpack.c.bf16 %v7180_v48, %v7180_v48  ;;  %v7185_v54 = vrot.slane %v7178_v35, 4  ;;  %v7249_v0 = vpack.c.bf16 %v7178_v35, %v7178_v35 }
 0xe51   : > { %9963 = vmatmul.msk.bf16.vlgmr.msra.gmra.mxu1 %vm2339_vm4, %v5411_v7  ;;  %v10533_v43 = vpack.i.bf16 %v12825_v33, %v12828_v20 }
 0xe52   : > { %v7186_v47 = vsel %vm1676_vm2, 0.0, %v7185_v54 }
 0xe53   : > { %v7250_v46 = vpack.c.bf16 %v7186_v47, %v7186_v47 }
 0xe56   : > { %10511 = vxpose.binary.xlu0.c.b16.start.end [1/2] (short) (narrow) %v5355_v14, %v5354_v5, 16 }
 0xe5b   : > { %10541 = vxpose.binary.xlu1.c.b16.start.end [1/2] (short) (narrow) %v7246_v56, %v7245_v57, 16 }
 0xe5c   : > { %10508 = vxpose.binary.xlu2.c.b16.start.end [1/2] (short) (narrow) %v5359_v21, %v5358_v50, 16 }
 0xe66   : > { %10514 = vxpose.binary.xlu0.c.b16.start.end [1/2] (short) (narrow) %v7248_v11, %v7247_v23, 16 }
 0xe76   : > { %10517 = vxpose.binary.xlu0.c.b16.start.end [1/2] (short) (narrow) %v7244_v26, %v7243_v15, 16 }
 0xe86   : > { %10520 = vxpose.binary.xlu0.c.b16.start.end [1/2] (short) (narrow) %v7250_v46, %v7249_v0, 16 }
 0xebc   : > { %v12820_v44 = vpop.f32.mrf.mxu0 }
 0xebe   : > { %v12822_v31 = vpop.f32.mrf.mxu1 }
 0xec4   : > { %v6009_v27 = vpop.f32.mrf.mxu0 }
 0xec5   : > { %10534 = vrot.lane.b32.xlu2 %v10533_v43, %s11271_s9 }
 0xec6   : > { %v6028_v41 = vpop.f32.mrf.mxu1 }
 0xecc   : > { %v12833_v45 = vpop.f32.mrf.mxu0 }
 0xece   : > { %v12835_v49 = vpop.f32.mrf.mxu1 }
 0xed4   : > { %v6047_v63 = vpop.f32.mrf.mxu0 }
 0xed6   : > { %v6066_v38 = vpop.f32.mrf.mxu1 }
 0xedd   : > { %v10494_v40 = vpop.trf.xlu2 }
 0xee2   : > { %v10497_v55 = vpop.trf.xlu0 }
 0xee3   : > { %v6390_v62 = vrot.slane %v10497_v55, 4 }
 0xee5   : > { %v10495_v12 = vpop.trf.xlu2 }
 0xee7   : > { %v10491_v34 = vpop.trf.xlu1 }
 0xee8   : > { %v6384_v8 = vrot.slane %v10491_v34, 4 }
 0xeea   : > { %v10498_v1 = vpop.trf.xlu0  ;;  %v6385_v25 = vsel %vm1676_vm2, %v6384_v8, %v10494_v40 }
 0xeeb   : > { %v6389_v7 = vperm.slane %v6385_v25, %v11783_v30  ;;  %v6446_v22 = vrot.slane %v10498_v1, 4 }
 0xeed   : > { %v10500_v36 = vpop.trf.xlu2  ;;  %v6410_v3 = vrot.slane %v6389_v7, 4 }
 0xeee   : > { %v6396_v42 = vrot.slane %v10500_v36, 4 }
 0xeef   : > { %v10492_v9 = vpop.trf.xlu1 }
 0xef0   : > { %v6440_v37 = vrot.slane %v10492_v9, 4 }
 0xef2   : > { %v10506_v51 = vpop.trf.xlu0  ;;  %v6441_v13 = vsel %vm1676_vm2, %v6440_v37, %v10495_v12 }
 0xef3   : > { %v6397_v39 = vsel %vm1676_vm2, %v6396_v42, %v10506_v51  ;;  %v6445_v17 = vperm.slane %v6441_v13, %v11783_v30 }
 0xef4   : > { %10524 = vrot.lane.b32.xlu0 %v10533_v43, %s11273_s21  ;;  %v6401_v2 = vperm.slane %v6397_v39, %v11783_v30 }
 0xef5   : > { %v10501_v4 = vpop.trf.xlu2  ;;  %v6466_v32 = vrot.slane %v6445_v17, 4 }
 0xef6   : > { %v6452_v16 = vrot.slane %v10501_v4, 4  ;;  %v6422_v48 = vrot.slane %v6401_v2, 4 }
 0xef7   : > { %v10503_v10 = vpop.trf.xlu1 }
 0xef8   : > { %v6391_v5 = vsel %vm1676_vm2, %v6390_v62, %v10503_v10 }
 0xef9   : > { %v6395_v14 = vperm.slane %v6391_v5, %v11783_v30 }
 0xefa   : > { %v10507_v53 = vpop.trf.xlu0 }
 0xefb   : > { %v6408_v57 = vrot.slane %v6395_v14, 4  ;;  %v6411_v56 = vsel %vm1676_vm2, %v6395_v14, %v6410_v3  ;;  %v6453_v26 = vsel %vm1676_vm2, %v6452_v16, %v10507_v53 }
 0xefc   : > { %10529 = vrot.lane.b32.xlu0 %v10533_v43, %s11272_s12  ;;  %v6419_v28 = vperm.slane %v6411_v56, %v11814_v61  ;;  %v6457_v6 = vperm.slane %v6453_v26, %v11783_v30 }
 0xefd   : > { %v10509_v50 = vpop.trf.xlu2  ;;  %v6409_v21 = vsel %vm1676_vm2, %v6408_v57, %v6389_v7 }
 0xefe   : > { %v6402_v23 = vrot.slane %v10509_v50, 4  ;;  %v6415_v35 = vperm.slane %v6409_v21, %v11814_v61  ;;  %v6438_v0 = vrot.slane %v6419_v28, 4  ;;  %v6478_v8 = vrot.slane %v6457_v6, 4 }
 0xeff   : > { %v10504_v11 = vpop.trf.xlu1 }
 0xf00   : > { %v6447_v18 = vsel %vm1676_vm2, %v6446_v22, %v10504_v11  ;;  %v6434_v41 = vrot.slane %v6415_v35, 4 }
 0xf01   : > { %v6451_v29 = vperm.slane %v6447_v18, %v11783_v30 }
 0xf02   : > { %v10512_v15 = vpop.trf.xlu0 }
 0xf03   : > { %v6403_v60 = vsel %vm1676_vm2, %v6402_v23, %v10512_v15  ;;  %v6464_v54 = vrot.slane %v6451_v29, 4  ;;  %v6467_v43 = vsel %vm1676_vm2, %v6451_v29, %v6466_v32 }
 0xf04   : > { %v6407_v47 = vperm.slane %v6403_v60, %v11783_v30  ;;  %v6475_v34 = vperm.slane %v6467_v43, %v11814_v61 }
 0xf05   : > { %v10510_v46 = vpop.trf.xlu2  ;;  %v6465_v38 = vsel %vm1676_vm2, %v6464_v54, %v6445_v17 }
 0xf06   : > { %v6420_v52 = vrot.slane %v6407_v47, 4  ;;  %v6423_v19 = vsel %vm1676_vm2, %v6407_v47, %v6422_v48  ;;  %v6458_v63 = vrot.slane %v10510_v46, 4  ;;  %v6471_v9 = vperm.slane %v6465_v38, %v11814_v61 }
 0xf07   : > { %v6431_v27 = vperm.slane %v6423_v19, %v11814_v61  ;;  %v6494_v42 = vrot.slane %v6475_v34, 4  ;;  %v10542_v38 = vpop.trf.xlu1 }
 0xf08   : > { %v6421_v40 = vsel %vm1676_vm2, %v6420_v52, %v6401_v2  ;;  %v6490_v14 = vrot.slane %v6471_v9, 4 }
 0xf09   : > { %v6427_v55 = vperm.slane %v6421_v40, %v11814_v61  ;;  %v6436_v12 = vrot.slane %v6431_v27, 4  ;;  %v12865_v1 = vsel %vm1676_vm2, %v6431_v27, %v6438_v0 }
 0xf0a   : > { %v10513_v36 = vpop.trf.xlu0  ;;  %v6524_v39 = vshrl.u32 %v12865_v1, 16 }
 0xf0b   : > { %v6432_v25 = vrot.slane %v6427_v55, 4  ;;  %v6459_v51 = vsel %vm1676_vm2, %v6458_v63, %v10513_v36  ;;  %v12870_v7 = vsel %vm1676_vm2, %v6427_v55, %v6434_v41  ;;  %v12873_v62 = vsel %vm1676_vm2, %v6436_v12, %v6419_v28 }
 0xf0c   : > { %v6463_v4 = vperm.slane %v6459_v51, %v11783_v30  ;;  %v6508_v50 = vshrl.u32 %v12870_v7, 16  ;;  %v6516_v48 = vshrl.u32 %v12873_v62, 16 }
 0xf0d   : > { %v12877_v3 = vsel %vm1676_vm2, %v6432_v25, %v6415_v35 }
 0xf0e   : > { %v6476_v37 = vrot.slane %v6463_v4, 4  ;;  %v6479_v10 = vsel %vm1676_vm2, %v6463_v4, %v6478_v8  ;;  %v6500_v35 = vshrl.u32 %v12877_v3, 16 }
 0xf0f   : > { %v6487_v5 = vperm.slane %v6479_v10, %v11814_v61 }
 0xf10   : > { %v6477_v53 = vsel %vm1676_vm2, %v6476_v37, %v6457_v6 }
 0xf11   : > { %v6483_v13 = vperm.slane %v6477_v53, %v11814_v61  ;;  %v6492_v57 = vrot.slane %v6487_v5, 4  ;;  %v12885_v56 = vsel %vm1676_vm2, %v6487_v5, %v6494_v42  ;;  %v10543_v42 = vpop.trf.xlu1 }
 0xf12   : > { %v10515_v22 = vpop.trf.xlu0  ;;  %v6522_v21 = vpack.i.b16 %v12885_v56, %v12865_v1  ;;  %v6525_v2 = vshrl.u32 %v12885_v56, 16 }
 0xf13   : > { %v6488_v17 = vrot.slane %v6483_v13, 4  ;;  %v12892_v16 = vsel %vm1676_vm2, %v6483_v13, %v6490_v14  ;;  %v12895_v23 = vsel %vm1676_vm2, %v6492_v57, %v6475_v34  ;;  %v7715_v6 = vrot.slane %v10515_v22, 4 }
 0xf14   : > { %v6506_v11 = vpack.i.b16 %v12892_v16, %v12870_v7  ;;  %v6509_v18 = vshrl.u32 %v12892_v16, 16  ;;  %v12900_v28 = vpack.i.b16 %v6525_v2, %v6524_v39  ;;  %v6514_v29 = vpack.i.b16 %v12895_v23, %v12873_v62 }
 0xf15   : > { %v6517_v32 = vshrl.u32 %v12895_v23, 16  ;;  %v12907_v15 = vsel %vm1676_vm2, %v6488_v17, %v6471_v9  ;;  %v7189_v2 = vrot.slane %v12828_v20, 4  ;;  %v6071_v7 = vsel %vm3200_vm5, %v12822_v31, -inf }
 0xf16   : > { %v12909_v26 = vpack.i.b16 %v6509_v18, %v6508_v50  ;;  %v6498_v60 = vpack.i.b16 %v12907_v15, %v12877_v3  ;;  %v6501_v54 = vshrl.u32 %v12907_v15, 16 }
 0xf17   : > { %v12915_v47 = vpack.i.b16 %v6517_v32, %v6516_v48 }
 0xf18   : > { %v12917_v0 = vpack.i.b16 %v6501_v54, %v6500_v35 }
 0xf1a   : > { %v10516_v46 = vpop.trf.xlu0 }
 0xf1b   : > { %v7771_v43 = vrot.slane %v10516_v46, 4 }
 0xf1f   : > { %v12939_v57 = vpop.permute.xlu2 %10534 }
 0xf20   : > { %v10536_v50 = vunpack.i.l.bf16 %v12939_v57 }
 0xf22   : > { %v10518_v52 = vpop.trf.xlu0  ;;  %v7190_v18 = vsel %vm1676_vm2, %v10536_v50, %v7189_v2 }
 0xf23   : > { %v7716_v19 = vsel %vm1676_vm2, %v7715_v6, %v10518_v52  ;;  %v7198_v54 = vperm.slane %v7190_v18, %v11783_v30 }
 0xf24   : > { %v7720_v63 = vperm.slane %v7716_v19, %v11783_v30 }
 0xf26   : > { %v7741_v12 = vrot.slane %v7720_v63, 4 }
 0xf2a   : > { %v10519_v27 = vpop.trf.xlu0 }
 0xf2b   : > { %v7772_v41 = vsel %vm1676_vm2, %v7771_v43, %v10519_v27  ;;  %v7187_v43 = vrot.slane %v10536_v50, 4  ;;  %v7225_v27 = vrot.slane %v7198_v54, 4 }
 0xf2c   : > { %v7776_v36 = vperm.slane %v7772_v41, %v11783_v30 }
 0xf2e   : > { %v7797_v10 = vrot.slane %v7776_v36, 4 }
 0xf32   : > { %v10521_v40 = vpop.trf.xlu0 }
 0xf33   : > { %v7721_v55 = vrot.slane %v10521_v40, 4 }
 0xf35   : > { %v7722_v34 = vsel %vm1676_vm2, %v7721_v55, %v10542_v38  ;;  %v7188_v38 = vsel %vm1676_vm2, %v7187_v43, %v12828_v20 }
 0xf36   : > { %v7726_v8 = vperm.slane %v7722_v34, %v11783_v30  ;;  %v7194_v34 = vperm.slane %v7188_v38, %v11783_v30 }
 0xf38   : > { %v7739_v9 = vrot.slane %v7726_v8, 4  ;;  %v12926_v25 = vsel %vm1676_vm2, %v7726_v8, %v7741_v12 }
 0xf3a   : > { %v12929_v51 = vsel %vm1676_vm2, %v7739_v9, %v7720_v63  ;;  %v10522_v4 = vpop.trf.xlu0 }
 0xf3b   : > { %v7777_v37 = vrot.slane %v10522_v4, 4 }
 0xf3d   : > { %v7778_v5 = vsel %vm1676_vm2, %v7777_v37, %v10543_v42  ;;  %v7213_v37 = vrot.slane %v7194_v34, 4 }
 0xf3e   : > { %v7782_v14 = vperm.slane %v7778_v5, %v11783_v30 }
 0xf40   : > { %v7795_v53 = vrot.slane %v7782_v14, 4  ;;  %v12934_v39 = vsel %vm1676_vm2, %v7782_v14, %v7797_v10 }
 0xf42   : > { %v12937_v13 = vsel %vm1676_vm2, %v7795_v53, %v7776_v36 }
 0xf66   : > { %v12941_v22 = vpop.permute.xlu0 %10524 }
 0xf67   : > { %v10526_v17 = vunpack.i.l.bf16 %v12941_v22 }
 0xf69   : > { %v7201_v32 = vrot.slane %v10526_v17, 4 }
 0xf6e   : > { %v12947_v48 = vpop.permute.xlu0 %10529 }
 0xf6f   : > { %v10531_v35 = vunpack.i.l.bf16 %v12947_v48 }
 0xf71   : > { %v7199_v46 = vrot.slane %v10531_v35, 4  ;;  %v7202_v6 = vsel %vm1676_vm2, %v10531_v35, %v7201_v32 }
 0xf72   : > { %v7210_v52 = vperm.slane %v7202_v6, %v11783_v30 }
 0xf73   : > { %v7200_v19 = vsel %vm1676_vm2, %v7199_v46, %v10526_v17 }
 0xf74   : > { %v7206_v41 = vperm.slane %v7200_v19, %v11783_v30  ;;  %v7226_v63 = vsel %vm1676_vm2, %v7210_v52, %v7225_v27  ;;  %v7223_v40 = vrot.slane %v7210_v52, 4 }
 0xf75   : > { %v7234_v12 = vperm.slane %v7226_v63, %v11814_v61 }
 0xf76   : > { %v7211_v55 = vrot.slane %v7206_v41, 4  ;;  %v7224_v8 = vsel %vm1676_vm2, %v7223_v40, %v7198_v54  ;;  %v7214_v50 = vsel %vm1676_vm2, %v7206_v41, %v7213_v37 }
 0xf77   : > { %v7241_v36 = vrot.slane %v7234_v12, 4  ;;  %v7230_v42 = vperm.slane %v7224_v8, %v11814_v61  ;;  %v7257_v10 = vpack.c.bf16 %v7234_v12, %v7234_v12  ;;  %v7222_v46 = vperm.slane %v7214_v50, %v11814_v61 }
 0xf78   : > { %v7212_v9 = vsel %vm1676_vm2, %v7211_v55, %v7194_v34  ;;  %v7746_v55 = vperm.slane %v12929_v51, %v11814_v61  ;;  %v7750_v12 = vperm.slane %v12926_v25, %v11814_v61  ;;  %v7802_v51 = vperm.slane %v12937_v13, %v11814_v61 }
 0xf79   : > { %v7242_v4 = vsel %vm1676_vm2, 0.0, %v7241_v36  ;;  %v7218_v20 = vperm.slane %v7212_v9, %v11814_v61  ;;  %v7239_v14 = vrot.slane %v7230_v42, 4  ;;  %v7255_v17 = vpack.c.bf16 %v7230_v42, %v7230_v42 }
 0xf7a   : > { %v7258_v5 = vpack.c.bf16 %v7242_v4, %v7242_v4  ;;  %v7237_v6 = vrot.slane %v7222_v46, 4  ;;  %v7253_v19 = vpack.c.bf16 %v7222_v46, %v7222_v46  ;;  %v7806_v42 = vperm.slane %v12934_v39, %v11814_v61 }
 0xf7b   : > { %v7235_v53 = vrot.slane %v7218_v20, 4  ;;  %v7240_v2 = vsel %vm1676_vm2, 0.0, %v7239_v14  ;;  %v7251_v35 = vpack.c.bf16 %v7218_v20, %v7218_v20  ;;  %v7769_v20 = vrot.slane %v7750_v12, 4 }
 0xf7c   : > { %10547 = vxpose.binary.xlu1.c.b16.start.end [1/2] (short) (narrow) %v7258_v5, %v7257_v10, 16  ;;  %v7256_v18 = vpack.c.bf16 %v7240_v2, %v7240_v2  ;;  %v7238_v52 = vsel %vm1676_vm2, 0.0, %v7237_v6  ;;  %v7765_v5 = vrot.slane %v7746_v55, 4  ;;  %v7825_v2 = vrot.slane %v7806_v42, 4 }
 0xf7d   : > { %v7236_v32 = vsel %vm1676_vm2, 0.0, %v7235_v53  ;;  %v7254_v43 = vpack.c.bf16 %v7238_v52, %v7238_v52 }
 0xf7e   : > { %v7252_v54 = vpack.c.bf16 %v7236_v32, %v7236_v32  ;;  %10538 = vxpose.binary.xlu0.c.b16.start.end [1/2] (short) (narrow) %v7256_v18, %v7255_v17, 16 }
 0xf80   : > { %10544 = vxpose.binary.xlu2.c.b16.start.end [1/2] (short) (narrow) %v7252_v54, %v7251_v35, 16  ;;  %v7821_v35 = vrot.slane %v7802_v51, 4 }
 0xf8c   : > { %10550 = vxpose.binary.xlu1.c.b16.start.end [1/2] (short) (narrow) %v7254_v43, %v7253_v19, 16 }
 0xf8e   : > { %10556 = vxpose.binary.xlu0.c.b16.start.end [1/2] (short) (narrow) %v12909_v26, %v6506_v11, 16 }
 0xf9c   : > { %10553 = vxpose.binary.xlu1.c.b16.start.end [1/2] (short) (narrow) %v12900_v28, %v6522_v21, 16 }
 0xfac   : > { %10559 = vxpose.binary.xlu1.c.b16.start.end [1/2] (short) (narrow) %v12915_v47, %v6514_v29, 16 }
 0xfbc   : > { %10562 = vxpose.binary.xlu1.c.b16.start.end [1/2] (short) (narrow) %v12917_v0, %v6498_v60, 16 }
 0xff1   : > { %6072 = vmax.xlane.f32.xlu2 %v6071_v7 }
0x1021   : > { %v10545_v26 = vpop.trf.xlu2 }
0x1028   : > { %v10548_v16 = vpop.trf.xlu1 }
0x1029   : > { %v10546_v29 = vpop.trf.xlu2  ;;  %v7733_v47 = vrot.slane %v10548_v16, 4 }
0x102a   : > { %v10539_v11 = vpop.trf.xlu0 }
0x102b   : > { %v7727_v1 = vrot.slane %v10539_v11, 4 }
0x102d   : > { %v7728_v21 = vsel %vm1676_vm2, %v7727_v1, %v10545_v26 }
0x102e   : > { %v7732_v62 = vperm.slane %v7728_v21, %v11783_v30 }
0x1030   : > { %v10549_v56 = vpop.trf.xlu1  ;;  %v7753_v15 = vrot.slane %v7732_v62, 4 }
0x1031   : > { %v7789_v34 = vrot.slane %v10549_v56, 4 }
0x1032   : > { %v10540_v28 = vpop.trf.xlu0 }
0x1033   : > { %v7783_v23 = vrot.slane %v10540_v28, 4 }
0x1035   : > { %v7784_v0 = vsel %vm1676_vm2, %v7783_v23, %v10546_v29 }
0x1036   : > { %v7788_v63 = vperm.slane %v7784_v0, %v11783_v30 }
0x1038   : > { %v10551_v3 = vpop.trf.xlu1  ;;  %v7809_v9 = vrot.slane %v7788_v63, 4 }
0x1039   : > { %v7734_v60 = vsel %vm1676_vm2, %v7733_v47, %v10551_v3 }
0x103a   : > { %v7738_v27 = vperm.slane %v7734_v60, %v11783_v30 }
0x103c   : > { %v7751_v41 = vrot.slane %v7738_v27, 4  ;;  %v7754_v38 = vsel %vm1676_vm2, %v7738_v27, %v7753_v15 }
0x103d   : > { %v7762_v36 = vperm.slane %v7754_v38, %v11814_v61 }
0x103e   : > { %v7752_v40 = vsel %vm1676_vm2, %v7751_v41, %v7732_v62 }
0x103f   : > { %v7758_v8 = vperm.slane %v7752_v40, %v11814_v61  ;;  %v7767_v14 = vrot.slane %v7762_v36, 4  ;;  %v7770_v18 = vsel %vm1676_vm2, %v7762_v36, %v7769_v20  ;;  %v6068_v36 = vsel %vm3200_vm5, %v12820_v44, -inf }
0x1040   : > { %v10552_v4 = vpop.trf.xlu1  ;;  %v7855_v6 = vshrl.u32 %v7770_v18, 16 }
0x1041   : > { %v7790_v37 = vsel %vm1676_vm2, %v7789_v34, %v10552_v4  ;;  %v7763_v25 = vrot.slane %v7758_v8, 4  ;;  %v7766_v32 = vsel %vm1676_vm2, %v7758_v8, %v7765_v5  ;;  %v13016_v19 = vsel %vm1676_vm2, %v7767_v14, %v7750_v12  ;;  %v10557_v5 = vpop.trf.xlu0 }
0x1042   : > { %v7794_v10 = vperm.slane %v7790_v37, %v11783_v30  ;;  %v7839_v11 = vshrl.u32 %v7766_v32, 16  ;;  %v7847_v62 = vshrl.u32 %v13016_v19, 16 }
0x1043   : > { %v13019_v43 = vsel %vm1676_vm2, %v7763_v25, %v7746_v55 }
0x1044   : > { %v7807_v53 = vrot.slane %v7794_v10, 4  ;;  %v7810_v50 = vsel %vm1676_vm2, %v7794_v10, %v7809_v9  ;;  %v7831_v47 = vshrl.u32 %v13019_v43, 16  ;;  %v6077_v9 = vsel %vm3200_vm5, %v12835_v49, -inf }
0x1045   : > { %v7818_v17 = vperm.slane %v7810_v50, %v11814_v61 }
0x1046   : > { %v7808_v39 = vsel %vm1676_vm2, %v7807_v53, %v7788_v63  ;;  %v10027_v63 = vld [vmem:[#allocation5 + $0x8] sm:$0xff] }
0x1047   : > { %v7814_v54 = vperm.slane %v7808_v39, %v11814_v61  ;;  %v7823_v46 = vrot.slane %v7818_v17, 4  ;;  %v7826_v13 = vsel %vm1676_vm2, %v7818_v17, %v7825_v2  ;;  %9959 = vmatmul.msk.bf16.gmra.mxu3 %vm1604_vm1, %v10027_v63 }
0x1048   : > { %v7856_v52 = vshrl.u32 %v7826_v13, 16  ;;  %v7853_v1 = vpack.i.b16 %v7826_v13, %v7770_v18  ;;  %v10554_v8 = vpop.trf.xlu1 }
0x1049   : > { %v7819_v7 = vrot.slane %v7814_v54, 4  ;;  %v7822_v16 = vsel %vm1676_vm2, %v7814_v54, %v7821_v35  ;;  %v13023_v26 = vsel %vm1676_vm2, %v7823_v46, %v7806_v42  ;;  %v6662_v10 = vrot.slane %v10554_v8, 4  ;;  %v10558_v39 = vpop.trf.xlu0 }
0x104a   : > { %v7857_v56 = vpack.i.b16 %v7856_v52, %v7855_v6  ;;  %v7840_v21 = vshrl.u32 %v7822_v16, 16  ;;  %v7845_v28 = vpack.i.b16 %v13023_v26, %v13016_v19  ;;  %v7848_v23 = vshrl.u32 %v13023_v26, 16 }
0x104b   : > { %v13030_v29 = vsel %vm1676_vm2, %v7819_v7, %v7802_v51  ;;  %v7837_v3 = vpack.i.b16 %v7822_v16, %v7766_v32  ;;  %v6663_v25 = vsel %vm1676_vm2, %v6662_v10, %v10557_v5 }
0x104c   : > { %10565 = vxpose.binary.xlu1.c.b16.start.end [1/2] (short) (narrow) %v7857_v56, %v7853_v1, 16  ;;  %v7841_v15 = vpack.i.b16 %v7840_v21, %v7839_v11  ;;  %v7829_v60 = vpack.i.b16 %v13030_v29, %v13019_v43  ;;  %v7832_v0 = vshrl.u32 %v13030_v29, 16  ;;  %v13036_v27 = vpack.i.b16 %v7848_v23, %v7847_v62  ;;  %v10770_v62 = vld [vmem:[%s11738_s25] ss:$0 sm:$0xff] }
0x104d   : > { %v6667_v53 = vperm.slane %v6663_v25, %v11783_v30 }
0x104e   : > { %10568 = vxpose.binary.xlu0.c.b16.start.end [1/2] (short) (narrow) %v7841_v15, %v7837_v3, 16  ;;  %v13038_v41 = vpack.i.b16 %v7832_v0, %v7831_v47 }
0x104f   : > { %v6668_v17 = vrot.slane %v6667_v53, 4 }
0x1050   : > { %v10555_v4 = vpop.trf.xlu1 }
0x1051   : > { %v6682_v14 = vrot.slane %v10555_v4, 4 }
0x1053   : > { %v6683_v32 = vsel %vm1676_vm2, %v6682_v14, %v10558_v39 }
0x1054   : > { %v6687_v35 = vperm.slane %v6683_v32, %v11783_v30 }
0x1056   : > { %v6688_v52 = vrot.slane %v6687_v35, 4 }
0x1058   : > { %v10560_v42 = vpop.trf.xlu1 }
0x1059   : > { %v6656_v20 = vrot.slane %v10560_v42, 4 }
0x1060   : > { %v10561_v37 = vpop.trf.xlu1 }
0x1061   : > { %v6676_v2 = vrot.slane %v10561_v37, 4 }
0x1064   : > { %v6073_v38 = vpop.xlane.xlu2 %6072 }
0x1065   : > { %v6081_v40 = vsub.f32 %v12822_v31, %v6073_v38  ;;  %v6074_v31 = vsel %vm3200_vm5, %v12833_v45, -inf }
0x1067   : > { %v6086_v55 = vmul.f32 1.442695, %v6081_v40 }
0x1068   : > { %v10563_v51 = vpop.trf.xlu1 }
0x1069   : > { %10724 = vpow2.f32 %v6086_v55  ;;  %v6657_v50 = vsel %vm1676_vm2, %v6656_v20, %v10563_v51 }
0x106a   : > { %v6661_v18 = vperm.slane %v6657_v50, %v11783_v30 }
0x106c   : > { %v6669_v6 = vsel %vm1676_vm2, %v6668_v17, %v6661_v18 }
0x106d   : > { %v13060_v11 = vperm.slane %v6669_v6, %v11814_v61 }
0x106f   : > { %v10725_v12 = vpop.eup %10724  ;;  %v6674_v56 = vrot.slane %v13060_v11, 4  ;;  %v6699_v5 = vshrl.u32 %v13060_v11, 16 }
0x1070   : > { %v6095_v34 = vsel %vm3200_vm5, %v10725_v12, 0.0  ;;  %v10564_v54 = vpop.trf.xlu1 }
0x1071   : > { %6096 = vadd.xlane.f32.xlu2 %v6095_v34  ;;  %v6677_v46 = vsel %vm1676_vm2, %v6676_v2, %v10564_v54  ;;  %v13073_v15 = vsel %vm1676_vm2, 0, %v6674_v56 }
0x1072   : > { %v6681_v7 = vperm.slane %v6677_v46, %v11783_v30  ;;  %v6705_v55 = vshrl.u32 %v13073_v15, 16 }
0x1074   : > { %v6689_v16 = vsel %vm1676_vm2, %v6688_v52, %v6681_v7 }
0x1075   : > { %v13063_v1 = vperm.slane %v6689_v16, %v11814_v61 }
0x1077   : > { %v6694_v21 = vrot.slane %v13063_v1, 4  ;;  %v6698_v63 = vpack.i.b16 %v13063_v1, %v13060_v11  ;;  %v6700_v20 = vshrl.u32 %v13063_v1, 16  ;;  %v10537_v11 = vunpack.i.h.bf16 %v12939_v57 }
0x1078   : > { %v10527_v1 = vunpack.i.h.bf16 %v12941_v22 }
0x1079   : > { %v13076_v0 = vsel %vm1676_vm2, 0, %v6694_v21  ;;  %v6701_v25 = vpack.i.b16 %v6700_v20, %v6699_v5 }
0x107a   : > { %v6706_v34 = vshrl.u32 %v13076_v0, 16  ;;  %v6704_v8 = vpack.i.b16 %v13076_v0, %v13073_v15 }
0x10ac   : > { %6069 = vmax.xlane.f32.xlu1 %v6068_v36  ;;  %v13090_v36 = vpack.i.b16 %v6706_v34, %v6705_v55 }
0x10b4   : > { %6078 = vmax.xlane.f32.xlu1 %v6077_v9 }
0x10bf   : > { %6075 = vmax.xlane.f32.xlu0 %v6074_v31 }
0x10ca   : > { %v4980_v13 = vpop.f32.mrf.mxu3 }
0x10cb   : > { %v13068_v23 = vadd.f32 %v10770_v62, %v4980_v13 }
0x10d2   : > { %v4982_v47 = vpop.f32.mrf.mxu3 }
0x10d3   : > { %v13070_v3 = vadd.f32 %v10770_v62, %v4982_v47 }
0x10d5   : > { %v13082_v38 = vpack.i.bf16 %v13070_v3, %v13068_v23 }
0x10d7   : > { %10588 = vrot.lane.b32.xlu2 %v13082_v38, %s11271_s9 }
0x10e4   : > { %v6097_v40 = vpop.xlane.xlu2 %6096 }
0x10e5   : > { %10726 = vrcp.f32 %v6097_v40 }
0x10eb   : > { %v10727_v9 = vpop.eup %10726 }
0x10ec   : > { %v6109_v4 = vmul.f32 %v10727_v9, %v6097_v40 }
0x10ee   : > { %v6113_v42 = vsub.f32 2.0, %v6109_v4 }
0x10f0   : > { %v6117_v31 = vmul.f32 %v10727_v9, %v6113_v42 }
0x10f2   : > { %v6121_v37 = vmul.f32 %v10725_v12, %v6117_v31 }
0x10f4   : > { %v6125_v10 = vpack.c.bf16 %v6121_v37, %v6121_v37 }
0x10f6   : > { %v6731_v51 = vsel %vm3200_vm5, %v6125_v10, 0 }
0x10f7   : > { %6740 = vmatpush.bf16.xpose.msra.mxu3 %v6731_v51 }
0x10f8   : > { %v10566_v14 = vpop.trf.xlu1 }
0x10f9   : > { %v7993_v53 = vrot.slane %v10566_v14, 4 }
0x10fa   : > { %v10569_v50 = vpop.trf.xlu0 }
0x10fb   : > { %v13097_v2 = vsel %vm1676_vm2, %v7993_v53, %v10569_v50 }
0x10fe   : > { %9965 = vmatmul.msk.bf16.vlgmr.msra.gmra.mxu3 %vm3200_vm5, %v6701_v25 }
0x1100   : > { %v10567_v17 = vpop.trf.xlu1 }
0x1101   : > { %v8013_v18 = vrot.slane %v10567_v17, 4 }
0x1102   : > { %v10570_v12 = vpop.trf.xlu0 }
0x1103   : > { %v13100_v39 = vsel %vm1676_vm2, %v8013_v18, %v10570_v12  ;;  %v7047_v12 = vrot.slane %v10537_v11, 4 }
0x111f   : > { %v6070_v32 = vpop.xlane.xlu1 %6069 }
0x1120   : > { %v6080_v35 = vsub.f32 %v12820_v44, %v6070_v32 }
0x1122   : > { %v6084_v54 = vmul.f32 1.442695, %v6080_v35  ;;  %v7061_v35 = vrot.slane %v10527_v1, 4 }
0x1124   : > { %10728 = vpow2.f32 %v6084_v54 }
0x1127   : > { %v6079_v46 = vpop.xlane.xlu1 %6078 }
0x1128   : > { %v6083_v13 = vsub.f32 %v12835_v49, %v6079_v46 }
0x112a   : > { %v10729_v6 = vpop.eup %10728  ;;  %v6090_v52 = vmul.f32 1.442695, %v6083_v13 }
0x112b   : > { %v6092_v7 = vsel %vm3200_vm5, %v10729_v6, 0.0 }
0x112c   : > { %10730 = vpow2.f32 %v6090_v52  ;;  %6093 = vadd.xlane.f32.xlu1 %v6092_v7 }
0x1131   : > { %v13118_v55 = vpop.permute.xlu2 %10588 }
0x1132   : > { %v10731_v16 = vpop.eup %10730  ;;  %v6076_v56 = vpop.xlane.xlu0 %6075 }
0x1133   : > { %v6082_v21 = vsub.f32 %v12833_v45, %v6076_v56  ;;  %v6101_v62 = vsel %vm3200_vm5, %v10731_v16, 0.0 }
0x1134   : > { %6102 = vadd.xlane.f32.xlu2 %v6101_v62 }
0x1135   : > { %v6088_v47 = vmul.f32 1.442695, %v6082_v21 }
0x1137   : > { %10732 = vpow2.f32 %v6088_v47 }
0x113d   : > { %v10733_v44 = vpop.eup %10732 }
0x113e   : > { %v6098_v40 = vsel %vm3200_vm5, %v10733_v44, 0.0 }
0x113f   : > { %6099 = vadd.xlane.f32.xlu0 %v6098_v40 }
0x1166   : > { %10571 = vxpose.binary.xlu1.c.b16.start.end [1/2] (short) (narrow) %v13036_v27, %v7845_v28, 16 }
0x1168   : > { %10574 = vxpose.binary.xlu0.c.b16.start.end [1/2] (short) (narrow) %v13038_v41, %v7829_v60, 16 }
0x1181   : > { %v13116_v45 = vpop.f32.mrf.mxu3 }
0x1189   : > { %v6744_v49 = vpop.f32.mrf.mxu3 }
0x119f   : > { %v6094_v34 = vpop.xlane.xlu1 %6093 }
0x11a0   : > { %10734 = vrcp.f32 %v6094_v34 }
0x11a6   : > { %v10735_v9 = vpop.eup %10734 }
0x11a7   : > { %v6108_v4 = vmul.f32 %v10735_v9, %v6094_v34  ;;  %v6103_v42 = vpop.xlane.xlu2 %6102 }
0x11a8   : > { %10736 = vrcp.f32 %v6103_v42 }
0x11a9   : > { %v6112_v31 = vsub.f32 2.0, %v6108_v4 }
0x11ab   : > { %v6116_v19 = vmul.f32 %v10735_v9, %v6112_v31 }
0x11ad   : > { %v6120_v26 = vmul.f32 %v10729_v6, %v6116_v19 }
0x11ae   : > { %v10737_v28 = vpop.eup %10736 }
0x11af   : > { %v6111_v27 = vmul.f32 %v10737_v28, %v6103_v42  ;;  %v6124_v37 = vpack.c.bf16 %v6120_v26, %v6120_v26 }
0x11b1   : > { %v6115_v43 = vsub.f32 2.0, %v6111_v27  ;;  %v6712_v29 = vsel %vm3200_vm5, %v6124_v37, 0 }
0x11b2   : > { %6721 = vmatpush.bf16.xpose.msra.mxu2 %v6712_v29  ;;  %v6100_v60 = vpop.xlane.xlu0 %6099 }
0x11b3   : > { %v6119_v41 = vmul.f32 %v10737_v28, %v6115_v43  ;;  %10738 = vrcp.f32 %v6100_v60 }
0x11b5   : > { %v6123_v10 = vmul.f32 %v10731_v16, %v6119_v41 }
0x11b7   : > { %v6127_v5 = vpack.c.bf16 %v6123_v10, %v6123_v10 }
0x11b9   : > { %v10739_v20 = vpop.eup %10738  ;;  %9964 = vmatmul.msk.bf16.vlgmr.msra.gmra.mxu2 %vm3200_vm5, %v6698_v63  ;;  %v6769_v51 = vsel %vm3200_vm5, %v6127_v5, 0  ;;  %v7049_v63 = vrot.slane %v12825_v33, 4 }
0x11ba   : > { %v6110_v25 = vmul.f32 %v10739_v20, %v6100_v60  ;;  %6778 = vmatpush.bf16.xpose.msrb.mxu1 %v6769_v51 }
0x11bb   : > { %v7050_v32 = vsel %vm1676_vm2, %v10537_v11, %v7049_v63 }
0x11bc   : > { %v6114_v14 = vsub.f32 2.0, %v6110_v25  ;;  %v7058_v0 = vperm.slane %v7050_v32, %v11783_v30 }
0x11be   : > { %v6118_v53 = vmul.f32 %v10739_v20, %v6114_v14  ;;  %v7085_v46 = vrot.slane %v7058_v0, 4 }
0x11c0   : > { %10578 = vrot.lane.b32.xlu1 %v13082_v38, %s11273_s21  ;;  %v6122_v50 = vmul.f32 %v10733_v44, %v6118_v53  ;;  %v7998_v53 = vperm.slane %v13097_v2, %v11783_v30 }
0x11c1   : > { %9967 = vmatmul.msk.bf16.vlgmr.msrb.gmra.mxu1 %vm3200_vm5, %v13090_v36  ;;  %v10532_v36 = vunpack.i.h.bf16 %v12947_v48 }
0x11c2   : > { %v6126_v17 = vpack.c.bf16 %v6122_v50, %v6122_v50  ;;  %v7999_v32 = vrot.slane %v7998_v53, 4 }
0x11c3   : > { %v7059_v54 = vrot.slane %v10532_v36, 4  ;;  %v7062_v15 = vsel %vm1676_vm2, %v10532_v36, %v7061_v35 }
0x11c4   : > { %v6750_v18 = vsel %vm3200_vm5, %v6126_v17, 0  ;;  %v7070_v57 = vperm.slane %v7062_v15, %v11783_v30 }
0x11c5   : > { %6759 = vmatpush.bf16.xpose.msrb.mxu0 %v6750_v18  ;;  %v7060_v22 = vsel %vm1676_vm2, %v7059_v54, %v10527_v1 }
0x11c6   : > { %v7066_v48 = vperm.slane %v7060_v22, %v11783_v30  ;;  %v7083_v13 = vrot.slane %v7070_v57, 4  ;;  %v7086_v6 = vsel %vm1676_vm2, %v7070_v57, %v7085_v46  ;;  %v8018_v57 = vperm.slane %v13100_v39, %v11783_v30 }
0x11c7   : > { %v7094_v7 = vperm.slane %v7086_v6, %v11814_v61 }
0x11c8   : > { %v7071_v16 = vrot.slane %v7066_v48, 4 }
0x11c9   : > { %v7101_v47 = vrot.slane %v7094_v7, 4  ;;  %v7109_v26 = vpack.c.bf16 %v7094_v7, %v7094_v7 }
0x11cb   : > { %v7102_v9 = vsel %vm1676_vm2, 0.0, %v7101_v47  ;;  %v7413_v41 = vrot.slane %v7109_v26, 4 }
0x11cc   : > { %9966 = vmatmul.msk.bf16.vlgmr.msrb.gmra.mxu0 %vm3200_vm5, %v6704_v8  ;;  %v7110_v4 = vpack.c.bf16 %v7102_v9, %v7102_v9 }
0x11ce   : > { %v7433_v37 = vrot.slane %v7110_v4, 4 }
0x11d6   : > { %10583 = vrot.lane.b32.xlu0 %v13082_v38, %s11272_s12  ;;  %v7048_v38 = vsel %vm1676_vm2, %v7047_v12, %v12825_v33  ;;  %v7084_v33 = vsel %vm1676_vm2, %v7083_v13, %v7058_v0 }
0x11d7   : > { %v7054_v8 = vperm.slane %v7048_v38, %v11783_v30  ;;  %v7090_v62 = vperm.slane %v7084_v33, %v11814_v61 }
0x11d9   : > { %v7073_v52 = vrot.slane %v7054_v8, 4  ;;  %v7072_v44 = vsel %vm1676_vm2, %v7071_v16, %v7054_v8  ;;  %v7099_v34 = vrot.slane %v7090_v62, 4  ;;  %v7107_v60 = vpack.c.bf16 %v7090_v62, %v7090_v62 }
0x11da   : > { %v7078_v40 = vperm.slane %v7072_v44, %v11814_v61  ;;  %v8019_v16 = vrot.slane %v8018_v57, 4 }
0x11db   : > { %v7074_v56 = vsel %vm1676_vm2, %v7066_v48, %v7073_v52  ;;  %v7100_v19 = vsel %vm1676_vm2, 0.0, %v7099_v34  ;;  %v7407_v25 = vrot.slane %v7107_v60, 4 }
0x11dc   : > { %v7082_v21 = vperm.slane %v7074_v56, %v11814_v61  ;;  %v7095_v42 = vrot.slane %v7078_v40, 4  ;;  %v7108_v27 = vpack.c.bf16 %v7100_v19, %v7100_v19  ;;  %v7103_v51 = vpack.c.bf16 %v7078_v40, %v7078_v40 }
0x11de   : > { %v7097_v49 = vrot.slane %v7082_v21, 4  ;;  %v7096_v43 = vsel %vm1676_vm2, 0.0, %v7095_v42  ;;  %v7105_v29 = vpack.c.bf16 %v7082_v21, %v7082_v21  ;;  %v7427_v5 = vrot.slane %v7108_v27, 4 }
0x11df   : > { %v7104_v10 = vpack.c.bf16 %v7096_v43, %v7096_v43  ;;  %v7408_v63 = vsel %vm1676_vm2, %v7407_v25, %v7103_v51 }
0x11e0   : > { %v7098_v31 = vsel %vm1676_vm2, 0.0, %v7097_v49  ;;  %v7414_v14 = vsel %vm1676_vm2, %v7413_v41, %v7105_v29  ;;  %v7412_v0 = vperm.slane %v7408_v63, %v11783_v30 }
0x11e1   : > { %v7106_v28 = vpack.c.bf16 %v7098_v31, %v7098_v31  ;;  %v7418_v18 = vperm.slane %v7414_v14, %v11783_v30  ;;  %v7428_v1 = vsel %vm1676_vm2, %v7427_v5, %v7104_v10 }
0x11e2   : > { %v7432_v54 = vperm.slane %v7428_v1, %v11783_v30 }
0x11e3   : > { %v7434_v20 = vsel %vm1676_vm2, %v7433_v37, %v7106_v28  ;;  %v7419_v2 = vrot.slane %v7418_v18, 4 }
0x11e4   : > { %v7438_v17 = vperm.slane %v7434_v20, %v11783_v30 }
0x11e5   : > { %v7420_v13 = vsel %vm1676_vm2, %v7419_v2, %v7412_v0 }
0x11e6   : > { %v7439_v15 = vrot.slane %v7438_v17, 4  ;;  %v7424_v33 = vperm.slane %v7420_v13, %v11814_v61 }
0x11e8   : > { %v7440_v8 = vsel %vm1676_vm2, %v7439_v15, %v7432_v54  ;;  %v7425_v40 = vrot.slane %v7424_v33, 4  ;;  %v7450_v41 = vshrl.u32 %v7424_v33, 16  ;;  %v7281_v54 = vrot.slane %v13068_v23, 4 }
0x11e9   : > { %v7444_v7 = vperm.slane %v7440_v8, %v11814_v61 }
0x11ea   : > { %v7426_v10 = vsel %vm1676_vm2, 0, %v7425_v40 }
0x11eb   : > { %v7445_v47 = vrot.slane %v7444_v7, 4  ;;  %v7451_v42 = vshrl.u32 %v7444_v7, 16  ;;  %v7449_v60 = vpack.i.b16 %v7444_v7, %v7424_v33 }
0x11ed   : > { %v7446_v28 = vsel %vm1676_vm2, 0, %v7445_v47  ;;  %v7452_v25 = vpack.i.b16 %v7451_v42, %v7450_v41 }
0x11ee   : > { %v7457_v51 = vshrl.u32 %v7446_v28, 16  ;;  %v7455_v53 = vpack.i.b16 %v7446_v28, %v7426_v10  ;;  %v7337_v28 = vrot.slane %v13070_v3, 4 }
0x1212   : > { %v10572_v50 = vpop.trf.xlu1 }
0x1213   : > { %v7987_v11 = vrot.slane %v10572_v50, 4  ;;  %v7456_v50 = vshrl.u32 %v7426_v10, 16 }
0x1214   : > { %v10575_v36 = vpop.trf.xlu0 }
0x1215   : > { %v7988_v12 = vsel %vm1676_vm2, %v7987_v11, %v10575_v36  ;;  %v7458_v17 = vpack.i.b16 %v7457_v51, %v7456_v50 }
0x1216   : > { %v7992_v35 = vperm.slane %v7988_v12, %v11783_v30  ;;  %v10590_v12 = vunpack.i.l.bf16 %v13118_v55 }
0x1218   : > { %v8000_v38 = vsel %vm1676_vm2, %v7999_v32, %v7992_v35  ;;  %v7279_v2 = vrot.slane %v10590_v12, 4 }
0x1219   : > { %v8004_v46 = vperm.slane %v8000_v38, %v11814_v61 }
0x121a   : > { %v10573_v22 = vpop.trf.xlu1  ;;  %v7280_v13 = vsel %vm1676_vm2, %v7279_v2, %v13068_v23 }
0x121b   : > { %v8007_v48 = vrot.slane %v10573_v22, 4  ;;  %v8005_v21 = vrot.slane %v8004_v46, 4  ;;  %v8030_v44 = vshrl.u32 %v8004_v46, 16  ;;  %v7282_v22 = vsel %vm1676_vm2, %v10590_v12, %v7281_v54 }
0x121c   : > { %v10576_v6 = vpop.trf.xlu0 }
0x121d   : > { %v8008_v52 = vsel %vm1676_vm2, %v8007_v48, %v10576_v6  ;;  %v8006_v9 = vsel %vm1676_vm2, 0, %v8005_v21 }
0x121e   : > { %v8012_v56 = vperm.slane %v8008_v52, %v11783_v30  ;;  %v8036_v37 = vshrl.u32 %v8006_v9, 16  ;;  %v13220_v52 = vperm.slane %v7282_v22, %v11783_v30 }
0x1220   : > { %v8020_v39 = vsel %vm1676_vm2, %v8019_v16, %v8012_v56  ;;  %v7286_v56 = vperm.slane %v7280_v13, %v11783_v30 }
0x1221   : > { %v8024_v62 = vperm.slane %v8020_v39, %v11814_v61 }
0x1222   : > { %v7305_v42 = vrot.slane %v7286_v56, 4 }
0x1223   : > { %v8029_v49 = vpack.i.b16 %v8024_v62, %v8004_v46  ;;  %v8031_v34 = vshrl.u32 %v8024_v62, 16  ;;  %v8025_v4 = vrot.slane %v8024_v62, 4 }
0x1225   : > { %v8043_v31 = vsel %vm2343_vm3, %v8029_v49, 0  ;;  %v8032_v19 = vpack.i.b16 %v8031_v34, %v8030_v44  ;;  %v8026_v26 = vsel %vm1676_vm2, 0, %v8025_v4 }
0x1226   : > { %8052 = vmatpush.bf16.msrb.mxu2 %v8043_v31  ;;  %v8035_v27 = vpack.i.b16 %v8026_v26, %v8006_v9  ;;  %v8037_v43 = vshrl.u32 %v8026_v26, 16 }
0x1227   : > { %v8062_v29 = vsel %vm2343_vm3, %v8032_v19, 0 }
0x1228   : > { %8071 = vmatpush.bf16.msrb.mxu3 %v8062_v29  ;;  %v8081_v5 = vsel %vm2343_vm3, %v8035_v27, 0  ;;  %v8038_v20 = vpack.i.b16 %v8037_v43, %v8036_v37  ;;  %v10591_v43 = vunpack.i.h.bf16 %v13118_v55 }
0x1229   : > { %9968 = vmatmul.msk.bf16.vlgmr.msrb.gmra.mxu2 %vm2339_vm4, %v7449_v60  ;;  %8090 = vmatpush.bf16.msra.mxu0 %v8081_v5 }
0x122a   : > { %v8100_v14 = vsel %vm2343_vm3, %v8038_v20, 0  ;;  %v7338_v60 = vsel %vm1676_vm2, %v10591_v43, %v7337_v28  ;;  %v7335_v55 = vrot.slane %v10591_v43, 4 }
0x122b   : > { %9969 = vmatmul.msk.bf16.vlgmr.msrb.gmra.mxu3 %vm2339_vm4, %v7452_v25  ;;  %8109 = vmatpush.bf16.msra.mxu1 %v8100_v14  ;;  %v7346_v20 = vperm.slane %v7338_v60, %v11783_v30 }
0x122c   : > { %9970 = vmatmul.msk.bf16.vlgmr.msra.gmra.mxu0 %vm2339_vm4, %v7455_v53  ;;  %v7336_v12 = vsel %vm1676_vm2, %v7335_v55, %v13070_v3 }
0x122d   : > { %v7373_v14 = vrot.slane %v7346_v20, 4  ;;  %v7342_v54 = vperm.slane %v7336_v12, %v11783_v30 }
0x122e   : > { %9971 = vmatmul.msk.bf16.vlgmr.msra.gmra.mxu1 %vm2339_vm4, %v7458_v17 }
0x1232   : > { %v13204_v63 = vpop.permute.xlu1 %10578 }
0x1233   : > { %v10580_v32 = vunpack.i.l.bf16 %v13204_v63  ;;  %v10581_v27 = vunpack.i.h.bf16 %v13204_v63 }
0x1235   : > { %v7293_v0 = vrot.slane %v10580_v32, 4  ;;  %v7349_v41 = vrot.slane %v10581_v27, 4 }
0x123c   : > { %v13198_v18 = vpop.f32.mrf.mxu2 }
0x123e   : > { %v13200_v11 = vpop.f32.mrf.mxu1 }
0x123f   : > { %v10628_v1 = vpack.i.bf16 %v13200_v11, %v13198_v18 }
0x1244   : > { %v6725_v36 = vpop.f32.mrf.mxu2 }
0x1246   : > { %v6782_v35 = vpop.f32.mrf.mxu1 }
0x1248   : > { %v10584_v15 = vpop.permute.xlu0 %10583 }
0x1249   : > { %v10585_v38 = vunpack.i.l.bf16 %v10584_v15  ;;  %v13209_v57 = vpop.f32.mrf.mxu0  ;;  %v10586_v29 = vunpack.i.h.bf16 %v10584_v15 }
0x124b   : > { %v7291_v8 = vrot.slane %v10585_v38, 4  ;;  %v7294_v46 = vsel %vm1676_vm2, %v10585_v38, %v7293_v0  ;;  %v7350_v5 = vsel %vm1676_vm2, %v10586_v29, %v7349_v41  ;;  %v7347_v36 = vrot.slane %v10586_v29, 4 }
0x124c   : > { %v13214_v48 = vperm.slane %v7294_v46, %v11783_v30  ;;  %v7358_v25 = vperm.slane %v7350_v5, %v11783_v30  ;;  %v7361_v0 = vrot.slane %v7342_v54, 4 }
0x124d   : > { %v7292_v6 = vsel %vm1676_vm2, %v7291_v8, %v10580_v32  ;;  %v7348_v35 = vsel %vm1676_vm2, %v7347_v36, %v10581_v27 }
0x124e   : > { %v7298_v7 = vperm.slane %v7292_v6, %v11783_v30  ;;  %v7315_v16 = vrot.slane %v13214_v48, 4  ;;  %v7374_v17 = vsel %vm1676_vm2, %v7358_v25, %v7373_v14  ;;  %v7354_v2 = vperm.slane %v7348_v35, %v11783_v30 }
0x124f   : > { %v7382_v63 = vperm.slane %v7374_v17, %v11814_v61  ;;  %v7371_v27 = vrot.slane %v7358_v25, 4 }
0x1250   : > { %v7303_v33 = vrot.slane %v7298_v7, 4  ;;  %v7316_v21 = vsel %vm1676_vm2, %v7315_v16, %v13220_v52  ;;  %v7306_v26 = vsel %vm1676_vm2, %v7298_v7, %v7305_v42  ;;  %v7362_v8 = vsel %vm1676_vm2, %v7354_v2, %v7361_v0 }
0x1251   : > { %v6763_v39 = vpop.f32.mrf.mxu0  ;;  %v7322_v62 = vperm.slane %v7316_v21, %v11814_v61  ;;  %v7314_v37 = vperm.slane %v7306_v26, %v11814_v61  ;;  %v7389_v32 = vrot.slane %v7382_v63, 4  ;;  %v7405_v38 = vpack.c.bf16 %v7382_v63, %v7382_v63 }
0x1252   : > { %v7304_v23 = vsel %vm1676_vm2, %v7303_v33, %v7286_v56  ;;  %v7370_v46 = vperm.slane %v7362_v8, %v11814_v61 }
0x1253   : > { %v7331_v47 = vrot.slane %v7322_v62, 4  ;;  %v7310_v44 = vperm.slane %v7304_v23, %v11814_v61  ;;  %v7395_v34 = vpack.c.bf16 %v7322_v62, %v7322_v62  ;;  %v7329_v10 = vrot.slane %v7314_v37, 4 }
0x1254   : > { %v7393_v53 = vpack.c.bf16 %v7314_v37, %v7314_v37  ;;  %v7390_v15 = vsel %vm1676_vm2, 0.0, %v7389_v32  ;;  %v7385_v13 = vrot.slane %v7370_v46, 4  ;;  %v7401_v6 = vpack.c.bf16 %v7370_v46, %v7370_v46 }
0x1255   : > { %v7332_v40 = vsel %vm1676_vm2, 0.0, %v7331_v47  ;;  %v7327_v49 = vrot.slane %v7310_v44, 4  ;;  %v7391_v31 = vpack.c.bf16 %v7310_v44, %v7310_v44  ;;  %v7330_v51 = vsel %vm1676_vm2, 0.0, %v7329_v10 }
0x1256   : > { %v7396_v9 = vpack.c.bf16 %v7332_v40, %v7332_v40  ;;  %v7394_v50 = vpack.c.bf16 %v7330_v51, %v7330_v51  ;;  %v7406_v22 = vpack.c.bf16 %v7390_v15, %v7390_v15  ;;  %v7386_v3 = vsel %vm1676_vm2, 0.0, %v7385_v13 }
0x1257   : > { %v7328_v4 = vsel %vm1676_vm2, 0.0, %v7327_v49  ;;  %v7402_v7 = vpack.c.bf16 %v7386_v3, %v7386_v3  ;;  %v7372_v37 = vsel %vm1676_vm2, %v7371_v27, %v7346_v20 }
0x1258   : > { %10592 = vxpose.binary.xlu2.c.b16.start.end [1/2] (short) (narrow) %v7396_v9, %v7395_v34, 16  ;;  %v7392_v19 = vpack.c.bf16 %v7328_v4, %v7328_v4  ;;  %v7317_v34 = vrot.slane %v13220_v52, 4  ;;  %v7378_v43 = vperm.slane %v7372_v37, %v11814_v61 }
0x125a   : > { %10595 = vxpose.binary.xlu0.c.b16.start.end [1/2] (short) (narrow) %v7392_v19, %v7391_v31, 16  ;;  %v7318_v9 = vsel %vm1676_vm2, %v13214_v48, %v7317_v34  ;;  %v7387_v52 = vrot.slane %v7378_v43, 4  ;;  %v7359_v48 = vrot.slane %v7354_v2, 4  ;;  %v7403_v60 = vpack.c.bf16 %v7378_v43, %v7378_v43 }
0x125b   : > { %v7326_v42 = vperm.slane %v7318_v9, %v11814_v61 }
0x125c   : > { %v7388_v29 = vsel %vm1676_vm2, 0.0, %v7387_v52  ;;  %v7360_v10 = vsel %vm1676_vm2, %v7359_v48, %v7342_v54 }
0x125d   : > { %v7333_v31 = vrot.slane %v7326_v42, 4  ;;  %v7397_v26 = vpack.c.bf16 %v7326_v42, %v7326_v42  ;;  %v7404_v41 = vpack.c.bf16 %v7388_v29, %v7388_v29  ;;  %v7366_v5 = vperm.slane %v7360_v10, %v11814_v61 }
0x125f   : > { %v7334_v19 = vsel %vm1676_vm2, 0.0, %v7333_v31  ;;  %v7383_v51 = vrot.slane %v7366_v5, 4 }
0x1260   : > { %v7398_v28 = vpack.c.bf16 %v7334_v19, %v7334_v19 }
0x1261   : > { %v7384_v14 = vsel %vm1676_vm2, 0.0, %v7383_v51 }
0x1262   : > { %v7400_v25 = vpack.c.bf16 %v7384_v14, %v7384_v14 }
0x126a   : > { %10604 = vxpose.binary.xlu0.c.b16.start.end [1/2] (short) (narrow) %v7394_v50, %v7393_v53, 16  ;;  %v7399_v53 = vpack.c.bf16 %v7366_v5, %v7366_v5 }
0x127a   : > { %10610 = vxpose.binary.xlu0.c.b16.start.end [1/2] (short) (narrow) %v7406_v22, %v7405_v38, 16 }
0x128a   : > { %10613 = vxpose.binary.xlu0.c.b16.start.end [1/2] (short) (narrow) %v7402_v7, %v7401_v6, 16 }
0x12a9   : > { %v8092_v16 = vpop.f32.mrf.mxu0 }
0x12aa   : > { %v8121_v4 = vsel %vm3200_vm5, %v8092_v16, -inf }
0x12ab   : > { %v13253_v56 = vpop.f32.mrf.mxu1 }
0x12ac   : > { %v13255_v33 = vpop.f32.mrf.mxu2  ;;  %v8124_v21 = vsel %vm3200_vm5, %v13253_v56, -inf }
0x12ad   : > { %8125 = vmax.xlane.f32.xlu1 %v8124_v21  ;;  %v8115_v40 = vsel %vm3200_vm5, %v13255_v33, -inf }
0x12ae   : > { %v8073_v39 = vpop.f32.mrf.mxu3 }
0x12af   : > { %v8118_v49 = vsel %vm3200_vm5, %v8073_v39, -inf }
0x12b1   : > { %v8094_v62 = vpop.f32.mrf.mxu0 }
0x12b3   : > { %v8113_v23 = vpop.f32.mrf.mxu1 }
0x12b4   : > { %v8056_v47 = vpop.f32.mrf.mxu2 }
0x12b6   : > { %v8075_v44 = vpop.f32.mrf.mxu3 }
0x12c9   : > { %8116 = vmax.xlane.f32.xlu2 %v8115_v40 }
0x12d1   : > { %8119 = vmax.xlane.f32.xlu2 %v8118_v49 }
0x12d9   : > { %8122 = vmax.xlane.f32.xlu2 %v8121_v4 }
0x12e7   : > { %10598 = vxpose.binary.xlu1.c.b16.start.end [1/2] (short) (narrow) %v7398_v28, %v7397_v26, 16 }
0x12f9   : > { %v10593_v20 = vpop.trf.xlu2 }
0x12fa   : > { %v8431_v47 = vrot.slane %v10593_v20, 4 }
0x1301   : > { %v10594_v50 = vpop.trf.xlu2 }
0x1302   : > { %10601 = vxpose.binary.xlu2.c.b16.start.end [1/2] (short) (narrow) %v7404_v41, %v7403_v60, 16  ;;  %v8487_v9 = vrot.slane %v10594_v50, 4 }
0x1306   : > { %v10596_v38 = vpop.trf.xlu0 }
0x1307   : > { %v8432_v4 = vsel %vm1676_vm2, %v8431_v47, %v10596_v38 }
0x1308   : > { %v8436_v26 = vperm.slane %v8432_v4, %v11783_v30 }
0x130a   : > { %v8457_v10 = vrot.slane %v8436_v26, 4 }
0x130e   : > { %v10597_v22 = vpop.trf.xlu0 }
0x130f   : > { %v8488_v27 = vsel %vm1676_vm2, %v8487_v9, %v10597_v22 }
0x1310   : > { %v8492_v5 = vperm.slane %v8488_v27, %v11783_v30 }
0x1312   : > { %10607 = vxpose.binary.xlu2.c.b16.start.end [1/2] (short) (narrow) %v7400_v25, %v7399_v53, 16 }
0x1316   : > { %v10605_v8 = vpop.trf.xlu0 }
0x131e   : > { %v10606_v46 = vpop.trf.xlu0 }
0x1320   : > { %v13284_v13 = vpop.xlane.xlu1 %8125 }
0x1326   : > { %v10611_v3 = vpop.trf.xlu0 }
0x1327   : > { %v8449_v44 = vrot.slane %v10611_v3, 4 }
0x132e   : > { %v10612_v7 = vpop.trf.xlu0 }
0x132f   : > { %v8505_v43 = vrot.slane %v10612_v7, 4 }
0x1336   : > { %v10614_v23 = vpop.trf.xlu0 }
0x1337   : > { %v8450_v42 = vsel %vm1676_vm2, %v8449_v44, %v10614_v23 }
0x1338   : > { %v8454_v28 = vperm.slane %v8450_v42, %v11783_v30 }
0x133a   : > { %v8467_v51 = vrot.slane %v8454_v28, 4 }
0x133c   : > { %v13274_v17 = vpop.xlane.xlu2 %8116 }
0x133e   : > { %v10615_v48 = vpop.trf.xlu0 }
0x133f   : > { %v8506_v53 = vsel %vm1676_vm2, %v8505_v43, %v10615_v48 }
0x1344   : > { %v8120_v55 = vpop.xlane.xlu2 %8119 }
0x1345   : > { %v8128_v63 = vsub.f32 %v8073_v39, %v8120_v55 }
0x1347   : > { %v8133_v36 = vmul.f32 1.442695, %v8128_v63 }
0x1349   : > { %10740 = vpow2.f32 %v8133_v36 }
0x134c   : > { %v8123_v12 = vpop.xlane.xlu2 %8122 }
0x134d   : > { %v8129_v32 = vsub.f32 %v8092_v16, %v8123_v12  ;;  %v8513_v12 = vrot.slane %v8492_v5, 4 }
0x134f   : > { %v13276_v35 = vpop.eup %10740  ;;  %v8135_v54 = vmul.f32 1.442695, %v8129_v32 }
0x1350   : > { %v8142_v15 = vsel %vm3200_vm5, %v13276_v35, 0.0 }
0x1351   : > { %10742 = vpow2.f32 %v8135_v54  ;;  %8143 = vadd.xlane.f32.xlu1 %v8142_v15  ;;  %v8510_v54 = vperm.slane %v8506_v53, %v11783_v30 }
0x1357   : > { %v13280_v2 = vpop.eup %10742 }
0x1358   : > { %v8145_v0 = vsel %vm3200_vm5, %v13280_v2, 0.0 }
0x1359   : > { %8146 = vadd.xlane.f32.xlu0 %v8145_v0 }
0x1393   : > { %v10599_v6 = vpop.trf.xlu1 }
0x1394   : > { %v8437_v39 = vrot.slane %v10599_v6, 4 }
0x1396   : > { %v8438_v49 = vsel %vm1676_vm2, %v8437_v39, %v10605_v8 }
0x1397   : > { %v8442_v31 = vperm.slane %v8438_v49, %v11783_v30 }
0x1399   : > { %v8455_v52 = vrot.slane %v8442_v31, 4  ;;  %v8458_v20 = vsel %vm1676_vm2, %v8442_v31, %v8457_v10 }
0x139a   : > { %v8466_v0 = vperm.slane %v8458_v20, %v11814_v61 }
0x139b   : > { %v10600_v21 = vpop.trf.xlu1  ;;  %v8456_v25 = vsel %vm1676_vm2, %v8455_v52, %v8436_v26 }
0x139c   : > { %v8493_v62 = vrot.slane %v10600_v21, 4  ;;  %v8462_v15 = vperm.slane %v8456_v25, %v11814_v61  ;;  %v8523_v21 = vrot.slane %v8510_v54, 4 }
0x139e   : > { %v8494_v34 = vsel %vm1676_vm2, %v8493_v62, %v10606_v46  ;;  %v8485_v62 = vrot.slane %v8466_v0, 4  ;;  %v8481_v47 = vrot.slane %v8462_v15, 4 }
0x139f   : > { %v8498_v19 = vperm.slane %v8494_v34, %v11783_v30 }
0x13a1   : > { %v8511_v60 = vrot.slane %v8498_v19, 4  ;;  %v8514_v8 = vsel %vm1676_vm2, %v8498_v19, %v8513_v12 }
0x13a2   : > { %v8522_v23 = vperm.slane %v8514_v8, %v11814_v61 }
0x13a3   : > { %v10602_v16 = vpop.trf.xlu2  ;;  %v8512_v63 = vsel %vm1676_vm2, %v8511_v60, %v8492_v5 }
0x13a4   : > { %v8443_v37 = vrot.slane %v10602_v16, 4  ;;  %v8518_v46 = vperm.slane %v8512_v63, %v11814_v61  ;;  %v8541_v19 = vrot.slane %v8522_v23, 4 }
0x13a6   : > { %v8537_v49 = vrot.slane %v8518_v46, 4 }
0x13ab   : > { %v10603_v40 = vpop.trf.xlu2 }
0x13ac   : > { %v8499_v38 = vrot.slane %v10603_v40, 4 }
0x13b3   : > { %v10608_v29 = vpop.trf.xlu2 }
0x13b4   : > { %v8444_v41 = vsel %vm1676_vm2, %v8443_v37, %v10608_v29 }
0x13b5   : > { %v8448_v14 = vperm.slane %v8444_v41, %v11783_v30 }
0x13b7   : > { %v8468_v50 = vsel %vm1676_vm2, %v8467_v51, %v8448_v14  ;;  %v8469_v55 = vrot.slane %v8448_v14, 4 }
0x13b8   : > { %v8474_v36 = vperm.slane %v8468_v50, %v11814_v61 }
0x13b9   : > { %v8470_v32 = vsel %vm1676_vm2, %v8454_v28, %v8469_v55 }
0x13ba   : > { %v8479_v22 = vrot.slane %v8474_v36, 4  ;;  %v8478_v6 = vperm.slane %v8470_v32, %v11814_v61  ;;  %v8482_v4 = vsel %vm1676_vm2, %v8474_v36, %v8481_v47 }
0x13bb   : > { %v10609_v3 = vpop.trf.xlu2  ;;  %v8555_v43 = vshrl.u32 %v8482_v4, 16 }
0x13bc   : > { %v8500_v7 = vsel %vm1676_vm2, %v8499_v38, %v10609_v3  ;;  %v13313_v16 = vsel %vm1676_vm2, %v8479_v22, %v8462_v15  ;;  %v8483_v34 = vrot.slane %v8478_v6, 4  ;;  %v8486_v42 = vsel %vm1676_vm2, %v8478_v6, %v8485_v62 }
0x13bd   : > { %v8504_v39 = vperm.slane %v8500_v7, %v11783_v30  ;;  %v8571_v29 = vshrl.u32 %v8486_v42, 16  ;;  %v8547_v50 = vshrl.u32 %v13313_v16, 16 }
0x13be   : > { %v8484_v10 = vsel %vm1676_vm2, %v8483_v34, %v8466_v0 }
0x13bf   : > { %v8524_v44 = vsel %vm1676_vm2, %v8523_v21, %v8504_v39  ;;  %v8525_v40 = vrot.slane %v8504_v39, 4  ;;  %v8563_v12 = vshrl.u32 %v8484_v10, 16 }
0x13c0   : > { %v8530_v9 = vperm.slane %v8524_v44, %v11814_v61 }
0x13c1   : > { %v8526_v31 = vsel %vm1676_vm2, %v8510_v54, %v8525_v40  ;;  %v8127_v40 = vsub.f32 %v13255_v33, %v13274_v17 }
0x13c2   : > { %v8534_v26 = vperm.slane %v8526_v31, %v11814_v61  ;;  %v8535_v28 = vrot.slane %v8530_v9, 4  ;;  %v8538_v27 = vsel %vm1676_vm2, %v8530_v9, %v8537_v49 }
0x13c3   : > { %v8553_v37 = vpack.i.b16 %v8538_v27, %v8482_v4  ;;  %v8556_v52 = vshrl.u32 %v8538_v27, 16  ;;  %v8131_v49 = vmul.f32 1.442695, %v8127_v40 }
0x13c4   : > { %v8539_v48 = vrot.slane %v8534_v26, 4  ;;  %v8144_v60 = vpop.xlane.xlu1 %8143  ;;  %v8542_v41 = vsel %vm1676_vm2, %v8534_v26, %v8541_v19  ;;  %v8536_v5 = vsel %vm1676_vm2, %v8535_v28, %v8518_v46 }
0x13c5   : > { %10744 = vrcp.f32 %v8144_v60  ;;  %v8557_v51 = vpack.i.b16 %v8556_v52, %v8555_v43  ;;  %v8569_v14 = vpack.i.b16 %v8542_v41, %v8486_v42  ;;  %v8572_v53 = vshrl.u32 %v8542_v41, 16 }
0x13c6   : > { %v8540_v25 = vsel %vm1676_vm2, %v8539_v48, %v8522_v23  ;;  %v8545_v20 = vpack.i.b16 %v8536_v5, %v13313_v16  ;;  %v8548_v55 = vshrl.u32 %v8536_v5, 16 }
0x13c7   : > { %10619 = vxpose.binary.xlu2.c.b16.start.end [1/2] (short) (narrow) %v8557_v51, %v8553_v37, 16  ;;  %v8573_v63 = vpack.i.b16 %v8572_v53, %v8571_v29  ;;  %v8561_v36 = vpack.i.b16 %v8540_v25, %v8484_v10  ;;  %v8564_v32 = vshrl.u32 %v8540_v25, 16 }
0x13c8   : > { %v8549_v54 = vpack.i.b16 %v8548_v55, %v8547_v50 }
0x13c9   : > { %10616 = vxpose.binary.xlu1.c.b16.start.end [1/2] (short) (narrow) %v8573_v63, %v8569_v14, 16  ;;  %v8565_v15 = vpack.i.b16 %v8564_v32, %v8563_v12 }
0x13cb   : > { %v10745_v0 = vpop.eup %10744  ;;  %10622 = vxpose.binary.xlu0.c.b16.start.end [1/2] (short) (narrow) %v8565_v15, %v8561_v36, 16 }
0x13cc   : > { %v8156_v38 = vmul.f32 %v10745_v0, %v8144_v60  ;;  %v8147_v22 = vpop.xlane.xlu0 %8146 }
0x13cd   : > { %10746 = vrcp.f32 %v8147_v22 }
0x13ce   : > { %v8160_v8 = vsub.f32 2.0, %v8156_v38  ;;  %10748 = vpow2.f32 %v8131_v49 }
0x13d0   : > { %v8164_v46 = vmul.f32 %v10745_v0, %v8160_v8 }
0x13d2   : > { %v8168_v3 = vmul.f32 %v13276_v35, %v8164_v46  ;;  %v8130_v35 = vsub.f32 %v13253_v56, %v13284_v13 }
0x13d3   : > { %v10747_v6 = vpop.eup %10746 }
0x13d4   : > { %v8157_v7 = vmul.f32 %v10747_v6, %v8147_v22  ;;  %v8172_v16 = vpack.c.bf16 %v8168_v3, %v8168_v3  ;;  %v8137_v34 = vmul.f32 1.442695, %v8130_v35  ;;  %v10749_v9 = vpop.eup %10748 }
0x13d5   : > { %v8139_v4 = vsel %vm3200_vm5, %v10749_v9, 0.0 }
0x13d6   : > { %v8161_v21 = vsub.f32 2.0, %v8157_v7  ;;  %v8778_v39 = vsel %vm3200_vm5, %v8172_v16, 0  ;;  %10750 = vpow2.f32 %v8137_v34 }
0x13d7   : > { %8787 = vmatpush.bf16.xpose.msra.mxu3 %v8778_v39 }
0x13d8   : > { %v8165_v62 = vmul.f32 %v10747_v6, %v8161_v21 }
0x13da   : > { %v8169_v23 = vmul.f32 %v13280_v2, %v8165_v62 }
0x13dc   : > { %v8173_v47 = vpack.c.bf16 %v8169_v23, %v8169_v23  ;;  %v10751_v42 = vpop.eup %10750 }
0x13dd   : > { %v8148_v2 = vsel %vm3200_vm5, %v10751_v42, 0.0 }
0x13de   : > { %v8797_v44 = vsel %vm3200_vm5, %v8173_v47, 0 }
0x13df   : > { %8806 = vmatpush.bf16.xpose.msrb.mxu0 %v8797_v44 }
0x1438   : > { %8140 = vadd.xlane.f32.xlu2 %v8139_v4 }
0x1440   : > { %8149 = vadd.xlane.f32.xlu2 %v8148_v2 }
0x1468   : > { %v10620_v33 = vpop.trf.xlu2 }
0x1469   : > { %10625 = vxpose.binary.xlu2.c.b16.start.end [1/2] (short) (narrow) %v8549_v54, %v8545_v20, 16 }
0x1470   : > { %v10621_v17 = vpop.trf.xlu2 }
0x1475   : > { %v10617_v41 = vpop.trf.xlu1 }
0x1476   : > { %v8709_v10 = vrot.slane %v10617_v41, 4 }
0x1477   : > { %v10623_v5 = vpop.trf.xlu0 }
0x1478   : > { %v8710_v51 = vsel %vm1676_vm2, %v8709_v10, %v10620_v33  ;;  %v8703_v53 = vrot.slane %v10623_v5, 4 }
0x1479   : > { %10629 = vxpose.xlu2.b32.start.end [1/1] (short) (narrow) %v10628_v1, 8  ;;  %v8714_v25 = vperm.slane %v8710_v51, %v11783_v30 }
0x147b   : > { %v8715_v63 = vrot.slane %v8714_v25, 4 }
0x147d   : > { %v10618_v14 = vpop.trf.xlu1 }
0x147e   : > { %v8729_v20 = vrot.slane %v10618_v14, 4 }
0x147f   : > { %v10624_v12 = vpop.trf.xlu0 }
0x1480   : > { %v8730_v32 = vsel %vm1676_vm2, %v8729_v20, %v10621_v17  ;;  %v8723_v15 = vrot.slane %v10624_v12, 4 }
0x1481   : > { %v8734_v0 = vperm.slane %v8730_v32, %v11783_v30 }
0x1483   : > { %v8735_v46 = vrot.slane %v8734_v0, 4 }
0x14ab   : > { %v8141_v31 = vpop.xlane.xlu2 %8140 }
0x14ac   : > { %10752 = vrcp.f32 %v8141_v31 }
0x14b2   : > { %v10753_v56 = vpop.eup %10752 }
0x14b3   : > { %v8155_v13 = vmul.f32 %v10753_v56, %v8141_v31  ;;  %v8150_v19 = vpop.xlane.xlu2 %8149 }
0x14b4   : > { %10754 = vrcp.f32 %v8150_v19 }
0x14b5   : > { %v8159_v26 = vsub.f32 2.0, %v8155_v13 }
0x14b7   : > { %v8163_v28 = vmul.f32 %v10753_v56, %v8159_v26 }
0x14b9   : > { %v8167_v27 = vmul.f32 %v10749_v9, %v8163_v28 }
0x14ba   : > { %v10755_v37 = vpop.eup %10754 }
0x14bb   : > { %v8158_v43 = vmul.f32 %v10755_v37, %v8150_v19  ;;  %v8171_v52 = vpack.c.bf16 %v8167_v27, %v8167_v27 }
0x14bd   : > { %v8162_v29 = vsub.f32 2.0, %v8158_v43  ;;  %v8759_v48 = vsel %vm3200_vm5, %v8171_v52, 0 }
0x14be   : > { %8768 = vmatpush.bf16.xpose.msra.mxu2 %v8759_v48 }
0x14bf   : > { %v8166_v18 = vmul.f32 %v10755_v37, %v8162_v29 }
0x14c1   : > { %v8170_v11 = vmul.f32 %v10751_v42, %v8166_v18 }
0x14c3   : > { %v8174_v1 = vpack.c.bf16 %v8170_v11, %v8170_v11 }
0x14c5   : > { %v8816_v60 = vsel %vm3200_vm5, %v8174_v1, 0 }
0x14c6   : > { %8825 = vmatpush.bf16.xpose.msrb.mxu1 %v8816_v60 }
0x150a   : > { %v10626_v50 = vpop.trf.xlu2 }
0x150b   : > { %v8704_v55 = vsel %vm1676_vm2, %v8703_v53, %v10626_v50 }
0x150c   : > { %v8708_v36 = vperm.slane %v8704_v55, %v11783_v30 }
0x150e   : > { %v8716_v54 = vsel %vm1676_vm2, %v8715_v63, %v8708_v36 }
0x150f   : > { %v8720_v38 = vperm.slane %v8716_v54, %v11814_v61 }
0x1511   : > { %v8721_v6 = vrot.slane %v8720_v38, 4  ;;  %v8746_v21 = vshrl.u32 %v8720_v38, 16 }
0x1512   : > { %v10627_v22 = vpop.trf.xlu2 }
0x1513   : > { %v8724_v8 = vsel %vm1676_vm2, %v8723_v15, %v10627_v22  ;;  %v8722_v47 = vsel %vm1676_vm2, 0, %v8721_v6 }
0x1514   : > { %v8728_v3 = vperm.slane %v8724_v8, %v11783_v30  ;;  %v8752_v35 = vshrl.u32 %v8722_v47, 16 }
0x1516   : > { %v8736_v7 = vsel %vm1676_vm2, %v8735_v46, %v8728_v3 }
0x1517   : > { %v8740_v16 = vperm.slane %v8736_v7, %v11814_v61 }
0x1519   : > { %v8741_v39 = vrot.slane %v8740_v16, 4  ;;  %v8747_v62 = vshrl.u32 %v8740_v16, 16  ;;  %v8745_v23 = vpack.i.b16 %v8740_v16, %v8720_v38 }
0x151a   : > { %v10630_v27 = vpop.trf.xlu2 }
0x151b   : > { %9972 = vmatmul.msk.bf16.vlgmr.msra.gmra.mxu2 %vm3200_vm5, %v8745_v23  ;;  %v8748_v44 = vpack.i.b16 %v8747_v62, %v8746_v21  ;;  %v8742_v40 = vsel %vm1676_vm2, 0, %v8741_v39  ;;  %v10634_v37 = vunpack.i.h.bf16 %v10630_v27  ;;  %v10631_v41 = vunpack.i.l.bf16 %v10630_v27 }
0x151c   : > { %v8751_v49 = vpack.i.b16 %v8742_v40, %v8722_v47  ;;  %v8753_v34 = vshrl.u32 %v8742_v40, 16 }
0x151d   : > { %9973 = vmatmul.msk.bf16.vlgmr.msra.gmra.mxu3 %vm3200_vm5, %v8748_v44  ;;  %v6924_v48 = vrot.slane %v10634_v37, 4  ;;  %v6914_v53 = vrot.slane %v10631_v41, 4 }
0x151e   : > { %9974 = vmatmul.msk.bf16.vlgmr.msrb.gmra.mxu0 %vm3200_vm5, %v8751_v49  ;;  %v8754_v9 = vpack.i.b16 %v8753_v34, %v8752_v35 }
0x1520   : > { %9975 = vmatmul.msk.bf16.vlgmr.msrb.gmra.mxu1 %vm3200_vm5, %v8754_v9 }
0x159b   : > { %v8808_v4 = vpop.f32.mrf.mxu0 }
0x159c   : > { %v10642_v28 = vpack.i.bf16 %v8808_v4, %v13209_v57 }
0x159d   : > { %v8827_v42 = vpop.f32.mrf.mxu1 }
0x159e   : > { %v8770_v2 = vpop.f32.mrf.mxu2 }
0x159f   : > { %v10649_v33 = vpack.i.bf16 %v8827_v42, %v8770_v2 }
0x15a0   : > { %v8789_v17 = vpop.f32.mrf.mxu3 }
0x15a1   : > { %v10635_v31 = vpack.i.bf16 %v8789_v17, %v13116_v45  ;;  %10650 = vxpose.xlu0.b32.start.end [1/1] (short) (narrow) %v10649_v33, 8 }
0x15a3   : > { %10636 = vxpose.xlu1.b32.start.end [1/1] (short) (narrow) %v10635_v31, 8  ;;  %v8810_v56 = vpop.f32.mrf.mxu0 }
0x15a5   : > { %v8829_v13 = vpop.f32.mrf.mxu1 }
0x15a6   : > { %v8772_v19 = vpop.f32.mrf.mxu2 }
0x15a8   : > { %v8791_v26 = vpop.f32.mrf.mxu3 }
0x15ab   : > { %10643 = vxpose.xlu1.b32.start.end [1/1] (short) (narrow) %v10642_v28, 8 }
0x1645   : > { %v10651_v43 = vpop.trf.xlu0 }
0x1646   : > { %v10655_v52 = vunpack.i.h.bf16 %v10651_v43  ;;  %v10652_v10 = vunpack.i.l.bf16 %v10651_v43 }
0x1647   : > { %v10637_v29 = vpop.trf.xlu1 }
0x1648   : > { %v10641_v18 = vunpack.i.h.bf16 %v10637_v29  ;;  %v10638_v11 = vunpack.i.l.bf16 %v10637_v29  ;;  %v8971_v1 = vrot.slane %v10655_v52, 4  ;;  %v8961_v25 = vrot.slane %v10652_v10, 4 }
0x164a   : > { %v8973_v60 = vrot.slane %v10641_v18, 4  ;;  %v6926_v45 = vrot.slane %v10638_v11, 4  ;;  %v6925_v5 = vsel %vm1676_vm2, %v6924_v48, %v10638_v11  ;;  %v8972_v57 = vsel %vm1676_vm2, %v8971_v1, %v10641_v18 }
0x164b   : > { %v6931_v20 = vperm.slane %v6925_v5, %v11783_v30  ;;  %v8978_v55 = vperm.slane %v8972_v57, %v11783_v30 }
0x164c   : > { %v6927_v51 = vsel %vm1676_vm2, %v10634_v37, %v6926_v45  ;;  %v8974_v14 = vsel %vm1676_vm2, %v10655_v52, %v8973_v60 }
0x164d   : > { %v6935_v50 = vperm.slane %v6927_v51, %v11783_v30  ;;  %v8982_v63 = vperm.slane %v8974_v14, %v11783_v30  ;;  %v6936_v22 = vrot.slane %v6931_v20, 4  ;;  %v8983_v7 = vrot.slane %v8978_v55, 4 }
0x164f   : > { %v10644_v36 = vpop.trf.xlu1  ;;  %v8995_v8 = vrot.slane %v8982_v63, 4  ;;  %v6948_v6 = vrot.slane %v6935_v50, 4 }
0x1650   : > { %v10648_v12 = vunpack.i.h.bf16 %v10644_v36  ;;  %v10645_v32 = vunpack.i.l.bf16 %v10644_v36 }
0x1652   : > { %v8959_v54 = vrot.slane %v10648_v12, 4  ;;  %v8962_v15 = vsel %vm1676_vm2, %v10648_v12, %v8961_v25  ;;  %v6912_v0 = vrot.slane %v10645_v32, 4  ;;  %v6915_v38 = vsel %vm1676_vm2, %v10645_v32, %v6914_v53 }
0x1653   : > { %v8970_v46 = vperm.slane %v8962_v15, %v11783_v30  ;;  %v6923_v3 = vperm.slane %v6915_v38, %v11783_v30 }
0x1654   : > { %v8960_v16 = vsel %vm1676_vm2, %v8959_v54, %v10652_v10  ;;  %v6913_v21 = vsel %vm1676_vm2, %v6912_v0, %v10631_v41 }
0x1655   : > { %v8966_v39 = vperm.slane %v8960_v16, %v11783_v30  ;;  %v8996_v62 = vsel %vm1676_vm2, %v8995_v8, %v8970_v46  ;;  %v8997_v23 = vrot.slane %v8970_v46, 4  ;;  %v6919_v47 = vperm.slane %v6913_v21, %v11783_v30 }
0x1656   : > { %v9002_v44 = vperm.slane %v8996_v62, %v11814_v61  ;;  %v6949_v40 = vsel %vm1676_vm2, %v6948_v6, %v6923_v3  ;;  %v6950_v49 = vrot.slane %v6923_v3, 4 }
0x1657   : > { %v8984_v35 = vsel %vm1676_vm2, %v8983_v7, %v8966_v39  ;;  %v8985_v34 = vrot.slane %v8966_v39, 4  ;;  %v8998_v9 = vsel %vm1676_vm2, %v8982_v63, %v8997_v23  ;;  %v6937_v4 = vsel %vm1676_vm2, %v6936_v22, %v6919_v47 }
0x1658   : > { %v8990_v42 = vperm.slane %v8984_v35, %v11814_v61  ;;  %v9006_v2 = vperm.slane %v8998_v9, %v11814_v61  ;;  %v9011_v33 = vrot.slane %v9002_v44, 4  ;;  %v6938_v17 = vrot.slane %v6919_v47, 4 }
0x1659   : > { %v8986_v31 = vsel %vm1676_vm2, %v8978_v55, %v8985_v34  ;;  %v6943_v56 = vperm.slane %v6937_v4, %v11814_v61  ;;  %v6951_v13 = vsel %vm1676_vm2, %v6935_v50, %v6950_v49  ;;  %v6955_v19 = vperm.slane %v6949_v40, %v11814_v61 }
0x165a   : > { %v8994_v26 = vperm.slane %v8986_v31, %v11814_v61  ;;  %v9007_v28 = vrot.slane %v8990_v42, 4  ;;  %v9012_v27 = vsel %vm1676_vm2, 0.0, %v9011_v33  ;;  %v9013_v37 = vrot.slane %v9006_v2, 4 }
0x165b   : > { %v6939_v43 = vsel %vm1676_vm2, %v6931_v20, %v6938_v17  ;;  %v6959_v52 = vperm.slane %v6951_v13, %v11814_v61  ;;  %v6960_v29 = vrot.slane %v6943_v56, 4  ;;  %v6964_v48 = vrot.slane %v6955_v19, 4 }
0x165c   : > { %v9009_v18 = vrot.slane %v8994_v26, 4  ;;  %v9014_v11 = vsel %vm1676_vm2, 0.0, %v9013_v37  ;;  %v9026_v1 = vsel %vm1676_vm2, %v9013_v37, %v9002_v44  ;;  %v6947_v60 = vperm.slane %v6939_v43, %v11814_v61 }
0x165d   : > { %v9030_v45 = vperm.slane %v9026_v1, %v11783_v30  ;;  %v9031_v41 = vrot.slane %v9014_v11, 4  ;;  %v6965_v10 = vsel %vm1676_vm2, 0.0, %v6964_v48  ;;  %v6966_v5 = vrot.slane %v6959_v52, 4 }
0x165e   : > { %v9010_v51 = vsel %vm1676_vm2, 0.0, %v9009_v18  ;;  %v6962_v57 = vrot.slane %v6947_v60, 4  ;;  %v6961_v14 = vsel %vm1676_vm2, 0.0, %v6960_v29  ;;  %v9008_v53 = vsel %vm1676_vm2, 0.0, %v9007_v28 }
0x165f   : > { %v9020_v25 = vrot.slane %v9010_v51, 4  ;;  %v6967_v20 = vsel %vm1676_vm2, 0.0, %v6966_v5  ;;  %v6979_v50 = vsel %vm1676_vm2, %v6966_v5, %v6955_v19  ;;  %v9015_v55 = vsel %vm1676_vm2, %v9009_v18, %v8990_v42 }
0x1660   : > { %v6963_v63 = vsel %vm1676_vm2, 0.0, %v6962_v57  ;;  %v6983_v36 = vperm.slane %v6979_v50, %v11783_v30  ;;  %v6984_v12 = vrot.slane %v6967_v20, 4  ;;  %v6968_v32 = vsel %vm1676_vm2, %v6962_v57, %v6943_v56  ;;  %v10043_v20 = vld [vmem:[%s1300_s19 + $0x8] sm:$0xff]  ;;  %v10042_v50 = vld [vmem:[%s1300_s19] sm:$0xff] }
0x1661   : > { %v6973_v54 = vrot.slane %v6963_v63, 4  ;;  %v6972_v15 = vperm.slane %v6968_v32, %v11783_v30  ;;  %v9019_v0 = vperm.slane %v9015_v55, %v11783_v30  ;;  %v9021_v38 = vsel %vm1676_vm2, %v9020_v25, %v9008_v53  ;;  %9109 = vmatpush.bf16.msrb.mxu2 %v10043_v20 }
0x1662   : > { %v6985_v22 = vsel %vm1676_vm2, %v6984_v12, %v6965_v10  ;;  %v7004_v8 = vrot.slane %v6983_v36, 4  ;;  %v9025_v46 = vperm.slane %v9021_v38, %v11783_v30  ;;  %v9032_v3 = vsel %vm1676_vm2, %v9031_v41, %v9012_v27 }
0x1663   : > { %v6974_v6 = vsel %vm1676_vm2, %v6973_v54, %v6961_v14  ;;  %v6989_v7 = vperm.slane %v6985_v22, %v11783_v30  ;;  %v6992_v16 = vrot.slane %v6972_v15, 4  ;;  %v9036_v21 = vperm.slane %v9032_v3, %v11783_v30 }
0x1664   : > { %v6978_v39 = vperm.slane %v6974_v6, %v11783_v30  ;;  %v9039_v62 = vrot.slane %v9019_v0, 4  ;;  %v9051_v23 = vrot.slane %v9030_v45, 4  ;;  %v9037_v47 = vrot.slane %v9025_v46, 4 }
0x1665   : > { %v7005_v44 = vsel %vm1676_vm2, %v6989_v7, %v7004_v8  ;;  %v7002_v40 = vrot.slane %v6989_v7, 4  ;;  %v9049_v49 = vrot.slane %v9036_v21, 4  ;;  %9110 = vmatpush.bf16.msrb.mxu2 %v10042_v50 }
0x1666   : > { %v6993_v35 = vsel %vm1676_vm2, %v6978_v39, %v6992_v16  ;;  %v7013_v34 = vperm.slane %v7005_v44, %v11814_v61  ;;  %v9040_v9 = vsel %vm1676_vm2, %v9025_v46, %v9039_v62  ;;  %v9052_v4 = vsel %vm1676_vm2, %v9036_v21, %v9051_v23  ;;  %v10679_v21 = vld [vmem:[%s1537_s7] ss:$0 sm:$0xff] }
0x1667   : > { %v7001_v42 = vperm.slane %v6993_v35, %v11814_v61  ;;  %v9048_v2 = vperm.slane %v9040_v9, %v11814_v61  ;;  %v9060_v30 = vperm.slane %v9052_v4, %v11814_v61  ;;  %v6990_v33 = vrot.slane %v6978_v39, 4 }
0x1668   : > { %v7018_v17 = vrot.slane %v7013_v34, 4  ;;  %v7003_v31 = vsel %vm1676_vm2, %v7002_v40, %v6983_v36  ;;  %v9038_v56 = vsel %vm1676_vm2, %v9037_v47, %v9019_v0  ;;  %v9050_v13 = vsel %vm1676_vm2, %v9049_v49, %v9030_v45 }
0x1669   : > { %v9065_v19 = vrot.slane %v9060_v30, 4  ;;  %v7020_v26 = vrot.slane %v7001_v42, 4  ;;  %v9067_v28 = vrot.slane %v9048_v2, 4  ;;  %v6991_v27 = vsel %vm1676_vm2, %v6990_v33, %v6972_v15 }
0x166a   : > { %v7019_v37 = vsel %vm1676_vm2, %v7018_v17, %v7001_v42  ;;  %v6997_v43 = vperm.slane %v6991_v27, %v11814_v61  ;;  %v7009_v52 = vperm.slane %v7003_v31, %v11814_v61  ;;  %v9044_v29 = vperm.slane %v9038_v56, %v11814_v61 }
0x166b   : > { %v9066_v48 = vsel %vm1676_vm2, %v9065_v19, %v9048_v2  ;;  %v7021_v18 = vsel %vm1676_vm2, %v7013_v34, %v7020_v26  ;;  %v9068_v11 = vsel %vm1676_vm2, %v9060_v30, %v9067_v28  ;;  %v9056_v1 = vperm.slane %v9050_v13, %v11814_v61  ;;  %v10045_v19 = vld [vmem:[%s1310_s20 + $0x8] sm:$0xff]  ;;  %v10044_v26 = vld [vmem:[%s1310_s20] sm:$0xff] }
0x166c   : > { %v10661_v60 = vpack.i.bf16 %v9066_v48, %v7019_v37  ;;  %v10666_v45 = vpack.i.bf16 %v9068_v11, %v7021_v18  ;;  %v7016_v41 = vrot.slane %v6997_v43, 4  ;;  %v9063_v10 = vrot.slane %v9044_v29, 4  ;;  %9205 = vmatpush.bf16.msrb.mxu3 %v10045_v19 }
0x166d   : > { %v7014_v5 = vrot.slane %v7009_v52, 4  ;;  %v9061_v51 = vrot.slane %v9056_v1, 4 }
0x166e   : > { %10662 = vrot.lane.b32.xlu0 %v10661_v60, %s11278_s5  ;;  %10667 = vrot.lane.b32.xlu1 %v10666_v45, %s11277_s28  ;;  %v7017_v57 = vsel %vm1676_vm2, %v7009_v52, %v7016_v41  ;;  %v9064_v14 = vsel %vm1676_vm2, %v9056_v1, %v9063_v10 }
0x166f   : > { %v10656_v53 = vpack.i.bf16 %v9064_v14, %v7017_v57  ;;  %v9062_v25 = vsel %vm1676_vm2, %v9061_v51, %v9044_v29  ;;  %v7015_v61 = vsel %vm1676_vm2, %v7014_v5, %v6997_v43  ;;  %v10680_v51 = vld [vmem:[%s1554_s13] ss:$0 sm:$0xff] }
0x1670   : > { %9206 = vmatpush.bf16.msrb.mxu3 %v10044_v26 }
0x1671   : > { %10657 = vrot.lane.b32.xlu2 %v10656_v53, %s11279_s10 }
0x16cb   : > { %v10658_v55 = vpop.permute.xlu2 %10657 }
0x16cc   : > { %v10660_v63 = vunpack.i.h.bf16 %v10658_v55  ;;  %v10659_v36 = vunpack.i.l.bf16 %v10658_v55 }
0x16ce   : > { %v9081_v22 = vsel %vm2339_vm4, %v9062_v25, %v10660_v63  ;;  %v7034_v8 = vsel %vm2339_vm4, %v7015_v61, %v10659_v36  ;;  %v10681_v25 = vld [vmem:[%s1328_s27] ss:$0 sm:$0xff]  ;;  %s13683_s27 = sld [smem:[#allocation57_spill]] }
0x16d4   : > { %p10011_p8 = scmp.ne.s32.totalorder %s13683_s27, 1 }
0x16e0   : > { %v10663_v12 = vpop.permute.xlu0 %10662  ;;  %v10668_v32 = vpop.permute.xlu1 %10667 }
0x16e1   : > { %v10665_v54 = vunpack.i.h.bf16 %v10663_v12  ;;  %v10664_v15 = vunpack.i.l.bf16 %v10663_v12  ;;  %v10670_v0 = vunpack.i.h.bf16 %v10668_v32  ;;  %v10669_v38 = vunpack.i.l.bf16 %v10668_v32  ;;  %v10049_v12 = vld [vmem:[%s11748_s0 + $0x18] sm:$0xff]  ;;  %v10048_v32 = vld [vmem:[%s11748_s0 + $0x10] sm:$0xff] }
0x16e2   : > { %9260 = vmatpush.bf16.msra.mxu0 %v10049_v12 }
0x16e3   : > { %v7035_v46 = vsel %vm3200_vm5, %v7034_v8, %v10664_v15  ;;  %v9082_v3 = vsel %vm3200_vm5, %v9081_v22, %v10665_v54  ;;  %v10047_v54 = vld [vmem:[%s11748_s0 + $0x8] sm:$0xff]  ;;  %v10046_v15 = vld [vmem:[%s11748_s0] sm:$0xff]  ;;  %vm9252_vm5 = vcmask 523264   ;;  %s13685_s0 = sld [smem:[#allocation53_spill]] (!%p10011_p8) }
0x16e4   : > { %v7036_v6 = vsel %vm3202_vm6, %v7035_v46, %v10669_v38  ;;  %v9083_v7 = vsel %vm3202_vm6, %v9082_v3, %v10670_v0  ;;  %v10682_v38 = vld [vmem:[%s1540_s6] ss:$0 sm:$0xff] }
0x16e5   : > { %v9084_v16 = vpack.c.bf16 %v9083_v7, %v7036_v6 }
0x16e6   : > { %9261 = vmatpush.bf16.msra.mxu0 %v10048_v32 }
0x16e7   : > { %9984 = vmatmul.msk.bf16.vlgmr.msrb.gmra.mxu2 %vm1604_vm1, %v9084_v16  ;;  %v10683_v16 = vld [vmem:[%s1548_s23] ss:$0 sm:$0xff]  ;;  %s13684_s23 = sld [smem:[#allocation52_spill]] (!%p10011_p8) }
0x16ea   : > { %9262 = vmatpush.bf16.msra.mxu0 %v10047_v54 }
0x16ee   : > { %9263 = vmatpush.bf16.msra.mxu0 %v10046_v15 }
0x176a   : > { %v9112_v39 = vpop.f32.mrf.mxu2 }
0x176b   : > { %v9113_v62 = vadd.f32 %v10679_v21, %v9112_v39 }
0x176d   : > { %v9117_v23 = vadd.f32 %v9113_v62, %v12627_v58 }
0x176f   : > { %v9121_v47 = vsel %vm1604_vm1, %v9117_v23, 0.0 }
0x1770   : > { %9122 = vadd.xlane.f32.xlu1 %v9121_v47 }
0x1772   : > { %v9114_v44 = vpop.f32.mrf.mxu2 }
0x1773   : > { %v9115_v40 = vadd.f32 %v10679_v21, %v9114_v44 }
0x1775   : > { %v9118_v49 = vadd.f32 %v9115_v40, %v12629_v59 }
0x1777   : > { %v9124_v35 = vsel %vm1604_vm1, %v9118_v49, 0.0 }
0x1778   : > { %9125 = vadd.xlane.f32.xlu2 %v9124_v35 }
0x17e3   : > { %v9123_v34 = vpop.xlane.xlu1 %9122 }
0x17e4   : > { %v9127_v9 = vmul.f32 %v9123_v34, %v12589_v24 }
0x17e6   : > { %v9129_v4 = vsub.f32 %v9117_v23, %v9127_v9 }
0x17e8   : > { %v9131_v42 = vmul.f32 %v9129_v4, %v9129_v4 }
0x17ea   : > { %v9133_v2 = vsel %vm1604_vm1, %v9131_v42, 0.0 }
0x17eb   : > { %v9126_v58 = vpop.xlane.xlu2 %9125  ;;  %9134 = vadd.xlane.f32.xlu0 %v9133_v2 }
0x17ec   : > { %v9128_v30 = vmul.f32 %v9126_v58, %v12589_v24 }
0x17ee   : > { %v9130_v33 = vsub.f32 %v9118_v49, %v9128_v30 }
0x17f0   : > { %v9132_v17 = vmul.f32 %v9130_v33, %v9130_v33 }
0x17f2   : > { %v9136_v59 = vsel %vm1604_vm1, %v9132_v17, 0.0 }
0x17f3   : > { %9137 = vadd.xlane.f32.xlu1 %v9136_v59 }
0x185e   : > { %v9135_v31 = vpop.xlane.xlu0 %9134 }
0x185f   : > { %v9139_v56 = vmul.f32 %v9135_v31, %v12589_v24 }
0x1861   : > { %v9141_v13 = vadd.f32 1e-05, %v9139_v56 }
0x1863   : > { %10756 = vrsqrt.f32 %v9141_v13  ;;  %vm9149_vm15 = vweird.f32 %v9141_v13 }
0x1866   : > { %v9138_v28 = vpop.xlane.xlu1 %9137 }
0x1867   : > { %v9140_v27 = vmul.f32 %v9138_v28, %v12589_v24 }
0x1869   : > { %v10757_v37 = vpop.eup %10756  ;;  %v9142_v43 = vadd.f32 1e-05, %v9140_v27 }
0x186a   : > { %v9144_v52 = vmul.f32 %v10757_v37, %v9141_v13  ;;  %vm9150_vm14 = vweird.f32 %v10757_v37 }
0x186b   : > { %10758 = vrsqrt.f32 %v9142_v43  ;;  %vm9151_vm0 = vmor %vm9149_vm15, %vm9150_vm14  ;;  %vm9159_vm3 = vweird.f32 %v9142_v43 }
0x186c   : > { %v9145_v29 = vmul.f32 %v10757_v37, %v9144_v52 }
0x186e   : > { %v9146_v48 = vmul.f32 0.5, %v9145_v29 }
0x1870   : > { %v9147_v18 = vsub.f32 1.5, %v9146_v48 }
0x1871   : > { %v10759_v11 = vpop.eup %10758 }
0x1872   : > { %v9148_v1 = vmul.f32 %v10757_v37, %v9147_v18  ;;  %v9154_v60 = vmul.f32 %v10759_v11, %v9142_v43  ;;  %vm9160_vm2 = vweird.f32 %v10759_v11 }
0x1873   : > { %vm9161_vm4 = vmor %vm9159_vm3, %vm9160_vm2 }
0x1874   : > { %v9155_v45 = vmul.f32 %v10759_v11, %v9154_v60  ;;  %v9152_v41 = vsel %vm9151_vm0, %v10757_v37, %v9148_v1 }
0x1875   : > { %v9163_v57 = vmul.f32 %v9152_v41, %v9129_v4 }
0x1876   : > { %v9156_v10 = vmul.f32 0.5, %v9155_v45  ;;  %v10685_v45 = vld [vmem:[%s1337_s26] ss:$0 sm:$0xff] }
0x1877   : > { %v9168_v61 = vmul.f32 %v10680_v51, %v9163_v57 }
0x1878   : > { %v9157_v5 = vsub.f32 1.5, %v9156_v10 }
0x1879   : > { %v9173_v55 = vadd.f32 %v10681_v25, %v9168_v61 }
0x187a   : > { %v9158_v14 = vmul.f32 %v10759_v11, %v9157_v5 }
0x187c   : > { %v9162_v53 = vsel %vm9161_vm4, %v10759_v11, %v9158_v14  ;;  %v10684_v11 = vld [vmem:[%s1557_s24] ss:$0 sm:$0xff] }
0x187d   : > { %v9164_v20 = vmul.f32 %v9162_v53, %v9130_v33 }
0x187f   : > { %v9169_v50 = vmul.f32 %v10680_v51, %v9164_v20 }
0x1881   : > { %v9174_v63 = vadd.f32 %v10681_v25, %v9169_v50 }
0x1883   : > { %v9175_v36 = vpack.c.bf16 %v9174_v63, %v9173_v55 }
0x1885   : > { %9993 = vmatmul.msk.bf16.vlgmr.msrb.gmra.mxu3 %vm1604_vm1, %v9175_v36 }
0x1908   : > { %v9208_v0 = vpop.f32.mrf.mxu3 }
0x1909   : > { %v9209_v22 = vadd.f32 %v10682_v38, %v9208_v0 }
0x190b   : > { %v9213_v3 = vmax.f32 %v9209_v22, 0.0 }
0x1910   : > { %v9210_v8 = vpop.f32.mrf.mxu3 }
0x1911   : > { %v9211_v46 = vadd.f32 %v10682_v38, %v9210_v8 }
0x1913   : > { %v9214_v6 = vmax.f32 %v9211_v46, 0.0 }
0x1915   : > { %v9215_v7 = vpack.c.bf16 %v9214_v6, %v9213_v3 }
0x1917   : > { %10010 = vmatmul.msk.bf16.vlgmr.msra.gmra.mxu0 %vm9252_vm5, %v9215_v7 }
0x1994   : > { %v9265_v21 = vpop.f32.mrf.mxu0 }
0x1995   : > { %v9266_v39 = vadd.f32 %v10683_v16, %v9265_v21 }
0x1997   : > { %v9270_v62 = vadd.f32 %v9266_v39, %v9173_v55 }
0x1999   : > { %v9274_v23 = vsel %vm1604_vm1, %v9270_v62, 0.0 }
0x199a   : > { %9275 = vadd.xlane.f32.xlu2 %v9274_v23 }
0x199c   : > { %v9267_v47 = vpop.f32.mrf.mxu0 }
0x199d   : > { %v9268_v44 = vadd.f32 %v10683_v16, %v9267_v47 }
0x199f   : > { %v9271_v40 = vadd.f32 %v9268_v44, %v9174_v63 }
0x19a1   : > { %v9277_v49 = vsel %vm1604_vm1, %v9271_v40, 0.0 }
0x19a2   : > { %9278 = vadd.xlane.f32.xlu1 %v9277_v49 }
0x1a0d   : > { %v9276_v35 = vpop.xlane.xlu2 %9275 }
0x1a0e   : > { %v9280_v34 = vmul.f32 %v9276_v35, %v12589_v24 }
0x1a10   : > { %v9282_v9 = vsub.f32 %v9270_v62, %v9280_v34 }
0x1a12   : > { %v9284_v4 = vmul.f32 %v9282_v9, %v9282_v9 }
0x1a14   : > { %v9286_v42 = vsel %vm1604_vm1, %v9284_v4, 0.0 }
0x1a15   : > { %v9279_v2 = vpop.xlane.xlu1 %9278  ;;  %9287 = vadd.xlane.f32.xlu2 %v9286_v42 }
0x1a16   : > { %v9281_v58 = vmul.f32 %v9279_v2, %v12589_v24 }
0x1a18   : > { %v9283_v30 = vsub.f32 %v9271_v40, %v9281_v58 }
0x1a1a   : > { %v9285_v33 = vmul.f32 %v9283_v30, %v9283_v30 }
0x1a1c   : > { %v9289_v17 = vsel %vm1604_vm1, %v9285_v33, 0.0 }
0x1a1d   : > { %9290 = vadd.xlane.f32.xlu1 %v9289_v17 }
0x1a88   : > { %v9288_v59 = vpop.xlane.xlu2 %9287 }
0x1a89   : > { %v9292_v31 = vmul.f32 %v9288_v59, %v12589_v24 }
0x1a8b   : > { %v9294_v56 = vadd.f32 1e-05, %v9292_v31 }
0x1a8d   : > { %10760 = vrsqrt.f32 %v9294_v56  ;;  %vm9302_vm7 = vweird.f32 %v9294_v56 }
0x1a90   : > { %v9291_v13 = vpop.xlane.xlu1 %9290 }
0x1a91   : > { %v9293_v19 = vmul.f32 %v9291_v13, %v12589_v24 }
0x1a93   : > { %v10761_v26 = vpop.eup %10760  ;;  %v9295_v28 = vadd.f32 1e-05, %v9293_v19 }
0x1a94   : > { %v9297_v27 = vmul.f32 %v10761_v26, %v9294_v56  ;;  %vm9303_vm6 = vweird.f32 %v10761_v26 }
0x1a95   : > { %10762 = vrsqrt.f32 %v9295_v28  ;;  %vm9304_vm8 = vmor %vm9302_vm7, %vm9303_vm6  ;;  %vm9312_vm10 = vweird.f32 %v9295_v28 }
0x1a96   : > { %v9298_v37 = vmul.f32 %v10761_v26, %v9297_v27 }
0x1a98   : > { %v9299_v43 = vmul.f32 0.5, %v9298_v37 }
0x1a9a   : > { %v9300_v52 = vsub.f32 1.5, %v9299_v43 }
0x1a9b   : > { %v10763_v29 = vpop.eup %10762 }
0x1a9c   : > { %v9301_v48 = vmul.f32 %v10761_v26, %v9300_v52  ;;  %v9307_v18 = vmul.f32 %v10763_v29, %v9295_v28  ;;  %vm9313_vm9 = vweird.f32 %v10763_v29 }
0x1a9d   : > { %vm9314_vm11 = vmor %vm9312_vm10, %vm9313_vm9 }
0x1a9e   : > { %v9305_v1 = vsel %vm9304_vm8, %v10761_v26, %v9301_v48  ;;  %v9308_v60 = vmul.f32 %v10763_v29, %v9307_v18 }
0x1a9f   : > { %v9316_v41 = vmul.f32 %v9305_v1, %v9282_v9 }
0x1aa0   : > { %v9309_v10 = vmul.f32 0.5, %v9308_v60 }
0x1aa1   : > { %v9321_v5 = vmul.f32 %v10684_v11, %v9316_v41 }
0x1aa2   : > { %v9310_v51 = vsub.f32 1.5, %v9309_v10 }
0x1aa3   : > { %v13505_v57 = vadd.f32 %v10685_v45, %v9321_v5 }
0x1aa4   : > { %v9311_v14 = vmul.f32 %v10763_v29, %v9310_v51 }
0x1aa6   : > { %v9315_v53 = vsel %vm9314_vm11, %v10763_v29, %v9311_v14 }
0x1aa7   : > { %v9317_v25 = vmul.f32 %v9315_v53, %v9283_v30  ;;  %9331 = sbr.rel (%p10011_p8) target bundleno = 7105 (0x1bc1), region = 196 }
0x1aa9   : > { %v9322_v61 = vmul.f32 %v10684_v11, %v9317_v25 }
0x1aab   : > { %v9327_v20 = vadd.f32 %v10685_v45, %v9322_v61 }
0x1aac   : > { %v9334_v50 = vsel %vm1604_vm1, %v13505_v57, 0.0  ;;  %v10771_v34 = vld [vmem:[%s13684_s23] ss:$0 sm:$0xff] }
0x1aad   : > { %9335 = vadd.xlane.f32.xlu0 %v9334_v50  ;;  %v9337_v55 = vsel %vm1604_vm1, %v9327_v20, 0.0  ;;  %v10772_v2 = vld [vmem:[%s13685_s0] ss:$0 sm:$0xff] }
0x1ab5   : > { %9338 = vadd.xlane.f32.xlu0 %v9337_v55 }
0x1b20   : > { %v9336_v63 = vpop.xlane.xlu0 %9335 }
0x1b21   : > { %v9340_v36 = vmul.f32 %v9336_v63, %v12589_v24 }
0x1b23   : > { %v9342_v12 = vsub.f32 %v13505_v57, %v9340_v36 }
0x1b25   : > { %v9344_v32 = vmul.f32 %v9342_v12, %v9342_v12 }
0x1b27   : > { %v9346_v54 = vsel %vm1604_vm1, %v9344_v32, 0.0 }
0x1b28   : > { %9347 = vadd.xlane.f32.xlu1 %v9346_v54  ;;  %v9339_v15 = vpop.xlane.xlu0 %9338 }
0x1b29   : > { %v9341_v0 = vmul.f32 %v9339_v15, %v12589_v24 }
0x1b2b   : > { %v9343_v38 = vsub.f32 %v9327_v20, %v9341_v0 }
0x1b2d   : > { %v9345_v22 = vmul.f32 %v9343_v38, %v9343_v38 }
0x1b2f   : > { %v9349_v8 = vsel %vm1604_vm1, %v9345_v22, 0.0 }
0x1b30   : > { %9350 = vadd.xlane.f32.xlu1 %v9349_v8 }
0x1b9b   : > { %v9348_v46 = vpop.xlane.xlu1 %9347 }
0x1b9c   : > { %v9352_v3 = vmul.f32 %v9348_v46, %v12589_v24 }
0x1b9e   : > { %v9354_v6 = vadd.f32 1e-05, %v9352_v3 }
0x1ba0   : > { %10773 = vrsqrt.f32 %v9354_v6  ;;  %vm9362_vm13 = vweird.f32 %v9354_v6 }
0x1ba3   : > { %v9351_v7 = vpop.xlane.xlu1 %9350 }
0x1ba4   : > { %v9353_v16 = vmul.f32 %v9351_v7, %v12589_v24 }
0x1ba6   : > { %v10774_v21 = vpop.eup %10773  ;;  %v9355_v39 = vadd.f32 1e-05, %v9353_v16 }
0x1ba7   : > { %v9357_v62 = vmul.f32 %v10774_v21, %v9354_v6  ;;  %vm9363_vm12 = vweird.f32 %v10774_v21 }
0x1ba8   : > { %10775 = vrsqrt.f32 %v9355_v39  ;;  %vm9364_vm14 = vmor %vm9362_vm13, %vm9363_vm12  ;;  %vm9372_vm0 = vweird.f32 %v9355_v39 }
0x1ba9   : > { %v9358_v23 = vmul.f32 %v10774_v21, %v9357_v62 }
0x1bab   : > { %v9359_v47 = vmul.f32 0.5, %v9358_v23 }
0x1bad   : > { %v9360_v44 = vsub.f32 1.5, %v9359_v47 }
0x1bae   : > { %v10776_v40 = vpop.eup %10775 }
0x1baf   : > { %v9361_v49 = vmul.f32 %v10774_v21, %v9360_v44  ;;  %v9367_v35 = vmul.f32 %v10776_v40, %v9355_v39  ;;  %vm9373_vm15 = vweird.f32 %v10776_v40 }
0x1bb0   : > { %vm9374_vm2 = vmor %vm9372_vm0, %vm9373_vm15 }
0x1bb1   : > { %v9365_v9 = vsel %vm9364_vm14, %v10774_v21, %v9361_v49  ;;  %v9368_v4 = vmul.f32 %v10776_v40, %v9367_v35 }
0x1bb2   : > { %v9376_v42 = vmul.f32 %v9365_v9, %v9342_v12 }
0x1bb3   : > { %v9369_v24 = vmul.f32 0.5, %v9368_v4 }
0x1bb4   : > { %v9381_v58 = vmul.f32 %v10771_v34, %v9376_v42 }
0x1bb5   : > { %v9370_v30 = vsub.f32 1.5, %v9369_v24 }
0x1bb6   : > { %v9386_v33 = vadd.f32 %v10772_v2, %v9381_v58 }
0x1bb7   : > { %v9371_v17 = vmul.f32 %v10776_v40, %v9370_v30 }
0x1bb8   : > { %9388 = vst.msk [vmem:[#allocation18] sm:$0xff] %vm1604_vm1, %v9386_v33 }
0x1bb9   : > { %v9375_v59 = vsel %vm9374_vm2, %v10776_v40, %v9371_v17 }
0x1bba   : > { %v9377_v31 = vmul.f32 %v9375_v59, %v9343_v38 }
0x1bbc   : > { %v9382_v56 = vmul.f32 %v10771_v34, %v9377_v31 }
0x1bbe   : > { %v9387_v13 = vadd.f32 %v10772_v2, %v9382_v56 }
0x1bc0   : > { %9389 = vst.msk [vmem:[#allocation18 + $0x8] sm:$0xff] %vm1604_vm1, %v9387_v13 }
0x1bc1 PF: > { %s13686_s3 = sld [smem:[#allocation57_spill]] }
0x1bc7   : > { %p10012_p10 = scmp.ge.s32.totalorder %s13686_s3, 1 }
0x1bc9   : > { %9393 = sbr.rel (%p10012_p10) target bundleno = 7120 (0x1bd0), region = 200 }
0x1bce   : > { %9394 = vst.msk [vmem:[#allocation18] sm:$0xff] %vm1604_vm1, %v13505_v57 }
0x1bcf   : > { %9395 = vst.msk [vmem:[#allocation18 + $0x8] sm:$0xff] %vm1604_vm1, %v9327_v20 }
0x1bd0 PF: > { %s13687_s14 = sld [smem:[#allocation60_spill]]  ;;  %s11281_s19 = smov [#allocation18]  }
0x1bd1   : > { %s13688_s15 = sld [smem:[#allocation54_spill]]  ;;  %s9404_s26 = sshll.u32 %s11281_s19, 4  ;;  %s9405_s26 = int_to_ptr.vmem [resolvable:$true] %s9404_s26 }
0x1bd6   : > { %p10133_p12 = scmp.eq.s32.totalorder %s13687_s14, 1 }
0x1bd7   : > { %s13689_s7 = smov %s13688_s15  ;;  %s9406_s24 = sshll.u32 %s13688_s15, 4  ;;  %s9407_s24 = int_to_ptr.hbm [resolvable:$true] %s9406_s24 }
0x1bd8   : > { %s11151_s9 = sshra.s32 %s9407_s24, 4  ;;  %s11157_s21 = scalar_lea.hbm %s13689_s7, 16  ;;  %s11152_s9 = int_to_ptr.hbm [resolvable:$true] %s11151_s9 }
0x1bd9   : > { %s11153_s12 = scalar_lea.hbm %s11152_s9, 16  ;;  %p11158_p4 = scmp.lt.s32.totalorder %s11152_s9, %s13689_s7 }
0x1bda   : > { %p11154_p11 = scmp.ne.s32.totalorder %s11152_s9, %s11153_s12  ;;  %p11159_p2 = scmp.lt.s32.totalorder %s11157_s21, %s11153_s12 }
0x1bdc   : > { %p11155_p1 = pnand %p11154_p11, %p10133_p12  ;;  %p11160_p5 = por %p11159_p2, %p11158_p4 }
0x1bde   : > { %p11156_p13 = pneg %p11155_p1 }
0x1be0   : > { %p11161_p7 = pnand %p11160_p5, %p11156_p13 }
0x1be2   : > { %11164 = shalt.err (!%p11161_p7)
}
0x1be3   : > { %s11282_s11 = smov 128  }
0x1be4   : > { %10083 = dma.vmem_to_hbm [thread:$0]  (%p10133_p12), %s9405_s26, 256, %s9407_s24, [#allocation4], %s11282_s11, %s11282_s11, %s11279_s10  }
0x1be5   : > { %11206 = dma.done.wait (%p10133_p12), [#allocation4], 256  }
0x1be6   : > { %11208 = vsyncadd (%p10133_p12), [#allocation4], 4294967040 }
0x1be7 PF: > { %s13690_s22 = sld [smem:[#allocation59_spill]] }
0x1be8   : > { %s13691_s15 = sld [smem:[#allocation55_spill]] }
0x1be9   : > { %s13692_s16 = sld [smem:[#allocation56_spill]] }
0x1bea   : > { %s13693_s18 = sld [smem:[#allocation63_spill]] }
0x1beb   : > { %s13695_s23 = sld [smem:[#allocation62_spill]] }
0x1bed   : > { %s75_s26 = sadd.s32 1, %s13690_s22   ;;  %s13694_s22 = sld [smem:[#allocation58_spill]] }
0x1bee   : > { %p72_p9 = scmp.ge.s32.totalorder %s75_s26, 4  }
0x1bf0   :  { %74 = sbr.rel (!%p72_p9) target bundleno = 74 (0x4a), region = 364 }
0x1bf5   :  { %9423 = vsyncpa [#allocation3], 1 }
0x1bf6   :  { %9425 = vsyncpa [#allocation3 + $0x1], 1 }
0x1bf7   :  { %9426 = vsyncpa [#allocation6], 1 }
0x1bf8   :  { %9427 = vsyncpa [#allocation9], 1 }
0x1bf9   :  { %9428 = vsyncpa [#allocation4], 1 }
0x1bfa   :  { %9430 = vsyncpa [#allocation4 + $0x1], 1 }

</bundles_post_ra>
